<compile_context>
chip_gen: v6e
topology: v6e:2x2x1
jax: 0.10.0
libtpu: 0.0.40
codegen_flags: <defaults>
</compile_context>

<pallas_src>
import random

import jax
import jax.numpy as jnp
from jax.experimental import pallas as pl
from jax.experimental.pallas import tpu as pltpu

# ---- model dimensions (small, consistent with the module's forward) ----------
SRC_VOCAB = 32
TRG_VOCAB = 32
ENC_EMB = 16
DEC_EMB = 16
ENC_HID = 32           # H (per direction)
DEC_HID = 32           # DH
ATTN_DIM = 32          # A
SRC_LEN = 10           # S
TRG_LEN = 8            # T
BATCH = 16             # total batch (raised so matmul/vector rows are sublane-dense)
BB = 8                 # batch rows per grid program (== f32 sublane count)
NB = BATCH // BB       # parallel grid size (2nd TensorCore on v7x / megacore)
OUT_PAD = 128          # lane-dense padded logits width (sliced back outside)

assert BATCH % BB == 0

_VMEM = pl.BlockSpec(memory_space=pltpu.MemorySpace.VMEM)


# =============================== fused Pallas kernel ==========================

def _seq2seq_kernel(
        # scalar prefetch (SMEM)
        tf_ref,                       # (T,) int32 teacher-forcing coins
        # activations
        srcp_ref,                     # (S*BB, 2E)  rows time-major: [x(t) | x(S-1-t)]
        trg_emb_ref,                  # (T, BB, DEC_EMB)
        pe_dec_ref,                   # (T, DEC_EMB)
        dec_emb_ref,                  # (V, DEC_EMB)
        # encoder params (fused fwd/bwd, gate-interleaved columns)
        enc_wih_ref, enc_bih_ref,     # (2E, 6H), (1, 6H)
        enc_whh_ref, enc_bhh_ref,     # (2H, 6H) block-diagonal, (1, 6H)
        enc_fc_w_ref, enc_fc_b_ref,   # (2H, DH), (1, DH)
        # attention params (unsplit 2H)
        attn_wh_ref, attn_we_ref, attn_b_ref, attn_v_ref,   # (DH,A),(2H,A),(1,A),(1,A)
        # decoder params (ctx weights unsplit)
        dec_wih_e_ref, dec_wih_c_ref,                       # (E,3DH),(2H,3DH)
        dec_whh_ref, dec_bih_ref, dec_bhh_ref,              # (DH,3DH),(1,3DH),(1,3DH)
        fc_wh_ref, fc_wc_ref, fc_we_ref, fc_b_ref,          # (DH|2H|E|1, OUT_PAD)
        # output
        out_ref,                      # (T*BB, OUT_PAD)
        # scratch
        enc_ref,                      # (S*BB, 2H) encoder outputs [fwd|bwd], time-major
        inp_ref):                     # (BB, DEC_EMB) next decoder input embedding
    f32 = jnp.float32
    H, DH = ENC_HID, DEC_HID
    H2, H4 = 2 * H, 4 * H

    # ---------------- encoder: fused bidirectional GRU ------------------------
    # h-independent input projections for BOTH directions & ALL timesteps:
    # one matmul, result kept register-resident (no scratch round-trip).
    gi_all = (jnp.dot(srcp_ref[...], enc_wih_ref[...], preferred_element_type=f32)
              + enc_bih_ref[...])                                   # (S*BB, 6H)
    whh = enc_whh_ref[...]                                          # (2H, 6H)
    bhh = enc_bhh_ref[...]

    h = jnp.zeros((BB, H2), f32)                                    # [h_fwd | h_bwd]
    for t in range(SRC_LEN):
        gi = gi_all[t * BB:(t + 1) * BB, :]                         # fwd@t | bwd@(S-1-t)
        gh = jnp.dot(h, whh, preferred_element_type=f32) + bhh      # (BB, 6H)
        rz = jax.nn.sigmoid(gi[:, :H4] + gh[:, :H4])                # [r_f r_b | z_f z_b]
        r, z = rz[:, :H2], rz[:, H2:H4]
        n = jnp.tanh(gi[:, H4:] + r * gh[:, H4:])                   # [n_f | n_b]
        h = (1.0 - z) * n + z * h
        # time-major 2D encoder-output scratch (no 3D batch-first slab stores)
        enc_ref[t * BB:(t + 1) * BB, 0:H] = h[:, 0:H]                       # fwd @ t
        enc_ref[(SRC_LEN - 1 - t) * BB:(SRC_LEN - t) * BB, H:H2] = h[:, H:H2]  # bwd @ S-1-t

    # hidden = tanh(fc([h_fwd_final ; h_bwd_final])) -- unsplit (2H, DH) weight
    hidden = jnp.tanh(jnp.dot(h, enc_fc_w_ref[...], preferred_element_type=f32)
                      + enc_fc_b_ref[...])                          # (BB, DH)

    # ---------------- attention precompute (hoisted, single flat matmul) ------
    enc = enc_ref[...]                                              # (S*BB, 2H)
    e_proj = (jnp.dot(enc, attn_we_ref[...], preferred_element_type=f32)
              + attn_b_ref[...])                                    # (S*BB, A)
    attn_wh = attn_wh_ref[...]
    v_row = attn_v_ref[...]                                         # (1, A)

    # recurrence-critical decoder weights hoisted; fc/dec_emb re-read in loop.
    wih_e = dec_wih_e_ref[...]
    wih_c = dec_wih_c_ref[...]
    dwhh = dec_whh_ref[...]
    dbih = dec_bih_ref[...]
    dbhh = dec_bhh_ref[...]

    # ---------------- decoder (fully unrolled) ---------------------------------
    out_ref[0:BB, :] = jnp.zeros((BB, OUT_PAD), f32)                # outputs[0] stays 0
    inp_ref[...] = trg_emb_ref[0]                                   # embedding of trg[0]

    for t in range(1, TRG_LEN):
        emb = inp_ref[...] + pe_dec_ref[t:t + 1, :]                 # (BB, DEC_EMB)

        # --- Bahdanau attention: VPU multiply + lane reduce per source step (no MXU)
        h_proj = jnp.dot(hidden, attn_wh, preferred_element_type=f32)   # (BB, A)
        sc = [jnp.sum(jnp.tanh(e_proj[s * BB:(s + 1) * BB, :] + h_proj) * v_row,
                      axis=-1, keepdims=True) for s in range(SRC_LEN)]  # S x (BB,1)
        m = sc[0]
        for s in range(1, SRC_LEN):
            m = jnp.maximum(m, sc[s])
        es = [jnp.exp(x - m) for x in sc]
        den = es[0]
        for s in range(1, SRC_LEN):
            den = den + es[s]
        ctxw = es[0] * enc[0:BB, :]
        for s in range(1, SRC_LEN):
            ctxw = ctxw + es[s] * enc[s * BB:(s + 1) * BB, :]
        ctx = ctxw * pl.reciprocal(den, approx=True)                # (BB, 2H)

        # --- decoder GRU cell: split-weight input projection, ctx unsplit
        gi = (jnp.dot(emb, wih_e, preferred_element_type=f32)
              + jnp.dot(ctx, wih_c, preferred_element_type=f32) + dbih)
        gh = jnp.dot(hidden, dwhh, preferred_element_type=f32) + dbhh
        rz = jax.nn.sigmoid(gi[:, :2 * DH] + gh[:, :2 * DH])
        r, z = rz[:, :DH], rz[:, DH:2 * DH]
        n = jnp.tanh(gi[:, 2 * DH:] + r * gh[:, 2 * DH:])
        hidden = (1.0 - z) * n + z * hidden

        # --- fc_out([h ; ctx ; emb]) -> lane-padded logits; full-vreg (8,128) store
        logits = (jnp.dot(hidden, fc_wh_ref[...], preferred_element_type=f32)
                  + jnp.dot(ctx, fc_wc_ref[...], preferred_element_type=f32)
                  + jnp.dot(emb, fc_we_ref[...], preferred_element_type=f32)
                  + fc_b_ref[...])                                  # (BB, OUT_PAD)
        out_ref[t * BB:(t + 1) * BB, :] = logits

        if t < TRG_LEN - 1:
            tf_t = tf_ref[t]

            @pl.when(tf_t == 1)
            def _():
                inp_ref[...] = trg_emb_ref[t]                       # teacher forcing

            @pl.when(tf_t == 0)
            def _():
                # greedy token = first argmax -> one-hot -> embedding matmul
                real = logits[:, :TRG_VOCAB]
                col = jax.lax.broadcasted_iota(jnp.int32, (BB, TRG_VOCAB), 1)
                mx = jnp.max(real, axis=-1, keepdims=True)
                first = jnp.min(jnp.where(real >= mx, col, TRG_VOCAB),
                                axis=-1, keepdims=True)
                onehot = (col == first).astype(f32)
                inp_ref[...] = jnp.dot(onehot, dec_emb_ref[...],
                                       preferred_element_type=f32)


# ================================ host-side glue ==============================

def positional_encoding(length, d_model):
    pos = jnp.arange(length, dtype=jnp.float32)[:, None]
    i = jnp.arange(d_model)[None, :]
    angle_rates = 1.0 / jnp.power(10000.0, (2 * (i // 2)).astype(jnp.float32) / d_model)
    angles = pos * angle_rates
    return jnp.where(i % 2 == 0, jnp.sin(angles), jnp.cos(angles)).astype(jnp.float32)


def init_params(key):
    def normal(k, shape, scale=0.1):
        return (scale * jax.random.normal(k, shape)).astype(jnp.float32)

    ks = jax.random.split(key, 16)
    p = {}
    p['enc_emb'] = normal(ks[0], (SRC_VOCAB, ENC_EMB))
    p['enc_f_wih'] = normal(ks[1], (ENC_EMB, 3 * ENC_HID))
    p['enc_f_whh'] = normal(ks[2], (ENC_HID, 3 * ENC_HID))
    p['enc_f_bih'] = jnp.zeros((1, 3 * ENC_HID), jnp.float32)
    p['enc_f_bhh'] = jnp.zeros((1, 3 * ENC_HID), jnp.float32)
    p['enc_b_wih'] = normal(ks[3], (ENC_EMB, 3 * ENC_HID))
    p['enc_b_whh'] = normal(ks[4], (ENC_HID, 3 * ENC_HID))
    p['enc_b_bih'] = jnp.zeros((1, 3 * ENC_HID), jnp.float32)
    p['enc_b_bhh'] = jnp.zeros((1, 3 * ENC_HID), jnp.float32)
    p['enc_fc_w'] = normal(ks[5], (2 * ENC_HID, DEC_HID))
    p['enc_fc_b'] = jnp.zeros((1, DEC_HID), jnp.float32)
    p['attn_wh'] = normal(ks[6], (DEC_HID, ATTN_DIM))
    p['attn_we'] = normal(ks[7], (2 * ENC_HID, ATTN_DIM))
    p['attn_b'] = jnp.zeros((1, ATTN_DIM), jnp.float32)
    p['attn_v'] = normal(ks[8], (ATTN_DIM, 1))
    p['dec_emb'] = normal(ks[9], (TRG_VOCAB, DEC_EMB))
    p['dec_wih'] = normal(ks[10], (DEC_EMB + 2 * ENC_HID, 3 * DEC_HID))
    p['dec_whh'] = normal(ks[11], (DEC_HID, 3 * DEC_HID))
    p['dec_bih'] = jnp.zeros((1, 3 * DEC_HID), jnp.float32)
    p['dec_bhh'] = jnp.zeros((1, 3 * DEC_HID), jnp.float32)
    p['fc_out_w'] = normal(ks[12], (DEC_HID + 2 * ENC_HID + DEC_EMB, TRG_VOCAB))
    p['fc_out_b'] = jnp.zeros((1, TRG_VOCAB), jnp.float32)
    return p


def prepare_kernel_params(p):
    """Pre-fuse / pre-split / lane-pad weights once so the kernel never concats."""
    H = ENC_HID

    def gate_cols(cf, cb):
        # fused gate-column layout: [r_f r_b | z_f z_b | n_f n_b]
        return jnp.concatenate([cf[:, 0:H], cb[:, 0:H],
                                cf[:, H:2 * H], cb[:, H:2 * H],
                                cf[:, 2 * H:3 * H], cb[:, 2 * H:3 * H]], axis=1)

    zi = jnp.zeros_like(p['enc_f_wih'])
    zh = jnp.zeros_like(p['enc_f_whh'])
    enc_wih = jnp.concatenate([gate_cols(p['enc_f_wih'], zi),
                               gate_cols(zi, p['enc_b_wih'])], axis=0)    # (2E, 6H)
    enc_whh = jnp.concatenate([gate_cols(p['enc_f_whh'], zh),
                               gate_cols(zh, p['enc_b_whh'])], axis=0)    # (2H, 6H) block-diag
    enc_bih = gate_cols(p['enc_f_bih'], p['enc_b_bih'])                    # (1, 6H)
    enc_bhh = gate_cols(p['enc_f_bhh'], p['enc_b_bhh'])                    # (1, 6H)

    pad = OUT_PAD - TRG_VOCAB
    pad_cols = lambda w: jnp.pad(w, ((0, 0), (0, pad)))

    return {
        'enc_emb': p['enc_emb'], 'dec_emb': p['dec_emb'],
        'enc_wih': enc_wih, 'enc_bih': enc_bih,
        'enc_whh': enc_whh, 'enc_bhh': enc_bhh,
        'enc_fc_w': p['enc_fc_w'], 'enc_fc_b': p['enc_fc_b'],
        'attn_wh': p['attn_wh'], 'attn_we': p['attn_we'],
        'attn_b': p['attn_b'], 'attn_v': p['attn_v'].T,                    # (1, A)
        'dec_wih_e': p['dec_wih'][:DEC_EMB],
        'dec_wih_c': p['dec_wih'][DEC_EMB:],
        'dec_whh': p['dec_whh'], 'dec_bih': p['dec_bih'], 'dec_bhh': p['dec_bhh'],
        'fc_wh': pad_cols(p['fc_out_w'][:DEC_HID]),
        'fc_wc': pad_cols(p['fc_out_w'][DEC_HID:DEC_HID + 2 * H]),
        'fc_we': pad_cols(p['fc_out_w'][DEC_HID + 2 * H:]),
        'fc_b': pad_cols(p['fc_out_b']),
    }


@jax.jit
def _seq2seq_forward_jit(kp, src, trg, tf_mask):
    S, T, B = SRC_LEN, TRG_LEN, BATCH
    pe_src = positional_encoding(S, ENC_EMB)
    pe_dec = positional_encoding(T, DEC_EMB)

    # src embedding + PE; paired rows [x(t) | x(S-1-t)] feed the fused fwd/bwd encoder.
    x = jnp.take(kp['enc_emb'], src, axis=0) + pe_src[:, None, :]          # (S, B, E)
    x_pair = jnp.concatenate([x, x[::-1]], axis=-1)                        # (S, B, 2E)
    x_pair = (x_pair.reshape(S, NB, BB, 2 * ENC_EMB)
              .transpose(1, 0, 2, 3).reshape(NB, S * BB, 2 * ENC_EMB))

    trg_emb = jnp.take(kp['dec_emb'], trg, axis=0)                         # (T, B, E)
    trg_emb = trg_emb.reshape(T, NB, BB, DEC_EMB).transpose(1, 0, 2, 3)    # (NB, T, BB, E)

    grid_spec = pltpu.PrefetchScalarGridSpec(
        num_scalar_prefetch=1,
        grid=(NB,),
        in_specs=[
            pl.BlockSpec((None, S * BB, 2 * ENC_EMB), lambda i, tf: (i, 0, 0)),
            pl.BlockSpec((None, T, BB, DEC_EMB), lambda i, tf: (i, 0, 0, 0)),
            _VMEM,                      # pe_dec
            _VMEM,                      # dec_emb
            _VMEM, _VMEM, _VMEM, _VMEM,  # enc_wih, enc_bih, enc_whh, enc_bhh
            _VMEM, _VMEM,               # enc_fc_w, enc_fc_b
            _VMEM, _VMEM, _VMEM, _VMEM,  # attn_wh, attn_we, attn_b, attn_v
            _VMEM, _VMEM, _VMEM, _VMEM, _VMEM,  # dec_wih_e, dec_wih_c, dec_whh, dec_bih, dec_bhh
            _VMEM, _VMEM, _VMEM, _VMEM,  # fc_wh, fc_wc, fc_we, fc_b
        ],
        out_specs=pl.BlockSpec((None, T * BB, OUT_PAD), lambda i, tf: (i, 0, 0)),
        scratch_shapes=[
            pltpu.VMEM((S * BB, 2 * ENC_HID), jnp.float32),   # encoder outputs (time-major)
            pltpu.VMEM((BB, DEC_EMB), jnp.float32),           # next decoder input embedding
        ],
    )

    out = pl.pallas_call(
        _seq2seq_kernel,
        out_shape=jax.ShapeDtypeStruct((NB, T * BB, OUT_PAD), jnp.float32),
        grid_spec=grid_spec,
        compiler_params=pltpu.CompilerParams(dimension_semantics=("parallel",)),
    )(tf_mask, x_pair, trg_emb, pe_dec,
      kp['dec_emb'],
      kp['enc_wih'], kp['enc_bih'], kp['enc_whh'], kp['enc_bhh'],
      kp['enc_fc_w'], kp['enc_fc_b'],
      kp['attn_wh'], kp['attn_we'], kp['attn_b'], kp['attn_v'],
      kp['dec_wih_e'], kp['dec_wih_c'], kp['dec_whh'], kp['dec_bih'], kp['dec_bhh'],
      kp['fc_wh'], kp['fc_wc'], kp['fc_we'], kp['fc_b'])

    out = (out.reshape(NB, T, BB, OUT_PAD).transpose(1, 0, 2, 3)
           .reshape(T, B, OUT_PAD))
    return out[:, :, :TRG_VOCAB]


def seq2seq_forward(kparams, src, trg, teacher_forcing_ratio=0.5, seed=0):
    """Mirrors Seq2Seq.forward: time-major src/trg, per-step teacher forcing."""
    trg_len = trg.shape[0]
    rng = random.Random(seed)                      # deterministic host-side coins
    coins = [0] * trg_len
    for t in range(1, trg_len):
        coins[t] = 1 if rng.random() < teacher_forcing_ratio else 0
    tf_mask = jnp.asarray(coins, dtype=jnp.int32)
    return _seq2seq_forward_jit(kparams, src, trg, tf_mask)


# ==================================== main ====================================

if __name__ == "__main__":
    key = jax.random.PRNGKey(0)
    pkey, skey, tkey = jax.random.split(key, 3)
    params = init_params(pkey)
    kparams = prepare_kernel_params(params)
    src = jax.random.randint(skey, (SRC_LEN, BATCH), 0, SRC_VOCAB, dtype=jnp.int32)
    trg = jax.random.randint(tkey, (TRG_LEN, BATCH), 0, TRG_VOCAB, dtype=jnp.int32)

    out = seq2seq_forward(kparams, src, trg, teacher_forcing_ratio=0.5, seed=0)
    out = jax.block_until_ready(out)
    assert out.shape == (TRG_LEN, BATCH, TRG_VOCAB)
    assert bool(jnp.all(jnp.isfinite(out)))
    print("KERNEL_OK")
</pallas_src>

<mosaic_0001>
module attributes {stable_mosaic.version = 11 : i64} {
  func.func @_seq2seq_kernel(%arg0: i32, %arg1: memref<8xi32, #tpu.memory_space<smem>>, %arg2: memref<1x80x32xf32, #tpu.memory_space<vmem>>, %arg3: memref<1x8x8x16xf32, #tpu.memory_space<vmem>>, %arg4: memref<8x16xf32, #tpu.memory_space<vmem>>, %arg5: memref<32x16xf32, #tpu.memory_space<vmem>>, %arg6: memref<32x192xf32, #tpu.memory_space<vmem>>, %arg7: memref<1x192xf32, #tpu.memory_space<vmem>>, %arg8: memref<64x192xf32, #tpu.memory_space<vmem>>, %arg9: memref<1x192xf32, #tpu.memory_space<vmem>>, %arg10: memref<64x32xf32, #tpu.memory_space<vmem>>, %arg11: memref<1x32xf32, #tpu.memory_space<vmem>>, %arg12: memref<32x32xf32, #tpu.memory_space<vmem>>, %arg13: memref<64x32xf32, #tpu.memory_space<vmem>>, %arg14: memref<1x32xf32, #tpu.memory_space<vmem>>, %arg15: memref<1x32xf32, #tpu.memory_space<vmem>>, %arg16: memref<16x96xf32, #tpu.memory_space<vmem>>, %arg17: memref<64x96xf32, #tpu.memory_space<vmem>>, %arg18: memref<32x96xf32, #tpu.memory_space<vmem>>, %arg19: memref<1x96xf32, #tpu.memory_space<vmem>>, %arg20: memref<1x96xf32, #tpu.memory_space<vmem>>, %arg21: memref<32x128xf32, #tpu.memory_space<vmem>>, %arg22: memref<64x128xf32, #tpu.memory_space<vmem>>, %arg23: memref<16x128xf32, #tpu.memory_space<vmem>>, %arg24: memref<1x128xf32, #tpu.memory_space<vmem>>, %arg25: memref<1x64x128xf32, #tpu.memory_space<vmem>>, %arg26: memref<80x64xf32, #tpu.memory_space<vmem>>, %arg27: memref<8x16xf32, #tpu.memory_space<vmem>>) attributes {dimension_semantics = [#tpu.dimension_semantics<parallel>], iteration_bounds = array<i64: 2>, scalar_prefetch = 1 : i64, scratch_operands = 2 : i64, tpu.core_type = #tpu.core_type<tc>, window_params = [{transform_indices = @transform_0, window_bounds = array<i64: 1, 80, 32>}, {transform_indices = @transform_1, window_bounds = array<i64: 1, 8, 8, 16>}, {pipeline_mode = #tpu.pipeline_mode<synchronous>, transform_indices = @transform_2, window_bounds = array<i64: 8, 16>}, {pipeline_mode = #tpu.pipeline_mode<synchronous>, transform_indices = @transform_3, window_bounds = array<i64: 32, 16>}, {pipeline_mode = #tpu.pipeline_mode<synchronous>, transform_indices = @transform_4, window_bounds = array<i64: 32, 192>}, {pipeline_mode = #tpu.pipeline_mode<synchronous>, transform_indices = @transform_5, window_bounds = array<i64: 1, 192>}, {pipeline_mode = #tpu.pipeline_mode<synchronous>, transform_indices = @transform_6, window_bounds = array<i64: 64, 192>}, {pipeline_mode = #tpu.pipeline_mode<synchronous>, transform_indices = @transform_7, window_bounds = array<i64: 1, 192>}, {pipeline_mode = #tpu.pipeline_mode<synchronous>, transform_indices = @transform_8, window_bounds = array<i64: 64, 32>}, {pipeline_mode = #tpu.pipeline_mode<synchronous>, transform_indices = @transform_9, window_bounds = array<i64: 1, 32>}, {pipeline_mode = #tpu.pipeline_mode<synchronous>, transform_indices = @transform_10, window_bounds = array<i64: 32, 32>}, {pipeline_mode = #tpu.pipeline_mode<synchronous>, transform_indices = @transform_11, window_bounds = array<i64: 64, 32>}, {pipeline_mode = #tpu.pipeline_mode<synchronous>, transform_indices = @transform_12, window_bounds = array<i64: 1, 32>}, {pipeline_mode = #tpu.pipeline_mode<synchronous>, transform_indices = @transform_13, window_bounds = array<i64: 1, 32>}, {pipeline_mode = #tpu.pipeline_mode<synchronous>, transform_indices = @transform_14, window_bounds = array<i64: 16, 96>}, {pipeline_mode = #tpu.pipeline_mode<synchronous>, transform_indices = @transform_15, window_bounds = array<i64: 64, 96>}, {pipeline_mode = #tpu.pipeline_mode<synchronous>, transform_indices = @transform_16, window_bounds = array<i64: 32, 96>}, {pipeline_mode = #tpu.pipeline_mode<synchronous>, transform_indices = @transform_17, window_bounds = array<i64: 1, 96>}, {pipeline_mode = #tpu.pipeline_mode<synchronous>, transform_indices = @transform_18, window_bounds = array<i64: 1, 96>}, {pipeline_mode = #tpu.pipeline_mode<synchronous>, transform_indices = @transform_19, window_bounds = array<i64: 32, 128>}, {pipeline_mode = #tpu.pipeline_mode<synchronous>, transform_indices = @transform_20, window_bounds = array<i64: 64, 128>}, {pipeline_mode = #tpu.pipeline_mode<synchronous>, transform_indices = @transform_21, window_bounds = array<i64: 16, 128>}, {pipeline_mode = #tpu.pipeline_mode<synchronous>, transform_indices = @transform_22, window_bounds = array<i64: 1, 128>}, {transform_indices = @transform_23, window_bounds = array<i64: 1, 64, 128>}]} {
    %c0 = arith.constant 0 : index
    %c0_0 = arith.constant 0 : index
    %c0_1 = arith.constant 0 : index
    %0 = vector.load %arg2[%c0, %c0_0, %c0_1] : memref<1x80x32xf32, #tpu.memory_space<vmem>>, vector<1x80x32xf32>
    %1 = vector.shape_cast %0 : vector<1x80x32xf32> to vector<80x32xf32>
    %c0_2 = arith.constant 0 : index
    %c0_3 = arith.constant 0 : index
    %2 = vector.load %arg6[%c0_2, %c0_3] : memref<32x192xf32, #tpu.memory_space<vmem>>, vector<32x192xf32>
    %cst = arith.constant dense<0.000000e+00> : vector<80x192xf32>
    %3 = tpu.matmul %1, %2, %cst {dimension_numbers = #tpu.dot_dimension_numbers<[1], [0], [0], [1], [0, 0, 1, 1], [], []>} : vector<80x32xf32>, vector<32x192xf32>, vector<80x192xf32> -> vector<80x192xf32>
    %c0_4 = arith.constant 0 : index
    %c0_5 = arith.constant 0 : index
    %4 = vector.load %arg7[%c0_4, %c0_5] : memref<1x192xf32, #tpu.memory_space<vmem>>, vector<1x192xf32>
    %5 = vector.broadcast %4 : vector<1x192xf32> to vector<80x192xf32>
    %6 = arith.addf %3, %5 : vector<80x192xf32>
    %c0_6 = arith.constant 0 : index
    %c0_7 = arith.constant 0 : index
    %7 = vector.load %arg8[%c0_6, %c0_7] : memref<64x192xf32, #tpu.memory_space<vmem>>, vector<64x192xf32>
    %c0_8 = arith.constant 0 : index
    %c0_9 = arith.constant 0 : index
    %8 = vector.load %arg9[%c0_8, %c0_9] : memref<1x192xf32, #tpu.memory_space<vmem>>, vector<1x192xf32>
    %cst_10 = arith.constant 0.000000e+00 : f32
    %9 = vector.broadcast %cst_10 : f32 to vector<8x64xf32>
    %10 = vector.extract_strided_slice %6 {offsets = [0, 0], sizes = [8, 192], strides = [1, 1]} : vector<80x192xf32> to vector<8x192xf32>
    %cst_11 = arith.constant dense<0.000000e+00> : vector<8x192xf32>
    %11 = tpu.matmul %9, %7, %cst_11 {dimension_numbers = #tpu.dot_dimension_numbers<[1], [0], [0], [1], [0, 0, 1, 1], [], []>} : vector<8x64xf32>, vector<64x192xf32>, vector<8x192xf32> -> vector<8x192xf32>
    %12 = vector.broadcast %8 : vector<1x192xf32> to vector<8x192xf32>
    %13 = arith.addf %11, %12 : vector<8x192xf32>
    %14 = vector.extract_strided_slice %10 {offsets = [0, 0], sizes = [8, 128], strides = [1, 1]} : vector<8x192xf32> to vector<8x128xf32>
    %15 = vector.extract_strided_slice %13 {offsets = [0, 0], sizes = [8, 128], strides = [1, 1]} : vector<8x192xf32> to vector<8x128xf32>
    %16 = arith.addf %14, %15 : vector<8x128xf32>
    %17 = arith.negf %16 : vector<8x128xf32>
    %18 = math.exp %17 : vector<8x128xf32>
    %cst_12 = arith.constant 1.000000e+00 : f32
    %19 = vector.broadcast %cst_12 : f32 to vector<8x128xf32>
    %20 = arith.addf %19, %18 : vector<8x128xf32>
    %21 = arith.divf %19, %20 : vector<8x128xf32>
    %22 = vector.extract_strided_slice %21 {offsets = [0, 0], sizes = [8, 64], strides = [1, 1]} : vector<8x128xf32> to vector<8x64xf32>
    %23 = vector.extract_strided_slice %21 {offsets = [0, 64], sizes = [8, 64], strides = [1, 1]} : vector<8x128xf32> to vector<8x64xf32>
    %24 = vector.extract_strided_slice %10 {offsets = [0, 128], sizes = [8, 64], strides = [1, 1]} : vector<8x192xf32> to vector<8x64xf32>
    %25 = vector.extract_strided_slice %13 {offsets = [0, 128], sizes = [8, 64], strides = [1, 1]} : vector<8x192xf32> to vector<8x64xf32>
    %26 = arith.mulf %22, %25 : vector<8x64xf32>
    %27 = arith.addf %24, %26 : vector<8x64xf32>
    %28 = math.tanh %27 : vector<8x64xf32>
    %cst_13 = arith.constant 1.000000e+00 : f32
    %29 = vector.broadcast %cst_13 : f32 to vector<8x64xf32>
    %30 = arith.subf %29, %23 : vector<8x64xf32>
    %31 = arith.mulf %30, %28 : vector<8x64xf32>
    %32 = arith.mulf %23, %9 : vector<8x64xf32>
    %33 = arith.addf %31, %32 : vector<8x64xf32>
    %34 = vector.extract_strided_slice %33 {offsets = [0, 0], sizes = [8, 32], strides = [1, 1]} : vector<8x64xf32> to vector<8x32xf32>
    %c0_14 = arith.constant 0 : index
    %c0_15 = arith.constant 0 : index
    %35 = vector.load %arg26[%c0_14, %c0_15] : memref<80x64xf32, #tpu.memory_space<vmem>>, vector<8x32xf32>
    tpu.vector_store %arg26[%c0_14, %c0_15], %34 {strides = array<i32>} : memref<80x64xf32, #tpu.memory_space<vmem>>, vector<8x32xf32>,
    %36 = vector.extract_strided_slice %33 {offsets = [0, 32], sizes = [8, 32], strides = [1, 1]} : vector<8x64xf32> to vector<8x32xf32>
    %c72 = arith.constant 72 : index
    %c32 = arith.constant 32 : index
    %37 = vector.load %arg26[%c72, %c32] : memref<80x64xf32, #tpu.memory_space<vmem>>, vector<8x32xf32>
    tpu.vector_store %arg26[%c72, %c32], %36 {strides = array<i32>} : memref<80x64xf32, #tpu.memory_space<vmem>>, vector<8x32xf32>,
    %38 = vector.extract_strided_slice %6 {offsets = [8, 0], sizes = [8, 192], strides = [1, 1]} : vector<80x192xf32> to vector<8x192xf32>
    %cst_16 = arith.constant dense<0.000000e+00> : vector<8x192xf32>
    %39 = tpu.matmul %33, %7, %cst_16 {dimension_numbers = #tpu.dot_dimension_numbers<[1], [0], [0], [1], [0, 0, 1, 1], [], []>} : vector<8x64xf32>, vector<64x192xf32>, vector<8x192xf32> -> vector<8x192xf32>
    %40 = vector.broadcast %8 : vector<1x192xf32> to vector<8x192xf32>
    %41 = arith.addf %39, %40 : vector<8x192xf32>
    %42 = vector.extract_strided_slice %38 {offsets = [0, 0], sizes = [8, 128], strides = [1, 1]} : vector<8x192xf32> to vector<8x128xf32>
    %43 = vector.extract_strided_slice %41 {offsets = [0, 0], sizes = [8, 128], strides = [1, 1]} : vector<8x192xf32> to vector<8x128xf32>
    %44 = arith.addf %42, %43 : vector<8x128xf32>
    %45 = arith.negf %44 : vector<8x128xf32>
    %46 = math.exp %45 : vector<8x128xf32>
    %cst_17 = arith.constant 1.000000e+00 : f32
    %47 = vector.broadcast %cst_17 : f32 to vector<8x128xf32>
    %48 = arith.addf %47, %46 : vector<8x128xf32>
    %49 = arith.divf %47, %48 : vector<8x128xf32>
    %50 = vector.extract_strided_slice %49 {offsets = [0, 0], sizes = [8, 64], strides = [1, 1]} : vector<8x128xf32> to vector<8x64xf32>
    %51 = vector.extract_strided_slice %49 {offsets = [0, 64], sizes = [8, 64], strides = [1, 1]} : vector<8x128xf32> to vector<8x64xf32>
    %52 = vector.extract_strided_slice %38 {offsets = [0, 128], sizes = [8, 64], strides = [1, 1]} : vector<8x192xf32> to vector<8x64xf32>
    %53 = vector.extract_strided_slice %41 {offsets = [0, 128], sizes = [8, 64], strides = [1, 1]} : vector<8x192xf32> to vector<8x64xf32>
    %54 = arith.mulf %50, %53 : vector<8x64xf32>
    %55 = arith.addf %52, %54 : vector<8x64xf32>
    %56 = math.tanh %55 : vector<8x64xf32>
    %cst_18 = arith.constant 1.000000e+00 : f32
    %57 = vector.broadcast %cst_18 : f32 to vector<8x64xf32>
    %58 = arith.subf %57, %51 : vector<8x64xf32>
    %59 = arith.mulf %58, %56 : vector<8x64xf32>
    %60 = arith.mulf %51, %33 : vector<8x64xf32>
    %61 = arith.addf %59, %60 : vector<8x64xf32>
    %62 = vector.extract_strided_slice %61 {offsets = [0, 0], sizes = [8, 32], strides = [1, 1]} : vector<8x64xf32> to vector<8x32xf32>
    %c8 = arith.constant 8 : index
    %c0_19 = arith.constant 0 : index
    %63 = vector.load %arg26[%c8, %c0_19] : memref<80x64xf32, #tpu.memory_space<vmem>>, vector<8x32xf32>
    tpu.vector_store %arg26[%c8, %c0_19], %62 {strides = array<i32>} : memref<80x64xf32, #tpu.memory_space<vmem>>, vector<8x32xf32>,
    %64 = vector.extract_strided_slice %61 {offsets = [0, 32], sizes = [8, 32], strides = [1, 1]} : vector<8x64xf32> to vector<8x32xf32>
    %c64 = arith.constant 64 : index
    %c32_20 = arith.constant 32 : index
    %65 = vector.load %arg26[%c64, %c32_20] : memref<80x64xf32, #tpu.memory_space<vmem>>, vector<8x32xf32>
    tpu.vector_store %arg26[%c64, %c32_20], %64 {strides = array<i32>} : memref<80x64xf32, #tpu.memory_space<vmem>>, vector<8x32xf32>,
    %66 = vector.extract_strided_slice %6 {offsets = [16, 0], sizes = [8, 192], strides = [1, 1]} : vector<80x192xf32> to vector<8x192xf32>
    %cst_21 = arith.constant dense<0.000000e+00> : vector<8x192xf32>
    %67 = tpu.matmul %61, %7, %cst_21 {dimension_numbers = #tpu.dot_dimension_numbers<[1], [0], [0], [1], [0, 0, 1, 1], [], []>} : vector<8x64xf32>, vector<64x192xf32>, vector<8x192xf32> -> vector<8x192xf32>
    %68 = vector.broadcast %8 : vector<1x192xf32> to vector<8x192xf32>
    %69 = arith.addf %67, %68 : vector<8x192xf32>
    %70 = vector.extract_strided_slice %66 {offsets = [0, 0], sizes = [8, 128], strides = [1, 1]} : vector<8x192xf32> to vector<8x128xf32>
    %71 = vector.extract_strided_slice %69 {offsets = [0, 0], sizes = [8, 128], strides = [1, 1]} : vector<8x192xf32> to vector<8x128xf32>
    %72 = arith.addf %70, %71 : vector<8x128xf32>
    %73 = arith.negf %72 : vector<8x128xf32>
    %74 = math.exp %73 : vector<8x128xf32>
    %cst_22 = arith.constant 1.000000e+00 : f32
    %75 = vector.broadcast %cst_22 : f32 to vector<8x128xf32>
    %76 = arith.addf %75, %74 : vector<8x128xf32>
    %77 = arith.divf %75, %76 : vector<8x128xf32>
    %78 = vector.extract_strided_slice %77 {offsets = [0, 0], sizes = [8, 64], strides = [1, 1]} : vector<8x128xf32> to vector<8x64xf32>
    %79 = vector.extract_strided_slice %77 {offsets = [0, 64], sizes = [8, 64], strides = [1, 1]} : vector<8x128xf32> to vector<8x64xf32>
    %80 = vector.extract_strided_slice %66 {offsets = [0, 128], sizes = [8, 64], strides = [1, 1]} : vector<8x192xf32> to vector<8x64xf32>
    %81 = vector.extract_strided_slice %69 {offsets = [0, 128], sizes = [8, 64], strides = [1, 1]} : vector<8x192xf32> to vector<8x64xf32>
    %82 = arith.mulf %78, %81 : vector<8x64xf32>
    %83 = arith.addf %80, %82 : vector<8x64xf32>
    %84 = math.tanh %83 : vector<8x64xf32>
    %cst_23 = arith.constant 1.000000e+00 : f32
    %85 = vector.broadcast %cst_23 : f32 to vector<8x64xf32>
    %86 = arith.subf %85, %79 : vector<8x64xf32>
    %87 = arith.mulf %86, %84 : vector<8x64xf32>
    %88 = arith.mulf %79, %61 : vector<8x64xf32>
    %89 = arith.addf %87, %88 : vector<8x64xf32>
    %90 = vector.extract_strided_slice %89 {offsets = [0, 0], sizes = [8, 32], strides = [1, 1]} : vector<8x64xf32> to vector<8x32xf32>
    %c16 = arith.constant 16 : index
    %c0_24 = arith.constant 0 : index
    %91 = vector.load %arg26[%c16, %c0_24] : memref<80x64xf32, #tpu.memory_space<vmem>>, vector<8x32xf32>
    tpu.vector_store %arg26[%c16, %c0_24], %90 {strides = array<i32>} : memref<80x64xf32, #tpu.memory_space<vmem>>, vector<8x32xf32>,
    %92 = vector.extract_strided_slice %89 {offsets = [0, 32], sizes = [8, 32], strides = [1, 1]} : vector<8x64xf32> to vector<8x32xf32>
    %c56 = arith.constant 56 : index
    %c32_25 = arith.constant 32 : index
    %93 = vector.load %arg26[%c56, %c32_25] : memref<80x64xf32, #tpu.memory_space<vmem>>, vector<8x32xf32>
    tpu.vector_store %arg26[%c56, %c32_25], %92 {strides = array<i32>} : memref<80x64xf32, #tpu.memory_space<vmem>>, vector<8x32xf32>,
    %94 = vector.extract_strided_slice %6 {offsets = [24, 0], sizes = [8, 192], strides = [1, 1]} : vector<80x192xf32> to vector<8x192xf32>
    %cst_26 = arith.constant dense<0.000000e+00> : vector<8x192xf32>
    %95 = tpu.matmul %89, %7, %cst_26 {dimension_numbers = #tpu.dot_dimension_numbers<[1], [0], [0], [1], [0, 0, 1, 1], [], []>} : vector<8x64xf32>, vector<64x192xf32>, vector<8x192xf32> -> vector<8x192xf32>
    %96 = vector.broadcast %8 : vector<1x192xf32> to vector<8x192xf32>
    %97 = arith.addf %95, %96 : vector<8x192xf32>
    %98 = vector.extract_strided_slice %94 {offsets = [0, 0], sizes = [8, 128], strides = [1, 1]} : vector<8x192xf32> to vector<8x128xf32>
    %99 = vector.extract_strided_slice %97 {offsets = [0, 0], sizes = [8, 128], strides = [1, 1]} : vector<8x192xf32> to vector<8x128xf32>
    %100 = arith.addf %98, %99 : vector<8x128xf32>
    %101 = arith.negf %100 : vector<8x128xf32>
    %102 = math.exp %101 : vector<8x128xf32>
    %cst_27 = arith.constant 1.000000e+00 : f32
    %103 = vector.broadcast %cst_27 : f32 to vector<8x128xf32>
    %104 = arith.addf %103, %102 : vector<8x128xf32>
    %105 = arith.divf %103, %104 : vector<8x128xf32>
    %106 = vector.extract_strided_slice %105 {offsets = [0, 0], sizes = [8, 64], strides = [1, 1]} : vector<8x128xf32> to vector<8x64xf32>
    %107 = vector.extract_strided_slice %105 {offsets = [0, 64], sizes = [8, 64], strides = [1, 1]} : vector<8x128xf32> to vector<8x64xf32>
    %108 = vector.extract_strided_slice %94 {offsets = [0, 128], sizes = [8, 64], strides = [1, 1]} : vector<8x192xf32> to vector<8x64xf32>
    %109 = vector.extract_strided_slice %97 {offsets = [0, 128], sizes = [8, 64], strides = [1, 1]} : vector<8x192xf32> to vector<8x64xf32>
    %110 = arith.mulf %106, %109 : vector<8x64xf32>
    %111 = arith.addf %108, %110 : vector<8x64xf32>
    %112 = math.tanh %111 : vector<8x64xf32>
    %cst_28 = arith.constant 1.000000e+00 : f32
    %113 = vector.broadcast %cst_28 : f32 to vector<8x64xf32>
    %114 = arith.subf %113, %107 : vector<8x64xf32>
    %115 = arith.mulf %114, %112 : vector<8x64xf32>
    %116 = arith.mulf %107, %89 : vector<8x64xf32>
    %117 = arith.addf %115, %116 : vector<8x64xf32>
    %118 = vector.extract_strided_slice %117 {offsets = [0, 0], sizes = [8, 32], strides = [1, 1]} : vector<8x64xf32> to vector<8x32xf32>
    %c24 = arith.constant 24 : index
    %c0_29 = arith.constant 0 : index
    %119 = vector.load %arg26[%c24, %c0_29] : memref<80x64xf32, #tpu.memory_space<vmem>>, vector<8x32xf32>
    tpu.vector_store %arg26[%c24, %c0_29], %118 {strides = array<i32>} : memref<80x64xf32, #tpu.memory_space<vmem>>, vector<8x32xf32>,
    %120 = vector.extract_strided_slice %117 {offsets = [0, 32], sizes = [8, 32], strides = [1, 1]} : vector<8x64xf32> to vector<8x32xf32>
    %c48 = arith.constant 48 : index
    %c32_30 = arith.constant 32 : index
    %121 = vector.load %arg26[%c48, %c32_30] : memref<80x64xf32, #tpu.memory_space<vmem>>, vector<8x32xf32>
    tpu.vector_store %arg26[%c48, %c32_30], %120 {strides = array<i32>} : memref<80x64xf32, #tpu.memory_space<vmem>>, vector<8x32xf32>,
    %122 = vector.extract_strided_slice %6 {offsets = [32, 0], sizes = [8, 192], strides = [1, 1]} : vector<80x192xf32> to vector<8x192xf32>
    %cst_31 = arith.constant dense<0.000000e+00> : vector<8x192xf32>
    %123 = tpu.matmul %117, %7, %cst_31 {dimension_numbers = #tpu.dot_dimension_numbers<[1], [0], [0], [1], [0, 0, 1, 1], [], []>} : vector<8x64xf32>, vector<64x192xf32>, vector<8x192xf32> -> vector<8x192xf32>
    %124 = vector.broadcast %8 : vector<1x192xf32> to vector<8x192xf32>
    %125 = arith.addf %123, %124 : vector<8x192xf32>
    %126 = vector.extract_strided_slice %122 {offsets = [0, 0], sizes = [8, 128], strides = [1, 1]} : vector<8x192xf32> to vector<8x128xf32>
    %127 = vector.extract_strided_slice %125 {offsets = [0, 0], sizes = [8, 128], strides = [1, 1]} : vector<8x192xf32> to vector<8x128xf32>
    %128 = arith.addf %126, %127 : vector<8x128xf32>
    %129 = arith.negf %128 : vector<8x128xf32>
    %130 = math.exp %129 : vector<8x128xf32>
    %cst_32 = arith.constant 1.000000e+00 : f32
    %131 = vector.broadcast %cst_32 : f32 to vector<8x128xf32>
    %132 = arith.addf %131, %130 : vector<8x128xf32>
    %133 = arith.divf %131, %132 : vector<8x128xf32>
    %134 = vector.extract_strided_slice %133 {offsets = [0, 0], sizes = [8, 64], strides = [1, 1]} : vector<8x128xf32> to vector<8x64xf32>
    %135 = vector.extract_strided_slice %133 {offsets = [0, 64], sizes = [8, 64], strides = [1, 1]} : vector<8x128xf32> to vector<8x64xf32>
    %136 = vector.extract_strided_slice %122 {offsets = [0, 128], sizes = [8, 64], strides = [1, 1]} : vector<8x192xf32> to vector<8x64xf32>
    %137 = vector.extract_strided_slice %125 {offsets = [0, 128], sizes = [8, 64], strides = [1, 1]} : vector<8x192xf32> to vector<8x64xf32>
    %138 = arith.mulf %134, %137 : vector<8x64xf32>
    %139 = arith.addf %136, %138 : vector<8x64xf32>
    %140 = math.tanh %139 : vector<8x64xf32>
    %cst_33 = arith.constant 1.000000e+00 : f32
    %141 = vector.broadcast %cst_33 : f32 to vector<8x64xf32>
    %142 = arith.subf %141, %135 : vector<8x64xf32>
    %143 = arith.mulf %142, %140 : vector<8x64xf32>
    %144 = arith.mulf %135, %117 : vector<8x64xf32>
    %145 = arith.addf %143, %144 : vector<8x64xf32>
    %146 = vector.extract_strided_slice %145 {offsets = [0, 0], sizes = [8, 32], strides = [1, 1]} : vector<8x64xf32> to vector<8x32xf32>
    %c32_34 = arith.constant 32 : index
    %c0_35 = arith.constant 0 : index
    %147 = vector.load %arg26[%c32_34, %c0_35] : memref<80x64xf32, #tpu.memory_space<vmem>>, vector<8x32xf32>
    tpu.vector_store %arg26[%c32_34, %c0_35], %146 {strides = array<i32>} : memref<80x64xf32, #tpu.memory_space<vmem>>, vector<8x32xf32>,
    %148 = vector.extract_strided_slice %145 {offsets = [0, 32], sizes = [8, 32], strides = [1, 1]} : vector<8x64xf32> to vector<8x32xf32>
    %c40 = arith.constant 40 : index
    %c32_36 = arith.constant 32 : index
    %149 = vector.load %arg26[%c40, %c32_36] : memref<80x64xf32, #tpu.memory_space<vmem>>, vector<8x32xf32>
    tpu.vector_store %arg26[%c40, %c32_36], %148 {strides = array<i32>} : memref<80x64xf32, #tpu.memory_space<vmem>>, vector<8x32xf32>,
    %150 = vector.extract_strided_slice %6 {offsets = [40, 0], sizes = [8, 192], strides = [1, 1]} : vector<80x192xf32> to vector<8x192xf32>
    %cst_37 = arith.constant dense<0.000000e+00> : vector<8x192xf32>
    %151 = tpu.matmul %145, %7, %cst_37 {dimension_numbers = #tpu.dot_dimension_numbers<[1], [0], [0], [1], [0, 0, 1, 1], [], []>} : vector<8x64xf32>, vector<64x192xf32>, vector<8x192xf32> -> vector<8x192xf32>
    %152 = vector.broadcast %8 : vector<1x192xf32> to vector<8x192xf32>
    %153 = arith.addf %151, %152 : vector<8x192xf32>
    %154 = vector.extract_strided_slice %150 {offsets = [0, 0], sizes = [8, 128], strides = [1, 1]} : vector<8x192xf32> to vector<8x128xf32>
    %155 = vector.extract_strided_slice %153 {offsets = [0, 0], sizes = [8, 128], strides = [1, 1]} : vector<8x192xf32> to vector<8x128xf32>
    %156 = arith.addf %154, %155 : vector<8x128xf32>
    %157 = arith.negf %156 : vector<8x128xf32>
    %158 = math.exp %157 : vector<8x128xf32>
    %cst_38 = arith.constant 1.000000e+00 : f32
    %159 = vector.broadcast %cst_38 : f32 to vector<8x128xf32>
    %160 = arith.addf %159, %158 : vector<8x128xf32>
    %161 = arith.divf %159, %160 : vector<8x128xf32>
    %162 = vector.extract_strided_slice %161 {offsets = [0, 0], sizes = [8, 64], strides = [1, 1]} : vector<8x128xf32> to vector<8x64xf32>
    %163 = vector.extract_strided_slice %161 {offsets = [0, 64], sizes = [8, 64], strides = [1, 1]} : vector<8x128xf32> to vector<8x64xf32>
    %164 = vector.extract_strided_slice %150 {offsets = [0, 128], sizes = [8, 64], strides = [1, 1]} : vector<8x192xf32> to vector<8x64xf32>
    %165 = vector.extract_strided_slice %153 {offsets = [0, 128], sizes = [8, 64], strides = [1, 1]} : vector<8x192xf32> to vector<8x64xf32>
    %166 = arith.mulf %162, %165 : vector<8x64xf32>
    %167 = arith.addf %164, %166 : vector<8x64xf32>
    %168 = math.tanh %167 : vector<8x64xf32>
    %cst_39 = arith.constant 1.000000e+00 : f32
    %169 = vector.broadcast %cst_39 : f32 to vector<8x64xf32>
    %170 = arith.subf %169, %163 : vector<8x64xf32>
    %171 = arith.mulf %170, %168 : vector<8x64xf32>
    %172 = arith.mulf %163, %145 : vector<8x64xf32>
    %173 = arith.addf %171, %172 : vector<8x64xf32>
    %174 = vector.extract_strided_slice %173 {offsets = [0, 0], sizes = [8, 32], strides = [1, 1]} : vector<8x64xf32> to vector<8x32xf32>
    %c40_40 = arith.constant 40 : index
    %c0_41 = arith.constant 0 : index
    %175 = vector.load %arg26[%c40_40, %c0_41] : memref<80x64xf32, #tpu.memory_space<vmem>>, vector<8x32xf32>
    tpu.vector_store %arg26[%c40_40, %c0_41], %174 {strides = array<i32>} : memref<80x64xf32, #tpu.memory_space<vmem>>, vector<8x32xf32>,
    %176 = vector.extract_strided_slice %173 {offsets = [0, 32], sizes = [8, 32], strides = [1, 1]} : vector<8x64xf32> to vector<8x32xf32>
    %c32_42 = arith.constant 32 : index
    %c32_43 = arith.constant 32 : index
    %177 = vector.load %arg26[%c32_42, %c32_43] : memref<80x64xf32, #tpu.memory_space<vmem>>, vector<8x32xf32>
    tpu.vector_store %arg26[%c32_42, %c32_43], %176 {strides = array<i32>} : memref<80x64xf32, #tpu.memory_space<vmem>>, vector<8x32xf32>,
    %178 = vector.extract_strided_slice %6 {offsets = [48, 0], sizes = [8, 192], strides = [1, 1]} : vector<80x192xf32> to vector<8x192xf32>
    %cst_44 = arith.constant dense<0.000000e+00> : vector<8x192xf32>
    %179 = tpu.matmul %173, %7, %cst_44 {dimension_numbers = #tpu.dot_dimension_numbers<[1], [0], [0], [1], [0, 0, 1, 1], [], []>} : vector<8x64xf32>, vector<64x192xf32>, vector<8x192xf32> -> vector<8x192xf32>
    %180 = vector.broadcast %8 : vector<1x192xf32> to vector<8x192xf32>
    %181 = arith.addf %179, %180 : vector<8x192xf32>
    %182 = vector.extract_strided_slice %178 {offsets = [0, 0], sizes = [8, 128], strides = [1, 1]} : vector<8x192xf32> to vector<8x128xf32>
    %183 = vector.extract_strided_slice %181 {offsets = [0, 0], sizes = [8, 128], strides = [1, 1]} : vector<8x192xf32> to vector<8x128xf32>
    %184 = arith.addf %182, %183 : vector<8x128xf32>
    %185 = arith.negf %184 : vector<8x128xf32>
    %186 = math.exp %185 : vector<8x128xf32>
    %cst_45 = arith.constant 1.000000e+00 : f32
    %187 = vector.broadcast %cst_45 : f32 to vector<8x128xf32>
    %188 = arith.addf %187, %186 : vector<8x128xf32>
    %189 = arith.divf %187, %188 : vector<8x128xf32>
    %190 = vector.extract_strided_slice %189 {offsets = [0, 0], sizes = [8, 64], strides = [1, 1]} : vector<8x128xf32> to vector<8x64xf32>
    %191 = vector.extract_strided_slice %189 {offsets = [0, 64], sizes = [8, 64], strides = [1, 1]} : vector<8x128xf32> to vector<8x64xf32>
    %192 = vector.extract_strided_slice %178 {offsets = [0, 128], sizes = [8, 64], strides = [1, 1]} : vector<8x192xf32> to vector<8x64xf32>
    %193 = vector.extract_strided_slice %181 {offsets = [0, 128], sizes = [8, 64], strides = [1, 1]} : vector<8x192xf32> to vector<8x64xf32>
    %194 = arith.mulf %190, %193 : vector<8x64xf32>
    %195 = arith.addf %192, %194 : vector<8x64xf32>
    %196 = math.tanh %195 : vector<8x64xf32>
    %cst_46 = arith.constant 1.000000e+00 : f32
    %197 = vector.broadcast %cst_46 : f32 to vector<8x64xf32>
    %198 = arith.subf %197, %191 : vector<8x64xf32>
    %199 = arith.mulf %198, %196 : vector<8x64xf32>
    %200 = arith.mulf %191, %173 : vector<8x64xf32>
    %201 = arith.addf %199, %200 : vector<8x64xf32>
    %202 = vector.extract_strided_slice %201 {offsets = [0, 0], sizes = [8, 32], strides = [1, 1]} : vector<8x64xf32> to vector<8x32xf32>
    %c48_47 = arith.constant 48 : index
    %c0_48 = arith.constant 0 : index
    %203 = vector.load %arg26[%c48_47, %c0_48] : memref<80x64xf32, #tpu.memory_space<vmem>>, vector<8x32xf32>
    tpu.vector_store %arg26[%c48_47, %c0_48], %202 {strides = array<i32>} : memref<80x64xf32, #tpu.memory_space<vmem>>, vector<8x32xf32>,
    %204 = vector.extract_strided_slice %201 {offsets = [0, 32], sizes = [8, 32], strides = [1, 1]} : vector<8x64xf32> to vector<8x32xf32>
    %c24_49 = arith.constant 24 : index
    %c32_50 = arith.constant 32 : index
    %205 = vector.load %arg26[%c24_49, %c32_50] : memref<80x64xf32, #tpu.memory_space<vmem>>, vector<8x32xf32>
    tpu.vector_store %arg26[%c24_49, %c32_50], %204 {strides = array<i32>} : memref<80x64xf32, #tpu.memory_space<vmem>>, vector<8x32xf32>,
    %206 = vector.extract_strided_slice %6 {offsets = [56, 0], sizes = [8, 192], strides = [1, 1]} : vector<80x192xf32> to vector<8x192xf32>
    %cst_51 = arith.constant dense<0.000000e+00> : vector<8x192xf32>
    %207 = tpu.matmul %201, %7, %cst_51 {dimension_numbers = #tpu.dot_dimension_numbers<[1], [0], [0], [1], [0, 0, 1, 1], [], []>} : vector<8x64xf32>, vector<64x192xf32>, vector<8x192xf32> -> vector<8x192xf32>
    %208 = vector.broadcast %8 : vector<1x192xf32> to vector<8x192xf32>
    %209 = arith.addf %207, %208 : vector<8x192xf32>
    %210 = vector.extract_strided_slice %206 {offsets = [0, 0], sizes = [8, 128], strides = [1, 1]} : vector<8x192xf32> to vector<8x128xf32>
    %211 = vector.extract_strided_slice %209 {offsets = [0, 0], sizes = [8, 128], strides = [1, 1]} : vector<8x192xf32> to vector<8x128xf32>
    %212 = arith.addf %210, %211 : vector<8x128xf32>
    %213 = arith.negf %212 : vector<8x128xf32>
    %214 = math.exp %213 : vector<8x128xf32>
    %cst_52 = arith.constant 1.000000e+00 : f32
    %215 = vector.broadcast %cst_52 : f32 to vector<8x128xf32>
    %216 = arith.addf %215, %214 : vector<8x128xf32>
    %217 = arith.divf %215, %216 : vector<8x128xf32>
    %218 = vector.extract_strided_slice %217 {offsets = [0, 0], sizes = [8, 64], strides = [1, 1]} : vector<8x128xf32> to vector<8x64xf32>
    %219 = vector.extract_strided_slice %217 {offsets = [0, 64], sizes = [8, 64], strides = [1, 1]} : vector<8x128xf32> to vector<8x64xf32>
    %220 = vector.extract_strided_slice %206 {offsets = [0, 128], sizes = [8, 64], strides = [1, 1]} : vector<8x192xf32> to vector<8x64xf32>
    %221 = vector.extract_strided_slice %209 {offsets = [0, 128], sizes = [8, 64], strides = [1, 1]} : vector<8x192xf32> to vector<8x64xf32>
    %222 = arith.mulf %218, %221 : vector<8x64xf32>
    %223 = arith.addf %220, %222 : vector<8x64xf32>
    %224 = math.tanh %223 : vector<8x64xf32>
    %cst_53 = arith.constant 1.000000e+00 : f32
    %225 = vector.broadcast %cst_53 : f32 to vector<8x64xf32>
    %226 = arith.subf %225, %219 : vector<8x64xf32>
    %227 = arith.mulf %226, %224 : vector<8x64xf32>
    %228 = arith.mulf %219, %201 : vector<8x64xf32>
    %229 = arith.addf %227, %228 : vector<8x64xf32>
    %230 = vector.extract_strided_slice %229 {offsets = [0, 0], sizes = [8, 32], strides = [1, 1]} : vector<8x64xf32> to vector<8x32xf32>
    %c56_54 = arith.constant 56 : index
    %c0_55 = arith.constant 0 : index
    %231 = vector.load %arg26[%c56_54, %c0_55] : memref<80x64xf32, #tpu.memory_space<vmem>>, vector<8x32xf32>
    tpu.vector_store %arg26[%c56_54, %c0_55], %230 {strides = array<i32>} : memref<80x64xf32, #tpu.memory_space<vmem>>, vector<8x32xf32>,
    %232 = vector.extract_strided_slice %229 {offsets = [0, 32], sizes = [8, 32], strides = [1, 1]} : vector<8x64xf32> to vector<8x32xf32>
    %c16_56 = arith.constant 16 : index
    %c32_57 = arith.constant 32 : index
    %233 = vector.load %arg26[%c16_56, %c32_57] : memref<80x64xf32, #tpu.memory_space<vmem>>, vector<8x32xf32>
    tpu.vector_store %arg26[%c16_56, %c32_57], %232 {strides = array<i32>} : memref<80x64xf32, #tpu.memory_space<vmem>>, vector<8x32xf32>,
    %234 = vector.extract_strided_slice %6 {offsets = [64, 0], sizes = [8, 192], strides = [1, 1]} : vector<80x192xf32> to vector<8x192xf32>
    %cst_58 = arith.constant dense<0.000000e+00> : vector<8x192xf32>
    %235 = tpu.matmul %229, %7, %cst_58 {dimension_numbers = #tpu.dot_dimension_numbers<[1], [0], [0], [1], [0, 0, 1, 1], [], []>} : vector<8x64xf32>, vector<64x192xf32>, vector<8x192xf32> -> vector<8x192xf32>
    %236 = vector.broadcast %8 : vector<1x192xf32> to vector<8x192xf32>
    %237 = arith.addf %235, %236 : vector<8x192xf32>
    %238 = vector.extract_strided_slice %234 {offsets = [0, 0], sizes = [8, 128], strides = [1, 1]} : vector<8x192xf32> to vector<8x128xf32>
    %239 = vector.extract_strided_slice %237 {offsets = [0, 0], sizes = [8, 128], strides = [1, 1]} : vector<8x192xf32> to vector<8x128xf32>
    %240 = arith.addf %238, %239 : vector<8x128xf32>
    %241 = arith.negf %240 : vector<8x128xf32>
    %242 = math.exp %241 : vector<8x128xf32>
    %cst_59 = arith.constant 1.000000e+00 : f32
    %243 = vector.broadcast %cst_59 : f32 to vector<8x128xf32>
    %244 = arith.addf %243, %242 : vector<8x128xf32>
    %245 = arith.divf %243, %244 : vector<8x128xf32>
    %246 = vector.extract_strided_slice %245 {offsets = [0, 0], sizes = [8, 64], strides = [1, 1]} : vector<8x128xf32> to vector<8x64xf32>
    %247 = vector.extract_strided_slice %245 {offsets = [0, 64], sizes = [8, 64], strides = [1, 1]} : vector<8x128xf32> to vector<8x64xf32>
    %248 = vector.extract_strided_slice %234 {offsets = [0, 128], sizes = [8, 64], strides = [1, 1]} : vector<8x192xf32> to vector<8x64xf32>
    %249 = vector.extract_strided_slice %237 {offsets = [0, 128], sizes = [8, 64], strides = [1, 1]} : vector<8x192xf32> to vector<8x64xf32>
    %250 = arith.mulf %246, %249 : vector<8x64xf32>
    %251 = arith.addf %248, %250 : vector<8x64xf32>
    %252 = math.tanh %251 : vector<8x64xf32>
    %cst_60 = arith.constant 1.000000e+00 : f32
    %253 = vector.broadcast %cst_60 : f32 to vector<8x64xf32>
    %254 = arith.subf %253, %247 : vector<8x64xf32>
    %255 = arith.mulf %254, %252 : vector<8x64xf32>
    %256 = arith.mulf %247, %229 : vector<8x64xf32>
    %257 = arith.addf %255, %256 : vector<8x64xf32>
    %258 = vector.extract_strided_slice %257 {offsets = [0, 0], sizes = [8, 32], strides = [1, 1]} : vector<8x64xf32> to vector<8x32xf32>
    %c64_61 = arith.constant 64 : index
    %c0_62 = arith.constant 0 : index
    %259 = vector.load %arg26[%c64_61, %c0_62] : memref<80x64xf32, #tpu.memory_space<vmem>>, vector<8x32xf32>
    tpu.vector_store %arg26[%c64_61, %c0_62], %258 {strides = array<i32>} : memref<80x64xf32, #tpu.memory_space<vmem>>, vector<8x32xf32>,
    %260 = vector.extract_strided_slice %257 {offsets = [0, 32], sizes = [8, 32], strides = [1, 1]} : vector<8x64xf32> to vector<8x32xf32>
    %c8_63 = arith.constant 8 : index
    %c32_64 = arith.constant 32 : index
    %261 = vector.load %arg26[%c8_63, %c32_64] : memref<80x64xf32, #tpu.memory_space<vmem>>, vector<8x32xf32>
    tpu.vector_store %arg26[%c8_63, %c32_64], %260 {strides = array<i32>} : memref<80x64xf32, #tpu.memory_space<vmem>>, vector<8x32xf32>,
    %262 = vector.extract_strided_slice %6 {offsets = [72, 0], sizes = [8, 192], strides = [1, 1]} : vector<80x192xf32> to vector<8x192xf32>
    %cst_65 = arith.constant dense<0.000000e+00> : vector<8x192xf32>
    %263 = tpu.matmul %257, %7, %cst_65 {dimension_numbers = #tpu.dot_dimension_numbers<[1], [0], [0], [1], [0, 0, 1, 1], [], []>} : vector<8x64xf32>, vector<64x192xf32>, vector<8x192xf32> -> vector<8x192xf32>
    %264 = vector.broadcast %8 : vector<1x192xf32> to vector<8x192xf32>
    %265 = arith.addf %263, %264 : vector<8x192xf32>
    %266 = vector.extract_strided_slice %262 {offsets = [0, 0], sizes = [8, 128], strides = [1, 1]} : vector<8x192xf32> to vector<8x128xf32>
    %267 = vector.extract_strided_slice %265 {offsets = [0, 0], sizes = [8, 128], strides = [1, 1]} : vector<8x192xf32> to vector<8x128xf32>
    %268 = arith.addf %266, %267 : vector<8x128xf32>
    %269 = arith.negf %268 : vector<8x128xf32>
    %270 = math.exp %269 : vector<8x128xf32>
    %cst_66 = arith.constant 1.000000e+00 : f32
    %271 = vector.broadcast %cst_66 : f32 to vector<8x128xf32>
    %272 = arith.addf %271, %270 : vector<8x128xf32>
    %273 = arith.divf %271, %272 : vector<8x128xf32>
    %274 = vector.extract_strided_slice %273 {offsets = [0, 0], sizes = [8, 64], strides = [1, 1]} : vector<8x128xf32> to vector<8x64xf32>
    %275 = vector.extract_strided_slice %273 {offsets = [0, 64], sizes = [8, 64], strides = [1, 1]} : vector<8x128xf32> to vector<8x64xf32>
    %276 = vector.extract_strided_slice %262 {offsets = [0, 128], sizes = [8, 64], strides = [1, 1]} : vector<8x192xf32> to vector<8x64xf32>
    %277 = vector.extract_strided_slice %265 {offsets = [0, 128], sizes = [8, 64], strides = [1, 1]} : vector<8x192xf32> to vector<8x64xf32>
    %278 = arith.mulf %274, %277 : vector<8x64xf32>
    %279 = arith.addf %276, %278 : vector<8x64xf32>
    %280 = math.tanh %279 : vector<8x64xf32>
    %cst_67 = arith.constant 1.000000e+00 : f32
    %281 = vector.broadcast %cst_67 : f32 to vector<8x64xf32>
    %282 = arith.subf %281, %275 : vector<8x64xf32>
    %283 = arith.mulf %282, %280 : vector<8x64xf32>
    %284 = arith.mulf %275, %257 : vector<8x64xf32>
    %285 = arith.addf %283, %284 : vector<8x64xf32>
    %286 = vector.extract_strided_slice %285 {offsets = [0, 0], sizes = [8, 32], strides = [1, 1]} : vector<8x64xf32> to vector<8x32xf32>
    %c72_68 = arith.constant 72 : index
    %c0_69 = arith.constant 0 : index
    %287 = vector.load %arg26[%c72_68, %c0_69] : memref<80x64xf32, #tpu.memory_space<vmem>>, vector<8x32xf32>
    tpu.vector_store %arg26[%c72_68, %c0_69], %286 {strides = array<i32>} : memref<80x64xf32, #tpu.memory_space<vmem>>, vector<8x32xf32>,
    %288 = vector.extract_strided_slice %285 {offsets = [0, 32], sizes = [8, 32], strides = [1, 1]} : vector<8x64xf32> to vector<8x32xf32>
    %c0_70 = arith.constant 0 : index
    %c32_71 = arith.constant 32 : index
    %289 = vector.load %arg26[%c0_70, %c32_71] : memref<80x64xf32, #tpu.memory_space<vmem>>, vector<8x32xf32>
    tpu.vector_store %arg26[%c0_70, %c32_71], %288 {strides = array<i32>} : memref<80x64xf32, #tpu.memory_space<vmem>>, vector<8x32xf32>,
    %c0_72 = arith.constant 0 : index
    %c0_73 = arith.constant 0 : index
    %290 = vector.load %arg10[%c0_72, %c0_73] : memref<64x32xf32, #tpu.memory_space<vmem>>, vector<64x32xf32>
    %cst_74 = arith.constant dense<0.000000e+00> : vector<8x32xf32>
    %291 = tpu.matmul %285, %290, %cst_74 {dimension_numbers = #tpu.dot_dimension_numbers<[1], [0], [0], [1], [0, 0, 1, 1], [], []>} : vector<8x64xf32>, vector<64x32xf32>, vector<8x32xf32> -> vector<8x32xf32>
    %c0_75 = arith.constant 0 : index
    %c0_76 = arith.constant 0 : index
    %292 = vector.load %arg11[%c0_75, %c0_76] : memref<1x32xf32, #tpu.memory_space<vmem>>, vector<1x32xf32>
    %293 = vector.broadcast %292 : vector<1x32xf32> to vector<8x32xf32>
    %294 = arith.addf %291, %293 : vector<8x32xf32>
    %295 = math.tanh %294 : vector<8x32xf32>
    %c0_77 = arith.constant 0 : index
    %c0_78 = arith.constant 0 : index
    %296 = vector.load %arg26[%c0_77, %c0_78] : memref<80x64xf32, #tpu.memory_space<vmem>>, vector<80x64xf32>
    %c0_79 = arith.constant 0 : index
    %c0_80 = arith.constant 0 : index
    %297 = vector.load %arg13[%c0_79, %c0_80] : memref<64x32xf32, #tpu.memory_space<vmem>>, vector<64x32xf32>
    %cst_81 = arith.constant dense<0.000000e+00> : vector<80x32xf32>
    %298 = tpu.matmul %296, %297, %cst_81 {dimension_numbers = #tpu.dot_dimension_numbers<[1], [0], [0], [1], [0, 0, 1, 1], [], []>} : vector<80x64xf32>, vector<64x32xf32>, vector<80x32xf32> -> vector<80x32xf32>
    %c0_82 = arith.constant 0 : index
    %c0_83 = arith.constant 0 : index
    %299 = vector.load %arg14[%c0_82, %c0_83] : memref<1x32xf32, #tpu.memory_space<vmem>>, vector<1x32xf32>
    %300 = vector.broadcast %299 : vector<1x32xf32> to vector<80x32xf32>
    %301 = arith.addf %298, %300 : vector<80x32xf32>
    %c0_84 = arith.constant 0 : index
    %c0_85 = arith.constant 0 : index
    %302 = vector.load %arg12[%c0_84, %c0_85] : memref<32x32xf32, #tpu.memory_space<vmem>>, vector<32x32xf32>
    %c0_86 = arith.constant 0 : index
    %c0_87 = arith.constant 0 : index
    %303 = vector.load %arg15[%c0_86, %c0_87] : memref<1x32xf32, #tpu.memory_space<vmem>>, vector<1x32xf32>
    %c0_88 = arith.constant 0 : index
    %c0_89 = arith.constant 0 : index
    %304 = vector.load %arg16[%c0_88, %c0_89] : memref<16x96xf32, #tpu.memory_space<vmem>>, vector<16x96xf32>
    %c0_90 = arith.constant 0 : index
    %c0_91 = arith.constant 0 : index
    %305 = vector.load %arg17[%c0_90, %c0_91] : memref<64x96xf32, #tpu.memory_space<vmem>>, vector<64x96xf32>
    %c0_92 = arith.constant 0 : index
    %c0_93 = arith.constant 0 : index
    %306 = vector.load %arg18[%c0_92, %c0_93] : memref<32x96xf32, #tpu.memory_space<vmem>>, vector<32x96xf32>
    %c0_94 = arith.constant 0 : index
    %c0_95 = arith.constant 0 : index
    %307 = vector.load %arg19[%c0_94, %c0_95] : memref<1x96xf32, #tpu.memory_space<vmem>>, vector<1x96xf32>
    %c0_96 = arith.constant 0 : index
    %c0_97 = arith.constant 0 : index
    %308 = vector.load %arg20[%c0_96, %c0_97] : memref<1x96xf32, #tpu.memory_space<vmem>>, vector<1x96xf32>
    %cst_98 = arith.constant 0.000000e+00 : f32
    %309 = vector.broadcast %cst_98 : f32 to vector<8x128xf32>
    %c0_99 = arith.constant 0 : index
    %c0_100 = arith.constant 0 : index
    %c0_101 = arith.constant 0 : index
    %310 = vector.load %arg25[%c0_99, %c0_100, %c0_101] : memref<1x64x128xf32, #tpu.memory_space<vmem>>, vector<1x8x128xf32>
    %311 = vector.shape_cast %310 : vector<1x8x128xf32> to vector<8x128xf32>
    %312 = vector.shape_cast %309 : vector<8x128xf32> to vector<1x8x128xf32>
    tpu.vector_store %arg25[%c0_99, %c0_100, %c0_101], %312 {strides = array<i32>} : memref<1x64x128xf32, #tpu.memory_space<vmem>>, vector<1x8x128xf32>,
    %c0_102 = arith.constant 0 : index
    %c0_103 = arith.constant 0 : index
    %c0_104 = arith.constant 0 : index
    %c0_105 = arith.constant 0 : index
    %313 = vector.load %arg3[%c0_102, %c0_103, %c0_104, %c0_105] : memref<1x8x8x16xf32, #tpu.memory_space<vmem>>, vector<1x1x8x16xf32>
    %314 = vector.shape_cast %313 : vector<1x1x8x16xf32> to vector<8x16xf32>
    %c0_106 = arith.constant 0 : index
    %c0_107 = arith.constant 0 : index
    %315 = vector.load %arg27[%c0_106, %c0_107] : memref<8x16xf32, #tpu.memory_space<vmem>>, vector<8x16xf32>
    tpu.vector_store %arg27[%c0_106, %c0_107], %314 {strides = array<i32>} : memref<8x16xf32, #tpu.memory_space<vmem>>, vector<8x16xf32>,
    %c0_108 = arith.constant 0 : index
    %c0_109 = arith.constant 0 : index
    %316 = vector.load %arg27[%c0_108, %c0_109] : memref<8x16xf32, #tpu.memory_space<vmem>>, vector<8x16xf32>
    %c1 = arith.constant 1 : index
    %c0_110 = arith.constant 0 : index
    %317 = vector.load %arg4[%c1, %c0_110] : memref<8x16xf32, #tpu.memory_space<vmem>>, vector<1x16xf32>
    %318 = vector.broadcast %317 : vector<1x16xf32> to vector<8x16xf32>
    %319 = arith.addf %316, %318 : vector<8x16xf32>
    %cst_111 = arith.constant dense<0.000000e+00> : vector<8x32xf32>
    %320 = tpu.matmul %295, %302, %cst_111 {dimension_numbers = #tpu.dot_dimension_numbers<[1], [0], [0], [1], [0, 0, 1, 1], [], []>} : vector<8x32xf32>, vector<32x32xf32>, vector<8x32xf32> -> vector<8x32xf32>
    %321 = vector.extract_strided_slice %301 {offsets = [0, 0], sizes = [8, 32], strides = [1, 1]} : vector<80x32xf32> to vector<8x32xf32>
    %322 = arith.addf %321, %320 : vector<8x32xf32>
    %323 = math.tanh %322 : vector<8x32xf32>
    %324 = vector.broadcast %303 : vector<1x32xf32> to vector<8x32xf32>
    %325 = arith.mulf %323, %324 : vector<8x32xf32>
    %cst_112 = arith.constant dense<0.000000e+00> : vector<8xf32>
    %326 = vector.multi_reduction <add>, %325, %cst_112 [1] : vector<8x32xf32> to vector<8xf32>
    %327 = vector.shape_cast %326 : vector<8xf32> to vector<8x1xf32>
    %328 = vector.extract_strided_slice %301 {offsets = [8, 0], sizes = [8, 32], strides = [1, 1]} : vector<80x32xf32> to vector<8x32xf32>
    %329 = arith.addf %328, %320 : vector<8x32xf32>
    %330 = math.tanh %329 : vector<8x32xf32>
    %331 = vector.broadcast %303 : vector<1x32xf32> to vector<8x32xf32>
    %332 = arith.mulf %330, %331 : vector<8x32xf32>
    %cst_113 = arith.constant dense<0.000000e+00> : vector<8xf32>
    %333 = vector.multi_reduction <add>, %332, %cst_113 [1] : vector<8x32xf32> to vector<8xf32>
    %334 = vector.shape_cast %333 : vector<8xf32> to vector<8x1xf32>
    %335 = vector.extract_strided_slice %301 {offsets = [16, 0], sizes = [8, 32], strides = [1, 1]} : vector<80x32xf32> to vector<8x32xf32>
    %336 = arith.addf %335, %320 : vector<8x32xf32>
    %337 = math.tanh %336 : vector<8x32xf32>
    %338 = vector.broadcast %303 : vector<1x32xf32> to vector<8x32xf32>
    %339 = arith.mulf %337, %338 : vector<8x32xf32>
    %cst_114 = arith.constant dense<0.000000e+00> : vector<8xf32>
    %340 = vector.multi_reduction <add>, %339, %cst_114 [1] : vector<8x32xf32> to vector<8xf32>
    %341 = vector.shape_cast %340 : vector<8xf32> to vector<8x1xf32>
    %342 = vector.extract_strided_slice %301 {offsets = [24, 0], sizes = [8, 32], strides = [1, 1]} : vector<80x32xf32> to vector<8x32xf32>
    %343 = arith.addf %342, %320 : vector<8x32xf32>
    %344 = math.tanh %343 : vector<8x32xf32>
    %345 = vector.broadcast %303 : vector<1x32xf32> to vector<8x32xf32>
    %346 = arith.mulf %344, %345 : vector<8x32xf32>
    %cst_115 = arith.constant dense<0.000000e+00> : vector<8xf32>
    %347 = vector.multi_reduction <add>, %346, %cst_115 [1] : vector<8x32xf32> to vector<8xf32>
    %348 = vector.shape_cast %347 : vector<8xf32> to vector<8x1xf32>
    %349 = vector.extract_strided_slice %301 {offsets = [32, 0], sizes = [8, 32], strides = [1, 1]} : vector<80x32xf32> to vector<8x32xf32>
    %350 = arith.addf %349, %320 : vector<8x32xf32>
    %351 = math.tanh %350 : vector<8x32xf32>
    %352 = vector.broadcast %303 : vector<1x32xf32> to vector<8x32xf32>
    %353 = arith.mulf %351, %352 : vector<8x32xf32>
    %cst_116 = arith.constant dense<0.000000e+00> : vector<8xf32>
    %354 = vector.multi_reduction <add>, %353, %cst_116 [1] : vector<8x32xf32> to vector<8xf32>
    %355 = vector.shape_cast %354 : vector<8xf32> to vector<8x1xf32>
    %356 = vector.extract_strided_slice %301 {offsets = [40, 0], sizes = [8, 32], strides = [1, 1]} : vector<80x32xf32> to vector<8x32xf32>
    %357 = arith.addf %356, %320 : vector<8x32xf32>
    %358 = math.tanh %357 : vector<8x32xf32>
    %359 = vector.broadcast %303 : vector<1x32xf32> to vector<8x32xf32>
    %360 = arith.mulf %358, %359 : vector<8x32xf32>
    %cst_117 = arith.constant dense<0.000000e+00> : vector<8xf32>
    %361 = vector.multi_reduction <add>, %360, %cst_117 [1] : vector<8x32xf32> to vector<8xf32>
    %362 = vector.shape_cast %361 : vector<8xf32> to vector<8x1xf32>
    %363 = vector.extract_strided_slice %301 {offsets = [48, 0], sizes = [8, 32], strides = [1, 1]} : vector<80x32xf32> to vector<8x32xf32>
    %364 = arith.addf %363, %320 : vector<8x32xf32>
    %365 = math.tanh %364 : vector<8x32xf32>
    %366 = vector.broadcast %303 : vector<1x32xf32> to vector<8x32xf32>
    %367 = arith.mulf %365, %366 : vector<8x32xf32>
    %cst_118 = arith.constant dense<0.000000e+00> : vector<8xf32>
    %368 = vector.multi_reduction <add>, %367, %cst_118 [1] : vector<8x32xf32> to vector<8xf32>
    %369 = vector.shape_cast %368 : vector<8xf32> to vector<8x1xf32>
    %370 = vector.extract_strided_slice %301 {offsets = [56, 0], sizes = [8, 32], strides = [1, 1]} : vector<80x32xf32> to vector<8x32xf32>
    %371 = arith.addf %370, %320 : vector<8x32xf32>
    %372 = math.tanh %371 : vector<8x32xf32>
    %373 = vector.broadcast %303 : vector<1x32xf32> to vector<8x32xf32>
    %374 = arith.mulf %372, %373 : vector<8x32xf32>
    %cst_119 = arith.constant dense<0.000000e+00> : vector<8xf32>
    %375 = vector.multi_reduction <add>, %374, %cst_119 [1] : vector<8x32xf32> to vector<8xf32>
    %376 = vector.shape_cast %375 : vector<8xf32> to vector<8x1xf32>
    %377 = vector.extract_strided_slice %301 {offsets = [64, 0], sizes = [8, 32], strides = [1, 1]} : vector<80x32xf32> to vector<8x32xf32>
    %378 = arith.addf %377, %320 : vector<8x32xf32>
    %379 = math.tanh %378 : vector<8x32xf32>
    %380 = vector.broadcast %303 : vector<1x32xf32> to vector<8x32xf32>
    %381 = arith.mulf %379, %380 : vector<8x32xf32>
    %cst_120 = arith.constant dense<0.000000e+00> : vector<8xf32>
    %382 = vector.multi_reduction <add>, %381, %cst_120 [1] : vector<8x32xf32> to vector<8xf32>
    %383 = vector.shape_cast %382 : vector<8xf32> to vector<8x1xf32>
    %384 = vector.extract_strided_slice %301 {offsets = [72, 0], sizes = [8, 32], strides = [1, 1]} : vector<80x32xf32> to vector<8x32xf32>
    %385 = arith.addf %384, %320 : vector<8x32xf32>
    %386 = math.tanh %385 : vector<8x32xf32>
    %387 = vector.broadcast %303 : vector<1x32xf32> to vector<8x32xf32>
    %388 = arith.mulf %386, %387 : vector<8x32xf32>
    %cst_121 = arith.constant dense<0.000000e+00> : vector<8xf32>
    %389 = vector.multi_reduction <add>, %388, %cst_121 [1] : vector<8x32xf32> to vector<8xf32>
    %390 = vector.shape_cast %389 : vector<8xf32> to vector<8x1xf32>
    %391 = arith.maximumf %327, %334 : vector<8x1xf32>
    %392 = arith.maximumf %391, %341 : vector<8x1xf32>
    %393 = arith.maximumf %392, %348 : vector<8x1xf32>
    %394 = arith.maximumf %393, %355 : vector<8x1xf32>
    %395 = arith.maximumf %394, %362 : vector<8x1xf32>
    %396 = arith.maximumf %395, %369 : vector<8x1xf32>
    %397 = arith.maximumf %396, %376 : vector<8x1xf32>
    %398 = arith.maximumf %397, %383 : vector<8x1xf32>
    %399 = arith.maximumf %398, %390 : vector<8x1xf32>
    %400 = arith.subf %327, %399 : vector<8x1xf32>
    %401 = math.exp %400 : vector<8x1xf32>
    %402 = arith.subf %334, %399 : vector<8x1xf32>
    %403 = math.exp %402 : vector<8x1xf32>
    %404 = arith.subf %341, %399 : vector<8x1xf32>
    %405 = math.exp %404 : vector<8x1xf32>
    %406 = arith.subf %348, %399 : vector<8x1xf32>
    %407 = math.exp %406 : vector<8x1xf32>
    %408 = arith.subf %355, %399 : vector<8x1xf32>
    %409 = math.exp %408 : vector<8x1xf32>
    %410 = arith.subf %362, %399 : vector<8x1xf32>
    %411 = math.exp %410 : vector<8x1xf32>
    %412 = arith.subf %369, %399 : vector<8x1xf32>
    %413 = math.exp %412 : vector<8x1xf32>
    %414 = arith.subf %376, %399 : vector<8x1xf32>
    %415 = math.exp %414 : vector<8x1xf32>
    %416 = arith.subf %383, %399 : vector<8x1xf32>
    %417 = math.exp %416 : vector<8x1xf32>
    %418 = arith.subf %390, %399 : vector<8x1xf32>
    %419 = math.exp %418 : vector<8x1xf32>
    %420 = arith.addf %401, %403 : vector<8x1xf32>
    %421 = arith.addf %420, %405 : vector<8x1xf32>
    %422 = arith.addf %421, %407 : vector<8x1xf32>
    %423 = arith.addf %422, %409 : vector<8x1xf32>
    %424 = arith.addf %423, %411 : vector<8x1xf32>
    %425 = arith.addf %424, %413 : vector<8x1xf32>
    %426 = arith.addf %425, %415 : vector<8x1xf32>
    %427 = arith.addf %426, %417 : vector<8x1xf32>
    %428 = arith.addf %427, %419 : vector<8x1xf32>
    %429 = vector.extract_strided_slice %296 {offsets = [0, 0], sizes = [8, 64], strides = [1, 1]} : vector<80x64xf32> to vector<8x64xf32>
    %430 = vector.broadcast %401 : vector<8x1xf32> to vector<8x64xf32>
    %431 = arith.mulf %430, %429 : vector<8x64xf32>
    %432 = vector.extract_strided_slice %296 {offsets = [8, 0], sizes = [8, 64], strides = [1, 1]} : vector<80x64xf32> to vector<8x64xf32>
    %433 = vector.broadcast %403 : vector<8x1xf32> to vector<8x64xf32>
    %434 = arith.mulf %433, %432 : vector<8x64xf32>
    %435 = arith.addf %431, %434 : vector<8x64xf32>
    %436 = vector.extract_strided_slice %296 {offsets = [16, 0], sizes = [8, 64], strides = [1, 1]} : vector<80x64xf32> to vector<8x64xf32>
    %437 = vector.broadcast %405 : vector<8x1xf32> to vector<8x64xf32>
    %438 = arith.mulf %437, %436 : vector<8x64xf32>
    %439 = arith.addf %435, %438 : vector<8x64xf32>
    %440 = vector.extract_strided_slice %296 {offsets = [24, 0], sizes = [8, 64], strides = [1, 1]} : vector<80x64xf32> to vector<8x64xf32>
    %441 = vector.broadcast %407 : vector<8x1xf32> to vector<8x64xf32>
    %442 = arith.mulf %441, %440 : vector<8x64xf32>
    %443 = arith.addf %439, %442 : vector<8x64xf32>
    %444 = vector.extract_strided_slice %296 {offsets = [32, 0], sizes = [8, 64], strides = [1, 1]} : vector<80x64xf32> to vector<8x64xf32>
    %445 = vector.broadcast %409 : vector<8x1xf32> to vector<8x64xf32>
    %446 = arith.mulf %445, %444 : vector<8x64xf32>
    %447 = arith.addf %443, %446 : vector<8x64xf32>
    %448 = vector.extract_strided_slice %296 {offsets = [40, 0], sizes = [8, 64], strides = [1, 1]} : vector<80x64xf32> to vector<8x64xf32>
    %449 = vector.broadcast %411 : vector<8x1xf32> to vector<8x64xf32>
    %450 = arith.mulf %449, %448 : vector<8x64xf32>
    %451 = arith.addf %447, %450 : vector<8x64xf32>
    %452 = vector.extract_strided_slice %296 {offsets = [48, 0], sizes = [8, 64], strides = [1, 1]} : vector<80x64xf32> to vector<8x64xf32>
    %453 = vector.broadcast %413 : vector<8x1xf32> to vector<8x64xf32>
    %454 = arith.mulf %453, %452 : vector<8x64xf32>
    %455 = arith.addf %451, %454 : vector<8x64xf32>
    %456 = vector.extract_strided_slice %296 {offsets = [56, 0], sizes = [8, 64], strides = [1, 1]} : vector<80x64xf32> to vector<8x64xf32>
    %457 = vector.broadcast %415 : vector<8x1xf32> to vector<8x64xf32>
    %458 = arith.mulf %457, %456 : vector<8x64xf32>
    %459 = arith.addf %455, %458 : vector<8x64xf32>
    %460 = vector.extract_strided_slice %296 {offsets = [64, 0], sizes = [8, 64], strides = [1, 1]} : vector<80x64xf32> to vector<8x64xf32>
    %461 = vector.broadcast %417 : vector<8x1xf32> to vector<8x64xf32>
    %462 = arith.mulf %461, %460 : vector<8x64xf32>
    %463 = arith.addf %459, %462 : vector<8x64xf32>
    %464 = vector.extract_strided_slice %296 {offsets = [72, 0], sizes = [8, 64], strides = [1, 1]} : vector<80x64xf32> to vector<8x64xf32>
    %465 = vector.broadcast %419 : vector<8x1xf32> to vector<8x64xf32>
    %466 = arith.mulf %465, %464 : vector<8x64xf32>
    %467 = arith.addf %463, %466 : vector<8x64xf32>
    %468 = tpu.reciprocal %428 {approx = true} : vector<8x1xf32> -> vector<8x1xf32>
    %469 = vector.broadcast %468 : vector<8x1xf32> to vector<8x64xf32>
    %470 = arith.mulf %467, %469 : vector<8x64xf32>
    %cst_122 = arith.constant dense<0.000000e+00> : vector<8x96xf32>
    %471 = tpu.matmul %319, %304, %cst_122 {dimension_numbers = #tpu.dot_dimension_numbers<[1], [0], [0], [1], [0, 0, 1, 1], [], []>} : vector<8x16xf32>, vector<16x96xf32>, vector<8x96xf32> -> vector<8x96xf32>
    %cst_123 = arith.constant dense<0.000000e+00> : vector<8x96xf32>
    %472 = tpu.matmul %470, %305, %cst_123 {dimension_numbers = #tpu.dot_dimension_numbers<[1], [0], [0], [1], [0, 0, 1, 1], [], []>} : vector<8x64xf32>, vector<64x96xf32>, vector<8x96xf32> -> vector<8x96xf32>
    %473 = arith.addf %471, %472 : vector<8x96xf32>
    %474 = vector.broadcast %307 : vector<1x96xf32> to vector<8x96xf32>
    %475 = arith.addf %473, %474 : vector<8x96xf32>
    %cst_124 = arith.constant dense<0.000000e+00> : vector<8x96xf32>
    %476 = tpu.matmul %295, %306, %cst_124 {dimension_numbers = #tpu.dot_dimension_numbers<[1], [0], [0], [1], [0, 0, 1, 1], [], []>} : vector<8x32xf32>, vector<32x96xf32>, vector<8x96xf32> -> vector<8x96xf32>
    %477 = vector.broadcast %308 : vector<1x96xf32> to vector<8x96xf32>
    %478 = arith.addf %476, %477 : vector<8x96xf32>
    %479 = vector.extract_strided_slice %475 {offsets = [0, 0], sizes = [8, 64], strides = [1, 1]} : vector<8x96xf32> to vector<8x64xf32>
    %480 = vector.extract_strided_slice %478 {offsets = [0, 0], sizes = [8, 64], strides = [1, 1]} : vector<8x96xf32> to vector<8x64xf32>
    %481 = arith.addf %479, %480 : vector<8x64xf32>
    %482 = arith.negf %481 : vector<8x64xf32>
    %483 = math.exp %482 : vector<8x64xf32>
    %cst_125 = arith.constant 1.000000e+00 : f32
    %484 = vector.broadcast %cst_125 : f32 to vector<8x64xf32>
    %485 = arith.addf %484, %483 : vector<8x64xf32>
    %486 = arith.divf %484, %485 : vector<8x64xf32>
    %487 = vector.extract_strided_slice %486 {offsets = [0, 0], sizes = [8, 32], strides = [1, 1]} : vector<8x64xf32> to vector<8x32xf32>
    %488 = vector.extract_strided_slice %486 {offsets = [0, 32], sizes = [8, 32], strides = [1, 1]} : vector<8x64xf32> to vector<8x32xf32>
    %489 = vector.extract_strided_slice %475 {offsets = [0, 64], sizes = [8, 32], strides = [1, 1]} : vector<8x96xf32> to vector<8x32xf32>
    %490 = vector.extract_strided_slice %478 {offsets = [0, 64], sizes = [8, 32], strides = [1, 1]} : vector<8x96xf32> to vector<8x32xf32>
    %491 = arith.mulf %487, %490 : vector<8x32xf32>
    %492 = arith.addf %489, %491 : vector<8x32xf32>
    %493 = math.tanh %492 : vector<8x32xf32>
    %cst_126 = arith.constant 1.000000e+00 : f32
    %494 = vector.broadcast %cst_126 : f32 to vector<8x32xf32>
    %495 = arith.subf %494, %488 : vector<8x32xf32>
    %496 = arith.mulf %495, %493 : vector<8x32xf32>
    %497 = arith.mulf %488, %295 : vector<8x32xf32>
    %498 = arith.addf %496, %497 : vector<8x32xf32>
    %c0_127 = arith.constant 0 : index
    %c0_128 = arith.constant 0 : index
    %499 = vector.load %arg21[%c0_127, %c0_128] : memref<32x128xf32, #tpu.memory_space<vmem>>, vector<32x128xf32>
    %cst_129 = arith.constant dense<0.000000e+00> : vector<8x128xf32>
    %500 = tpu.matmul %498, %499, %cst_129 {dimension_numbers = #tpu.dot_dimension_numbers<[1], [0], [0], [1], [0, 0, 1, 1], [], []>} : vector<8x32xf32>, vector<32x128xf32>, vector<8x128xf32> -> vector<8x128xf32>
    %c0_130 = arith.constant 0 : index
    %c0_131 = arith.constant 0 : index
    %501 = vector.load %arg22[%c0_130, %c0_131] : memref<64x128xf32, #tpu.memory_space<vmem>>, vector<64x128xf32>
    %cst_132 = arith.constant dense<0.000000e+00> : vector<8x128xf32>
    %502 = tpu.matmul %470, %501, %cst_132 {dimension_numbers = #tpu.dot_dimension_numbers<[1], [0], [0], [1], [0, 0, 1, 1], [], []>} : vector<8x64xf32>, vector<64x128xf32>, vector<8x128xf32> -> vector<8x128xf32>
    %503 = arith.addf %500, %502 : vector<8x128xf32>
    %c0_133 = arith.constant 0 : index
    %c0_134 = arith.constant 0 : index
    %504 = vector.load %arg23[%c0_133, %c0_134] : memref<16x128xf32, #tpu.memory_space<vmem>>, vector<16x128xf32>
    %cst_135 = arith.constant dense<0.000000e+00> : vector<8x128xf32>
    %505 = tpu.matmul %319, %504, %cst_135 {dimension_numbers = #tpu.dot_dimension_numbers<[1], [0], [0], [1], [0, 0, 1, 1], [], []>} : vector<8x16xf32>, vector<16x128xf32>, vector<8x128xf32> -> vector<8x128xf32>
    %506 = arith.addf %503, %505 : vector<8x128xf32>
    %c0_136 = arith.constant 0 : index
    %c0_137 = arith.constant 0 : index
    %507 = vector.load %arg24[%c0_136, %c0_137] : memref<1x128xf32, #tpu.memory_space<vmem>>, vector<1x128xf32>
    %508 = vector.broadcast %507 : vector<1x128xf32> to vector<8x128xf32>
    %509 = arith.addf %506, %508 : vector<8x128xf32>
    %c0_138 = arith.constant 0 : index
    %c8_139 = arith.constant 8 : index
    %c0_140 = arith.constant 0 : index
    %510 = vector.load %arg25[%c0_138, %c8_139, %c0_140] : memref<1x64x128xf32, #tpu.memory_space<vmem>>, vector<1x8x128xf32>
    %511 = vector.shape_cast %510 : vector<1x8x128xf32> to vector<8x128xf32>
    %512 = vector.shape_cast %509 : vector<8x128xf32> to vector<1x8x128xf32>
    tpu.vector_store %arg25[%c0_138, %c8_139, %c0_140], %512 {strides = array<i32>} : memref<1x64x128xf32, #tpu.memory_space<vmem>>, vector<1x8x128xf32>,
    %c1_141 = arith.constant 1 : index
    %513 = memref.load %arg1[%c1_141] : memref<8xi32, #tpu.memory_space<smem>>
    %c1_i32 = arith.constant 1 : i32
    %514 = arith.cmpi eq, %513, %c1_i32 : i32
    %515 = arith.extui %514 : i1 to i32
    %c0_i32 = arith.constant 0 : i32
    %516 = arith.cmpi ne, %515, %c0_i32 : i32
    scf.if %516 {
      %c0_367 = arith.constant 0 : index
      %c1_368 = arith.constant 1 : index
      %c0_369 = arith.constant 0 : index
      %c0_370 = arith.constant 0 : index
      %1737 = vector.load %arg3[%c0_367, %c1_368, %c0_369, %c0_370] : memref<1x8x8x16xf32, #tpu.memory_space<vmem>>, vector<1x1x8x16xf32>
      %1738 = vector.shape_cast %1737 : vector<1x1x8x16xf32> to vector<8x16xf32>
      %c0_371 = arith.constant 0 : index
      %c0_372 = arith.constant 0 : index
      %1739 = vector.load %arg27[%c0_371, %c0_372] : memref<8x16xf32, #tpu.memory_space<vmem>>, vector<8x16xf32>
      tpu.vector_store %arg27[%c0_371, %c0_372], %1738 {strides = array<i32>} : memref<8x16xf32, #tpu.memory_space<vmem>>, vector<8x16xf32>,
    } else {
    }
    %c0_i32_142 = arith.constant 0 : i32
    %517 = arith.cmpi eq, %513, %c0_i32_142 : i32
    %518 = arith.extui %517 : i1 to i32
    %c0_i32_143 = arith.constant 0 : i32
    %519 = arith.cmpi ne, %518, %c0_i32_143 : i32
    scf.if %519 {
      %1737 = vector.extract_strided_slice %509 {offsets = [0, 0], sizes = [8, 32], strides = [1, 1]} : vector<8x128xf32> to vector<8x32xf32>
      %1738 = tpu.iota {dimensions = array<i32: 1>} : vector<8x32xi32>
      %cst_367 = arith.constant dense<0xFF800000> : vector<8xf32>
      %1739 = vector.multi_reduction <maximumf>, %1737, %cst_367 [1] : vector<8x32xf32> to vector<8xf32>
      %1740 = vector.shape_cast %1739 : vector<8xf32> to vector<8x1xf32>
      %1741 = vector.broadcast %1740 : vector<8x1xf32> to vector<8x32xf32>
      %1742 = arith.cmpf oge, %1737, %1741 : vector<8x32xf32>
      %c32_i32 = arith.constant 32 : i32
      %1743 = vector.broadcast %c32_i32 : i32 to vector<8x32xi32>
      %1744 = arith.select %1742, %1738, %1743 : vector<8x32xi1>, vector<8x32xi32>
      %cst_368 = arith.constant dense<2147483647> : vector<8xi32>
      %1745 = vector.multi_reduction <minsi>, %1744, %cst_368 [1] : vector<8x32xi32> to vector<8xi32>
      %1746 = vector.shape_cast %1745 : vector<8xi32> to vector<8x1xi32>
      %1747 = vector.broadcast %1746 : vector<8x1xi32> to vector<8x32xi32>
      %1748 = arith.cmpi eq, %1738, %1747 : vector<8x32xi32>
      %1749 = arith.extui %1748 : vector<8x32xi1> to vector<8x32xi32>
      %1750 = arith.sitofp %1749 : vector<8x32xi32> to vector<8x32xf32>
      %c0_369 = arith.constant 0 : index
      %c0_370 = arith.constant 0 : index
      %1751 = vector.load %arg5[%c0_369, %c0_370] : memref<32x16xf32, #tpu.memory_space<vmem>>, vector<32x16xf32>
      %cst_371 = arith.constant dense<0.000000e+00> : vector<8x16xf32>
      %1752 = tpu.matmul %1750, %1751, %cst_371 {dimension_numbers = #tpu.dot_dimension_numbers<[1], [0], [0], [1], [0, 0, 1, 1], [], []>} : vector<8x32xf32>, vector<32x16xf32>, vector<8x16xf32> -> vector<8x16xf32>
      %c0_372 = arith.constant 0 : index
      %c0_373 = arith.constant 0 : index
      %1753 = vector.load %arg27[%c0_372, %c0_373] : memref<8x16xf32, #tpu.memory_space<vmem>>, vector<8x16xf32>
      tpu.vector_store %arg27[%c0_372, %c0_373], %1752 {strides = array<i32>} : memref<8x16xf32, #tpu.memory_space<vmem>>, vector<8x16xf32>,
    } else {
    }
    %c0_144 = arith.constant 0 : index
    %c0_145 = arith.constant 0 : index
    %520 = vector.load %arg27[%c0_144, %c0_145] : memref<8x16xf32, #tpu.memory_space<vmem>>, vector<8x16xf32>
    %c2 = arith.constant 2 : index
    %c0_146 = arith.constant 0 : index
    %521 = vector.load %arg4[%c2, %c0_146] : memref<8x16xf32, #tpu.memory_space<vmem>>, vector<1x16xf32>
    %522 = vector.broadcast %521 : vector<1x16xf32> to vector<8x16xf32>
    %523 = arith.addf %520, %522 : vector<8x16xf32>
    %cst_147 = arith.constant dense<0.000000e+00> : vector<8x32xf32>
    %524 = tpu.matmul %498, %302, %cst_147 {dimension_numbers = #tpu.dot_dimension_numbers<[1], [0], [0], [1], [0, 0, 1, 1], [], []>} : vector<8x32xf32>, vector<32x32xf32>, vector<8x32xf32> -> vector<8x32xf32>
    %525 = vector.extract_strided_slice %301 {offsets = [0, 0], sizes = [8, 32], strides = [1, 1]} : vector<80x32xf32> to vector<8x32xf32>
    %526 = arith.addf %525, %524 : vector<8x32xf32>
    %527 = math.tanh %526 : vector<8x32xf32>
    %528 = vector.broadcast %303 : vector<1x32xf32> to vector<8x32xf32>
    %529 = arith.mulf %527, %528 : vector<8x32xf32>
    %cst_148 = arith.constant dense<0.000000e+00> : vector<8xf32>
    %530 = vector.multi_reduction <add>, %529, %cst_148 [1] : vector<8x32xf32> to vector<8xf32>
    %531 = vector.shape_cast %530 : vector<8xf32> to vector<8x1xf32>
    %532 = vector.extract_strided_slice %301 {offsets = [8, 0], sizes = [8, 32], strides = [1, 1]} : vector<80x32xf32> to vector<8x32xf32>
    %533 = arith.addf %532, %524 : vector<8x32xf32>
    %534 = math.tanh %533 : vector<8x32xf32>
    %535 = vector.broadcast %303 : vector<1x32xf32> to vector<8x32xf32>
    %536 = arith.mulf %534, %535 : vector<8x32xf32>
    %cst_149 = arith.constant dense<0.000000e+00> : vector<8xf32>
    %537 = vector.multi_reduction <add>, %536, %cst_149 [1] : vector<8x32xf32> to vector<8xf32>
    %538 = vector.shape_cast %537 : vector<8xf32> to vector<8x1xf32>
    %539 = vector.extract_strided_slice %301 {offsets = [16, 0], sizes = [8, 32], strides = [1, 1]} : vector<80x32xf32> to vector<8x32xf32>
    %540 = arith.addf %539, %524 : vector<8x32xf32>
    %541 = math.tanh %540 : vector<8x32xf32>
    %542 = vector.broadcast %303 : vector<1x32xf32> to vector<8x32xf32>
    %543 = arith.mulf %541, %542 : vector<8x32xf32>
    %cst_150 = arith.constant dense<0.000000e+00> : vector<8xf32>
    %544 = vector.multi_reduction <add>, %543, %cst_150 [1] : vector<8x32xf32> to vector<8xf32>
    %545 = vector.shape_cast %544 : vector<8xf32> to vector<8x1xf32>
    %546 = vector.extract_strided_slice %301 {offsets = [24, 0], sizes = [8, 32], strides = [1, 1]} : vector<80x32xf32> to vector<8x32xf32>
    %547 = arith.addf %546, %524 : vector<8x32xf32>
    %548 = math.tanh %547 : vector<8x32xf32>
    %549 = vector.broadcast %303 : vector<1x32xf32> to vector<8x32xf32>
    %550 = arith.mulf %548, %549 : vector<8x32xf32>
    %cst_151 = arith.constant dense<0.000000e+00> : vector<8xf32>
    %551 = vector.multi_reduction <add>, %550, %cst_151 [1] : vector<8x32xf32> to vector<8xf32>
    %552 = vector.shape_cast %551 : vector<8xf32> to vector<8x1xf32>
    %553 = vector.extract_strided_slice %301 {offsets = [32, 0], sizes = [8, 32], strides = [1, 1]} : vector<80x32xf32> to vector<8x32xf32>
    %554 = arith.addf %553, %524 : vector<8x32xf32>
    %555 = math.tanh %554 : vector<8x32xf32>
    %556 = vector.broadcast %303 : vector<1x32xf32> to vector<8x32xf32>
    %557 = arith.mulf %555, %556 : vector<8x32xf32>
    %cst_152 = arith.constant dense<0.000000e+00> : vector<8xf32>
    %558 = vector.multi_reduction <add>, %557, %cst_152 [1] : vector<8x32xf32> to vector<8xf32>
    %559 = vector.shape_cast %558 : vector<8xf32> to vector<8x1xf32>
    %560 = vector.extract_strided_slice %301 {offsets = [40, 0], sizes = [8, 32], strides = [1, 1]} : vector<80x32xf32> to vector<8x32xf32>
    %561 = arith.addf %560, %524 : vector<8x32xf32>
    %562 = math.tanh %561 : vector<8x32xf32>
    %563 = vector.broadcast %303 : vector<1x32xf32> to vector<8x32xf32>
    %564 = arith.mulf %562, %563 : vector<8x32xf32>
    %cst_153 = arith.constant dense<0.000000e+00> : vector<8xf32>
    %565 = vector.multi_reduction <add>, %564, %cst_153 [1] : vector<8x32xf32> to vector<8xf32>
    %566 = vector.shape_cast %565 : vector<8xf32> to vector<8x1xf32>
    %567 = vector.extract_strided_slice %301 {offsets = [48, 0], sizes = [8, 32], strides = [1, 1]} : vector<80x32xf32> to vector<8x32xf32>
    %568 = arith.addf %567, %524 : vector<8x32xf32>
    %569 = math.tanh %568 : vector<8x32xf32>
    %570 = vector.broadcast %303 : vector<1x32xf32> to vector<8x32xf32>
    %571 = arith.mulf %569, %570 : vector<8x32xf32>
    %cst_154 = arith.constant dense<0.000000e+00> : vector<8xf32>
    %572 = vector.multi_reduction <add>, %571, %cst_154 [1] : vector<8x32xf32> to vector<8xf32>
    %573 = vector.shape_cast %572 : vector<8xf32> to vector<8x1xf32>
    %574 = vector.extract_strided_slice %301 {offsets = [56, 0], sizes = [8, 32], strides = [1, 1]} : vector<80x32xf32> to vector<8x32xf32>
    %575 = arith.addf %574, %524 : vector<8x32xf32>
    %576 = math.tanh %575 : vector<8x32xf32>
    %577 = vector.broadcast %303 : vector<1x32xf32> to vector<8x32xf32>
    %578 = arith.mulf %576, %577 : vector<8x32xf32>
    %cst_155 = arith.constant dense<0.000000e+00> : vector<8xf32>
    %579 = vector.multi_reduction <add>, %578, %cst_155 [1] : vector<8x32xf32> to vector<8xf32>
    %580 = vector.shape_cast %579 : vector<8xf32> to vector<8x1xf32>
    %581 = vector.extract_strided_slice %301 {offsets = [64, 0], sizes = [8, 32], strides = [1, 1]} : vector<80x32xf32> to vector<8x32xf32>
    %582 = arith.addf %581, %524 : vector<8x32xf32>
    %583 = math.tanh %582 : vector<8x32xf32>
    %584 = vector.broadcast %303 : vector<1x32xf32> to vector<8x32xf32>
    %585 = arith.mulf %583, %584 : vector<8x32xf32>
    %cst_156 = arith.constant dense<0.000000e+00> : vector<8xf32>
    %586 = vector.multi_reduction <add>, %585, %cst_156 [1] : vector<8x32xf32> to vector<8xf32>
    %587 = vector.shape_cast %586 : vector<8xf32> to vector<8x1xf32>
    %588 = vector.extract_strided_slice %301 {offsets = [72, 0], sizes = [8, 32], strides = [1, 1]} : vector<80x32xf32> to vector<8x32xf32>
    %589 = arith.addf %588, %524 : vector<8x32xf32>
    %590 = math.tanh %589 : vector<8x32xf32>
    %591 = vector.broadcast %303 : vector<1x32xf32> to vector<8x32xf32>
    %592 = arith.mulf %590, %591 : vector<8x32xf32>
    %cst_157 = arith.constant dense<0.000000e+00> : vector<8xf32>
    %593 = vector.multi_reduction <add>, %592, %cst_157 [1] : vector<8x32xf32> to vector<8xf32>
    %594 = vector.shape_cast %593 : vector<8xf32> to vector<8x1xf32>
    %595 = arith.maximumf %531, %538 : vector<8x1xf32>
    %596 = arith.maximumf %595, %545 : vector<8x1xf32>
    %597 = arith.maximumf %596, %552 : vector<8x1xf32>
    %598 = arith.maximumf %597, %559 : vector<8x1xf32>
    %599 = arith.maximumf %598, %566 : vector<8x1xf32>
    %600 = arith.maximumf %599, %573 : vector<8x1xf32>
    %601 = arith.maximumf %600, %580 : vector<8x1xf32>
    %602 = arith.maximumf %601, %587 : vector<8x1xf32>
    %603 = arith.maximumf %602, %594 : vector<8x1xf32>
    %604 = arith.subf %531, %603 : vector<8x1xf32>
    %605 = math.exp %604 : vector<8x1xf32>
    %606 = arith.subf %538, %603 : vector<8x1xf32>
    %607 = math.exp %606 : vector<8x1xf32>
    %608 = arith.subf %545, %603 : vector<8x1xf32>
    %609 = math.exp %608 : vector<8x1xf32>
    %610 = arith.subf %552, %603 : vector<8x1xf32>
    %611 = math.exp %610 : vector<8x1xf32>
    %612 = arith.subf %559, %603 : vector<8x1xf32>
    %613 = math.exp %612 : vector<8x1xf32>
    %614 = arith.subf %566, %603 : vector<8x1xf32>
    %615 = math.exp %614 : vector<8x1xf32>
    %616 = arith.subf %573, %603 : vector<8x1xf32>
    %617 = math.exp %616 : vector<8x1xf32>
    %618 = arith.subf %580, %603 : vector<8x1xf32>
    %619 = math.exp %618 : vector<8x1xf32>
    %620 = arith.subf %587, %603 : vector<8x1xf32>
    %621 = math.exp %620 : vector<8x1xf32>
    %622 = arith.subf %594, %603 : vector<8x1xf32>
    %623 = math.exp %622 : vector<8x1xf32>
    %624 = arith.addf %605, %607 : vector<8x1xf32>
    %625 = arith.addf %624, %609 : vector<8x1xf32>
    %626 = arith.addf %625, %611 : vector<8x1xf32>
    %627 = arith.addf %626, %613 : vector<8x1xf32>
    %628 = arith.addf %627, %615 : vector<8x1xf32>
    %629 = arith.addf %628, %617 : vector<8x1xf32>
    %630 = arith.addf %629, %619 : vector<8x1xf32>
    %631 = arith.addf %630, %621 : vector<8x1xf32>
    %632 = arith.addf %631, %623 : vector<8x1xf32>
    %633 = vector.extract_strided_slice %296 {offsets = [0, 0], sizes = [8, 64], strides = [1, 1]} : vector<80x64xf32> to vector<8x64xf32>
    %634 = vector.broadcast %605 : vector<8x1xf32> to vector<8x64xf32>
    %635 = arith.mulf %634, %633 : vector<8x64xf32>
    %636 = vector.extract_strided_slice %296 {offsets = [8, 0], sizes = [8, 64], strides = [1, 1]} : vector<80x64xf32> to vector<8x64xf32>
    %637 = vector.broadcast %607 : vector<8x1xf32> to vector<8x64xf32>
    %638 = arith.mulf %637, %636 : vector<8x64xf32>
    %639 = arith.addf %635, %638 : vector<8x64xf32>
    %640 = vector.extract_strided_slice %296 {offsets = [16, 0], sizes = [8, 64], strides = [1, 1]} : vector<80x64xf32> to vector<8x64xf32>
    %641 = vector.broadcast %609 : vector<8x1xf32> to vector<8x64xf32>
    %642 = arith.mulf %641, %640 : vector<8x64xf32>
    %643 = arith.addf %639, %642 : vector<8x64xf32>
    %644 = vector.extract_strided_slice %296 {offsets = [24, 0], sizes = [8, 64], strides = [1, 1]} : vector<80x64xf32> to vector<8x64xf32>
    %645 = vector.broadcast %611 : vector<8x1xf32> to vector<8x64xf32>
    %646 = arith.mulf %645, %644 : vector<8x64xf32>
    %647 = arith.addf %643, %646 : vector<8x64xf32>
    %648 = vector.extract_strided_slice %296 {offsets = [32, 0], sizes = [8, 64], strides = [1, 1]} : vector<80x64xf32> to vector<8x64xf32>
    %649 = vector.broadcast %613 : vector<8x1xf32> to vector<8x64xf32>
    %650 = arith.mulf %649, %648 : vector<8x64xf32>
    %651 = arith.addf %647, %650 : vector<8x64xf32>
    %652 = vector.extract_strided_slice %296 {offsets = [40, 0], sizes = [8, 64], strides = [1, 1]} : vector<80x64xf32> to vector<8x64xf32>
    %653 = vector.broadcast %615 : vector<8x1xf32> to vector<8x64xf32>
    %654 = arith.mulf %653, %652 : vector<8x64xf32>
    %655 = arith.addf %651, %654 : vector<8x64xf32>
    %656 = vector.extract_strided_slice %296 {offsets = [48, 0], sizes = [8, 64], strides = [1, 1]} : vector<80x64xf32> to vector<8x64xf32>
    %657 = vector.broadcast %617 : vector<8x1xf32> to vector<8x64xf32>
    %658 = arith.mulf %657, %656 : vector<8x64xf32>
    %659 = arith.addf %655, %658 : vector<8x64xf32>
    %660 = vector.extract_strided_slice %296 {offsets = [56, 0], sizes = [8, 64], strides = [1, 1]} : vector<80x64xf32> to vector<8x64xf32>
    %661 = vector.broadcast %619 : vector<8x1xf32> to vector<8x64xf32>
    %662 = arith.mulf %661, %660 : vector<8x64xf32>
    %663 = arith.addf %659, %662 : vector<8x64xf32>
    %664 = vector.extract_strided_slice %296 {offsets = [64, 0], sizes = [8, 64], strides = [1, 1]} : vector<80x64xf32> to vector<8x64xf32>
    %665 = vector.broadcast %621 : vector<8x1xf32> to vector<8x64xf32>
    %666 = arith.mulf %665, %664 : vector<8x64xf32>
    %667 = arith.addf %663, %666 : vector<8x64xf32>
    %668 = vector.extract_strided_slice %296 {offsets = [72, 0], sizes = [8, 64], strides = [1, 1]} : vector<80x64xf32> to vector<8x64xf32>
    %669 = vector.broadcast %623 : vector<8x1xf32> to vector<8x64xf32>
    %670 = arith.mulf %669, %668 : vector<8x64xf32>
    %671 = arith.addf %667, %670 : vector<8x64xf32>
    %672 = tpu.reciprocal %632 {approx = true} : vector<8x1xf32> -> vector<8x1xf32>
    %673 = vector.broadcast %672 : vector<8x1xf32> to vector<8x64xf32>
    %674 = arith.mulf %671, %673 : vector<8x64xf32>
    %cst_158 = arith.constant dense<0.000000e+00> : vector<8x96xf32>
    %675 = tpu.matmul %523, %304, %cst_158 {dimension_numbers = #tpu.dot_dimension_numbers<[1], [0], [0], [1], [0, 0, 1, 1], [], []>} : vector<8x16xf32>, vector<16x96xf32>, vector<8x96xf32> -> vector<8x96xf32>
    %cst_159 = arith.constant dense<0.000000e+00> : vector<8x96xf32>
    %676 = tpu.matmul %674, %305, %cst_159 {dimension_numbers = #tpu.dot_dimension_numbers<[1], [0], [0], [1], [0, 0, 1, 1], [], []>} : vector<8x64xf32>, vector<64x96xf32>, vector<8x96xf32> -> vector<8x96xf32>
    %677 = arith.addf %675, %676 : vector<8x96xf32>
    %678 = vector.broadcast %307 : vector<1x96xf32> to vector<8x96xf32>
    %679 = arith.addf %677, %678 : vector<8x96xf32>
    %cst_160 = arith.constant dense<0.000000e+00> : vector<8x96xf32>
    %680 = tpu.matmul %498, %306, %cst_160 {dimension_numbers = #tpu.dot_dimension_numbers<[1], [0], [0], [1], [0, 0, 1, 1], [], []>} : vector<8x32xf32>, vector<32x96xf32>, vector<8x96xf32> -> vector<8x96xf32>
    %681 = vector.broadcast %308 : vector<1x96xf32> to vector<8x96xf32>
    %682 = arith.addf %680, %681 : vector<8x96xf32>
    %683 = vector.extract_strided_slice %679 {offsets = [0, 0], sizes = [8, 64], strides = [1, 1]} : vector<8x96xf32> to vector<8x64xf32>
    %684 = vector.extract_strided_slice %682 {offsets = [0, 0], sizes = [8, 64], strides = [1, 1]} : vector<8x96xf32> to vector<8x64xf32>
    %685 = arith.addf %683, %684 : vector<8x64xf32>
    %686 = arith.negf %685 : vector<8x64xf32>
    %687 = math.exp %686 : vector<8x64xf32>
    %cst_161 = arith.constant 1.000000e+00 : f32
    %688 = vector.broadcast %cst_161 : f32 to vector<8x64xf32>
    %689 = arith.addf %688, %687 : vector<8x64xf32>
    %690 = arith.divf %688, %689 : vector<8x64xf32>
    %691 = vector.extract_strided_slice %690 {offsets = [0, 0], sizes = [8, 32], strides = [1, 1]} : vector<8x64xf32> to vector<8x32xf32>
    %692 = vector.extract_strided_slice %690 {offsets = [0, 32], sizes = [8, 32], strides = [1, 1]} : vector<8x64xf32> to vector<8x32xf32>
    %693 = vector.extract_strided_slice %679 {offsets = [0, 64], sizes = [8, 32], strides = [1, 1]} : vector<8x96xf32> to vector<8x32xf32>
    %694 = vector.extract_strided_slice %682 {offsets = [0, 64], sizes = [8, 32], strides = [1, 1]} : vector<8x96xf32> to vector<8x32xf32>
    %695 = arith.mulf %691, %694 : vector<8x32xf32>
    %696 = arith.addf %693, %695 : vector<8x32xf32>
    %697 = math.tanh %696 : vector<8x32xf32>
    %cst_162 = arith.constant 1.000000e+00 : f32
    %698 = vector.broadcast %cst_162 : f32 to vector<8x32xf32>
    %699 = arith.subf %698, %692 : vector<8x32xf32>
    %700 = arith.mulf %699, %697 : vector<8x32xf32>
    %701 = arith.mulf %692, %498 : vector<8x32xf32>
    %702 = arith.addf %700, %701 : vector<8x32xf32>
    %c0_163 = arith.constant 0 : index
    %c0_164 = arith.constant 0 : index
    %703 = vector.load %arg21[%c0_163, %c0_164] : memref<32x128xf32, #tpu.memory_space<vmem>>, vector<32x128xf32>
    %cst_165 = arith.constant dense<0.000000e+00> : vector<8x128xf32>
    %704 = tpu.matmul %702, %703, %cst_165 {dimension_numbers = #tpu.dot_dimension_numbers<[1], [0], [0], [1], [0, 0, 1, 1], [], []>} : vector<8x32xf32>, vector<32x128xf32>, vector<8x128xf32> -> vector<8x128xf32>
    %c0_166 = arith.constant 0 : index
    %c0_167 = arith.constant 0 : index
    %705 = vector.load %arg22[%c0_166, %c0_167] : memref<64x128xf32, #tpu.memory_space<vmem>>, vector<64x128xf32>
    %cst_168 = arith.constant dense<0.000000e+00> : vector<8x128xf32>
    %706 = tpu.matmul %674, %705, %cst_168 {dimension_numbers = #tpu.dot_dimension_numbers<[1], [0], [0], [1], [0, 0, 1, 1], [], []>} : vector<8x64xf32>, vector<64x128xf32>, vector<8x128xf32> -> vector<8x128xf32>
    %707 = arith.addf %704, %706 : vector<8x128xf32>
    %c0_169 = arith.constant 0 : index
    %c0_170 = arith.constant 0 : index
    %708 = vector.load %arg23[%c0_169, %c0_170] : memref<16x128xf32, #tpu.memory_space<vmem>>, vector<16x128xf32>
    %cst_171 = arith.constant dense<0.000000e+00> : vector<8x128xf32>
    %709 = tpu.matmul %523, %708, %cst_171 {dimension_numbers = #tpu.dot_dimension_numbers<[1], [0], [0], [1], [0, 0, 1, 1], [], []>} : vector<8x16xf32>, vector<16x128xf32>, vector<8x128xf32> -> vector<8x128xf32>
    %710 = arith.addf %707, %709 : vector<8x128xf32>
    %c0_172 = arith.constant 0 : index
    %c0_173 = arith.constant 0 : index
    %711 = vector.load %arg24[%c0_172, %c0_173] : memref<1x128xf32, #tpu.memory_space<vmem>>, vector<1x128xf32>
    %712 = vector.broadcast %711 : vector<1x128xf32> to vector<8x128xf32>
    %713 = arith.addf %710, %712 : vector<8x128xf32>
    %c0_174 = arith.constant 0 : index
    %c16_175 = arith.constant 16 : index
    %c0_176 = arith.constant 0 : index
    %714 = vector.load %arg25[%c0_174, %c16_175, %c0_176] : memref<1x64x128xf32, #tpu.memory_space<vmem>>, vector<1x8x128xf32>
    %715 = vector.shape_cast %714 : vector<1x8x128xf32> to vector<8x128xf32>
    %716 = vector.shape_cast %713 : vector<8x128xf32> to vector<1x8x128xf32>
    tpu.vector_store %arg25[%c0_174, %c16_175, %c0_176], %716 {strides = array<i32>} : memref<1x64x128xf32, #tpu.memory_space<vmem>>, vector<1x8x128xf32>,
    %c2_177 = arith.constant 2 : index
    %717 = memref.load %arg1[%c2_177] : memref<8xi32, #tpu.memory_space<smem>>
    %c1_i32_178 = arith.constant 1 : i32
    %718 = arith.cmpi eq, %717, %c1_i32_178 : i32
    %719 = arith.extui %718 : i1 to i32
    %c0_i32_179 = arith.constant 0 : i32
    %720 = arith.cmpi ne, %719, %c0_i32_179 : i32
    scf.if %720 {
      %c0_367 = arith.constant 0 : index
      %c2_368 = arith.constant 2 : index
      %c0_369 = arith.constant 0 : index
      %c0_370 = arith.constant 0 : index
      %1737 = vector.load %arg3[%c0_367, %c2_368, %c0_369, %c0_370] : memref<1x8x8x16xf32, #tpu.memory_space<vmem>>, vector<1x1x8x16xf32>
      %1738 = vector.shape_cast %1737 : vector<1x1x8x16xf32> to vector<8x16xf32>
      %c0_371 = arith.constant 0 : index
      %c0_372 = arith.constant 0 : index
      %1739 = vector.load %arg27[%c0_371, %c0_372] : memref<8x16xf32, #tpu.memory_space<vmem>>, vector<8x16xf32>
      tpu.vector_store %arg27[%c0_371, %c0_372], %1738 {strides = array<i32>} : memref<8x16xf32, #tpu.memory_space<vmem>>, vector<8x16xf32>,
    } else {
    }
    %c0_i32_180 = arith.constant 0 : i32
    %721 = arith.cmpi eq, %717, %c0_i32_180 : i32
    %722 = arith.extui %721 : i1 to i32
    %c0_i32_181 = arith.constant 0 : i32
    %723 = arith.cmpi ne, %722, %c0_i32_181 : i32
    scf.if %723 {
      %1737 = vector.extract_strided_slice %713 {offsets = [0, 0], sizes = [8, 32], strides = [1, 1]} : vector<8x128xf32> to vector<8x32xf32>
      %1738 = tpu.iota {dimensions = array<i32: 1>} : vector<8x32xi32>
      %cst_367 = arith.constant dense<0xFF800000> : vector<8xf32>
      %1739 = vector.multi_reduction <maximumf>, %1737, %cst_367 [1] : vector<8x32xf32> to vector<8xf32>
      %1740 = vector.shape_cast %1739 : vector<8xf32> to vector<8x1xf32>
      %1741 = vector.broadcast %1740 : vector<8x1xf32> to vector<8x32xf32>
      %1742 = arith.cmpf oge, %1737, %1741 : vector<8x32xf32>
      %c32_i32 = arith.constant 32 : i32
      %1743 = vector.broadcast %c32_i32 : i32 to vector<8x32xi32>
      %1744 = arith.select %1742, %1738, %1743 : vector<8x32xi1>, vector<8x32xi32>
      %cst_368 = arith.constant dense<2147483647> : vector<8xi32>
      %1745 = vector.multi_reduction <minsi>, %1744, %cst_368 [1] : vector<8x32xi32> to vector<8xi32>
      %1746 = vector.shape_cast %1745 : vector<8xi32> to vector<8x1xi32>
      %1747 = vector.broadcast %1746 : vector<8x1xi32> to vector<8x32xi32>
      %1748 = arith.cmpi eq, %1738, %1747 : vector<8x32xi32>
      %1749 = arith.extui %1748 : vector<8x32xi1> to vector<8x32xi32>
      %1750 = arith.sitofp %1749 : vector<8x32xi32> to vector<8x32xf32>
      %c0_369 = arith.constant 0 : index
      %c0_370 = arith.constant 0 : index
      %1751 = vector.load %arg5[%c0_369, %c0_370] : memref<32x16xf32, #tpu.memory_space<vmem>>, vector<32x16xf32>
      %cst_371 = arith.constant dense<0.000000e+00> : vector<8x16xf32>
      %1752 = tpu.matmul %1750, %1751, %cst_371 {dimension_numbers = #tpu.dot_dimension_numbers<[1], [0], [0], [1], [0, 0, 1, 1], [], []>} : vector<8x32xf32>, vector<32x16xf32>, vector<8x16xf32> -> vector<8x16xf32>
      %c0_372 = arith.constant 0 : index
      %c0_373 = arith.constant 0 : index
      %1753 = vector.load %arg27[%c0_372, %c0_373] : memref<8x16xf32, #tpu.memory_space<vmem>>, vector<8x16xf32>
      tpu.vector_store %arg27[%c0_372, %c0_373], %1752 {strides = array<i32>} : memref<8x16xf32, #tpu.memory_space<vmem>>, vector<8x16xf32>,
    } else {
    }
    %c0_182 = arith.constant 0 : index
    %c0_183 = arith.constant 0 : index
    %724 = vector.load %arg27[%c0_182, %c0_183] : memref<8x16xf32, #tpu.memory_space<vmem>>, vector<8x16xf32>
    %c3 = arith.constant 3 : index
    %c0_184 = arith.constant 0 : index
    %725 = vector.load %arg4[%c3, %c0_184] : memref<8x16xf32, #tpu.memory_space<vmem>>, vector<1x16xf32>
    %726 = vector.broadcast %725 : vector<1x16xf32> to vector<8x16xf32>
    %727 = arith.addf %724, %726 : vector<8x16xf32>
    %cst_185 = arith.constant dense<0.000000e+00> : vector<8x32xf32>
    %728 = tpu.matmul %702, %302, %cst_185 {dimension_numbers = #tpu.dot_dimension_numbers<[1], [0], [0], [1], [0, 0, 1, 1], [], []>} : vector<8x32xf32>, vector<32x32xf32>, vector<8x32xf32> -> vector<8x32xf32>
    %729 = vector.extract_strided_slice %301 {offsets = [0, 0], sizes = [8, 32], strides = [1, 1]} : vector<80x32xf32> to vector<8x32xf32>
    %730 = arith.addf %729, %728 : vector<8x32xf32>
    %731 = math.tanh %730 : vector<8x32xf32>
    %732 = vector.broadcast %303 : vector<1x32xf32> to vector<8x32xf32>
    %733 = arith.mulf %731, %732 : vector<8x32xf32>
    %cst_186 = arith.constant dense<0.000000e+00> : vector<8xf32>
    %734 = vector.multi_reduction <add>, %733, %cst_186 [1] : vector<8x32xf32> to vector<8xf32>
    %735 = vector.shape_cast %734 : vector<8xf32> to vector<8x1xf32>
    %736 = vector.extract_strided_slice %301 {offsets = [8, 0], sizes = [8, 32], strides = [1, 1]} : vector<80x32xf32> to vector<8x32xf32>
    %737 = arith.addf %736, %728 : vector<8x32xf32>
    %738 = math.tanh %737 : vector<8x32xf32>
    %739 = vector.broadcast %303 : vector<1x32xf32> to vector<8x32xf32>
    %740 = arith.mulf %738, %739 : vector<8x32xf32>
    %cst_187 = arith.constant dense<0.000000e+00> : vector<8xf32>
    %741 = vector.multi_reduction <add>, %740, %cst_187 [1] : vector<8x32xf32> to vector<8xf32>
    %742 = vector.shape_cast %741 : vector<8xf32> to vector<8x1xf32>
    %743 = vector.extract_strided_slice %301 {offsets = [16, 0], sizes = [8, 32], strides = [1, 1]} : vector<80x32xf32> to vector<8x32xf32>
    %744 = arith.addf %743, %728 : vector<8x32xf32>
    %745 = math.tanh %744 : vector<8x32xf32>
    %746 = vector.broadcast %303 : vector<1x32xf32> to vector<8x32xf32>
    %747 = arith.mulf %745, %746 : vector<8x32xf32>
    %cst_188 = arith.constant dense<0.000000e+00> : vector<8xf32>
    %748 = vector.multi_reduction <add>, %747, %cst_188 [1] : vector<8x32xf32> to vector<8xf32>
    %749 = vector.shape_cast %748 : vector<8xf32> to vector<8x1xf32>
    %750 = vector.extract_strided_slice %301 {offsets = [24, 0], sizes = [8, 32], strides = [1, 1]} : vector<80x32xf32> to vector<8x32xf32>
    %751 = arith.addf %750, %728 : vector<8x32xf32>
    %752 = math.tanh %751 : vector<8x32xf32>
    %753 = vector.broadcast %303 : vector<1x32xf32> to vector<8x32xf32>
    %754 = arith.mulf %752, %753 : vector<8x32xf32>
    %cst_189 = arith.constant dense<0.000000e+00> : vector<8xf32>
    %755 = vector.multi_reduction <add>, %754, %cst_189 [1] : vector<8x32xf32> to vector<8xf32>
    %756 = vector.shape_cast %755 : vector<8xf32> to vector<8x1xf32>
    %757 = vector.extract_strided_slice %301 {offsets = [32, 0], sizes = [8, 32], strides = [1, 1]} : vector<80x32xf32> to vector<8x32xf32>
    %758 = arith.addf %757, %728 : vector<8x32xf32>
    %759 = math.tanh %758 : vector<8x32xf32>
    %760 = vector.broadcast %303 : vector<1x32xf32> to vector<8x32xf32>
    %761 = arith.mulf %759, %760 : vector<8x32xf32>
    %cst_190 = arith.constant dense<0.000000e+00> : vector<8xf32>
    %762 = vector.multi_reduction <add>, %761, %cst_190 [1] : vector<8x32xf32> to vector<8xf32>
    %763 = vector.shape_cast %762 : vector<8xf32> to vector<8x1xf32>
    %764 = vector.extract_strided_slice %301 {offsets = [40, 0], sizes = [8, 32], strides = [1, 1]} : vector<80x32xf32> to vector<8x32xf32>
    %765 = arith.addf %764, %728 : vector<8x32xf32>
    %766 = math.tanh %765 : vector<8x32xf32>
    %767 = vector.broadcast %303 : vector<1x32xf32> to vector<8x32xf32>
    %768 = arith.mulf %766, %767 : vector<8x32xf32>
    %cst_191 = arith.constant dense<0.000000e+00> : vector<8xf32>
    %769 = vector.multi_reduction <add>, %768, %cst_191 [1] : vector<8x32xf32> to vector<8xf32>
    %770 = vector.shape_cast %769 : vector<8xf32> to vector<8x1xf32>
    %771 = vector.extract_strided_slice %301 {offsets = [48, 0], sizes = [8, 32], strides = [1, 1]} : vector<80x32xf32> to vector<8x32xf32>
    %772 = arith.addf %771, %728 : vector<8x32xf32>
    %773 = math.tanh %772 : vector<8x32xf32>
    %774 = vector.broadcast %303 : vector<1x32xf32> to vector<8x32xf32>
    %775 = arith.mulf %773, %774 : vector<8x32xf32>
    %cst_192 = arith.constant dense<0.000000e+00> : vector<8xf32>
    %776 = vector.multi_reduction <add>, %775, %cst_192 [1] : vector<8x32xf32> to vector<8xf32>
    %777 = vector.shape_cast %776 : vector<8xf32> to vector<8x1xf32>
    %778 = vector.extract_strided_slice %301 {offsets = [56, 0], sizes = [8, 32], strides = [1, 1]} : vector<80x32xf32> to vector<8x32xf32>
    %779 = arith.addf %778, %728 : vector<8x32xf32>
    %780 = math.tanh %779 : vector<8x32xf32>
    %781 = vector.broadcast %303 : vector<1x32xf32> to vector<8x32xf32>
    %782 = arith.mulf %780, %781 : vector<8x32xf32>
    %cst_193 = arith.constant dense<0.000000e+00> : vector<8xf32>
    %783 = vector.multi_reduction <add>, %782, %cst_193 [1] : vector<8x32xf32> to vector<8xf32>
    %784 = vector.shape_cast %783 : vector<8xf32> to vector<8x1xf32>
    %785 = vector.extract_strided_slice %301 {offsets = [64, 0], sizes = [8, 32], strides = [1, 1]} : vector<80x32xf32> to vector<8x32xf32>
    %786 = arith.addf %785, %728 : vector<8x32xf32>
    %787 = math.tanh %786 : vector<8x32xf32>
    %788 = vector.broadcast %303 : vector<1x32xf32> to vector<8x32xf32>
    %789 = arith.mulf %787, %788 : vector<8x32xf32>
    %cst_194 = arith.constant dense<0.000000e+00> : vector<8xf32>
    %790 = vector.multi_reduction <add>, %789, %cst_194 [1] : vector<8x32xf32> to vector<8xf32>
    %791 = vector.shape_cast %790 : vector<8xf32> to vector<8x1xf32>
    %792 = vector.extract_strided_slice %301 {offsets = [72, 0], sizes = [8, 32], strides = [1, 1]} : vector<80x32xf32> to vector<8x32xf32>
    %793 = arith.addf %792, %728 : vector<8x32xf32>
    %794 = math.tanh %793 : vector<8x32xf32>
    %795 = vector.broadcast %303 : vector<1x32xf32> to vector<8x32xf32>
    %796 = arith.mulf %794, %795 : vector<8x32xf32>
    %cst_195 = arith.constant dense<0.000000e+00> : vector<8xf32>
    %797 = vector.multi_reduction <add>, %796, %cst_195 [1] : vector<8x32xf32> to vector<8xf32>
    %798 = vector.shape_cast %797 : vector<8xf32> to vector<8x1xf32>
    %799 = arith.maximumf %735, %742 : vector<8x1xf32>
    %800 = arith.maximumf %799, %749 : vector<8x1xf32>
    %801 = arith.maximumf %800, %756 : vector<8x1xf32>
    %802 = arith.maximumf %801, %763 : vector<8x1xf32>
    %803 = arith.maximumf %802, %770 : vector<8x1xf32>
    %804 = arith.maximumf %803, %777 : vector<8x1xf32>
    %805 = arith.maximumf %804, %784 : vector<8x1xf32>
    %806 = arith.maximumf %805, %791 : vector<8x1xf32>
    %807 = arith.maximumf %806, %798 : vector<8x1xf32>
    %808 = arith.subf %735, %807 : vector<8x1xf32>
    %809 = math.exp %808 : vector<8x1xf32>
    %810 = arith.subf %742, %807 : vector<8x1xf32>
    %811 = math.exp %810 : vector<8x1xf32>
    %812 = arith.subf %749, %807 : vector<8x1xf32>
    %813 = math.exp %812 : vector<8x1xf32>
    %814 = arith.subf %756, %807 : vector<8x1xf32>
    %815 = math.exp %814 : vector<8x1xf32>
    %816 = arith.subf %763, %807 : vector<8x1xf32>
    %817 = math.exp %816 : vector<8x1xf32>
    %818 = arith.subf %770, %807 : vector<8x1xf32>
    %819 = math.exp %818 : vector<8x1xf32>
    %820 = arith.subf %777, %807 : vector<8x1xf32>
    %821 = math.exp %820 : vector<8x1xf32>
    %822 = arith.subf %784, %807 : vector<8x1xf32>
    %823 = math.exp %822 : vector<8x1xf32>
    %824 = arith.subf %791, %807 : vector<8x1xf32>
    %825 = math.exp %824 : vector<8x1xf32>
    %826 = arith.subf %798, %807 : vector<8x1xf32>
    %827 = math.exp %826 : vector<8x1xf32>
    %828 = arith.addf %809, %811 : vector<8x1xf32>
    %829 = arith.addf %828, %813 : vector<8x1xf32>
    %830 = arith.addf %829, %815 : vector<8x1xf32>
    %831 = arith.addf %830, %817 : vector<8x1xf32>
    %832 = arith.addf %831, %819 : vector<8x1xf32>
    %833 = arith.addf %832, %821 : vector<8x1xf32>
    %834 = arith.addf %833, %823 : vector<8x1xf32>
    %835 = arith.addf %834, %825 : vector<8x1xf32>
    %836 = arith.addf %835, %827 : vector<8x1xf32>
    %837 = vector.extract_strided_slice %296 {offsets = [0, 0], sizes = [8, 64], strides = [1, 1]} : vector<80x64xf32> to vector<8x64xf32>
    %838 = vector.broadcast %809 : vector<8x1xf32> to vector<8x64xf32>
    %839 = arith.mulf %838, %837 : vector<8x64xf32>
    %840 = vector.extract_strided_slice %296 {offsets = [8, 0], sizes = [8, 64], strides = [1, 1]} : vector<80x64xf32> to vector<8x64xf32>
    %841 = vector.broadcast %811 : vector<8x1xf32> to vector<8x64xf32>
    %842 = arith.mulf %841, %840 : vector<8x64xf32>
    %843 = arith.addf %839, %842 : vector<8x64xf32>
    %844 = vector.extract_strided_slice %296 {offsets = [16, 0], sizes = [8, 64], strides = [1, 1]} : vector<80x64xf32> to vector<8x64xf32>
    %845 = vector.broadcast %813 : vector<8x1xf32> to vector<8x64xf32>
    %846 = arith.mulf %845, %844 : vector<8x64xf32>
    %847 = arith.addf %843, %846 : vector<8x64xf32>
    %848 = vector.extract_strided_slice %296 {offsets = [24, 0], sizes = [8, 64], strides = [1, 1]} : vector<80x64xf32> to vector<8x64xf32>
    %849 = vector.broadcast %815 : vector<8x1xf32> to vector<8x64xf32>
    %850 = arith.mulf %849, %848 : vector<8x64xf32>
    %851 = arith.addf %847, %850 : vector<8x64xf32>
    %852 = vector.extract_strided_slice %296 {offsets = [32, 0], sizes = [8, 64], strides = [1, 1]} : vector<80x64xf32> to vector<8x64xf32>
    %853 = vector.broadcast %817 : vector<8x1xf32> to vector<8x64xf32>
    %854 = arith.mulf %853, %852 : vector<8x64xf32>
    %855 = arith.addf %851, %854 : vector<8x64xf32>
    %856 = vector.extract_strided_slice %296 {offsets = [40, 0], sizes = [8, 64], strides = [1, 1]} : vector<80x64xf32> to vector<8x64xf32>
    %857 = vector.broadcast %819 : vector<8x1xf32> to vector<8x64xf32>
    %858 = arith.mulf %857, %856 : vector<8x64xf32>
    %859 = arith.addf %855, %858 : vector<8x64xf32>
    %860 = vector.extract_strided_slice %296 {offsets = [48, 0], sizes = [8, 64], strides = [1, 1]} : vector<80x64xf32> to vector<8x64xf32>
    %861 = vector.broadcast %821 : vector<8x1xf32> to vector<8x64xf32>
    %862 = arith.mulf %861, %860 : vector<8x64xf32>
    %863 = arith.addf %859, %862 : vector<8x64xf32>
    %864 = vector.extract_strided_slice %296 {offsets = [56, 0], sizes = [8, 64], strides = [1, 1]} : vector<80x64xf32> to vector<8x64xf32>
    %865 = vector.broadcast %823 : vector<8x1xf32> to vector<8x64xf32>
    %866 = arith.mulf %865, %864 : vector<8x64xf32>
    %867 = arith.addf %863, %866 : vector<8x64xf32>
    %868 = vector.extract_strided_slice %296 {offsets = [64, 0], sizes = [8, 64], strides = [1, 1]} : vector<80x64xf32> to vector<8x64xf32>
    %869 = vector.broadcast %825 : vector<8x1xf32> to vector<8x64xf32>
    %870 = arith.mulf %869, %868 : vector<8x64xf32>
    %871 = arith.addf %867, %870 : vector<8x64xf32>
    %872 = vector.extract_strided_slice %296 {offsets = [72, 0], sizes = [8, 64], strides = [1, 1]} : vector<80x64xf32> to vector<8x64xf32>
    %873 = vector.broadcast %827 : vector<8x1xf32> to vector<8x64xf32>
    %874 = arith.mulf %873, %872 : vector<8x64xf32>
    %875 = arith.addf %871, %874 : vector<8x64xf32>
    %876 = tpu.reciprocal %836 {approx = true} : vector<8x1xf32> -> vector<8x1xf32>
    %877 = vector.broadcast %876 : vector<8x1xf32> to vector<8x64xf32>
    %878 = arith.mulf %875, %877 : vector<8x64xf32>
    %cst_196 = arith.constant dense<0.000000e+00> : vector<8x96xf32>
    %879 = tpu.matmul %727, %304, %cst_196 {dimension_numbers = #tpu.dot_dimension_numbers<[1], [0], [0], [1], [0, 0, 1, 1], [], []>} : vector<8x16xf32>, vector<16x96xf32>, vector<8x96xf32> -> vector<8x96xf32>
    %cst_197 = arith.constant dense<0.000000e+00> : vector<8x96xf32>
    %880 = tpu.matmul %878, %305, %cst_197 {dimension_numbers = #tpu.dot_dimension_numbers<[1], [0], [0], [1], [0, 0, 1, 1], [], []>} : vector<8x64xf32>, vector<64x96xf32>, vector<8x96xf32> -> vector<8x96xf32>
    %881 = arith.addf %879, %880 : vector<8x96xf32>
    %882 = vector.broadcast %307 : vector<1x96xf32> to vector<8x96xf32>
    %883 = arith.addf %881, %882 : vector<8x96xf32>
    %cst_198 = arith.constant dense<0.000000e+00> : vector<8x96xf32>
    %884 = tpu.matmul %702, %306, %cst_198 {dimension_numbers = #tpu.dot_dimension_numbers<[1], [0], [0], [1], [0, 0, 1, 1], [], []>} : vector<8x32xf32>, vector<32x96xf32>, vector<8x96xf32> -> vector<8x96xf32>
    %885 = vector.broadcast %308 : vector<1x96xf32> to vector<8x96xf32>
    %886 = arith.addf %884, %885 : vector<8x96xf32>
    %887 = vector.extract_strided_slice %883 {offsets = [0, 0], sizes = [8, 64], strides = [1, 1]} : vector<8x96xf32> to vector<8x64xf32>
    %888 = vector.extract_strided_slice %886 {offsets = [0, 0], sizes = [8, 64], strides = [1, 1]} : vector<8x96xf32> to vector<8x64xf32>
    %889 = arith.addf %887, %888 : vector<8x64xf32>
    %890 = arith.negf %889 : vector<8x64xf32>
    %891 = math.exp %890 : vector<8x64xf32>
    %cst_199 = arith.constant 1.000000e+00 : f32
    %892 = vector.broadcast %cst_199 : f32 to vector<8x64xf32>
    %893 = arith.addf %892, %891 : vector<8x64xf32>
    %894 = arith.divf %892, %893 : vector<8x64xf32>
    %895 = vector.extract_strided_slice %894 {offsets = [0, 0], sizes = [8, 32], strides = [1, 1]} : vector<8x64xf32> to vector<8x32xf32>
    %896 = vector.extract_strided_slice %894 {offsets = [0, 32], sizes = [8, 32], strides = [1, 1]} : vector<8x64xf32> to vector<8x32xf32>
    %897 = vector.extract_strided_slice %883 {offsets = [0, 64], sizes = [8, 32], strides = [1, 1]} : vector<8x96xf32> to vector<8x32xf32>
    %898 = vector.extract_strided_slice %886 {offsets = [0, 64], sizes = [8, 32], strides = [1, 1]} : vector<8x96xf32> to vector<8x32xf32>
    %899 = arith.mulf %895, %898 : vector<8x32xf32>
    %900 = arith.addf %897, %899 : vector<8x32xf32>
    %901 = math.tanh %900 : vector<8x32xf32>
    %cst_200 = arith.constant 1.000000e+00 : f32
    %902 = vector.broadcast %cst_200 : f32 to vector<8x32xf32>
    %903 = arith.subf %902, %896 : vector<8x32xf32>
    %904 = arith.mulf %903, %901 : vector<8x32xf32>
    %905 = arith.mulf %896, %702 : vector<8x32xf32>
    %906 = arith.addf %904, %905 : vector<8x32xf32>
    %c0_201 = arith.constant 0 : index
    %c0_202 = arith.constant 0 : index
    %907 = vector.load %arg21[%c0_201, %c0_202] : memref<32x128xf32, #tpu.memory_space<vmem>>, vector<32x128xf32>
    %cst_203 = arith.constant dense<0.000000e+00> : vector<8x128xf32>
    %908 = tpu.matmul %906, %907, %cst_203 {dimension_numbers = #tpu.dot_dimension_numbers<[1], [0], [0], [1], [0, 0, 1, 1], [], []>} : vector<8x32xf32>, vector<32x128xf32>, vector<8x128xf32> -> vector<8x128xf32>
    %c0_204 = arith.constant 0 : index
    %c0_205 = arith.constant 0 : index
    %909 = vector.load %arg22[%c0_204, %c0_205] : memref<64x128xf32, #tpu.memory_space<vmem>>, vector<64x128xf32>
    %cst_206 = arith.constant dense<0.000000e+00> : vector<8x128xf32>
    %910 = tpu.matmul %878, %909, %cst_206 {dimension_numbers = #tpu.dot_dimension_numbers<[1], [0], [0], [1], [0, 0, 1, 1], [], []>} : vector<8x64xf32>, vector<64x128xf32>, vector<8x128xf32> -> vector<8x128xf32>
    %911 = arith.addf %908, %910 : vector<8x128xf32>
    %c0_207 = arith.constant 0 : index
    %c0_208 = arith.constant 0 : index
    %912 = vector.load %arg23[%c0_207, %c0_208] : memref<16x128xf32, #tpu.memory_space<vmem>>, vector<16x128xf32>
    %cst_209 = arith.constant dense<0.000000e+00> : vector<8x128xf32>
    %913 = tpu.matmul %727, %912, %cst_209 {dimension_numbers = #tpu.dot_dimension_numbers<[1], [0], [0], [1], [0, 0, 1, 1], [], []>} : vector<8x16xf32>, vector<16x128xf32>, vector<8x128xf32> -> vector<8x128xf32>
    %914 = arith.addf %911, %913 : vector<8x128xf32>
    %c0_210 = arith.constant 0 : index
    %c0_211 = arith.constant 0 : index
    %915 = vector.load %arg24[%c0_210, %c0_211] : memref<1x128xf32, #tpu.memory_space<vmem>>, vector<1x128xf32>
    %916 = vector.broadcast %915 : vector<1x128xf32> to vector<8x128xf32>
    %917 = arith.addf %914, %916 : vector<8x128xf32>
    %c0_212 = arith.constant 0 : index
    %c24_213 = arith.constant 24 : index
    %c0_214 = arith.constant 0 : index
    %918 = vector.load %arg25[%c0_212, %c24_213, %c0_214] : memref<1x64x128xf32, #tpu.memory_space<vmem>>, vector<1x8x128xf32>
    %919 = vector.shape_cast %918 : vector<1x8x128xf32> to vector<8x128xf32>
    %920 = vector.shape_cast %917 : vector<8x128xf32> to vector<1x8x128xf32>
    tpu.vector_store %arg25[%c0_212, %c24_213, %c0_214], %920 {strides = array<i32>} : memref<1x64x128xf32, #tpu.memory_space<vmem>>, vector<1x8x128xf32>,
    %c3_215 = arith.constant 3 : index
    %921 = memref.load %arg1[%c3_215] : memref<8xi32, #tpu.memory_space<smem>>
    %c1_i32_216 = arith.constant 1 : i32
    %922 = arith.cmpi eq, %921, %c1_i32_216 : i32
    %923 = arith.extui %922 : i1 to i32
    %c0_i32_217 = arith.constant 0 : i32
    %924 = arith.cmpi ne, %923, %c0_i32_217 : i32
    scf.if %924 {
      %c0_367 = arith.constant 0 : index
      %c3_368 = arith.constant 3 : index
      %c0_369 = arith.constant 0 : index
      %c0_370 = arith.constant 0 : index
      %1737 = vector.load %arg3[%c0_367, %c3_368, %c0_369, %c0_370] : memref<1x8x8x16xf32, #tpu.memory_space<vmem>>, vector<1x1x8x16xf32>
      %1738 = vector.shape_cast %1737 : vector<1x1x8x16xf32> to vector<8x16xf32>
      %c0_371 = arith.constant 0 : index
      %c0_372 = arith.constant 0 : index
      %1739 = vector.load %arg27[%c0_371, %c0_372] : memref<8x16xf32, #tpu.memory_space<vmem>>, vector<8x16xf32>
      tpu.vector_store %arg27[%c0_371, %c0_372], %1738 {strides = array<i32>} : memref<8x16xf32, #tpu.memory_space<vmem>>, vector<8x16xf32>,
    } else {
    }
    %c0_i32_218 = arith.constant 0 : i32
    %925 = arith.cmpi eq, %921, %c0_i32_218 : i32
    %926 = arith.extui %925 : i1 to i32
    %c0_i32_219 = arith.constant 0 : i32
    %927 = arith.cmpi ne, %926, %c0_i32_219 : i32
    scf.if %927 {
      %1737 = vector.extract_strided_slice %917 {offsets = [0, 0], sizes = [8, 32], strides = [1, 1]} : vector<8x128xf32> to vector<8x32xf32>
      %1738 = tpu.iota {dimensions = array<i32: 1>} : vector<8x32xi32>
      %cst_367 = arith.constant dense<0xFF800000> : vector<8xf32>
      %1739 = vector.multi_reduction <maximumf>, %1737, %cst_367 [1] : vector<8x32xf32> to vector<8xf32>
      %1740 = vector.shape_cast %1739 : vector<8xf32> to vector<8x1xf32>
      %1741 = vector.broadcast %1740 : vector<8x1xf32> to vector<8x32xf32>
      %1742 = arith.cmpf oge, %1737, %1741 : vector<8x32xf32>
      %c32_i32 = arith.constant 32 : i32
      %1743 = vector.broadcast %c32_i32 : i32 to vector<8x32xi32>
      %1744 = arith.select %1742, %1738, %1743 : vector<8x32xi1>, vector<8x32xi32>
      %cst_368 = arith.constant dense<2147483647> : vector<8xi32>
      %1745 = vector.multi_reduction <minsi>, %1744, %cst_368 [1] : vector<8x32xi32> to vector<8xi32>
      %1746 = vector.shape_cast %1745 : vector<8xi32> to vector<8x1xi32>
      %1747 = vector.broadcast %1746 : vector<8x1xi32> to vector<8x32xi32>
      %1748 = arith.cmpi eq, %1738, %1747 : vector<8x32xi32>
      %1749 = arith.extui %1748 : vector<8x32xi1> to vector<8x32xi32>
      %1750 = arith.sitofp %1749 : vector<8x32xi32> to vector<8x32xf32>
      %c0_369 = arith.constant 0 : index
      %c0_370 = arith.constant 0 : index
      %1751 = vector.load %arg5[%c0_369, %c0_370] : memref<32x16xf32, #tpu.memory_space<vmem>>, vector<32x16xf32>
      %cst_371 = arith.constant dense<0.000000e+00> : vector<8x16xf32>
      %1752 = tpu.matmul %1750, %1751, %cst_371 {dimension_numbers = #tpu.dot_dimension_numbers<[1], [0], [0], [1], [0, 0, 1, 1], [], []>} : vector<8x32xf32>, vector<32x16xf32>, vector<8x16xf32> -> vector<8x16xf32>
      %c0_372 = arith.constant 0 : index
      %c0_373 = arith.constant 0 : index
      %1753 = vector.load %arg27[%c0_372, %c0_373] : memref<8x16xf32, #tpu.memory_space<vmem>>, vector<8x16xf32>
      tpu.vector_store %arg27[%c0_372, %c0_373], %1752 {strides = array<i32>} : memref<8x16xf32, #tpu.memory_space<vmem>>, vector<8x16xf32>,
    } else {
    }
    %c0_220 = arith.constant 0 : index
    %c0_221 = arith.constant 0 : index
    %928 = vector.load %arg27[%c0_220, %c0_221] : memref<8x16xf32, #tpu.memory_space<vmem>>, vector<8x16xf32>
    %c4 = arith.constant 4 : index
    %c0_222 = arith.constant 0 : index
    %929 = vector.load %arg4[%c4, %c0_222] : memref<8x16xf32, #tpu.memory_space<vmem>>, vector<1x16xf32>
    %930 = vector.broadcast %929 : vector<1x16xf32> to vector<8x16xf32>
    %931 = arith.addf %928, %930 : vector<8x16xf32>
    %cst_223 = arith.constant dense<0.000000e+00> : vector<8x32xf32>
    %932 = tpu.matmul %906, %302, %cst_223 {dimension_numbers = #tpu.dot_dimension_numbers<[1], [0], [0], [1], [0, 0, 1, 1], [], []>} : vector<8x32xf32>, vector<32x32xf32>, vector<8x32xf32> -> vector<8x32xf32>
    %933 = vector.extract_strided_slice %301 {offsets = [0, 0], sizes = [8, 32], strides = [1, 1]} : vector<80x32xf32> to vector<8x32xf32>
    %934 = arith.addf %933, %932 : vector<8x32xf32>
    %935 = math.tanh %934 : vector<8x32xf32>
    %936 = vector.broadcast %303 : vector<1x32xf32> to vector<8x32xf32>
    %937 = arith.mulf %935, %936 : vector<8x32xf32>
    %cst_224 = arith.constant dense<0.000000e+00> : vector<8xf32>
    %938 = vector.multi_reduction <add>, %937, %cst_224 [1] : vector<8x32xf32> to vector<8xf32>
    %939 = vector.shape_cast %938 : vector<8xf32> to vector<8x1xf32>
    %940 = vector.extract_strided_slice %301 {offsets = [8, 0], sizes = [8, 32], strides = [1, 1]} : vector<80x32xf32> to vector<8x32xf32>
    %941 = arith.addf %940, %932 : vector<8x32xf32>
    %942 = math.tanh %941 : vector<8x32xf32>
    %943 = vector.broadcast %303 : vector<1x32xf32> to vector<8x32xf32>
    %944 = arith.mulf %942, %943 : vector<8x32xf32>
    %cst_225 = arith.constant dense<0.000000e+00> : vector<8xf32>
    %945 = vector.multi_reduction <add>, %944, %cst_225 [1] : vector<8x32xf32> to vector<8xf32>
    %946 = vector.shape_cast %945 : vector<8xf32> to vector<8x1xf32>
    %947 = vector.extract_strided_slice %301 {offsets = [16, 0], sizes = [8, 32], strides = [1, 1]} : vector<80x32xf32> to vector<8x32xf32>
    %948 = arith.addf %947, %932 : vector<8x32xf32>
    %949 = math.tanh %948 : vector<8x32xf32>
    %950 = vector.broadcast %303 : vector<1x32xf32> to vector<8x32xf32>
    %951 = arith.mulf %949, %950 : vector<8x32xf32>
    %cst_226 = arith.constant dense<0.000000e+00> : vector<8xf32>
    %952 = vector.multi_reduction <add>, %951, %cst_226 [1] : vector<8x32xf32> to vector<8xf32>
    %953 = vector.shape_cast %952 : vector<8xf32> to vector<8x1xf32>
    %954 = vector.extract_strided_slice %301 {offsets = [24, 0], sizes = [8, 32], strides = [1, 1]} : vector<80x32xf32> to vector<8x32xf32>
    %955 = arith.addf %954, %932 : vector<8x32xf32>
    %956 = math.tanh %955 : vector<8x32xf32>
    %957 = vector.broadcast %303 : vector<1x32xf32> to vector<8x32xf32>
    %958 = arith.mulf %956, %957 : vector<8x32xf32>
    %cst_227 = arith.constant dense<0.000000e+00> : vector<8xf32>
    %959 = vector.multi_reduction <add>, %958, %cst_227 [1] : vector<8x32xf32> to vector<8xf32>
    %960 = vector.shape_cast %959 : vector<8xf32> to vector<8x1xf32>
    %961 = vector.extract_strided_slice %301 {offsets = [32, 0], sizes = [8, 32], strides = [1, 1]} : vector<80x32xf32> to vector<8x32xf32>
    %962 = arith.addf %961, %932 : vector<8x32xf32>
    %963 = math.tanh %962 : vector<8x32xf32>
    %964 = vector.broadcast %303 : vector<1x32xf32> to vector<8x32xf32>
    %965 = arith.mulf %963, %964 : vector<8x32xf32>
    %cst_228 = arith.constant dense<0.000000e+00> : vector<8xf32>
    %966 = vector.multi_reduction <add>, %965, %cst_228 [1] : vector<8x32xf32> to vector<8xf32>
    %967 = vector.shape_cast %966 : vector<8xf32> to vector<8x1xf32>
    %968 = vector.extract_strided_slice %301 {offsets = [40, 0], sizes = [8, 32], strides = [1, 1]} : vector<80x32xf32> to vector<8x32xf32>
    %969 = arith.addf %968, %932 : vector<8x32xf32>
    %970 = math.tanh %969 : vector<8x32xf32>
    %971 = vector.broadcast %303 : vector<1x32xf32> to vector<8x32xf32>
    %972 = arith.mulf %970, %971 : vector<8x32xf32>
    %cst_229 = arith.constant dense<0.000000e+00> : vector<8xf32>
    %973 = vector.multi_reduction <add>, %972, %cst_229 [1] : vector<8x32xf32> to vector<8xf32>
    %974 = vector.shape_cast %973 : vector<8xf32> to vector<8x1xf32>
    %975 = vector.extract_strided_slice %301 {offsets = [48, 0], sizes = [8, 32], strides = [1, 1]} : vector<80x32xf32> to vector<8x32xf32>
    %976 = arith.addf %975, %932 : vector<8x32xf32>
    %977 = math.tanh %976 : vector<8x32xf32>
    %978 = vector.broadcast %303 : vector<1x32xf32> to vector<8x32xf32>
    %979 = arith.mulf %977, %978 : vector<8x32xf32>
    %cst_230 = arith.constant dense<0.000000e+00> : vector<8xf32>
    %980 = vector.multi_reduction <add>, %979, %cst_230 [1] : vector<8x32xf32> to vector<8xf32>
    %981 = vector.shape_cast %980 : vector<8xf32> to vector<8x1xf32>
    %982 = vector.extract_strided_slice %301 {offsets = [56, 0], sizes = [8, 32], strides = [1, 1]} : vector<80x32xf32> to vector<8x32xf32>
    %983 = arith.addf %982, %932 : vector<8x32xf32>
    %984 = math.tanh %983 : vector<8x32xf32>
    %985 = vector.broadcast %303 : vector<1x32xf32> to vector<8x32xf32>
    %986 = arith.mulf %984, %985 : vector<8x32xf32>
    %cst_231 = arith.constant dense<0.000000e+00> : vector<8xf32>
    %987 = vector.multi_reduction <add>, %986, %cst_231 [1] : vector<8x32xf32> to vector<8xf32>
    %988 = vector.shape_cast %987 : vector<8xf32> to vector<8x1xf32>
    %989 = vector.extract_strided_slice %301 {offsets = [64, 0], sizes = [8, 32], strides = [1, 1]} : vector<80x32xf32> to vector<8x32xf32>
    %990 = arith.addf %989, %932 : vector<8x32xf32>
    %991 = math.tanh %990 : vector<8x32xf32>
    %992 = vector.broadcast %303 : vector<1x32xf32> to vector<8x32xf32>
    %993 = arith.mulf %991, %992 : vector<8x32xf32>
    %cst_232 = arith.constant dense<0.000000e+00> : vector<8xf32>
    %994 = vector.multi_reduction <add>, %993, %cst_232 [1] : vector<8x32xf32> to vector<8xf32>
    %995 = vector.shape_cast %994 : vector<8xf32> to vector<8x1xf32>
    %996 = vector.extract_strided_slice %301 {offsets = [72, 0], sizes = [8, 32], strides = [1, 1]} : vector<80x32xf32> to vector<8x32xf32>
    %997 = arith.addf %996, %932 : vector<8x32xf32>
    %998 = math.tanh %997 : vector<8x32xf32>
    %999 = vector.broadcast %303 : vector<1x32xf32> to vector<8x32xf32>
    %1000 = arith.mulf %998, %999 : vector<8x32xf32>
    %cst_233 = arith.constant dense<0.000000e+00> : vector<8xf32>
    %1001 = vector.multi_reduction <add>, %1000, %cst_233 [1] : vector<8x32xf32> to vector<8xf32>
    %1002 = vector.shape_cast %1001 : vector<8xf32> to vector<8x1xf32>
    %1003 = arith.maximumf %939, %946 : vector<8x1xf32>
    %1004 = arith.maximumf %1003, %953 : vector<8x1xf32>
    %1005 = arith.maximumf %1004, %960 : vector<8x1xf32>
    %1006 = arith.maximumf %1005, %967 : vector<8x1xf32>
    %1007 = arith.maximumf %1006, %974 : vector<8x1xf32>
    %1008 = arith.maximumf %1007, %981 : vector<8x1xf32>
    %1009 = arith.maximumf %1008, %988 : vector<8x1xf32>
    %1010 = arith.maximumf %1009, %995 : vector<8x1xf32>
    %1011 = arith.maximumf %1010, %1002 : vector<8x1xf32>
    %1012 = arith.subf %939, %1011 : vector<8x1xf32>
    %1013 = math.exp %1012 : vector<8x1xf32>
    %1014 = arith.subf %946, %1011 : vector<8x1xf32>
    %1015 = math.exp %1014 : vector<8x1xf32>
    %1016 = arith.subf %953, %1011 : vector<8x1xf32>
    %1017 = math.exp %1016 : vector<8x1xf32>
    %1018 = arith.subf %960, %1011 : vector<8x1xf32>
    %1019 = math.exp %1018 : vector<8x1xf32>
    %1020 = arith.subf %967, %1011 : vector<8x1xf32>
    %1021 = math.exp %1020 : vector<8x1xf32>
    %1022 = arith.subf %974, %1011 : vector<8x1xf32>
    %1023 = math.exp %1022 : vector<8x1xf32>
    %1024 = arith.subf %981, %1011 : vector<8x1xf32>
    %1025 = math.exp %1024 : vector<8x1xf32>
    %1026 = arith.subf %988, %1011 : vector<8x1xf32>
    %1027 = math.exp %1026 : vector<8x1xf32>
    %1028 = arith.subf %995, %1011 : vector<8x1xf32>
    %1029 = math.exp %1028 : vector<8x1xf32>
    %1030 = arith.subf %1002, %1011 : vector<8x1xf32>
    %1031 = math.exp %1030 : vector<8x1xf32>
    %1032 = arith.addf %1013, %1015 : vector<8x1xf32>
    %1033 = arith.addf %1032, %1017 : vector<8x1xf32>
    %1034 = arith.addf %1033, %1019 : vector<8x1xf32>
    %1035 = arith.addf %1034, %1021 : vector<8x1xf32>
    %1036 = arith.addf %1035, %1023 : vector<8x1xf32>
    %1037 = arith.addf %1036, %1025 : vector<8x1xf32>
    %1038 = arith.addf %1037, %1027 : vector<8x1xf32>
    %1039 = arith.addf %1038, %1029 : vector<8x1xf32>
    %1040 = arith.addf %1039, %1031 : vector<8x1xf32>
    %1041 = vector.extract_strided_slice %296 {offsets = [0, 0], sizes = [8, 64], strides = [1, 1]} : vector<80x64xf32> to vector<8x64xf32>
    %1042 = vector.broadcast %1013 : vector<8x1xf32> to vector<8x64xf32>
    %1043 = arith.mulf %1042, %1041 : vector<8x64xf32>
    %1044 = vector.extract_strided_slice %296 {offsets = [8, 0], sizes = [8, 64], strides = [1, 1]} : vector<80x64xf32> to vector<8x64xf32>
    %1045 = vector.broadcast %1015 : vector<8x1xf32> to vector<8x64xf32>
    %1046 = arith.mulf %1045, %1044 : vector<8x64xf32>
    %1047 = arith.addf %1043, %1046 : vector<8x64xf32>
    %1048 = vector.extract_strided_slice %296 {offsets = [16, 0], sizes = [8, 64], strides = [1, 1]} : vector<80x64xf32> to vector<8x64xf32>
    %1049 = vector.broadcast %1017 : vector<8x1xf32> to vector<8x64xf32>
    %1050 = arith.mulf %1049, %1048 : vector<8x64xf32>
    %1051 = arith.addf %1047, %1050 : vector<8x64xf32>
    %1052 = vector.extract_strided_slice %296 {offsets = [24, 0], sizes = [8, 64], strides = [1, 1]} : vector<80x64xf32> to vector<8x64xf32>
    %1053 = vector.broadcast %1019 : vector<8x1xf32> to vector<8x64xf32>
    %1054 = arith.mulf %1053, %1052 : vector<8x64xf32>
    %1055 = arith.addf %1051, %1054 : vector<8x64xf32>
    %1056 = vector.extract_strided_slice %296 {offsets = [32, 0], sizes = [8, 64], strides = [1, 1]} : vector<80x64xf32> to vector<8x64xf32>
    %1057 = vector.broadcast %1021 : vector<8x1xf32> to vector<8x64xf32>
    %1058 = arith.mulf %1057, %1056 : vector<8x64xf32>
    %1059 = arith.addf %1055, %1058 : vector<8x64xf32>
    %1060 = vector.extract_strided_slice %296 {offsets = [40, 0], sizes = [8, 64], strides = [1, 1]} : vector<80x64xf32> to vector<8x64xf32>
    %1061 = vector.broadcast %1023 : vector<8x1xf32> to vector<8x64xf32>
    %1062 = arith.mulf %1061, %1060 : vector<8x64xf32>
    %1063 = arith.addf %1059, %1062 : vector<8x64xf32>
    %1064 = vector.extract_strided_slice %296 {offsets = [48, 0], sizes = [8, 64], strides = [1, 1]} : vector<80x64xf32> to vector<8x64xf32>
    %1065 = vector.broadcast %1025 : vector<8x1xf32> to vector<8x64xf32>
    %1066 = arith.mulf %1065, %1064 : vector<8x64xf32>
    %1067 = arith.addf %1063, %1066 : vector<8x64xf32>
    %1068 = vector.extract_strided_slice %296 {offsets = [56, 0], sizes = [8, 64], strides = [1, 1]} : vector<80x64xf32> to vector<8x64xf32>
    %1069 = vector.broadcast %1027 : vector<8x1xf32> to vector<8x64xf32>
    %1070 = arith.mulf %1069, %1068 : vector<8x64xf32>
    %1071 = arith.addf %1067, %1070 : vector<8x64xf32>
    %1072 = vector.extract_strided_slice %296 {offsets = [64, 0], sizes = [8, 64], strides = [1, 1]} : vector<80x64xf32> to vector<8x64xf32>
    %1073 = vector.broadcast %1029 : vector<8x1xf32> to vector<8x64xf32>
    %1074 = arith.mulf %1073, %1072 : vector<8x64xf32>
    %1075 = arith.addf %1071, %1074 : vector<8x64xf32>
    %1076 = vector.extract_strided_slice %296 {offsets = [72, 0], sizes = [8, 64], strides = [1, 1]} : vector<80x64xf32> to vector<8x64xf32>
    %1077 = vector.broadcast %1031 : vector<8x1xf32> to vector<8x64xf32>
    %1078 = arith.mulf %1077, %1076 : vector<8x64xf32>
    %1079 = arith.addf %1075, %1078 : vector<8x64xf32>
    %1080 = tpu.reciprocal %1040 {approx = true} : vector<8x1xf32> -> vector<8x1xf32>
    %1081 = vector.broadcast %1080 : vector<8x1xf32> to vector<8x64xf32>
    %1082 = arith.mulf %1079, %1081 : vector<8x64xf32>
    %cst_234 = arith.constant dense<0.000000e+00> : vector<8x96xf32>
    %1083 = tpu.matmul %931, %304, %cst_234 {dimension_numbers = #tpu.dot_dimension_numbers<[1], [0], [0], [1], [0, 0, 1, 1], [], []>} : vector<8x16xf32>, vector<16x96xf32>, vector<8x96xf32> -> vector<8x96xf32>
    %cst_235 = arith.constant dense<0.000000e+00> : vector<8x96xf32>
    %1084 = tpu.matmul %1082, %305, %cst_235 {dimension_numbers = #tpu.dot_dimension_numbers<[1], [0], [0], [1], [0, 0, 1, 1], [], []>} : vector<8x64xf32>, vector<64x96xf32>, vector<8x96xf32> -> vector<8x96xf32>
    %1085 = arith.addf %1083, %1084 : vector<8x96xf32>
    %1086 = vector.broadcast %307 : vector<1x96xf32> to vector<8x96xf32>
    %1087 = arith.addf %1085, %1086 : vector<8x96xf32>
    %cst_236 = arith.constant dense<0.000000e+00> : vector<8x96xf32>
    %1088 = tpu.matmul %906, %306, %cst_236 {dimension_numbers = #tpu.dot_dimension_numbers<[1], [0], [0], [1], [0, 0, 1, 1], [], []>} : vector<8x32xf32>, vector<32x96xf32>, vector<8x96xf32> -> vector<8x96xf32>
    %1089 = vector.broadcast %308 : vector<1x96xf32> to vector<8x96xf32>
    %1090 = arith.addf %1088, %1089 : vector<8x96xf32>
    %1091 = vector.extract_strided_slice %1087 {offsets = [0, 0], sizes = [8, 64], strides = [1, 1]} : vector<8x96xf32> to vector<8x64xf32>
    %1092 = vector.extract_strided_slice %1090 {offsets = [0, 0], sizes = [8, 64], strides = [1, 1]} : vector<8x96xf32> to vector<8x64xf32>
    %1093 = arith.addf %1091, %1092 : vector<8x64xf32>
    %1094 = arith.negf %1093 : vector<8x64xf32>
    %1095 = math.exp %1094 : vector<8x64xf32>
    %cst_237 = arith.constant 1.000000e+00 : f32
    %1096 = vector.broadcast %cst_237 : f32 to vector<8x64xf32>
    %1097 = arith.addf %1096, %1095 : vector<8x64xf32>
    %1098 = arith.divf %1096, %1097 : vector<8x64xf32>
    %1099 = vector.extract_strided_slice %1098 {offsets = [0, 0], sizes = [8, 32], strides = [1, 1]} : vector<8x64xf32> to vector<8x32xf32>
    %1100 = vector.extract_strided_slice %1098 {offsets = [0, 32], sizes = [8, 32], strides = [1, 1]} : vector<8x64xf32> to vector<8x32xf32>
    %1101 = vector.extract_strided_slice %1087 {offsets = [0, 64], sizes = [8, 32], strides = [1, 1]} : vector<8x96xf32> to vector<8x32xf32>
    %1102 = vector.extract_strided_slice %1090 {offsets = [0, 64], sizes = [8, 32], strides = [1, 1]} : vector<8x96xf32> to vector<8x32xf32>
    %1103 = arith.mulf %1099, %1102 : vector<8x32xf32>
    %1104 = arith.addf %1101, %1103 : vector<8x32xf32>
    %1105 = math.tanh %1104 : vector<8x32xf32>
    %cst_238 = arith.constant 1.000000e+00 : f32
    %1106 = vector.broadcast %cst_238 : f32 to vector<8x32xf32>
    %1107 = arith.subf %1106, %1100 : vector<8x32xf32>
    %1108 = arith.mulf %1107, %1105 : vector<8x32xf32>
    %1109 = arith.mulf %1100, %906 : vector<8x32xf32>
    %1110 = arith.addf %1108, %1109 : vector<8x32xf32>
    %c0_239 = arith.constant 0 : index
    %c0_240 = arith.constant 0 : index
    %1111 = vector.load %arg21[%c0_239, %c0_240] : memref<32x128xf32, #tpu.memory_space<vmem>>, vector<32x128xf32>
    %cst_241 = arith.constant dense<0.000000e+00> : vector<8x128xf32>
    %1112 = tpu.matmul %1110, %1111, %cst_241 {dimension_numbers = #tpu.dot_dimension_numbers<[1], [0], [0], [1], [0, 0, 1, 1], [], []>} : vector<8x32xf32>, vector<32x128xf32>, vector<8x128xf32> -> vector<8x128xf32>
    %c0_242 = arith.constant 0 : index
    %c0_243 = arith.constant 0 : index
    %1113 = vector.load %arg22[%c0_242, %c0_243] : memref<64x128xf32, #tpu.memory_space<vmem>>, vector<64x128xf32>
    %cst_244 = arith.constant dense<0.000000e+00> : vector<8x128xf32>
    %1114 = tpu.matmul %1082, %1113, %cst_244 {dimension_numbers = #tpu.dot_dimension_numbers<[1], [0], [0], [1], [0, 0, 1, 1], [], []>} : vector<8x64xf32>, vector<64x128xf32>, vector<8x128xf32> -> vector<8x128xf32>
    %1115 = arith.addf %1112, %1114 : vector<8x128xf32>
    %c0_245 = arith.constant 0 : index
    %c0_246 = arith.constant 0 : index
    %1116 = vector.load %arg23[%c0_245, %c0_246] : memref<16x128xf32, #tpu.memory_space<vmem>>, vector<16x128xf32>
    %cst_247 = arith.constant dense<0.000000e+00> : vector<8x128xf32>
    %1117 = tpu.matmul %931, %1116, %cst_247 {dimension_numbers = #tpu.dot_dimension_numbers<[1], [0], [0], [1], [0, 0, 1, 1], [], []>} : vector<8x16xf32>, vector<16x128xf32>, vector<8x128xf32> -> vector<8x128xf32>
    %1118 = arith.addf %1115, %1117 : vector<8x128xf32>
    %c0_248 = arith.constant 0 : index
    %c0_249 = arith.constant 0 : index
    %1119 = vector.load %arg24[%c0_248, %c0_249] : memref<1x128xf32, #tpu.memory_space<vmem>>, vector<1x128xf32>
    %1120 = vector.broadcast %1119 : vector<1x128xf32> to vector<8x128xf32>
    %1121 = arith.addf %1118, %1120 : vector<8x128xf32>
    %c0_250 = arith.constant 0 : index
    %c32_251 = arith.constant 32 : index
    %c0_252 = arith.constant 0 : index
    %1122 = vector.load %arg25[%c0_250, %c32_251, %c0_252] : memref<1x64x128xf32, #tpu.memory_space<vmem>>, vector<1x8x128xf32>
    %1123 = vector.shape_cast %1122 : vector<1x8x128xf32> to vector<8x128xf32>
    %1124 = vector.shape_cast %1121 : vector<8x128xf32> to vector<1x8x128xf32>
    tpu.vector_store %arg25[%c0_250, %c32_251, %c0_252], %1124 {strides = array<i32>} : memref<1x64x128xf32, #tpu.memory_space<vmem>>, vector<1x8x128xf32>,
    %c4_253 = arith.constant 4 : index
    %1125 = memref.load %arg1[%c4_253] : memref<8xi32, #tpu.memory_space<smem>>
    %c1_i32_254 = arith.constant 1 : i32
    %1126 = arith.cmpi eq, %1125, %c1_i32_254 : i32
    %1127 = arith.extui %1126 : i1 to i32
    %c0_i32_255 = arith.constant 0 : i32
    %1128 = arith.cmpi ne, %1127, %c0_i32_255 : i32
    scf.if %1128 {
      %c0_367 = arith.constant 0 : index
      %c4_368 = arith.constant 4 : index
      %c0_369 = arith.constant 0 : index
      %c0_370 = arith.constant 0 : index
      %1737 = vector.load %arg3[%c0_367, %c4_368, %c0_369, %c0_370] : memref<1x8x8x16xf32, #tpu.memory_space<vmem>>, vector<1x1x8x16xf32>
      %1738 = vector.shape_cast %1737 : vector<1x1x8x16xf32> to vector<8x16xf32>
      %c0_371 = arith.constant 0 : index
      %c0_372 = arith.constant 0 : index
      %1739 = vector.load %arg27[%c0_371, %c0_372] : memref<8x16xf32, #tpu.memory_space<vmem>>, vector<8x16xf32>
      tpu.vector_store %arg27[%c0_371, %c0_372], %1738 {strides = array<i32>} : memref<8x16xf32, #tpu.memory_space<vmem>>, vector<8x16xf32>,
    } else {
    }
    %c0_i32_256 = arith.constant 0 : i32
    %1129 = arith.cmpi eq, %1125, %c0_i32_256 : i32
    %1130 = arith.extui %1129 : i1 to i32
    %c0_i32_257 = arith.constant 0 : i32
    %1131 = arith.cmpi ne, %1130, %c0_i32_257 : i32
    scf.if %1131 {
      %1737 = vector.extract_strided_slice %1121 {offsets = [0, 0], sizes = [8, 32], strides = [1, 1]} : vector<8x128xf32> to vector<8x32xf32>
      %1738 = tpu.iota {dimensions = array<i32: 1>} : vector<8x32xi32>
      %cst_367 = arith.constant dense<0xFF800000> : vector<8xf32>
      %1739 = vector.multi_reduction <maximumf>, %1737, %cst_367 [1] : vector<8x32xf32> to vector<8xf32>
      %1740 = vector.shape_cast %1739 : vector<8xf32> to vector<8x1xf32>
      %1741 = vector.broadcast %1740 : vector<8x1xf32> to vector<8x32xf32>
      %1742 = arith.cmpf oge, %1737, %1741 : vector<8x32xf32>
      %c32_i32 = arith.constant 32 : i32
      %1743 = vector.broadcast %c32_i32 : i32 to vector<8x32xi32>
      %1744 = arith.select %1742, %1738, %1743 : vector<8x32xi1>, vector<8x32xi32>
      %cst_368 = arith.constant dense<2147483647> : vector<8xi32>
      %1745 = vector.multi_reduction <minsi>, %1744, %cst_368 [1] : vector<8x32xi32> to vector<8xi32>
      %1746 = vector.shape_cast %1745 : vector<8xi32> to vector<8x1xi32>
      %1747 = vector.broadcast %1746 : vector<8x1xi32> to vector<8x32xi32>
      %1748 = arith.cmpi eq, %1738, %1747 : vector<8x32xi32>
      %1749 = arith.extui %1748 : vector<8x32xi1> to vector<8x32xi32>
      %1750 = arith.sitofp %1749 : vector<8x32xi32> to vector<8x32xf32>
      %c0_369 = arith.constant 0 : index
      %c0_370 = arith.constant 0 : index
      %1751 = vector.load %arg5[%c0_369, %c0_370] : memref<32x16xf32, #tpu.memory_space<vmem>>, vector<32x16xf32>
      %cst_371 = arith.constant dense<0.000000e+00> : vector<8x16xf32>
      %1752 = tpu.matmul %1750, %1751, %cst_371 {dimension_numbers = #tpu.dot_dimension_numbers<[1], [0], [0], [1], [0, 0, 1, 1], [], []>} : vector<8x32xf32>, vector<32x16xf32>, vector<8x16xf32> -> vector<8x16xf32>
      %c0_372 = arith.constant 0 : index
      %c0_373 = arith.constant 0 : index
      %1753 = vector.load %arg27[%c0_372, %c0_373] : memref<8x16xf32, #tpu.memory_space<vmem>>, vector<8x16xf32>
      tpu.vector_store %arg27[%c0_372, %c0_373], %1752 {strides = array<i32>} : memref<8x16xf32, #tpu.memory_space<vmem>>, vector<8x16xf32>,
    } else {
    }
    %c0_258 = arith.constant 0 : index
    %c0_259 = arith.constant 0 : index
    %1132 = vector.load %arg27[%c0_258, %c0_259] : memref<8x16xf32, #tpu.memory_space<vmem>>, vector<8x16xf32>
    %c5 = arith.constant 5 : index
    %c0_260 = arith.constant 0 : index
    %1133 = vector.load %arg4[%c5, %c0_260] : memref<8x16xf32, #tpu.memory_space<vmem>>, vector<1x16xf32>
    %1134 = vector.broadcast %1133 : vector<1x16xf32> to vector<8x16xf32>
    %1135 = arith.addf %1132, %1134 : vector<8x16xf32>
    %cst_261 = arith.constant dense<0.000000e+00> : vector<8x32xf32>
    %1136 = tpu.matmul %1110, %302, %cst_261 {dimension_numbers = #tpu.dot_dimension_numbers<[1], [0], [0], [1], [0, 0, 1, 1], [], []>} : vector<8x32xf32>, vector<32x32xf32>, vector<8x32xf32> -> vector<8x32xf32>
    %1137 = vector.extract_strided_slice %301 {offsets = [0, 0], sizes = [8, 32], strides = [1, 1]} : vector<80x32xf32> to vector<8x32xf32>
    %1138 = arith.addf %1137, %1136 : vector<8x32xf32>
    %1139 = math.tanh %1138 : vector<8x32xf32>
    %1140 = vector.broadcast %303 : vector<1x32xf32> to vector<8x32xf32>
    %1141 = arith.mulf %1139, %1140 : vector<8x32xf32>
    %cst_262 = arith.constant dense<0.000000e+00> : vector<8xf32>
    %1142 = vector.multi_reduction <add>, %1141, %cst_262 [1] : vector<8x32xf32> to vector<8xf32>
    %1143 = vector.shape_cast %1142 : vector<8xf32> to vector<8x1xf32>
    %1144 = vector.extract_strided_slice %301 {offsets = [8, 0], sizes = [8, 32], strides = [1, 1]} : vector<80x32xf32> to vector<8x32xf32>
    %1145 = arith.addf %1144, %1136 : vector<8x32xf32>
    %1146 = math.tanh %1145 : vector<8x32xf32>
    %1147 = vector.broadcast %303 : vector<1x32xf32> to vector<8x32xf32>
    %1148 = arith.mulf %1146, %1147 : vector<8x32xf32>
    %cst_263 = arith.constant dense<0.000000e+00> : vector<8xf32>
    %1149 = vector.multi_reduction <add>, %1148, %cst_263 [1] : vector<8x32xf32> to vector<8xf32>
    %1150 = vector.shape_cast %1149 : vector<8xf32> to vector<8x1xf32>
    %1151 = vector.extract_strided_slice %301 {offsets = [16, 0], sizes = [8, 32], strides = [1, 1]} : vector<80x32xf32> to vector<8x32xf32>
    %1152 = arith.addf %1151, %1136 : vector<8x32xf32>
    %1153 = math.tanh %1152 : vector<8x32xf32>
    %1154 = vector.broadcast %303 : vector<1x32xf32> to vector<8x32xf32>
    %1155 = arith.mulf %1153, %1154 : vector<8x32xf32>
    %cst_264 = arith.constant dense<0.000000e+00> : vector<8xf32>
    %1156 = vector.multi_reduction <add>, %1155, %cst_264 [1] : vector<8x32xf32> to vector<8xf32>
    %1157 = vector.shape_cast %1156 : vector<8xf32> to vector<8x1xf32>
    %1158 = vector.extract_strided_slice %301 {offsets = [24, 0], sizes = [8, 32], strides = [1, 1]} : vector<80x32xf32> to vector<8x32xf32>
    %1159 = arith.addf %1158, %1136 : vector<8x32xf32>
    %1160 = math.tanh %1159 : vector<8x32xf32>
    %1161 = vector.broadcast %303 : vector<1x32xf32> to vector<8x32xf32>
    %1162 = arith.mulf %1160, %1161 : vector<8x32xf32>
    %cst_265 = arith.constant dense<0.000000e+00> : vector<8xf32>
    %1163 = vector.multi_reduction <add>, %1162, %cst_265 [1] : vector<8x32xf32> to vector<8xf32>
    %1164 = vector.shape_cast %1163 : vector<8xf32> to vector<8x1xf32>
    %1165 = vector.extract_strided_slice %301 {offsets = [32, 0], sizes = [8, 32], strides = [1, 1]} : vector<80x32xf32> to vector<8x32xf32>
    %1166 = arith.addf %1165, %1136 : vector<8x32xf32>
    %1167 = math.tanh %1166 : vector<8x32xf32>
    %1168 = vector.broadcast %303 : vector<1x32xf32> to vector<8x32xf32>
    %1169 = arith.mulf %1167, %1168 : vector<8x32xf32>
    %cst_266 = arith.constant dense<0.000000e+00> : vector<8xf32>
    %1170 = vector.multi_reduction <add>, %1169, %cst_266 [1] : vector<8x32xf32> to vector<8xf32>
    %1171 = vector.shape_cast %1170 : vector<8xf32> to vector<8x1xf32>
    %1172 = vector.extract_strided_slice %301 {offsets = [40, 0], sizes = [8, 32], strides = [1, 1]} : vector<80x32xf32> to vector<8x32xf32>
    %1173 = arith.addf %1172, %1136 : vector<8x32xf32>
    %1174 = math.tanh %1173 : vector<8x32xf32>
    %1175 = vector.broadcast %303 : vector<1x32xf32> to vector<8x32xf32>
    %1176 = arith.mulf %1174, %1175 : vector<8x32xf32>
    %cst_267 = arith.constant dense<0.000000e+00> : vector<8xf32>
    %1177 = vector.multi_reduction <add>, %1176, %cst_267 [1] : vector<8x32xf32> to vector<8xf32>
    %1178 = vector.shape_cast %1177 : vector<8xf32> to vector<8x1xf32>
    %1179 = vector.extract_strided_slice %301 {offsets = [48, 0], sizes = [8, 32], strides = [1, 1]} : vector<80x32xf32> to vector<8x32xf32>
    %1180 = arith.addf %1179, %1136 : vector<8x32xf32>
    %1181 = math.tanh %1180 : vector<8x32xf32>
    %1182 = vector.broadcast %303 : vector<1x32xf32> to vector<8x32xf32>
    %1183 = arith.mulf %1181, %1182 : vector<8x32xf32>
    %cst_268 = arith.constant dense<0.000000e+00> : vector<8xf32>
    %1184 = vector.multi_reduction <add>, %1183, %cst_268 [1] : vector<8x32xf32> to vector<8xf32>
    %1185 = vector.shape_cast %1184 : vector<8xf32> to vector<8x1xf32>
    %1186 = vector.extract_strided_slice %301 {offsets = [56, 0], sizes = [8, 32], strides = [1, 1]} : vector<80x32xf32> to vector<8x32xf32>
    %1187 = arith.addf %1186, %1136 : vector<8x32xf32>
    %1188 = math.tanh %1187 : vector<8x32xf32>
    %1189 = vector.broadcast %303 : vector<1x32xf32> to vector<8x32xf32>
    %1190 = arith.mulf %1188, %1189 : vector<8x32xf32>
    %cst_269 = arith.constant dense<0.000000e+00> : vector<8xf32>
    %1191 = vector.multi_reduction <add>, %1190, %cst_269 [1] : vector<8x32xf32> to vector<8xf32>
    %1192 = vector.shape_cast %1191 : vector<8xf32> to vector<8x1xf32>
    %1193 = vector.extract_strided_slice %301 {offsets = [64, 0], sizes = [8, 32], strides = [1, 1]} : vector<80x32xf32> to vector<8x32xf32>
    %1194 = arith.addf %1193, %1136 : vector<8x32xf32>
    %1195 = math.tanh %1194 : vector<8x32xf32>
    %1196 = vector.broadcast %303 : vector<1x32xf32> to vector<8x32xf32>
    %1197 = arith.mulf %1195, %1196 : vector<8x32xf32>
    %cst_270 = arith.constant dense<0.000000e+00> : vector<8xf32>
    %1198 = vector.multi_reduction <add>, %1197, %cst_270 [1] : vector<8x32xf32> to vector<8xf32>
    %1199 = vector.shape_cast %1198 : vector<8xf32> to vector<8x1xf32>
    %1200 = vector.extract_strided_slice %301 {offsets = [72, 0], sizes = [8, 32], strides = [1, 1]} : vector<80x32xf32> to vector<8x32xf32>
    %1201 = arith.addf %1200, %1136 : vector<8x32xf32>
    %1202 = math.tanh %1201 : vector<8x32xf32>
    %1203 = vector.broadcast %303 : vector<1x32xf32> to vector<8x32xf32>
    %1204 = arith.mulf %1202, %1203 : vector<8x32xf32>
    %cst_271 = arith.constant dense<0.000000e+00> : vector<8xf32>
    %1205 = vector.multi_reduction <add>, %1204, %cst_271 [1] : vector<8x32xf32> to vector<8xf32>
    %1206 = vector.shape_cast %1205 : vector<8xf32> to vector<8x1xf32>
    %1207 = arith.maximumf %1143, %1150 : vector<8x1xf32>
    %1208 = arith.maximumf %1207, %1157 : vector<8x1xf32>
    %1209 = arith.maximumf %1208, %1164 : vector<8x1xf32>
    %1210 = arith.maximumf %1209, %1171 : vector<8x1xf32>
    %1211 = arith.maximumf %1210, %1178 : vector<8x1xf32>
    %1212 = arith.maximumf %1211, %1185 : vector<8x1xf32>
    %1213 = arith.maximumf %1212, %1192 : vector<8x1xf32>
    %1214 = arith.maximumf %1213, %1199 : vector<8x1xf32>
    %1215 = arith.maximumf %1214, %1206 : vector<8x1xf32>
    %1216 = arith.subf %1143, %1215 : vector<8x1xf32>
    %1217 = math.exp %1216 : vector<8x1xf32>
    %1218 = arith.subf %1150, %1215 : vector<8x1xf32>
    %1219 = math.exp %1218 : vector<8x1xf32>
    %1220 = arith.subf %1157, %1215 : vector<8x1xf32>
    %1221 = math.exp %1220 : vector<8x1xf32>
    %1222 = arith.subf %1164, %1215 : vector<8x1xf32>
    %1223 = math.exp %1222 : vector<8x1xf32>
    %1224 = arith.subf %1171, %1215 : vector<8x1xf32>
    %1225 = math.exp %1224 : vector<8x1xf32>
    %1226 = arith.subf %1178, %1215 : vector<8x1xf32>
    %1227 = math.exp %1226 : vector<8x1xf32>
    %1228 = arith.subf %1185, %1215 : vector<8x1xf32>
    %1229 = math.exp %1228 : vector<8x1xf32>
    %1230 = arith.subf %1192, %1215 : vector<8x1xf32>
    %1231 = math.exp %1230 : vector<8x1xf32>
    %1232 = arith.subf %1199, %1215 : vector<8x1xf32>
    %1233 = math.exp %1232 : vector<8x1xf32>
    %1234 = arith.subf %1206, %1215 : vector<8x1xf32>
    %1235 = math.exp %1234 : vector<8x1xf32>
    %1236 = arith.addf %1217, %1219 : vector<8x1xf32>
    %1237 = arith.addf %1236, %1221 : vector<8x1xf32>
    %1238 = arith.addf %1237, %1223 : vector<8x1xf32>
    %1239 = arith.addf %1238, %1225 : vector<8x1xf32>
    %1240 = arith.addf %1239, %1227 : vector<8x1xf32>
    %1241 = arith.addf %1240, %1229 : vector<8x1xf32>
    %1242 = arith.addf %1241, %1231 : vector<8x1xf32>
    %1243 = arith.addf %1242, %1233 : vector<8x1xf32>
    %1244 = arith.addf %1243, %1235 : vector<8x1xf32>
    %1245 = vector.extract_strided_slice %296 {offsets = [0, 0], sizes = [8, 64], strides = [1, 1]} : vector<80x64xf32> to vector<8x64xf32>
    %1246 = vector.broadcast %1217 : vector<8x1xf32> to vector<8x64xf32>
    %1247 = arith.mulf %1246, %1245 : vector<8x64xf32>
    %1248 = vector.extract_strided_slice %296 {offsets = [8, 0], sizes = [8, 64], strides = [1, 1]} : vector<80x64xf32> to vector<8x64xf32>
    %1249 = vector.broadcast %1219 : vector<8x1xf32> to vector<8x64xf32>
    %1250 = arith.mulf %1249, %1248 : vector<8x64xf32>
    %1251 = arith.addf %1247, %1250 : vector<8x64xf32>
    %1252 = vector.extract_strided_slice %296 {offsets = [16, 0], sizes = [8, 64], strides = [1, 1]} : vector<80x64xf32> to vector<8x64xf32>
    %1253 = vector.broadcast %1221 : vector<8x1xf32> to vector<8x64xf32>
    %1254 = arith.mulf %1253, %1252 : vector<8x64xf32>
    %1255 = arith.addf %1251, %1254 : vector<8x64xf32>
    %1256 = vector.extract_strided_slice %296 {offsets = [24, 0], sizes = [8, 64], strides = [1, 1]} : vector<80x64xf32> to vector<8x64xf32>
    %1257 = vector.broadcast %1223 : vector<8x1xf32> to vector<8x64xf32>
    %1258 = arith.mulf %1257, %1256 : vector<8x64xf32>
    %1259 = arith.addf %1255, %1258 : vector<8x64xf32>
    %1260 = vector.extract_strided_slice %296 {offsets = [32, 0], sizes = [8, 64], strides = [1, 1]} : vector<80x64xf32> to vector<8x64xf32>
    %1261 = vector.broadcast %1225 : vector<8x1xf32> to vector<8x64xf32>
    %1262 = arith.mulf %1261, %1260 : vector<8x64xf32>
    %1263 = arith.addf %1259, %1262 : vector<8x64xf32>
    %1264 = vector.extract_strided_slice %296 {offsets = [40, 0], sizes = [8, 64], strides = [1, 1]} : vector<80x64xf32> to vector<8x64xf32>
    %1265 = vector.broadcast %1227 : vector<8x1xf32> to vector<8x64xf32>
    %1266 = arith.mulf %1265, %1264 : vector<8x64xf32>
    %1267 = arith.addf %1263, %1266 : vector<8x64xf32>
    %1268 = vector.extract_strided_slice %296 {offsets = [48, 0], sizes = [8, 64], strides = [1, 1]} : vector<80x64xf32> to vector<8x64xf32>
    %1269 = vector.broadcast %1229 : vector<8x1xf32> to vector<8x64xf32>
    %1270 = arith.mulf %1269, %1268 : vector<8x64xf32>
    %1271 = arith.addf %1267, %1270 : vector<8x64xf32>
    %1272 = vector.extract_strided_slice %296 {offsets = [56, 0], sizes = [8, 64], strides = [1, 1]} : vector<80x64xf32> to vector<8x64xf32>
    %1273 = vector.broadcast %1231 : vector<8x1xf32> to vector<8x64xf32>
    %1274 = arith.mulf %1273, %1272 : vector<8x64xf32>
    %1275 = arith.addf %1271, %1274 : vector<8x64xf32>
    %1276 = vector.extract_strided_slice %296 {offsets = [64, 0], sizes = [8, 64], strides = [1, 1]} : vector<80x64xf32> to vector<8x64xf32>
    %1277 = vector.broadcast %1233 : vector<8x1xf32> to vector<8x64xf32>
    %1278 = arith.mulf %1277, %1276 : vector<8x64xf32>
    %1279 = arith.addf %1275, %1278 : vector<8x64xf32>
    %1280 = vector.extract_strided_slice %296 {offsets = [72, 0], sizes = [8, 64], strides = [1, 1]} : vector<80x64xf32> to vector<8x64xf32>
    %1281 = vector.broadcast %1235 : vector<8x1xf32> to vector<8x64xf32>
    %1282 = arith.mulf %1281, %1280 : vector<8x64xf32>
    %1283 = arith.addf %1279, %1282 : vector<8x64xf32>
    %1284 = tpu.reciprocal %1244 {approx = true} : vector<8x1xf32> -> vector<8x1xf32>
    %1285 = vector.broadcast %1284 : vector<8x1xf32> to vector<8x64xf32>
    %1286 = arith.mulf %1283, %1285 : vector<8x64xf32>
    %cst_272 = arith.constant dense<0.000000e+00> : vector<8x96xf32>
    %1287 = tpu.matmul %1135, %304, %cst_272 {dimension_numbers = #tpu.dot_dimension_numbers<[1], [0], [0], [1], [0, 0, 1, 1], [], []>} : vector<8x16xf32>, vector<16x96xf32>, vector<8x96xf32> -> vector<8x96xf32>
    %cst_273 = arith.constant dense<0.000000e+00> : vector<8x96xf32>
    %1288 = tpu.matmul %1286, %305, %cst_273 {dimension_numbers = #tpu.dot_dimension_numbers<[1], [0], [0], [1], [0, 0, 1, 1], [], []>} : vector<8x64xf32>, vector<64x96xf32>, vector<8x96xf32> -> vector<8x96xf32>
    %1289 = arith.addf %1287, %1288 : vector<8x96xf32>
    %1290 = vector.broadcast %307 : vector<1x96xf32> to vector<8x96xf32>
    %1291 = arith.addf %1289, %1290 : vector<8x96xf32>
    %cst_274 = arith.constant dense<0.000000e+00> : vector<8x96xf32>
    %1292 = tpu.matmul %1110, %306, %cst_274 {dimension_numbers = #tpu.dot_dimension_numbers<[1], [0], [0], [1], [0, 0, 1, 1], [], []>} : vector<8x32xf32>, vector<32x96xf32>, vector<8x96xf32> -> vector<8x96xf32>
    %1293 = vector.broadcast %308 : vector<1x96xf32> to vector<8x96xf32>
    %1294 = arith.addf %1292, %1293 : vector<8x96xf32>
    %1295 = vector.extract_strided_slice %1291 {offsets = [0, 0], sizes = [8, 64], strides = [1, 1]} : vector<8x96xf32> to vector<8x64xf32>
    %1296 = vector.extract_strided_slice %1294 {offsets = [0, 0], sizes = [8, 64], strides = [1, 1]} : vector<8x96xf32> to vector<8x64xf32>
    %1297 = arith.addf %1295, %1296 : vector<8x64xf32>
    %1298 = arith.negf %1297 : vector<8x64xf32>
    %1299 = math.exp %1298 : vector<8x64xf32>
    %cst_275 = arith.constant 1.000000e+00 : f32
    %1300 = vector.broadcast %cst_275 : f32 to vector<8x64xf32>
    %1301 = arith.addf %1300, %1299 : vector<8x64xf32>
    %1302 = arith.divf %1300, %1301 : vector<8x64xf32>
    %1303 = vector.extract_strided_slice %1302 {offsets = [0, 0], sizes = [8, 32], strides = [1, 1]} : vector<8x64xf32> to vector<8x32xf32>
    %1304 = vector.extract_strided_slice %1302 {offsets = [0, 32], sizes = [8, 32], strides = [1, 1]} : vector<8x64xf32> to vector<8x32xf32>
    %1305 = vector.extract_strided_slice %1291 {offsets = [0, 64], sizes = [8, 32], strides = [1, 1]} : vector<8x96xf32> to vector<8x32xf32>
    %1306 = vector.extract_strided_slice %1294 {offsets = [0, 64], sizes = [8, 32], strides = [1, 1]} : vector<8x96xf32> to vector<8x32xf32>
    %1307 = arith.mulf %1303, %1306 : vector<8x32xf32>
    %1308 = arith.addf %1305, %1307 : vector<8x32xf32>
    %1309 = math.tanh %1308 : vector<8x32xf32>
    %cst_276 = arith.constant 1.000000e+00 : f32
    %1310 = vector.broadcast %cst_276 : f32 to vector<8x32xf32>
    %1311 = arith.subf %1310, %1304 : vector<8x32xf32>
    %1312 = arith.mulf %1311, %1309 : vector<8x32xf32>
    %1313 = arith.mulf %1304, %1110 : vector<8x32xf32>
    %1314 = arith.addf %1312, %1313 : vector<8x32xf32>
    %c0_277 = arith.constant 0 : index
    %c0_278 = arith.constant 0 : index
    %1315 = vector.load %arg21[%c0_277, %c0_278] : memref<32x128xf32, #tpu.memory_space<vmem>>, vector<32x128xf32>
    %cst_279 = arith.constant dense<0.000000e+00> : vector<8x128xf32>
    %1316 = tpu.matmul %1314, %1315, %cst_279 {dimension_numbers = #tpu.dot_dimension_numbers<[1], [0], [0], [1], [0, 0, 1, 1], [], []>} : vector<8x32xf32>, vector<32x128xf32>, vector<8x128xf32> -> vector<8x128xf32>
    %c0_280 = arith.constant 0 : index
    %c0_281 = arith.constant 0 : index
    %1317 = vector.load %arg22[%c0_280, %c0_281] : memref<64x128xf32, #tpu.memory_space<vmem>>, vector<64x128xf32>
    %cst_282 = arith.constant dense<0.000000e+00> : vector<8x128xf32>
    %1318 = tpu.matmul %1286, %1317, %cst_282 {dimension_numbers = #tpu.dot_dimension_numbers<[1], [0], [0], [1], [0, 0, 1, 1], [], []>} : vector<8x64xf32>, vector<64x128xf32>, vector<8x128xf32> -> vector<8x128xf32>
    %1319 = arith.addf %1316, %1318 : vector<8x128xf32>
    %c0_283 = arith.constant 0 : index
    %c0_284 = arith.constant 0 : index
    %1320 = vector.load %arg23[%c0_283, %c0_284] : memref<16x128xf32, #tpu.memory_space<vmem>>, vector<16x128xf32>
    %cst_285 = arith.constant dense<0.000000e+00> : vector<8x128xf32>
    %1321 = tpu.matmul %1135, %1320, %cst_285 {dimension_numbers = #tpu.dot_dimension_numbers<[1], [0], [0], [1], [0, 0, 1, 1], [], []>} : vector<8x16xf32>, vector<16x128xf32>, vector<8x128xf32> -> vector<8x128xf32>
    %1322 = arith.addf %1319, %1321 : vector<8x128xf32>
    %c0_286 = arith.constant 0 : index
    %c0_287 = arith.constant 0 : index
    %1323 = vector.load %arg24[%c0_286, %c0_287] : memref<1x128xf32, #tpu.memory_space<vmem>>, vector<1x128xf32>
    %1324 = vector.broadcast %1323 : vector<1x128xf32> to vector<8x128xf32>
    %1325 = arith.addf %1322, %1324 : vector<8x128xf32>
    %c0_288 = arith.constant 0 : index
    %c40_289 = arith.constant 40 : index
    %c0_290 = arith.constant 0 : index
    %1326 = vector.load %arg25[%c0_288, %c40_289, %c0_290] : memref<1x64x128xf32, #tpu.memory_space<vmem>>, vector<1x8x128xf32>
    %1327 = vector.shape_cast %1326 : vector<1x8x128xf32> to vector<8x128xf32>
    %1328 = vector.shape_cast %1325 : vector<8x128xf32> to vector<1x8x128xf32>
    tpu.vector_store %arg25[%c0_288, %c40_289, %c0_290], %1328 {strides = array<i32>} : memref<1x64x128xf32, #tpu.memory_space<vmem>>, vector<1x8x128xf32>,
    %c5_291 = arith.constant 5 : index
    %1329 = memref.load %arg1[%c5_291] : memref<8xi32, #tpu.memory_space<smem>>
    %c1_i32_292 = arith.constant 1 : i32
    %1330 = arith.cmpi eq, %1329, %c1_i32_292 : i32
    %1331 = arith.extui %1330 : i1 to i32
    %c0_i32_293 = arith.constant 0 : i32
    %1332 = arith.cmpi ne, %1331, %c0_i32_293 : i32
    scf.if %1332 {
      %c0_367 = arith.constant 0 : index
      %c5_368 = arith.constant 5 : index
      %c0_369 = arith.constant 0 : index
      %c0_370 = arith.constant 0 : index
      %1737 = vector.load %arg3[%c0_367, %c5_368, %c0_369, %c0_370] : memref<1x8x8x16xf32, #tpu.memory_space<vmem>>, vector<1x1x8x16xf32>
      %1738 = vector.shape_cast %1737 : vector<1x1x8x16xf32> to vector<8x16xf32>
      %c0_371 = arith.constant 0 : index
      %c0_372 = arith.constant 0 : index
      %1739 = vector.load %arg27[%c0_371, %c0_372] : memref<8x16xf32, #tpu.memory_space<vmem>>, vector<8x16xf32>
      tpu.vector_store %arg27[%c0_371, %c0_372], %1738 {strides = array<i32>} : memref<8x16xf32, #tpu.memory_space<vmem>>, vector<8x16xf32>,
    } else {
    }
    %c0_i32_294 = arith.constant 0 : i32
    %1333 = arith.cmpi eq, %1329, %c0_i32_294 : i32
    %1334 = arith.extui %1333 : i1 to i32
    %c0_i32_295 = arith.constant 0 : i32
    %1335 = arith.cmpi ne, %1334, %c0_i32_295 : i32
    scf.if %1335 {
      %1737 = vector.extract_strided_slice %1325 {offsets = [0, 0], sizes = [8, 32], strides = [1, 1]} : vector<8x128xf32> to vector<8x32xf32>
      %1738 = tpu.iota {dimensions = array<i32: 1>} : vector<8x32xi32>
      %cst_367 = arith.constant dense<0xFF800000> : vector<8xf32>
      %1739 = vector.multi_reduction <maximumf>, %1737, %cst_367 [1] : vector<8x32xf32> to vector<8xf32>
      %1740 = vector.shape_cast %1739 : vector<8xf32> to vector<8x1xf32>
      %1741 = vector.broadcast %1740 : vector<8x1xf32> to vector<8x32xf32>
      %1742 = arith.cmpf oge, %1737, %1741 : vector<8x32xf32>
      %c32_i32 = arith.constant 32 : i32
      %1743 = vector.broadcast %c32_i32 : i32 to vector<8x32xi32>
      %1744 = arith.select %1742, %1738, %1743 : vector<8x32xi1>, vector<8x32xi32>
      %cst_368 = arith.constant dense<2147483647> : vector<8xi32>
      %1745 = vector.multi_reduction <minsi>, %1744, %cst_368 [1] : vector<8x32xi32> to vector<8xi32>
      %1746 = vector.shape_cast %1745 : vector<8xi32> to vector<8x1xi32>
      %1747 = vector.broadcast %1746 : vector<8x1xi32> to vector<8x32xi32>
      %1748 = arith.cmpi eq, %1738, %1747 : vector<8x32xi32>
      %1749 = arith.extui %1748 : vector<8x32xi1> to vector<8x32xi32>
      %1750 = arith.sitofp %1749 : vector<8x32xi32> to vector<8x32xf32>
      %c0_369 = arith.constant 0 : index
      %c0_370 = arith.constant 0 : index
      %1751 = vector.load %arg5[%c0_369, %c0_370] : memref<32x16xf32, #tpu.memory_space<vmem>>, vector<32x16xf32>
      %cst_371 = arith.constant dense<0.000000e+00> : vector<8x16xf32>
      %1752 = tpu.matmul %1750, %1751, %cst_371 {dimension_numbers = #tpu.dot_dimension_numbers<[1], [0], [0], [1], [0, 0, 1, 1], [], []>} : vector<8x32xf32>, vector<32x16xf32>, vector<8x16xf32> -> vector<8x16xf32>
      %c0_372 = arith.constant 0 : index
      %c0_373 = arith.constant 0 : index
      %1753 = vector.load %arg27[%c0_372, %c0_373] : memref<8x16xf32, #tpu.memory_space<vmem>>, vector<8x16xf32>
      tpu.vector_store %arg27[%c0_372, %c0_373], %1752 {strides = array<i32>} : memref<8x16xf32, #tpu.memory_space<vmem>>, vector<8x16xf32>,
    } else {
    }
    %c0_296 = arith.constant 0 : index
    %c0_297 = arith.constant 0 : index
    %1336 = vector.load %arg27[%c0_296, %c0_297] : memref<8x16xf32, #tpu.memory_space<vmem>>, vector<8x16xf32>
    %c6 = arith.constant 6 : index
    %c0_298 = arith.constant 0 : index
    %1337 = vector.load %arg4[%c6, %c0_298] : memref<8x16xf32, #tpu.memory_space<vmem>>, vector<1x16xf32>
    %1338 = vector.broadcast %1337 : vector<1x16xf32> to vector<8x16xf32>
    %1339 = arith.addf %1336, %1338 : vector<8x16xf32>
    %cst_299 = arith.constant dense<0.000000e+00> : vector<8x32xf32>
    %1340 = tpu.matmul %1314, %302, %cst_299 {dimension_numbers = #tpu.dot_dimension_numbers<[1], [0], [0], [1], [0, 0, 1, 1], [], []>} : vector<8x32xf32>, vector<32x32xf32>, vector<8x32xf32> -> vector<8x32xf32>
    %1341 = vector.extract_strided_slice %301 {offsets = [0, 0], sizes = [8, 32], strides = [1, 1]} : vector<80x32xf32> to vector<8x32xf32>
    %1342 = arith.addf %1341, %1340 : vector<8x32xf32>
    %1343 = math.tanh %1342 : vector<8x32xf32>
    %1344 = vector.broadcast %303 : vector<1x32xf32> to vector<8x32xf32>
    %1345 = arith.mulf %1343, %1344 : vector<8x32xf32>
    %cst_300 = arith.constant dense<0.000000e+00> : vector<8xf32>
    %1346 = vector.multi_reduction <add>, %1345, %cst_300 [1] : vector<8x32xf32> to vector<8xf32>
    %1347 = vector.shape_cast %1346 : vector<8xf32> to vector<8x1xf32>
    %1348 = vector.extract_strided_slice %301 {offsets = [8, 0], sizes = [8, 32], strides = [1, 1]} : vector<80x32xf32> to vector<8x32xf32>
    %1349 = arith.addf %1348, %1340 : vector<8x32xf32>
    %1350 = math.tanh %1349 : vector<8x32xf32>
    %1351 = vector.broadcast %303 : vector<1x32xf32> to vector<8x32xf32>
    %1352 = arith.mulf %1350, %1351 : vector<8x32xf32>
    %cst_301 = arith.constant dense<0.000000e+00> : vector<8xf32>
    %1353 = vector.multi_reduction <add>, %1352, %cst_301 [1] : vector<8x32xf32> to vector<8xf32>
    %1354 = vector.shape_cast %1353 : vector<8xf32> to vector<8x1xf32>
    %1355 = vector.extract_strided_slice %301 {offsets = [16, 0], sizes = [8, 32], strides = [1, 1]} : vector<80x32xf32> to vector<8x32xf32>
    %1356 = arith.addf %1355, %1340 : vector<8x32xf32>
    %1357 = math.tanh %1356 : vector<8x32xf32>
    %1358 = vector.broadcast %303 : vector<1x32xf32> to vector<8x32xf32>
    %1359 = arith.mulf %1357, %1358 : vector<8x32xf32>
    %cst_302 = arith.constant dense<0.000000e+00> : vector<8xf32>
    %1360 = vector.multi_reduction <add>, %1359, %cst_302 [1] : vector<8x32xf32> to vector<8xf32>
    %1361 = vector.shape_cast %1360 : vector<8xf32> to vector<8x1xf32>
    %1362 = vector.extract_strided_slice %301 {offsets = [24, 0], sizes = [8, 32], strides = [1, 1]} : vector<80x32xf32> to vector<8x32xf32>
    %1363 = arith.addf %1362, %1340 : vector<8x32xf32>
    %1364 = math.tanh %1363 : vector<8x32xf32>
    %1365 = vector.broadcast %303 : vector<1x32xf32> to vector<8x32xf32>
    %1366 = arith.mulf %1364, %1365 : vector<8x32xf32>
    %cst_303 = arith.constant dense<0.000000e+00> : vector<8xf32>
    %1367 = vector.multi_reduction <add>, %1366, %cst_303 [1] : vector<8x32xf32> to vector<8xf32>
    %1368 = vector.shape_cast %1367 : vector<8xf32> to vector<8x1xf32>
    %1369 = vector.extract_strided_slice %301 {offsets = [32, 0], sizes = [8, 32], strides = [1, 1]} : vector<80x32xf32> to vector<8x32xf32>
    %1370 = arith.addf %1369, %1340 : vector<8x32xf32>
    %1371 = math.tanh %1370 : vector<8x32xf32>
    %1372 = vector.broadcast %303 : vector<1x32xf32> to vector<8x32xf32>
    %1373 = arith.mulf %1371, %1372 : vector<8x32xf32>
    %cst_304 = arith.constant dense<0.000000e+00> : vector<8xf32>
    %1374 = vector.multi_reduction <add>, %1373, %cst_304 [1] : vector<8x32xf32> to vector<8xf32>
    %1375 = vector.shape_cast %1374 : vector<8xf32> to vector<8x1xf32>
    %1376 = vector.extract_strided_slice %301 {offsets = [40, 0], sizes = [8, 32], strides = [1, 1]} : vector<80x32xf32> to vector<8x32xf32>
    %1377 = arith.addf %1376, %1340 : vector<8x32xf32>
    %1378 = math.tanh %1377 : vector<8x32xf32>
    %1379 = vector.broadcast %303 : vector<1x32xf32> to vector<8x32xf32>
    %1380 = arith.mulf %1378, %1379 : vector<8x32xf32>
    %cst_305 = arith.constant dense<0.000000e+00> : vector<8xf32>
    %1381 = vector.multi_reduction <add>, %1380, %cst_305 [1] : vector<8x32xf32> to vector<8xf32>
    %1382 = vector.shape_cast %1381 : vector<8xf32> to vector<8x1xf32>
    %1383 = vector.extract_strided_slice %301 {offsets = [48, 0], sizes = [8, 32], strides = [1, 1]} : vector<80x32xf32> to vector<8x32xf32>
    %1384 = arith.addf %1383, %1340 : vector<8x32xf32>
    %1385 = math.tanh %1384 : vector<8x32xf32>
    %1386 = vector.broadcast %303 : vector<1x32xf32> to vector<8x32xf32>
    %1387 = arith.mulf %1385, %1386 : vector<8x32xf32>
    %cst_306 = arith.constant dense<0.000000e+00> : vector<8xf32>
    %1388 = vector.multi_reduction <add>, %1387, %cst_306 [1] : vector<8x32xf32> to vector<8xf32>
    %1389 = vector.shape_cast %1388 : vector<8xf32> to vector<8x1xf32>
    %1390 = vector.extract_strided_slice %301 {offsets = [56, 0], sizes = [8, 32], strides = [1, 1]} : vector<80x32xf32> to vector<8x32xf32>
    %1391 = arith.addf %1390, %1340 : vector<8x32xf32>
    %1392 = math.tanh %1391 : vector<8x32xf32>
    %1393 = vector.broadcast %303 : vector<1x32xf32> to vector<8x32xf32>
    %1394 = arith.mulf %1392, %1393 : vector<8x32xf32>
    %cst_307 = arith.constant dense<0.000000e+00> : vector<8xf32>
    %1395 = vector.multi_reduction <add>, %1394, %cst_307 [1] : vector<8x32xf32> to vector<8xf32>
    %1396 = vector.shape_cast %1395 : vector<8xf32> to vector<8x1xf32>
    %1397 = vector.extract_strided_slice %301 {offsets = [64, 0], sizes = [8, 32], strides = [1, 1]} : vector<80x32xf32> to vector<8x32xf32>
    %1398 = arith.addf %1397, %1340 : vector<8x32xf32>
    %1399 = math.tanh %1398 : vector<8x32xf32>
    %1400 = vector.broadcast %303 : vector<1x32xf32> to vector<8x32xf32>
    %1401 = arith.mulf %1399, %1400 : vector<8x32xf32>
    %cst_308 = arith.constant dense<0.000000e+00> : vector<8xf32>
    %1402 = vector.multi_reduction <add>, %1401, %cst_308 [1] : vector<8x32xf32> to vector<8xf32>
    %1403 = vector.shape_cast %1402 : vector<8xf32> to vector<8x1xf32>
    %1404 = vector.extract_strided_slice %301 {offsets = [72, 0], sizes = [8, 32], strides = [1, 1]} : vector<80x32xf32> to vector<8x32xf32>
    %1405 = arith.addf %1404, %1340 : vector<8x32xf32>
    %1406 = math.tanh %1405 : vector<8x32xf32>
    %1407 = vector.broadcast %303 : vector<1x32xf32> to vector<8x32xf32>
    %1408 = arith.mulf %1406, %1407 : vector<8x32xf32>
    %cst_309 = arith.constant dense<0.000000e+00> : vector<8xf32>
    %1409 = vector.multi_reduction <add>, %1408, %cst_309 [1] : vector<8x32xf32> to vector<8xf32>
    %1410 = vector.shape_cast %1409 : vector<8xf32> to vector<8x1xf32>
    %1411 = arith.maximumf %1347, %1354 : vector<8x1xf32>
    %1412 = arith.maximumf %1411, %1361 : vector<8x1xf32>
    %1413 = arith.maximumf %1412, %1368 : vector<8x1xf32>
    %1414 = arith.maximumf %1413, %1375 : vector<8x1xf32>
    %1415 = arith.maximumf %1414, %1382 : vector<8x1xf32>
    %1416 = arith.maximumf %1415, %1389 : vector<8x1xf32>
    %1417 = arith.maximumf %1416, %1396 : vector<8x1xf32>
    %1418 = arith.maximumf %1417, %1403 : vector<8x1xf32>
    %1419 = arith.maximumf %1418, %1410 : vector<8x1xf32>
    %1420 = arith.subf %1347, %1419 : vector<8x1xf32>
    %1421 = math.exp %1420 : vector<8x1xf32>
    %1422 = arith.subf %1354, %1419 : vector<8x1xf32>
    %1423 = math.exp %1422 : vector<8x1xf32>
    %1424 = arith.subf %1361, %1419 : vector<8x1xf32>
    %1425 = math.exp %1424 : vector<8x1xf32>
    %1426 = arith.subf %1368, %1419 : vector<8x1xf32>
    %1427 = math.exp %1426 : vector<8x1xf32>
    %1428 = arith.subf %1375, %1419 : vector<8x1xf32>
    %1429 = math.exp %1428 : vector<8x1xf32>
    %1430 = arith.subf %1382, %1419 : vector<8x1xf32>
    %1431 = math.exp %1430 : vector<8x1xf32>
    %1432 = arith.subf %1389, %1419 : vector<8x1xf32>
    %1433 = math.exp %1432 : vector<8x1xf32>
    %1434 = arith.subf %1396, %1419 : vector<8x1xf32>
    %1435 = math.exp %1434 : vector<8x1xf32>
    %1436 = arith.subf %1403, %1419 : vector<8x1xf32>
    %1437 = math.exp %1436 : vector<8x1xf32>
    %1438 = arith.subf %1410, %1419 : vector<8x1xf32>
    %1439 = math.exp %1438 : vector<8x1xf32>
    %1440 = arith.addf %1421, %1423 : vector<8x1xf32>
    %1441 = arith.addf %1440, %1425 : vector<8x1xf32>
    %1442 = arith.addf %1441, %1427 : vector<8x1xf32>
    %1443 = arith.addf %1442, %1429 : vector<8x1xf32>
    %1444 = arith.addf %1443, %1431 : vector<8x1xf32>
    %1445 = arith.addf %1444, %1433 : vector<8x1xf32>
    %1446 = arith.addf %1445, %1435 : vector<8x1xf32>
    %1447 = arith.addf %1446, %1437 : vector<8x1xf32>
    %1448 = arith.addf %1447, %1439 : vector<8x1xf32>
    %1449 = vector.extract_strided_slice %296 {offsets = [0, 0], sizes = [8, 64], strides = [1, 1]} : vector<80x64xf32> to vector<8x64xf32>
    %1450 = vector.broadcast %1421 : vector<8x1xf32> to vector<8x64xf32>
    %1451 = arith.mulf %1450, %1449 : vector<8x64xf32>
    %1452 = vector.extract_strided_slice %296 {offsets = [8, 0], sizes = [8, 64], strides = [1, 1]} : vector<80x64xf32> to vector<8x64xf32>
    %1453 = vector.broadcast %1423 : vector<8x1xf32> to vector<8x64xf32>
    %1454 = arith.mulf %1453, %1452 : vector<8x64xf32>
    %1455 = arith.addf %1451, %1454 : vector<8x64xf32>
    %1456 = vector.extract_strided_slice %296 {offsets = [16, 0], sizes = [8, 64], strides = [1, 1]} : vector<80x64xf32> to vector<8x64xf32>
    %1457 = vector.broadcast %1425 : vector<8x1xf32> to vector<8x64xf32>
    %1458 = arith.mulf %1457, %1456 : vector<8x64xf32>
    %1459 = arith.addf %1455, %1458 : vector<8x64xf32>
    %1460 = vector.extract_strided_slice %296 {offsets = [24, 0], sizes = [8, 64], strides = [1, 1]} : vector<80x64xf32> to vector<8x64xf32>
    %1461 = vector.broadcast %1427 : vector<8x1xf32> to vector<8x64xf32>
    %1462 = arith.mulf %1461, %1460 : vector<8x64xf32>
    %1463 = arith.addf %1459, %1462 : vector<8x64xf32>
    %1464 = vector.extract_strided_slice %296 {offsets = [32, 0], sizes = [8, 64], strides = [1, 1]} : vector<80x64xf32> to vector<8x64xf32>
    %1465 = vector.broadcast %1429 : vector<8x1xf32> to vector<8x64xf32>
    %1466 = arith.mulf %1465, %1464 : vector<8x64xf32>
    %1467 = arith.addf %1463, %1466 : vector<8x64xf32>
    %1468 = vector.extract_strided_slice %296 {offsets = [40, 0], sizes = [8, 64], strides = [1, 1]} : vector<80x64xf32> to vector<8x64xf32>
    %1469 = vector.broadcast %1431 : vector<8x1xf32> to vector<8x64xf32>
    %1470 = arith.mulf %1469, %1468 : vector<8x64xf32>
    %1471 = arith.addf %1467, %1470 : vector<8x64xf32>
    %1472 = vector.extract_strided_slice %296 {offsets = [48, 0], sizes = [8, 64], strides = [1, 1]} : vector<80x64xf32> to vector<8x64xf32>
    %1473 = vector.broadcast %1433 : vector<8x1xf32> to vector<8x64xf32>
    %1474 = arith.mulf %1473, %1472 : vector<8x64xf32>
    %1475 = arith.addf %1471, %1474 : vector<8x64xf32>
    %1476 = vector.extract_strided_slice %296 {offsets = [56, 0], sizes = [8, 64], strides = [1, 1]} : vector<80x64xf32> to vector<8x64xf32>
    %1477 = vector.broadcast %1435 : vector<8x1xf32> to vector<8x64xf32>
    %1478 = arith.mulf %1477, %1476 : vector<8x64xf32>
    %1479 = arith.addf %1475, %1478 : vector<8x64xf32>
    %1480 = vector.extract_strided_slice %296 {offsets = [64, 0], sizes = [8, 64], strides = [1, 1]} : vector<80x64xf32> to vector<8x64xf32>
    %1481 = vector.broadcast %1437 : vector<8x1xf32> to vector<8x64xf32>
    %1482 = arith.mulf %1481, %1480 : vector<8x64xf32>
    %1483 = arith.addf %1479, %1482 : vector<8x64xf32>
    %1484 = vector.extract_strided_slice %296 {offsets = [72, 0], sizes = [8, 64], strides = [1, 1]} : vector<80x64xf32> to vector<8x64xf32>
    %1485 = vector.broadcast %1439 : vector<8x1xf32> to vector<8x64xf32>
    %1486 = arith.mulf %1485, %1484 : vector<8x64xf32>
    %1487 = arith.addf %1483, %1486 : vector<8x64xf32>
    %1488 = tpu.reciprocal %1448 {approx = true} : vector<8x1xf32> -> vector<8x1xf32>
    %1489 = vector.broadcast %1488 : vector<8x1xf32> to vector<8x64xf32>
    %1490 = arith.mulf %1487, %1489 : vector<8x64xf32>
    %cst_310 = arith.constant dense<0.000000e+00> : vector<8x96xf32>
    %1491 = tpu.matmul %1339, %304, %cst_310 {dimension_numbers = #tpu.dot_dimension_numbers<[1], [0], [0], [1], [0, 0, 1, 1], [], []>} : vector<8x16xf32>, vector<16x96xf32>, vector<8x96xf32> -> vector<8x96xf32>
    %cst_311 = arith.constant dense<0.000000e+00> : vector<8x96xf32>
    %1492 = tpu.matmul %1490, %305, %cst_311 {dimension_numbers = #tpu.dot_dimension_numbers<[1], [0], [0], [1], [0, 0, 1, 1], [], []>} : vector<8x64xf32>, vector<64x96xf32>, vector<8x96xf32> -> vector<8x96xf32>
    %1493 = arith.addf %1491, %1492 : vector<8x96xf32>
    %1494 = vector.broadcast %307 : vector<1x96xf32> to vector<8x96xf32>
    %1495 = arith.addf %1493, %1494 : vector<8x96xf32>
    %cst_312 = arith.constant dense<0.000000e+00> : vector<8x96xf32>
    %1496 = tpu.matmul %1314, %306, %cst_312 {dimension_numbers = #tpu.dot_dimension_numbers<[1], [0], [0], [1], [0, 0, 1, 1], [], []>} : vector<8x32xf32>, vector<32x96xf32>, vector<8x96xf32> -> vector<8x96xf32>
    %1497 = vector.broadcast %308 : vector<1x96xf32> to vector<8x96xf32>
    %1498 = arith.addf %1496, %1497 : vector<8x96xf32>
    %1499 = vector.extract_strided_slice %1495 {offsets = [0, 0], sizes = [8, 64], strides = [1, 1]} : vector<8x96xf32> to vector<8x64xf32>
    %1500 = vector.extract_strided_slice %1498 {offsets = [0, 0], sizes = [8, 64], strides = [1, 1]} : vector<8x96xf32> to vector<8x64xf32>
    %1501 = arith.addf %1499, %1500 : vector<8x64xf32>
    %1502 = arith.negf %1501 : vector<8x64xf32>
    %1503 = math.exp %1502 : vector<8x64xf32>
    %cst_313 = arith.constant 1.000000e+00 : f32
    %1504 = vector.broadcast %cst_313 : f32 to vector<8x64xf32>
    %1505 = arith.addf %1504, %1503 : vector<8x64xf32>
    %1506 = arith.divf %1504, %1505 : vector<8x64xf32>
    %1507 = vector.extract_strided_slice %1506 {offsets = [0, 0], sizes = [8, 32], strides = [1, 1]} : vector<8x64xf32> to vector<8x32xf32>
    %1508 = vector.extract_strided_slice %1506 {offsets = [0, 32], sizes = [8, 32], strides = [1, 1]} : vector<8x64xf32> to vector<8x32xf32>
    %1509 = vector.extract_strided_slice %1495 {offsets = [0, 64], sizes = [8, 32], strides = [1, 1]} : vector<8x96xf32> to vector<8x32xf32>
    %1510 = vector.extract_strided_slice %1498 {offsets = [0, 64], sizes = [8, 32], strides = [1, 1]} : vector<8x96xf32> to vector<8x32xf32>
    %1511 = arith.mulf %1507, %1510 : vector<8x32xf32>
    %1512 = arith.addf %1509, %1511 : vector<8x32xf32>
    %1513 = math.tanh %1512 : vector<8x32xf32>
    %cst_314 = arith.constant 1.000000e+00 : f32
    %1514 = vector.broadcast %cst_314 : f32 to vector<8x32xf32>
    %1515 = arith.subf %1514, %1508 : vector<8x32xf32>
    %1516 = arith.mulf %1515, %1513 : vector<8x32xf32>
    %1517 = arith.mulf %1508, %1314 : vector<8x32xf32>
    %1518 = arith.addf %1516, %1517 : vector<8x32xf32>
    %c0_315 = arith.constant 0 : index
    %c0_316 = arith.constant 0 : index
    %1519 = vector.load %arg21[%c0_315, %c0_316] : memref<32x128xf32, #tpu.memory_space<vmem>>, vector<32x128xf32>
    %cst_317 = arith.constant dense<0.000000e+00> : vector<8x128xf32>
    %1520 = tpu.matmul %1518, %1519, %cst_317 {dimension_numbers = #tpu.dot_dimension_numbers<[1], [0], [0], [1], [0, 0, 1, 1], [], []>} : vector<8x32xf32>, vector<32x128xf32>, vector<8x128xf32> -> vector<8x128xf32>
    %c0_318 = arith.constant 0 : index
    %c0_319 = arith.constant 0 : index
    %1521 = vector.load %arg22[%c0_318, %c0_319] : memref<64x128xf32, #tpu.memory_space<vmem>>, vector<64x128xf32>
    %cst_320 = arith.constant dense<0.000000e+00> : vector<8x128xf32>
    %1522 = tpu.matmul %1490, %1521, %cst_320 {dimension_numbers = #tpu.dot_dimension_numbers<[1], [0], [0], [1], [0, 0, 1, 1], [], []>} : vector<8x64xf32>, vector<64x128xf32>, vector<8x128xf32> -> vector<8x128xf32>
    %1523 = arith.addf %1520, %1522 : vector<8x128xf32>
    %c0_321 = arith.constant 0 : index
    %c0_322 = arith.constant 0 : index
    %1524 = vector.load %arg23[%c0_321, %c0_322] : memref<16x128xf32, #tpu.memory_space<vmem>>, vector<16x128xf32>
    %cst_323 = arith.constant dense<0.000000e+00> : vector<8x128xf32>
    %1525 = tpu.matmul %1339, %1524, %cst_323 {dimension_numbers = #tpu.dot_dimension_numbers<[1], [0], [0], [1], [0, 0, 1, 1], [], []>} : vector<8x16xf32>, vector<16x128xf32>, vector<8x128xf32> -> vector<8x128xf32>
    %1526 = arith.addf %1523, %1525 : vector<8x128xf32>
    %c0_324 = arith.constant 0 : index
    %c0_325 = arith.constant 0 : index
    %1527 = vector.load %arg24[%c0_324, %c0_325] : memref<1x128xf32, #tpu.memory_space<vmem>>, vector<1x128xf32>
    %1528 = vector.broadcast %1527 : vector<1x128xf32> to vector<8x128xf32>
    %1529 = arith.addf %1526, %1528 : vector<8x128xf32>
    %c0_326 = arith.constant 0 : index
    %c48_327 = arith.constant 48 : index
    %c0_328 = arith.constant 0 : index
    %1530 = vector.load %arg25[%c0_326, %c48_327, %c0_328] : memref<1x64x128xf32, #tpu.memory_space<vmem>>, vector<1x8x128xf32>
    %1531 = vector.shape_cast %1530 : vector<1x8x128xf32> to vector<8x128xf32>
    %1532 = vector.shape_cast %1529 : vector<8x128xf32> to vector<1x8x128xf32>
    tpu.vector_store %arg25[%c0_326, %c48_327, %c0_328], %1532 {strides = array<i32>} : memref<1x64x128xf32, #tpu.memory_space<vmem>>, vector<1x8x128xf32>,
    %c6_329 = arith.constant 6 : index
    %1533 = memref.load %arg1[%c6_329] : memref<8xi32, #tpu.memory_space<smem>>
    %c1_i32_330 = arith.constant 1 : i32
    %1534 = arith.cmpi eq, %1533, %c1_i32_330 : i32
    %1535 = arith.extui %1534 : i1 to i32
    %c0_i32_331 = arith.constant 0 : i32
    %1536 = arith.cmpi ne, %1535, %c0_i32_331 : i32
    scf.if %1536 {
      %c0_367 = arith.constant 0 : index
      %c6_368 = arith.constant 6 : index
      %c0_369 = arith.constant 0 : index
      %c0_370 = arith.constant 0 : index
      %1737 = vector.load %arg3[%c0_367, %c6_368, %c0_369, %c0_370] : memref<1x8x8x16xf32, #tpu.memory_space<vmem>>, vector<1x1x8x16xf32>
      %1738 = vector.shape_cast %1737 : vector<1x1x8x16xf32> to vector<8x16xf32>
      %c0_371 = arith.constant 0 : index
      %c0_372 = arith.constant 0 : index
      %1739 = vector.load %arg27[%c0_371, %c0_372] : memref<8x16xf32, #tpu.memory_space<vmem>>, vector<8x16xf32>
      tpu.vector_store %arg27[%c0_371, %c0_372], %1738 {strides = array<i32>} : memref<8x16xf32, #tpu.memory_space<vmem>>, vector<8x16xf32>,
    } else {
    }
    %c0_i32_332 = arith.constant 0 : i32
    %1537 = arith.cmpi eq, %1533, %c0_i32_332 : i32
    %1538 = arith.extui %1537 : i1 to i32
    %c0_i32_333 = arith.constant 0 : i32
    %1539 = arith.cmpi ne, %1538, %c0_i32_333 : i32
    scf.if %1539 {
      %1737 = vector.extract_strided_slice %1529 {offsets = [0, 0], sizes = [8, 32], strides = [1, 1]} : vector<8x128xf32> to vector<8x32xf32>
      %1738 = tpu.iota {dimensions = array<i32: 1>} : vector<8x32xi32>
      %cst_367 = arith.constant dense<0xFF800000> : vector<8xf32>
      %1739 = vector.multi_reduction <maximumf>, %1737, %cst_367 [1] : vector<8x32xf32> to vector<8xf32>
      %1740 = vector.shape_cast %1739 : vector<8xf32> to vector<8x1xf32>
      %1741 = vector.broadcast %1740 : vector<8x1xf32> to vector<8x32xf32>
      %1742 = arith.cmpf oge, %1737, %1741 : vector<8x32xf32>
      %c32_i32 = arith.constant 32 : i32
      %1743 = vector.broadcast %c32_i32 : i32 to vector<8x32xi32>
      %1744 = arith.select %1742, %1738, %1743 : vector<8x32xi1>, vector<8x32xi32>
      %cst_368 = arith.constant dense<2147483647> : vector<8xi32>
      %1745 = vector.multi_reduction <minsi>, %1744, %cst_368 [1] : vector<8x32xi32> to vector<8xi32>
      %1746 = vector.shape_cast %1745 : vector<8xi32> to vector<8x1xi32>
      %1747 = vector.broadcast %1746 : vector<8x1xi32> to vector<8x32xi32>
      %1748 = arith.cmpi eq, %1738, %1747 : vector<8x32xi32>
      %1749 = arith.extui %1748 : vector<8x32xi1> to vector<8x32xi32>
      %1750 = arith.sitofp %1749 : vector<8x32xi32> to vector<8x32xf32>
      %c0_369 = arith.constant 0 : index
      %c0_370 = arith.constant 0 : index
      %1751 = vector.load %arg5[%c0_369, %c0_370] : memref<32x16xf32, #tpu.memory_space<vmem>>, vector<32x16xf32>
      %cst_371 = arith.constant dense<0.000000e+00> : vector<8x16xf32>
      %1752 = tpu.matmul %1750, %1751, %cst_371 {dimension_numbers = #tpu.dot_dimension_numbers<[1], [0], [0], [1], [0, 0, 1, 1], [], []>} : vector<8x32xf32>, vector<32x16xf32>, vector<8x16xf32> -> vector<8x16xf32>
      %c0_372 = arith.constant 0 : index
      %c0_373 = arith.constant 0 : index
      %1753 = vector.load %arg27[%c0_372, %c0_373] : memref<8x16xf32, #tpu.memory_space<vmem>>, vector<8x16xf32>
      tpu.vector_store %arg27[%c0_372, %c0_373], %1752 {strides = array<i32>} : memref<8x16xf32, #tpu.memory_space<vmem>>, vector<8x16xf32>,
    } else {
    }
    %c0_334 = arith.constant 0 : index
    %c0_335 = arith.constant 0 : index
    %1540 = vector.load %arg27[%c0_334, %c0_335] : memref<8x16xf32, #tpu.memory_space<vmem>>, vector<8x16xf32>
    %c7 = arith.constant 7 : index
    %c0_336 = arith.constant 0 : index
    %1541 = vector.load %arg4[%c7, %c0_336] : memref<8x16xf32, #tpu.memory_space<vmem>>, vector<1x16xf32>
    %1542 = vector.broadcast %1541 : vector<1x16xf32> to vector<8x16xf32>
    %1543 = arith.addf %1540, %1542 : vector<8x16xf32>
    %cst_337 = arith.constant dense<0.000000e+00> : vector<8x32xf32>
    %1544 = tpu.matmul %1518, %302, %cst_337 {dimension_numbers = #tpu.dot_dimension_numbers<[1], [0], [0], [1], [0, 0, 1, 1], [], []>} : vector<8x32xf32>, vector<32x32xf32>, vector<8x32xf32> -> vector<8x32xf32>
    %1545 = vector.extract_strided_slice %301 {offsets = [0, 0], sizes = [8, 32], strides = [1, 1]} : vector<80x32xf32> to vector<8x32xf32>
    %1546 = arith.addf %1545, %1544 : vector<8x32xf32>
    %1547 = math.tanh %1546 : vector<8x32xf32>
    %1548 = vector.broadcast %303 : vector<1x32xf32> to vector<8x32xf32>
    %1549 = arith.mulf %1547, %1548 : vector<8x32xf32>
    %cst_338 = arith.constant dense<0.000000e+00> : vector<8xf32>
    %1550 = vector.multi_reduction <add>, %1549, %cst_338 [1] : vector<8x32xf32> to vector<8xf32>
    %1551 = vector.shape_cast %1550 : vector<8xf32> to vector<8x1xf32>
    %1552 = vector.extract_strided_slice %301 {offsets = [8, 0], sizes = [8, 32], strides = [1, 1]} : vector<80x32xf32> to vector<8x32xf32>
    %1553 = arith.addf %1552, %1544 : vector<8x32xf32>
    %1554 = math.tanh %1553 : vector<8x32xf32>
    %1555 = vector.broadcast %303 : vector<1x32xf32> to vector<8x32xf32>
    %1556 = arith.mulf %1554, %1555 : vector<8x32xf32>
    %cst_339 = arith.constant dense<0.000000e+00> : vector<8xf32>
    %1557 = vector.multi_reduction <add>, %1556, %cst_339 [1] : vector<8x32xf32> to vector<8xf32>
    %1558 = vector.shape_cast %1557 : vector<8xf32> to vector<8x1xf32>
    %1559 = vector.extract_strided_slice %301 {offsets = [16, 0], sizes = [8, 32], strides = [1, 1]} : vector<80x32xf32> to vector<8x32xf32>
    %1560 = arith.addf %1559, %1544 : vector<8x32xf32>
    %1561 = math.tanh %1560 : vector<8x32xf32>
    %1562 = vector.broadcast %303 : vector<1x32xf32> to vector<8x32xf32>
    %1563 = arith.mulf %1561, %1562 : vector<8x32xf32>
    %cst_340 = arith.constant dense<0.000000e+00> : vector<8xf32>
    %1564 = vector.multi_reduction <add>, %1563, %cst_340 [1] : vector<8x32xf32> to vector<8xf32>
    %1565 = vector.shape_cast %1564 : vector<8xf32> to vector<8x1xf32>
    %1566 = vector.extract_strided_slice %301 {offsets = [24, 0], sizes = [8, 32], strides = [1, 1]} : vector<80x32xf32> to vector<8x32xf32>
    %1567 = arith.addf %1566, %1544 : vector<8x32xf32>
    %1568 = math.tanh %1567 : vector<8x32xf32>
    %1569 = vector.broadcast %303 : vector<1x32xf32> to vector<8x32xf32>
    %1570 = arith.mulf %1568, %1569 : vector<8x32xf32>
    %cst_341 = arith.constant dense<0.000000e+00> : vector<8xf32>
    %1571 = vector.multi_reduction <add>, %1570, %cst_341 [1] : vector<8x32xf32> to vector<8xf32>
    %1572 = vector.shape_cast %1571 : vector<8xf32> to vector<8x1xf32>
    %1573 = vector.extract_strided_slice %301 {offsets = [32, 0], sizes = [8, 32], strides = [1, 1]} : vector<80x32xf32> to vector<8x32xf32>
    %1574 = arith.addf %1573, %1544 : vector<8x32xf32>
    %1575 = math.tanh %1574 : vector<8x32xf32>
    %1576 = vector.broadcast %303 : vector<1x32xf32> to vector<8x32xf32>
    %1577 = arith.mulf %1575, %1576 : vector<8x32xf32>
    %cst_342 = arith.constant dense<0.000000e+00> : vector<8xf32>
    %1578 = vector.multi_reduction <add>, %1577, %cst_342 [1] : vector<8x32xf32> to vector<8xf32>
    %1579 = vector.shape_cast %1578 : vector<8xf32> to vector<8x1xf32>
    %1580 = vector.extract_strided_slice %301 {offsets = [40, 0], sizes = [8, 32], strides = [1, 1]} : vector<80x32xf32> to vector<8x32xf32>
    %1581 = arith.addf %1580, %1544 : vector<8x32xf32>
    %1582 = math.tanh %1581 : vector<8x32xf32>
    %1583 = vector.broadcast %303 : vector<1x32xf32> to vector<8x32xf32>
    %1584 = arith.mulf %1582, %1583 : vector<8x32xf32>
    %cst_343 = arith.constant dense<0.000000e+00> : vector<8xf32>
    %1585 = vector.multi_reduction <add>, %1584, %cst_343 [1] : vector<8x32xf32> to vector<8xf32>
    %1586 = vector.shape_cast %1585 : vector<8xf32> to vector<8x1xf32>
    %1587 = vector.extract_strided_slice %301 {offsets = [48, 0], sizes = [8, 32], strides = [1, 1]} : vector<80x32xf32> to vector<8x32xf32>
    %1588 = arith.addf %1587, %1544 : vector<8x32xf32>
    %1589 = math.tanh %1588 : vector<8x32xf32>
    %1590 = vector.broadcast %303 : vector<1x32xf32> to vector<8x32xf32>
    %1591 = arith.mulf %1589, %1590 : vector<8x32xf32>
    %cst_344 = arith.constant dense<0.000000e+00> : vector<8xf32>
    %1592 = vector.multi_reduction <add>, %1591, %cst_344 [1] : vector<8x32xf32> to vector<8xf32>
    %1593 = vector.shape_cast %1592 : vector<8xf32> to vector<8x1xf32>
    %1594 = vector.extract_strided_slice %301 {offsets = [56, 0], sizes = [8, 32], strides = [1, 1]} : vector<80x32xf32> to vector<8x32xf32>
    %1595 = arith.addf %1594, %1544 : vector<8x32xf32>
    %1596 = math.tanh %1595 : vector<8x32xf32>
    %1597 = vector.broadcast %303 : vector<1x32xf32> to vector<8x32xf32>
    %1598 = arith.mulf %1596, %1597 : vector<8x32xf32>
    %cst_345 = arith.constant dense<0.000000e+00> : vector<8xf32>
    %1599 = vector.multi_reduction <add>, %1598, %cst_345 [1] : vector<8x32xf32> to vector<8xf32>
    %1600 = vector.shape_cast %1599 : vector<8xf32> to vector<8x1xf32>
    %1601 = vector.extract_strided_slice %301 {offsets = [64, 0], sizes = [8, 32], strides = [1, 1]} : vector<80x32xf32> to vector<8x32xf32>
    %1602 = arith.addf %1601, %1544 : vector<8x32xf32>
    %1603 = math.tanh %1602 : vector<8x32xf32>
    %1604 = vector.broadcast %303 : vector<1x32xf32> to vector<8x32xf32>
    %1605 = arith.mulf %1603, %1604 : vector<8x32xf32>
    %cst_346 = arith.constant dense<0.000000e+00> : vector<8xf32>
    %1606 = vector.multi_reduction <add>, %1605, %cst_346 [1] : vector<8x32xf32> to vector<8xf32>
    %1607 = vector.shape_cast %1606 : vector<8xf32> to vector<8x1xf32>
    %1608 = vector.extract_strided_slice %301 {offsets = [72, 0], sizes = [8, 32], strides = [1, 1]} : vector<80x32xf32> to vector<8x32xf32>
    %1609 = arith.addf %1608, %1544 : vector<8x32xf32>
    %1610 = math.tanh %1609 : vector<8x32xf32>
    %1611 = vector.broadcast %303 : vector<1x32xf32> to vector<8x32xf32>
    %1612 = arith.mulf %1610, %1611 : vector<8x32xf32>
    %cst_347 = arith.constant dense<0.000000e+00> : vector<8xf32>
    %1613 = vector.multi_reduction <add>, %1612, %cst_347 [1] : vector<8x32xf32> to vector<8xf32>
    %1614 = vector.shape_cast %1613 : vector<8xf32> to vector<8x1xf32>
    %1615 = arith.maximumf %1551, %1558 : vector<8x1xf32>
    %1616 = arith.maximumf %1615, %1565 : vector<8x1xf32>
    %1617 = arith.maximumf %1616, %1572 : vector<8x1xf32>
    %1618 = arith.maximumf %1617, %1579 : vector<8x1xf32>
    %1619 = arith.maximumf %1618, %1586 : vector<8x1xf32>
    %1620 = arith.maximumf %1619, %1593 : vector<8x1xf32>
    %1621 = arith.maximumf %1620, %1600 : vector<8x1xf32>
    %1622 = arith.maximumf %1621, %1607 : vector<8x1xf32>
    %1623 = arith.maximumf %1622, %1614 : vector<8x1xf32>
    %1624 = arith.subf %1551, %1623 : vector<8x1xf32>
    %1625 = math.exp %1624 : vector<8x1xf32>
    %1626 = arith.subf %1558, %1623 : vector<8x1xf32>
    %1627 = math.exp %1626 : vector<8x1xf32>
    %1628 = arith.subf %1565, %1623 : vector<8x1xf32>
    %1629 = math.exp %1628 : vector<8x1xf32>
    %1630 = arith.subf %1572, %1623 : vector<8x1xf32>
    %1631 = math.exp %1630 : vector<8x1xf32>
    %1632 = arith.subf %1579, %1623 : vector<8x1xf32>
    %1633 = math.exp %1632 : vector<8x1xf32>
    %1634 = arith.subf %1586, %1623 : vector<8x1xf32>
    %1635 = math.exp %1634 : vector<8x1xf32>
    %1636 = arith.subf %1593, %1623 : vector<8x1xf32>
    %1637 = math.exp %1636 : vector<8x1xf32>
    %1638 = arith.subf %1600, %1623 : vector<8x1xf32>
    %1639 = math.exp %1638 : vector<8x1xf32>
    %1640 = arith.subf %1607, %1623 : vector<8x1xf32>
    %1641 = math.exp %1640 : vector<8x1xf32>
    %1642 = arith.subf %1614, %1623 : vector<8x1xf32>
    %1643 = math.exp %1642 : vector<8x1xf32>
    %1644 = arith.addf %1625, %1627 : vector<8x1xf32>
    %1645 = arith.addf %1644, %1629 : vector<8x1xf32>
    %1646 = arith.addf %1645, %1631 : vector<8x1xf32>
    %1647 = arith.addf %1646, %1633 : vector<8x1xf32>
    %1648 = arith.addf %1647, %1635 : vector<8x1xf32>
    %1649 = arith.addf %1648, %1637 : vector<8x1xf32>
    %1650 = arith.addf %1649, %1639 : vector<8x1xf32>
    %1651 = arith.addf %1650, %1641 : vector<8x1xf32>
    %1652 = arith.addf %1651, %1643 : vector<8x1xf32>
    %1653 = vector.extract_strided_slice %296 {offsets = [0, 0], sizes = [8, 64], strides = [1, 1]} : vector<80x64xf32> to vector<8x64xf32>
    %1654 = vector.broadcast %1625 : vector<8x1xf32> to vector<8x64xf32>
    %1655 = arith.mulf %1654, %1653 : vector<8x64xf32>
    %1656 = vector.extract_strided_slice %296 {offsets = [8, 0], sizes = [8, 64], strides = [1, 1]} : vector<80x64xf32> to vector<8x64xf32>
    %1657 = vector.broadcast %1627 : vector<8x1xf32> to vector<8x64xf32>
    %1658 = arith.mulf %1657, %1656 : vector<8x64xf32>
    %1659 = arith.addf %1655, %1658 : vector<8x64xf32>
    %1660 = vector.extract_strided_slice %296 {offsets = [16, 0], sizes = [8, 64], strides = [1, 1]} : vector<80x64xf32> to vector<8x64xf32>
    %1661 = vector.broadcast %1629 : vector<8x1xf32> to vector<8x64xf32>
    %1662 = arith.mulf %1661, %1660 : vector<8x64xf32>
    %1663 = arith.addf %1659, %1662 : vector<8x64xf32>
    %1664 = vector.extract_strided_slice %296 {offsets = [24, 0], sizes = [8, 64], strides = [1, 1]} : vector<80x64xf32> to vector<8x64xf32>
    %1665 = vector.broadcast %1631 : vector<8x1xf32> to vector<8x64xf32>
    %1666 = arith.mulf %1665, %1664 : vector<8x64xf32>
    %1667 = arith.addf %1663, %1666 : vector<8x64xf32>
    %1668 = vector.extract_strided_slice %296 {offsets = [32, 0], sizes = [8, 64], strides = [1, 1]} : vector<80x64xf32> to vector<8x64xf32>
    %1669 = vector.broadcast %1633 : vector<8x1xf32> to vector<8x64xf32>
    %1670 = arith.mulf %1669, %1668 : vector<8x64xf32>
    %1671 = arith.addf %1667, %1670 : vector<8x64xf32>
    %1672 = vector.extract_strided_slice %296 {offsets = [40, 0], sizes = [8, 64], strides = [1, 1]} : vector<80x64xf32> to vector<8x64xf32>
    %1673 = vector.broadcast %1635 : vector<8x1xf32> to vector<8x64xf32>
    %1674 = arith.mulf %1673, %1672 : vector<8x64xf32>
    %1675 = arith.addf %1671, %1674 : vector<8x64xf32>
    %1676 = vector.extract_strided_slice %296 {offsets = [48, 0], sizes = [8, 64], strides = [1, 1]} : vector<80x64xf32> to vector<8x64xf32>
    %1677 = vector.broadcast %1637 : vector<8x1xf32> to vector<8x64xf32>
    %1678 = arith.mulf %1677, %1676 : vector<8x64xf32>
    %1679 = arith.addf %1675, %1678 : vector<8x64xf32>
    %1680 = vector.extract_strided_slice %296 {offsets = [56, 0], sizes = [8, 64], strides = [1, 1]} : vector<80x64xf32> to vector<8x64xf32>
    %1681 = vector.broadcast %1639 : vector<8x1xf32> to vector<8x64xf32>
    %1682 = arith.mulf %1681, %1680 : vector<8x64xf32>
    %1683 = arith.addf %1679, %1682 : vector<8x64xf32>
    %1684 = vector.extract_strided_slice %296 {offsets = [64, 0], sizes = [8, 64], strides = [1, 1]} : vector<80x64xf32> to vector<8x64xf32>
    %1685 = vector.broadcast %1641 : vector<8x1xf32> to vector<8x64xf32>
    %1686 = arith.mulf %1685, %1684 : vector<8x64xf32>
    %1687 = arith.addf %1683, %1686 : vector<8x64xf32>
    %1688 = vector.extract_strided_slice %296 {offsets = [72, 0], sizes = [8, 64], strides = [1, 1]} : vector<80x64xf32> to vector<8x64xf32>
    %1689 = vector.broadcast %1643 : vector<8x1xf32> to vector<8x64xf32>
    %1690 = arith.mulf %1689, %1688 : vector<8x64xf32>
    %1691 = arith.addf %1687, %1690 : vector<8x64xf32>
    %1692 = tpu.reciprocal %1652 {approx = true} : vector<8x1xf32> -> vector<8x1xf32>
    %1693 = vector.broadcast %1692 : vector<8x1xf32> to vector<8x64xf32>
    %1694 = arith.mulf %1691, %1693 : vector<8x64xf32>
    %cst_348 = arith.constant dense<0.000000e+00> : vector<8x96xf32>
    %1695 = tpu.matmul %1543, %304, %cst_348 {dimension_numbers = #tpu.dot_dimension_numbers<[1], [0], [0], [1], [0, 0, 1, 1], [], []>} : vector<8x16xf32>, vector<16x96xf32>, vector<8x96xf32> -> vector<8x96xf32>
    %cst_349 = arith.constant dense<0.000000e+00> : vector<8x96xf32>
    %1696 = tpu.matmul %1694, %305, %cst_349 {dimension_numbers = #tpu.dot_dimension_numbers<[1], [0], [0], [1], [0, 0, 1, 1], [], []>} : vector<8x64xf32>, vector<64x96xf32>, vector<8x96xf32> -> vector<8x96xf32>
    %1697 = arith.addf %1695, %1696 : vector<8x96xf32>
    %1698 = vector.broadcast %307 : vector<1x96xf32> to vector<8x96xf32>
    %1699 = arith.addf %1697, %1698 : vector<8x96xf32>
    %cst_350 = arith.constant dense<0.000000e+00> : vector<8x96xf32>
    %1700 = tpu.matmul %1518, %306, %cst_350 {dimension_numbers = #tpu.dot_dimension_numbers<[1], [0], [0], [1], [0, 0, 1, 1], [], []>} : vector<8x32xf32>, vector<32x96xf32>, vector<8x96xf32> -> vector<8x96xf32>
    %1701 = vector.broadcast %308 : vector<1x96xf32> to vector<8x96xf32>
    %1702 = arith.addf %1700, %1701 : vector<8x96xf32>
    %1703 = vector.extract_strided_slice %1699 {offsets = [0, 0], sizes = [8, 64], strides = [1, 1]} : vector<8x96xf32> to vector<8x64xf32>
    %1704 = vector.extract_strided_slice %1702 {offsets = [0, 0], sizes = [8, 64], strides = [1, 1]} : vector<8x96xf32> to vector<8x64xf32>
    %1705 = arith.addf %1703, %1704 : vector<8x64xf32>
    %1706 = arith.negf %1705 : vector<8x64xf32>
    %1707 = math.exp %1706 : vector<8x64xf32>
    %cst_351 = arith.constant 1.000000e+00 : f32
    %1708 = vector.broadcast %cst_351 : f32 to vector<8x64xf32>
    %1709 = arith.addf %1708, %1707 : vector<8x64xf32>
    %1710 = arith.divf %1708, %1709 : vector<8x64xf32>
    %1711 = vector.extract_strided_slice %1710 {offsets = [0, 0], sizes = [8, 32], strides = [1, 1]} : vector<8x64xf32> to vector<8x32xf32>
    %1712 = vector.extract_strided_slice %1710 {offsets = [0, 32], sizes = [8, 32], strides = [1, 1]} : vector<8x64xf32> to vector<8x32xf32>
    %1713 = vector.extract_strided_slice %1699 {offsets = [0, 64], sizes = [8, 32], strides = [1, 1]} : vector<8x96xf32> to vector<8x32xf32>
    %1714 = vector.extract_strided_slice %1702 {offsets = [0, 64], sizes = [8, 32], strides = [1, 1]} : vector<8x96xf32> to vector<8x32xf32>
    %1715 = arith.mulf %1711, %1714 : vector<8x32xf32>
    %1716 = arith.addf %1713, %1715 : vector<8x32xf32>
    %1717 = math.tanh %1716 : vector<8x32xf32>
    %cst_352 = arith.constant 1.000000e+00 : f32
    %1718 = vector.broadcast %cst_352 : f32 to vector<8x32xf32>
    %1719 = arith.subf %1718, %1712 : vector<8x32xf32>
    %1720 = arith.mulf %1719, %1717 : vector<8x32xf32>
    %1721 = arith.mulf %1712, %1518 : vector<8x32xf32>
    %1722 = arith.addf %1720, %1721 : vector<8x32xf32>
    %c0_353 = arith.constant 0 : index
    %c0_354 = arith.constant 0 : index
    %1723 = vector.load %arg21[%c0_353, %c0_354] : memref<32x128xf32, #tpu.memory_space<vmem>>, vector<32x128xf32>
    %cst_355 = arith.constant dense<0.000000e+00> : vector<8x128xf32>
    %1724 = tpu.matmul %1722, %1723, %cst_355 {dimension_numbers = #tpu.dot_dimension_numbers<[1], [0], [0], [1], [0, 0, 1, 1], [], []>} : vector<8x32xf32>, vector<32x128xf32>, vector<8x128xf32> -> vector<8x128xf32>
    %c0_356 = arith.constant 0 : index
    %c0_357 = arith.constant 0 : index
    %1725 = vector.load %arg22[%c0_356, %c0_357] : memref<64x128xf32, #tpu.memory_space<vmem>>, vector<64x128xf32>
    %cst_358 = arith.constant dense<0.000000e+00> : vector<8x128xf32>
    %1726 = tpu.matmul %1694, %1725, %cst_358 {dimension_numbers = #tpu.dot_dimension_numbers<[1], [0], [0], [1], [0, 0, 1, 1], [], []>} : vector<8x64xf32>, vector<64x128xf32>, vector<8x128xf32> -> vector<8x128xf32>
    %1727 = arith.addf %1724, %1726 : vector<8x128xf32>
    %c0_359 = arith.constant 0 : index
    %c0_360 = arith.constant 0 : index
    %1728 = vector.load %arg23[%c0_359, %c0_360] : memref<16x128xf32, #tpu.memory_space<vmem>>, vector<16x128xf32>
    %cst_361 = arith.constant dense<0.000000e+00> : vector<8x128xf32>
    %1729 = tpu.matmul %1543, %1728, %cst_361 {dimension_numbers = #tpu.dot_dimension_numbers<[1], [0], [0], [1], [0, 0, 1, 1], [], []>} : vector<8x16xf32>, vector<16x128xf32>, vector<8x128xf32> -> vector<8x128xf32>
    %1730 = arith.addf %1727, %1729 : vector<8x128xf32>
    %c0_362 = arith.constant 0 : index
    %c0_363 = arith.constant 0 : index
    %1731 = vector.load %arg24[%c0_362, %c0_363] : memref<1x128xf32, #tpu.memory_space<vmem>>, vector<1x128xf32>
    %1732 = vector.broadcast %1731 : vector<1x128xf32> to vector<8x128xf32>
    %1733 = arith.addf %1730, %1732 : vector<8x128xf32>
    %c0_364 = arith.constant 0 : index
    %c56_365 = arith.constant 56 : index
    %c0_366 = arith.constant 0 : index
    %1734 = vector.load %arg25[%c0_364, %c56_365, %c0_366] : memref<1x64x128xf32, #tpu.memory_space<vmem>>, vector<1x8x128xf32>
    %1735 = vector.shape_cast %1734 : vector<1x8x128xf32> to vector<8x128xf32>
    %1736 = vector.shape_cast %1733 : vector<8x128xf32> to vector<1x8x128xf32>
    tpu.vector_store %arg25[%c0_364, %c56_365, %c0_366], %1736 {strides = array<i32>} : memref<1x64x128xf32, #tpu.memory_space<vmem>>, vector<1x8x128xf32>,
    return
  }
  func.func @transform_0(%arg0: i32, %arg1: memref<8xi32, #tpu.memory_space<smem>>) -> (i32, i32, i32) {
    %c0_i32 = arith.constant 0 : i32
    %c0_i32_0 = arith.constant 0 : i32
    %c0_i32_1 = arith.constant 0 : i32
    return %arg0, %c0_i32, %c0_i32_0 : i32, i32, i32
  }
  func.func @transform_1(%arg0: i32, %arg1: memref<8xi32, #tpu.memory_space<smem>>) -> (i32, i32, i32, i32) {
    %c0_i32 = arith.constant 0 : i32
    %c0_i32_0 = arith.constant 0 : i32
    %c0_i32_1 = arith.constant 0 : i32
    %c0_i32_2 = arith.constant 0 : i32
    return %arg0, %c0_i32, %c0_i32_0, %c0_i32_1 : i32, i32, i32, i32
  }
  func.func @transform_2(%arg0: i32, %arg1: memref<8xi32, #tpu.memory_space<smem>>) -> (i32, i32) {
    %c0_i32 = arith.constant 0 : i32
    %c0_i32_0 = arith.constant 0 : i32
    %c0_i32_1 = arith.constant 0 : i32
    return %c0_i32, %c0_i32_0 : i32, i32
  }
  func.func @transform_3(%arg0: i32, %arg1: memref<8xi32, #tpu.memory_space<smem>>) -> (i32, i32) {
    %c0_i32 = arith.constant 0 : i32
    %c0_i32_0 = arith.constant 0 : i32
    %c0_i32_1 = arith.constant 0 : i32
    return %c0_i32, %c0_i32_0 : i32, i32
  }
  func.func @transform_4(%arg0: i32, %arg1: memref<8xi32, #tpu.memory_space<smem>>) -> (i32, i32) {
    %c0_i32 = arith.constant 0 : i32
    %c0_i32_0 = arith.constant 0 : i32
    %c0_i32_1 = arith.constant 0 : i32
    return %c0_i32, %c0_i32_0 : i32, i32
  }
  func.func @transform_5(%arg0: i32, %arg1: memref<8xi32, #tpu.memory_space<smem>>) -> (i32, i32) {
    %c0_i32 = arith.constant 0 : i32
    %c0_i32_0 = arith.constant 0 : i32
    %c0_i32_1 = arith.constant 0 : i32
    return %c0_i32, %c0_i32_0 : i32, i32
  }
  func.func @transform_6(%arg0: i32, %arg1: memref<8xi32, #tpu.memory_space<smem>>) -> (i32, i32) {
    %c0_i32 = arith.constant 0 : i32
    %c0_i32_0 = arith.constant 0 : i32
    %c0_i32_1 = arith.constant 0 : i32
    return %c0_i32, %c0_i32_0 : i32, i32
  }
  func.func @transform_7(%arg0: i32, %arg1: memref<8xi32, #tpu.memory_space<smem>>) -> (i32, i32) {
    %c0_i32 = arith.constant 0 : i32
    %c0_i32_0 = arith.constant 0 : i32
    %c0_i32_1 = arith.constant 0 : i32
    return %c0_i32, %c0_i32_0 : i32, i32
  }
  func.func @transform_8(%arg0: i32, %arg1: memref<8xi32, #tpu.memory_space<smem>>) -> (i32, i32) {
    %c0_i32 = arith.constant 0 : i32
    %c0_i32_0 = arith.constant 0 : i32
    %c0_i32_1 = arith.constant 0 : i32
    return %c0_i32, %c0_i32_0 : i32, i32
  }
  func.func @transform_9(%arg0: i32, %arg1: memref<8xi32, #tpu.memory_space<smem>>) -> (i32, i32) {
    %c0_i32 = arith.constant 0 : i32
    %c0_i32_0 = arith.constant 0 : i32
    %c0_i32_1 = arith.constant 0 : i32
    return %c0_i32, %c0_i32_0 : i32, i32
  }
  func.func @transform_10(%arg0: i32, %arg1: memref<8xi32, #tpu.memory_space<smem>>) -> (i32, i32) {
    %c0_i32 = arith.constant 0 : i32
    %c0_i32_0 = arith.constant 0 : i32
    %c0_i32_1 = arith.constant 0 : i32
    return %c0_i32, %c0_i32_0 : i32, i32
  }
  func.func @transform_11(%arg0: i32, %arg1: memref<8xi32, #tpu.memory_space<smem>>) -> (i32, i32) {
    %c0_i32 = arith.constant 0 : i32
    %c0_i32_0 = arith.constant 0 : i32
    %c0_i32_1 = arith.constant 0 : i32
    return %c0_i32, %c0_i32_0 : i32, i32
  }
  func.func @transform_12(%arg0: i32, %arg1: memref<8xi32, #tpu.memory_space<smem>>) -> (i32, i32) {
    %c0_i32 = arith.constant 0 : i32
    %c0_i32_0 = arith.constant 0 : i32
    %c0_i32_1 = arith.constant 0 : i32
    return %c0_i32, %c0_i32_0 : i32, i32
  }
  func.func @transform_13(%arg0: i32, %arg1: memref<8xi32, #tpu.memory_space<smem>>) -> (i32, i32) {
    %c0_i32 = arith.constant 0 : i32
    %c0_i32_0 = arith.constant 0 : i32
    %c0_i32_1 = arith.constant 0 : i32
    return %c0_i32, %c0_i32_0 : i32, i32
  }
  func.func @transform_14(%arg0: i32, %arg1: memref<8xi32, #tpu.memory_space<smem>>) -> (i32, i32) {
    %c0_i32 = arith.constant 0 : i32
    %c0_i32_0 = arith.constant 0 : i32
    %c0_i32_1 = arith.constant 0 : i32
    return %c0_i32, %c0_i32_0 : i32, i32
  }
  func.func @transform_15(%arg0: i32, %arg1: memref<8xi32, #tpu.memory_space<smem>>) -> (i32, i32) {
    %c0_i32 = arith.constant 0 : i32
    %c0_i32_0 = arith.constant 0 : i32
    %c0_i32_1 = arith.constant 0 : i32
    return %c0_i32, %c0_i32_0 : i32, i32
  }
  func.func @transform_16(%arg0: i32, %arg1: memref<8xi32, #tpu.memory_space<smem>>) -> (i32, i32) {
    %c0_i32 = arith.constant 0 : i32
    %c0_i32_0 = arith.constant 0 : i32
    %c0_i32_1 = arith.constant 0 : i32
    return %c0_i32, %c0_i32_0 : i32, i32
  }
  func.func @transform_17(%arg0: i32, %arg1: memref<8xi32, #tpu.memory_space<smem>>) -> (i32, i32) {
    %c0_i32 = arith.constant 0 : i32
    %c0_i32_0 = arith.constant 0 : i32
    %c0_i32_1 = arith.constant 0 : i32
    return %c0_i32, %c0_i32_0 : i32, i32
  }
  func.func @transform_18(%arg0: i32, %arg1: memref<8xi32, #tpu.memory_space<smem>>) -> (i32, i32) {
    %c0_i32 = arith.constant 0 : i32
    %c0_i32_0 = arith.constant 0 : i32
    %c0_i32_1 = arith.constant 0 : i32
    return %c0_i32, %c0_i32_0 : i32, i32
  }
  func.func @transform_19(%arg0: i32, %arg1: memref<8xi32, #tpu.memory_space<smem>>) -> (i32, i32) {
    %c0_i32 = arith.constant 0 : i32
    %c0_i32_0 = arith.constant 0 : i32
    %c0_i32_1 = arith.constant 0 : i32
    return %c0_i32, %c0_i32_0 : i32, i32
  }
  func.func @transform_20(%arg0: i32, %arg1: memref<8xi32, #tpu.memory_space<smem>>) -> (i32, i32) {
    %c0_i32 = arith.constant 0 : i32
    %c0_i32_0 = arith.constant 0 : i32
    %c0_i32_1 = arith.constant 0 : i32
    return %c0_i32, %c0_i32_0 : i32, i32
  }
  func.func @transform_21(%arg0: i32, %arg1: memref<8xi32, #tpu.memory_space<smem>>) -> (i32, i32) {
    %c0_i32 = arith.constant 0 : i32
    %c0_i32_0 = arith.constant 0 : i32
    %c0_i32_1 = arith.constant 0 : i32
    return %c0_i32, %c0_i32_0 : i32, i32
  }
  func.func @transform_22(%arg0: i32, %arg1: memref<8xi32, #tpu.memory_space<smem>>) -> (i32, i32) {
    %c0_i32 = arith.constant 0 : i32
    %c0_i32_0 = arith.constant 0 : i32
    %c0_i32_1 = arith.constant 0 : i32
    return %c0_i32, %c0_i32_0 : i32, i32
  }
  func.func @transform_23(%arg0: i32, %arg1: memref<8xi32, #tpu.memory_space<smem>>) -> (i32, i32, i32) {
    %c0_i32 = arith.constant 0 : i32
    %c0_i32_0 = arith.constant 0 : i32
    %c0_i32_1 = arith.constant 0 : i32
    return %arg0, %c0_i32, %c0_i32_0 : i32, i32, i32
  }
}

</mosaic_0001>

<bundles_post_ra>
// kernel: _seq2seq_forward_jit.1
= control target key start
LH: loop header
LB: loop body
LE: loop exit
PB: predicated region body
PF: predicated region fallthrough
CT: control target
= control target key end

     0   :  { %s11740_s0 = inlined_call_operand.vmem [shape: s32[8], index: 0, kind: input, shape index: {}]   ;;  %s11741_s1 = inlined_call_operand.vmem [shape: f32[2,80,32], index: 1, kind: input, shape index: {}]   ;;  %s11742_s2 = inlined_call_operand.vmem [shape: f32[2,8,8,16], index: 2, kind: input, shape index: {}]   ;;  %s11743_s3 = inlined_call_operand.vmem [shape: f32[8,16], index: 3, kind: input, shape index: {}]   ;;  %s11744_s4 = inlined_call_operand.vmem [shape: f32[32,16], index: 4, kind: input, shape index: {}]   ;;  %s11745_s5 = inlined_call_operand.vmem [shape: f32[32,192], index: 5, kind: input, shape index: {}]   ;;  %s11746_s6 = inlined_call_operand.vmem [shape: f32[1,192], index: 6, kind: input, shape index: {}]   ;;  %s11747_s7 = inlined_call_operand.vmem [shape: f32[64,192], index: 7, kind: input, shape index: {}]   ;;  %s11748_s8 = inlined_call_operand.vmem [shape: f32[1,192], index: 8, kind: input, shape index: {}]   ;;  %s11749_s9 = inlined_call_operand.vmem [shape: f32[64,32], index: 9, kind: input, shape index: {}]   ;;  %s11750_s10 = inlined_call_operand.vmem [shape: f32[1,32], index: 10, kind: input, shape index: {}]   ;;  %s11751_s11 = inlined_call_operand.vmem [shape: f32[32,32], index: 11, kind: input, shape index: {}]   ;;  %s11752_s12 = inlined_call_operand.vmem [shape: f32[64,32], index: 12, kind: input, shape index: {}]   ;;  %s11753_s13 = inlined_call_operand.vmem [shape: f32[1,32], index: 13, kind: input, shape index: {}]   ;;  %s11754_s14 = inlined_call_operand.vmem [shape: f32[1,32], index: 14, kind: input, shape index: {}]   ;;  %s11755_s15 = inlined_call_operand.vmem [shape: f32[16,96], index: 15, kind: input, shape index: {}]   ;;  %s11756_s16 = inlined_call_operand.vmem [shape: f32[64,96], index: 16, kind: input, shape index: {}]   ;;  %s11757_s17 = inlined_call_operand.vmem [shape: f32[32,96], index: 17, kind: input, shape index: {}]   ;;  %s11758_s18 = inlined_call_operand.vmem [shape: f32[1,96], index: 18, kind: input, shape index: {}]   ;;  %s11759_s19 = inlined_call_operand.vmem [shape: f32[1,96], index: 19, kind: input, shape index: {}]   ;;  %s11760_s20 = inlined_call_operand.vmem [shape: f32[32,128], index: 20, kind: input, shape index: {}]   ;;  %s11761_s21 = inlined_call_operand.vmem [shape: f32[64,128], index: 21, kind: input, shape index: {}]   ;;  %s11762_s22 = inlined_call_operand.vmem [shape: f32[16,128], index: 22, kind: input, shape index: {}]   ;;  %s11763_s23 = inlined_call_operand.vmem [shape: f32[1,128], index: 23, kind: input, shape index: {}]   ;;  %s11764_s24 = inlined_call_operand.vmem [shape: f32[2,64,128], index: 24, kind: output, shape index: {}]  }
   0x1   :  { %11797 = sst [smem:[#allocation16_spill]] %s11740_s0 }
   0x2   :  { %11798 = sst [smem:[#allocation17_spill]] %s11741_s1 }
   0x3   :  { %11799 = sst [smem:[#allocation18_spill]] %s11742_s2 }
   0x4   :  { %11800 = sst [smem:[#allocation19_spill]] %s11743_s3 }
   0x5   :  { %11801 = sst [smem:[#allocation20_spill]] %s11744_s4 }
   0x6   :  { %11802 = sst [smem:[#allocation21_spill]] %s11745_s5 }
   0x7   :  { %11803 = sst [smem:[#allocation22_spill]] %s11746_s6 }
   0x8   :  { %11804 = sst [smem:[#allocation23_spill]] %s11747_s7 }
   0x9   :  { %11805 = sst [smem:[#allocation24_spill]] %s11748_s8 }
   0xa   :  { %11806 = sst [smem:[#allocation25_spill]] %s11758_s18 }
   0xb   :  { %s11807_s27 = sld [smem:[#allocation16_spill]] }
  0x11   :  { %s29_s18 = sshll.u32 %s11807_s27, 4  ;;  %s30_s18 = int_to_ptr.vmem [resolvable:$true] %s29_s18 }
  0x12   :  { %s9436_s28 = scalar_lea.vmem %s30_s18, 16  ;;  %p9441_p1 = scmp.lt.s32.totalorder %s30_s18, %s30_s18 }
  0x13   :  { %p9437_p0 = scmp.ne.s32.totalorder %s30_s18, %s9436_s28  ;;  %p9442_p2 = scmp.lt.s32.totalorder %s9436_s28, %s9436_s28 }
  0x15   :  { %p9443_p3 = por %p9442_p2, %p9441_p1 }
  0x17   :  { %p9444_p4 = pnand %p9443_p3, %p9437_p0 }
  0x19   :  { %9447 = shalt.err (!%p9444_p4)  }
  0x1a   :  { %s9458_s6 = smov [#allocation5]  }
  0x1b   :  { %32 = dma.vmem_to_smem %s30_s18, 16, %s9458_s6, [#allocation4] }
  0x1c   :  { %9452 = dma.done.wait [#allocation4], 16 }
  0x1d   :  { %9453 = vsyncadd [#allocation4], 4294967280 }
  0x1e   :  { %34 = sfence }
  0x1f   :  { %s9604_s2 = smov 0  }
  0x20 LB: > { %s7805_s29 = sadd.s32 4294967295, %s9456_s2   ;;  %p7809_p5 = scmp.ge.s32.totalorder %s9456_s2, 1  ;;  %s9456_s2 = sphi %s9604_s2, %s40_s2  }
  0x21   : > { %p654_p6 = scmp.lt.s32.totalorder %s9456_s2, 3 }
  0x23   : > { %p655_p7 = pnand %p7809_p5, %p654_p6 }
  0x25   : > { %658 = sbr.rel (%p655_p7) target bundleno = 17528 (0x4478), region = 112 }
  0x2a   : > { %s11808_s7 = sld [smem:[#allocation23_spill]]  ;;  %p723_p8 = scmp.lt.s32.totalorder %s7805_s29, 1  ;;  %v11774_v4 = vmov 0.0   ;;  %vm768_vm0 = vcmask 261120   ;;  %v11773_v26 = vlaneseq  ;;  %vm1050_vm1 = vcmask 523520  }
  0x2b   : > { %863 = vmatprep.mubr.f32.mxu0 %v11774_v4  ;;  %s11809_s6 = sld [smem:[#allocation21_spill]]  ;;  %1020 = vmatprep.mubr.f32.mxu1 %v11774_v4  ;;  %s9460_s30 = smov 64   ;;  %vm952_vm2 = vcmask 523264   ;;  %vm9461_vm3 = vmmov 0   ;;  %vm2206_vm4 = vcmask 130048  }
  0x2c   : > { %s11902_s29 = smov (!%p723_p8, %s7805_s29), 1  ;;  %s11810_s28 = sld [smem:[#allocation17_spill]]  ;;  %v759_v27 = vshrl.u32 %v11773_v26, 7 }
  0x2d   : > { %s9011_s0 = smul.u32 80, %s11902_s29  ;;  %s11811_s5 = sld [smem:[#allocation22_spill]] }
  0x2e   : > { %v760_v28 = vsub.s32 0, %v759_v27  ;;  %v764_v41 = vsub.s32 1, %v759_v27  ;;  %s7968_s3 = sshll.u32 %s11902_s29, 6  ;;  %s11825_s1 = sld [smem:[#allocation25_spill]] }
  0x2f   : > { %s10505_s4 = scalar_lea.vmem %s11764_s24, %s7968_s3 }
  0x30   : > { %v9615_v0 = vld [vmem:[%s11808_s7 + $0x78] sm:$0xff]  ;;  %v9620_v1 = vld [vmem:[%s11808_s7 + $0x70] sm:$0xff]  ;;  %v9625_v2 = vld [vmem:[%s11808_s7 + $0x68] sm:$0xff] }
  0x31   : > { %972 = vmatprep.subr.mxu1 %v9615_v0  ;;  %v9631_v3 = vld [vmem:[%s11808_s7 + $0x60] sm:$0xff]  ;;  %v9638_v5 = vld [vmem:[%s11808_s7 + $0x58] sm:$0xff]  ;;  %v754_v7 = vld [vmem:[%s11809_s6 + $0x30] sm:$0xff] }
  0x32   : > { %973 = vmatpush1.msra.mxu1 %v9620_v1  ;;  %v755_v6 = vld [vmem:[%s11809_s6 + $0x38] sm:$0xff]  ;;  %v9653_v8 = vld [vmem:[%s11808_s7 + $0x50] sm:$0xff]  ;;  %v753_v9 = vld [vmem:[%s11809_s6 + $0x28] sm:$0xff]  ;;  %s9692_s18 = scalar_lea.vmem %s11810_s28, %s9011_s0  ;;  %s11812_s28 = sld [smem:[#allocation24_spill]] }
  0x33   : > { %974 = vmatprep.subr.mxu1 %v9625_v2  ;;  %823 = vmatprep.subr.mxu0 %v755_v6  ;;  %v9662_v10 = vld [vmem:[%s11808_s7 + $0x48] sm:$0xff]  ;;  %v752_v11 = vld [vmem:[%s11809_s6 + $0x20] sm:$0xff]  ;;  %v751_v12 = vld [vmem:[%s11809_s6 + $0x18] sm:$0xff]  ;;  %s11813_s0 = sld [smem:[#allocation18_spill]] }
  0x34   : > { %975 = vmatpush1.msra.mxu1 %v9631_v3  ;;  %824 = vmatpush1.msra.mxu0 %v754_v7  ;;  %v9675_v13 = vld [vmem:[%s11808_s7 + $0x40] sm:$0xff]  ;;  %v750_v14 = vld [vmem:[%s11809_s6 + $0x10] sm:$0xff]  ;;  %v9684_v15 = vld [vmem:[%s11808_s7 + $0x38] sm:$0xff] }
  0x35   : > { %976 = vmatprep.subr.mxu1 %v9638_v5  ;;  %825 = vmatprep.subr.mxu0 %v753_v9  ;;  %v749_v16 = vld [vmem:[%s11809_s6 + $0x8] sm:$0xff]  ;;  %v9698_v17 = vld [vmem:[%s11808_s7 + $0x30] sm:$0xff]  ;;  %v748_v18 = vld [vmem:[%s11809_s6] sm:$0xff] }
  0x36   : > { %977 = vmatpush1.msra.mxu1 %v9653_v8  ;;  %826 = vmatpush1.msra.mxu0 %v752_v11  ;;  %v9707_v19 = vld [vmem:[%s11808_s7 + $0x28] sm:$0xff]  ;;  %v738_v20 = vld [vmem:[%s9692_s18] sm:$0xff]  ;;  %v9720_v22 = vld [vmem:[%s11808_s7 + $0x18] sm:$0xff] }
  0x37   : > { %978 = vmatprep.subr.mxu1 %v9662_v10  ;;  %827 = vmatprep.subr.mxu0 %v751_v12  ;;  %v9714_v21 = vld [vmem:[%s11808_s7 + $0x20] sm:$0xff]  ;;  %v9726_v23 = vld [vmem:[%s11808_s7 + $0x10] sm:$0xff]  ;;  %v9733_v24 = vld [vmem:[%s11808_s7 + $0x8] sm:$0xff] }
  0x38   : > { %979 = vmatpush1.msra.mxu1 %v9675_v13  ;;  %828 = vmatpush1.msra.mxu0 %v750_v14  ;;  %v9740_v25 = vld [vmem:[%s11808_s7] sm:$0xff]  ;;  %v739_v51 = vld [vmem:[%s9692_s18 + $0x8] sm:$0xff] }
  0x39   : > { %980 = vmatprep.subr.mxu1 %v9684_v15  ;;  %829 = vmatprep.subr.mxu0 %v749_v16  ;;  %v756_v29 = vld [vmem:[%s11811_s5] sm:$0x3]  ;;  %s10199_s5 = scalar_lea.vmem %s11813_s0, %s7968_s3  ;;  %s11814_s0 = sld [smem:[#allocation19_spill]] }
  0x3a   : > { %981 = vmatpush1.msra.mxu1 %v9698_v17  ;;  %830 = vmatpush1.msra.mxu0 %v748_v18  ;;  %v940_v30 = vld [vmem:[%s11812_s28] sm:$0x3]  ;;  %v9788_v31 = vrot.slane %v756_v29, %v760_v28  ;;  %v9796_v44 = vrot.slane %v756_v29, %v764_v41  ;;  %v741_v29 = vld [vmem:[%s9692_s18 + $0x18] sm:$0xff] }
  0x3b   : > { %982 = vmatprep.subr.mxu1 %v9707_v19  ;;  %7815 = vmatmul.mubr.msk.f32.vlgmr.msra.gmra.mxu0 %vm768_vm0, %v738_v20  ;;  %v9790_v32 = vrot.slane %v940_v30, %v760_v28  ;;  %v9794_v42 = vrot.slane %v940_v30, %v764_v41  ;;  %v740_v28 = vld [vmem:[%s9692_s18 + $0x10] sm:$0xff]  ;;  %v742_v30 = vld [vmem:[%s9692_s18 + $0x20] sm:$0xff] }
  0x3c   : > { %983 = vmatpush1.msra.mxu1 %v9714_v21  ;;  %869 = vmatprep.mubr.f32.mxu0 %v11774_v4 }
  0x3d   : > { %984 = vmatprep.subr.mxu1 %v9720_v22  ;;  %1167 = vmatprep.subr.mxu0 %v9615_v0 }
  0x3e   : > { %985 = vmatpush1.msra.mxu1 %v9726_v23  ;;  %1168 = vmatpush1.msra.mxu0 %v9620_v1 }
  0x3f   : > { %986 = vmatprep.subr.mxu1 %v9733_v24  ;;  %1169 = vmatprep.subr.mxu0 %v9625_v2 }
  0x40   : > { %987 = vmatpush1.msra.mxu1 %v9740_v25  ;;  %1170 = vmatpush1.msra.mxu0 %v9631_v3 }
  0x41   : > { %1021 = vmatmul.mubr.f32.vlgmr.msra.gmra.mxu1 %v11774_v4  ;;  %1070 = vmatprep.subr.mxu1 %v9615_v0 }
  0x42   : > { %1071 = vmatpush1.msra.mxu1 %v9620_v1  ;;  %1118 = vmatprep.mubr.f32.mxu1 %v11774_v4 }
  0x43   : > { %1072 = vmatprep.subr.mxu1 %v9625_v2  ;;  %1171 = vmatprep.subr.mxu0 %v9638_v5 }
  0x44   : > { %1073 = vmatpush1.msra.mxu1 %v9631_v3  ;;  %1172 = vmatpush1.msra.mxu0 %v9653_v8 }
  0x45   : > { %1074 = vmatprep.subr.mxu1 %v9638_v5  ;;  %1173 = vmatprep.subr.mxu0 %v9662_v10 }
  0x46   : > { %1075 = vmatpush1.msra.mxu1 %v9653_v8  ;;  %1174 = vmatpush1.msra.mxu0 %v9675_v13 }
  0x47   : > { %1076 = vmatprep.subr.mxu1 %v9662_v10  ;;  %1175 = vmatprep.subr.mxu0 %v9684_v15 }
  0x48   : > { %1077 = vmatpush1.msra.mxu1 %v9675_v13  ;;  %1176 = vmatpush1.msra.mxu0 %v9698_v17 }
  0x49   : > { %1078 = vmatprep.subr.mxu1 %v9684_v15  ;;  %1177 = vmatprep.subr.mxu0 %v9707_v19 }
  0x4a   : > { %1079 = vmatpush1.msra.mxu1 %v9698_v17  ;;  %1178 = vmatpush1.msra.mxu0 %v9714_v21 }
  0x4b   : > { %1080 = vmatprep.subr.mxu1 %v9707_v19  ;;  %1179 = vmatprep.subr.mxu0 %v9720_v22 }
  0x4c   : > { %1081 = vmatpush1.msra.mxu1 %v9714_v21  ;;  %1180 = vmatpush1.msra.mxu0 %v9726_v23 }
  0x4d   : > { %1082 = vmatprep.subr.mxu1 %v9720_v22  ;;  %1181 = vmatprep.subr.mxu0 %v9733_v24 }
  0x4e   : > { %1083 = vmatpush1.msra.mxu1 %v9726_v23  ;;  %1182 = vmatpush1.msra.mxu0 %v9740_v25 }
  0x4f   : > { %1084 = vmatprep.subr.mxu1 %v9733_v24  ;;  %1361 = vmatprep.subr.mxu0 %v9615_v0 }
  0x50   : > { %1085 = vmatpush1.msra.mxu1 %v9740_v25  ;;  %7816 = vmatmul.mubr.msk.f32.gmra.mxu0 %vm768_vm0, %v739_v51 }
  0x51   : > { %1264 = vmatprep.subr.mxu1 %v9615_v0  ;;  %875 = vmatprep.mubr.f32.mxu0 %v11774_v4 }
  0x54   : > { %7817 = vmatmul.mubr.msk.f32.gmra.mxu0 %vm768_vm0, %v740_v28 }
  0x55   : > { %881 = vmatprep.mubr.f32.mxu0 %v11774_v4 }
  0x58   : > { %7818 = vmatmul.mubr.msk.f32.gmra.mxu0 %vm768_vm0, %v741_v29 }
  0x59   : > { %887 = vmatprep.mubr.f32.mxu0 %v11774_v4 }
  0x5c   : > { %7819 = vmatmul.mubr.msk.f32.gmra.mxu0 %vm768_vm0, %v742_v30 }
  0x5d   : > { %893 = vmatprep.mubr.f32.mxu0 %v11774_v4 }
  0xfb   : > { %v865_v33 = vpop.f32.mrf.mxu0 }
  0xfc   : > { %v866_v34 = vadd.f32 %v865_v33, %v9788_v31 }
  0xfd   : > { %v867_v45 = vpop.f32.mrf.mxu0 }
  0xfe   : > { %v868_v48 = vadd.f32 %v867_v45, %v9796_v44 }
 0x101   : > { %v1022_v35 = vpop.f32.mrf.mxu1 }
 0x102   : > { %v1023_v36 = vadd.f32 %v1022_v35, %v9790_v32  ;;  %v744_v35 = vld [vmem:[%s9692_s18 + $0x30] sm:$0xff] }
 0x103   : > { %v1024_v43 = vpop.f32.mrf.mxu1 }
 0x104   : > { %v1027_v37 = vadd.f32 %v1023_v36, %v866_v34  ;;  %v1025_v46 = vadd.f32 %v1024_v43, %v9794_v42  ;;  %v743_v34 = vld [vmem:[%s9692_s18 + $0x28] sm:$0xff]  ;;  %v745_v36 = vld [vmem:[%s9692_s18 + $0x38] sm:$0xff] }
 0x105   : > { %7820 = vmatmul.mubr.msk.f32.gmra.mxu0 %vm768_vm0, %v743_v34 }
 0x106   : > { %v7825_v38 = vmul.f32 -1.442695, %v1027_v37  ;;  %899 = vmatprep.mubr.f32.mxu0 %v11774_v4  ;;  %v746_v37 = vld [vmem:[%s9692_s18 + $0x40] sm:$0xff] }
 0x108   : > { %9038 = vpow2.f32 %v7825_v38  ;;  %v747_v38 = vld [vmem:[%s9692_s18 + $0x48] sm:$0xff] }
 0x109   : > { %7821 = vmatmul.mubr.msk.f32.gmra.mxu0 %vm768_vm0, %v744_v35 }
 0x10a   : > { %905 = vmatprep.mubr.f32.mxu0 %v11774_v4 }
 0x10d   : > { %7822 = vmatmul.mubr.msk.f32.gmra.mxu0 %vm768_vm0, %v745_v36 }
 0x10e   : > { %911 = vmatprep.mubr.f32.mxu0 %v11774_v4 }
 0x110   : > { %v871_v59 = vpop.f32.mrf.mxu0 }
 0x111   : > { %v872_v60 = vadd.f32 %v871_v59, %v9788_v31  ;;  %7823 = vmatmul.mubr.msk.f32.gmra.mxu0 %vm768_vm0, %v746_v37 }
 0x112   : > { %v873_v12 = vpop.f32.mrf.mxu0  ;;  %917 = vmatprep.mubr.f32.mxu0 %v11774_v4 }
 0x113   : > { %v874_v18 = vadd.f32 %v873_v12, %v9796_v44 }
 0x115   : > { %v9039_v39 = vpop.eup %9038  ;;  %7824 = vmatmul.mubr.msk.f32.gmra.mxu0 %vm768_vm0, %v747_v38 }
 0x116   : > { %v1031_v40 = vadd.f32 1.0, %v9039_v39  ;;  %1215 = vmatprep.mubr.f32.mxu0 %v11774_v4 }
 0x118   : > { %9040 = vrcp.f32 %v1031_v40 }
 0x125   : > { %v9041_v47 = vpop.eup %9040 }
 0x126   : > { %v1034_v49 = vmul.f32 %v9041_v47, %v1025_v46  ;;  %v1037_v53 = vsub.f32 1.0, %v9041_v47  ;;  %v1043_v55 = vmul.f32 0.0, %v9041_v47  ;;  %v877_v47 = vpop.f32.mrf.mxu0 }
 0x128   : > { %v1035_v50 = vadd.f32 %v1034_v49, %v868_v48  ;;  %v879_v48 = vpop.f32.mrf.mxu0 }
 0x12a   : > { %9042 = vtanh.f32 %v1035_v50  ;;  %v883_v49 = vpop.f32.mrf.mxu0 }
 0x12c   : > { %v9879_v50 = vpop.f32.mrf.mxu0 }
 0x12e   : > { %v9881_v51 = vpop.f32.mrf.mxu0 }
 0x137   : > { %v9043_v52 = vpop.eup %9042 }
 0x138   : > { %1039 = vrot.lane.b32.xlu0 %v9043_v52, %s9460_s30  ;;  %v9883_v52 = vpop.f32.mrf.mxu0 }
 0x1aa   : > { %v1040_v54 = vpop.permute.xlu0 %1039 }
 0x1ab   : > { %v1042_v56 = vmul.f32 %v1040_v54, %v1037_v53 }
 0x1ad   : > { %v9804_v57 = vadd.f32 %v1043_v55, %v1042_v56 }
 0x1af   : > { %1046 = vrot.lane.b32.xlu0 %v9804_v57, %s9460_s30 }
 0x1c5   : > { %v9885_v53 = vpop.f32.mrf.mxu0 }
 0x1c7   : > { %v9887_v54 = vpop.f32.mrf.mxu0 }
 0x1c9   : > { %v9889_v55 = vpop.f32.mrf.mxu0 }
 0x1cb   : > { %v9891_v56 = vpop.f32.mrf.mxu0 }
 0x221   : > { %v1047_v58 = vpop.permute.xlu0 %1046 }
 0x222   : > { %1049 = vst.msk [vmem:[#allocation2] sm:$0xff] %vm768_vm0, %v1047_v58  ;;  %7826 = vmatmul.mubr.msk.f32.vlgmr.msra.gmra.mxu1 %vm952_vm2, %v1047_v58 }
 0x223   : > { %1051 = vst.msk [vmem:[#allocation2 + $0x48] sm:$0xff] %vm1050_vm1, %v1047_v58  ;;  %1265 = vmatpush1.msra.mxu1 %v9620_v1  ;;  %1312 = vmatprep.mubr.f32.mxu1 %v11774_v4 }
 0x224   : > { %1266 = vmatprep.subr.mxu1 %v9625_v2 }
 0x225   : > { %1267 = vmatpush1.msra.mxu1 %v9631_v3 }
 0x226   : > { %1268 = vmatprep.subr.mxu1 %v9638_v5 }
 0x227   : > { %1269 = vmatpush1.msra.mxu1 %v9653_v8 }
 0x228   : > { %1270 = vmatprep.subr.mxu1 %v9662_v10 }
 0x229   : > { %1271 = vmatpush1.msra.mxu1 %v9675_v13 }
 0x22a   : > { %1272 = vmatprep.subr.mxu1 %v9684_v15 }
 0x22b   : > { %1273 = vmatpush1.msra.mxu1 %v9698_v17 }
 0x22c   : > { %1274 = vmatprep.subr.mxu1 %v9707_v19 }
 0x22d   : > { %1275 = vmatpush1.msra.mxu1 %v9714_v21 }
 0x22e   : > { %1276 = vmatprep.subr.mxu1 %v9720_v22 }
 0x22f   : > { %1277 = vmatpush1.msra.mxu1 %v9726_v23 }
 0x230   : > { %1278 = vmatprep.subr.mxu1 %v9733_v24 }
 0x231   : > { %1279 = vmatpush1.msra.mxu1 %v9740_v25 }
 0x232   : > { %1458 = vmatprep.subr.mxu1 %v9615_v0 }
 0x2e2   : > { %v1120_v61 = vpop.f32.mrf.mxu1 }
 0x2e3   : > { %v1121_v62 = vadd.f32 %v1120_v61, %v9790_v32 }
 0x2e4   : > { %v1122_v11 = vpop.f32.mrf.mxu1 }
 0x2e5   : > { %v1125_v63 = vadd.f32 %v1121_v62, %v872_v60  ;;  %v1123_v14 = vadd.f32 %v1122_v11, %v9794_v42 }
 0x2e7   : > { %v7827_v6 = vmul.f32 -1.442695, %v1125_v63 }
 0x2e9   : > { %9044 = vpow2.f32 %v7827_v6  ;;  %v878_v6 = vadd.f32 %v877_v47, %v9788_v31 }
 0x2f6   : > { %v9045_v7 = vpop.eup %9044 }
 0x2f7   : > { %v1129_v9 = vadd.f32 1.0, %v9045_v7 }
 0x2f9   : > { %9046 = vrcp.f32 %v1129_v9 }
 0x306   : > { %v9047_v16 = vpop.eup %9046 }
 0x307   : > { %v1132_v20 = vmul.f32 %v9047_v16, %v1123_v14  ;;  %v1135_v39 = vsub.f32 1.0, %v9047_v16  ;;  %v1141_v41 = vmul.f32 %v9047_v16, %v9804_v57  ;;  %v9893_v57 = vpop.f32.mrf.mxu0 }
 0x309   : > { %v1133_v27 = vadd.f32 %v1132_v20, %v874_v18  ;;  %v9895_v58 = vpop.f32.mrf.mxu0 }
 0x30b   : > { %9048 = vtanh.f32 %v1133_v27  ;;  %v9897_v59 = vpop.f32.mrf.mxu0  ;;  %v880_v27 = vadd.f32 %v879_v48, %v9796_v44 }
 0x30d   : > { %v9899_v60 = vpop.f32.mrf.mxu0 }
 0x30f   : > { %v9901_v61 = vpop.f32.mrf.mxu0 }
 0x311   : > { %v9903_v62 = vpop.f32.mrf.mxu0 }
 0x318   : > { %v9049_v33 = vpop.eup %9048 }
 0x319   : > { %1137 = vrot.lane.b32.xlu1 %v9049_v33, %s9460_s30 }
 0x38b   : > { %v1138_v40 = vpop.permute.xlu1 %1137 }
 0x38c   : > { %v1140_v43 = vmul.f32 %v1138_v40, %v1135_v39  ;;  %v884_v40 = vadd.f32 %v883_v49, %v9788_v31 }
 0x38e   : > { %v1142_v45 = vadd.f32 %v1141_v41, %v1140_v43 }
 0x390   : > { %1144 = vrot.lane.b32.xlu1 %v1142_v45, %s9460_s30 }
 0x402   : > { %v1145_v46 = vpop.permute.xlu1 %1144 }
 0x403   : > { %1147 = vst.msk [vmem:[#allocation2 + $0x8] sm:$0xff] %vm768_vm0, %v1145_v46  ;;  %7828 = vmatmul.mubr.msk.f32.vlgmr.msra.gmra.mxu0 %vm952_vm2, %v1145_v46 }
 0x404   : > { %1148 = vst.msk [vmem:[#allocation2 + $0x40] sm:$0xff] %vm1050_vm1, %v1145_v46  ;;  %1362 = vmatpush1.msra.mxu0 %v9620_v1  ;;  %1409 = vmatprep.mubr.f32.mxu0 %v11774_v4 }
 0x405   : > { %1363 = vmatprep.subr.mxu0 %v9625_v2 }
 0x406   : > { %1364 = vmatpush1.msra.mxu0 %v9631_v3 }
 0x407   : > { %1365 = vmatprep.subr.mxu0 %v9638_v5 }
 0x408   : > { %1366 = vmatpush1.msra.mxu0 %v9653_v8 }
 0x409   : > { %1367 = vmatprep.subr.mxu0 %v9662_v10 }
 0x40a   : > { %1368 = vmatpush1.msra.mxu0 %v9675_v13 }
 0x40b   : > { %1369 = vmatprep.subr.mxu0 %v9684_v15 }
 0x40c   : > { %1370 = vmatpush1.msra.mxu0 %v9698_v17 }
 0x40d   : > { %1371 = vmatprep.subr.mxu0 %v9707_v19 }
 0x40e   : > { %1372 = vmatpush1.msra.mxu0 %v9714_v21 }
 0x40f   : > { %1373 = vmatprep.subr.mxu0 %v9720_v22 }
 0x410   : > { %1374 = vmatpush1.msra.mxu0 %v9726_v23 }
 0x411   : > { %1375 = vmatprep.subr.mxu0 %v9733_v24 }
 0x412   : > { %1376 = vmatpush1.msra.mxu0 %v9740_v25 }
 0x413   : > { %1555 = vmatprep.subr.mxu0 %v9615_v0 }
 0x4c3   : > { %v1217_v63 = vpop.f32.mrf.mxu0 }
 0x4c4   : > { %v1218_v7 = vadd.f32 %v1217_v63, %v9790_v32 }
 0x4c5   : > { %v1219_v16 = vpop.f32.mrf.mxu0 }
 0x4c6   : > { %v1222_v9 = vadd.f32 %v1218_v7, %v878_v6  ;;  %v1220_v18 = vadd.f32 %v1219_v16, %v9794_v42  ;;  %v886_v7 = vadd.f32 %v9879_v50, %v9796_v44 }
 0x4c8   : > { %v7829_v11 = vmul.f32 -1.442695, %v1222_v9 }
 0x4ca   : > { %9050 = vpow2.f32 %v7829_v11 }
 0x4d7   : > { %v9051_v12 = vpop.eup %9050 }
 0x4d8   : > { %v1226_v14 = vadd.f32 1.0, %v9051_v12 }
 0x4da   : > { %9052 = vrcp.f32 %v1226_v14 }
 0x4e7   : > { %v9053_v20 = vpop.eup %9052 }
 0x4e8   : > { %v1229_v28 = vmul.f32 %v9053_v20, %v1220_v18  ;;  %v1232_v33 = vsub.f32 1.0, %v9053_v20  ;;  %v1238_v35 = vmul.f32 %v9053_v20, %v1142_v45 }
 0x4ea   : > { %v1230_v29 = vadd.f32 %v1229_v28, %v880_v27  ;;  %v890_v28 = vadd.f32 %v9881_v51, %v9788_v31 }
 0x4ec   : > { %9054 = vtanh.f32 %v1230_v29 }
 0x4f9   : > { %v9055_v30 = vpop.eup %9054 }
 0x4fa   : > { %1234 = vrot.lane.b32.xlu0 %v9055_v30, %s9460_s30 }
 0x56c   : > { %v1235_v34 = vpop.permute.xlu0 %1234 }
 0x56d   : > { %v1237_v36 = vmul.f32 %v1235_v34, %v1232_v33 }
 0x56f   : > { %v1239_v37 = vadd.f32 %v1238_v35, %v1237_v36 }
 0x571   : > { %1241 = vrot.lane.b32.xlu1 %v1239_v37, %s9460_s30 }
 0x5e3   : > { %v1242_v38 = vpop.permute.xlu1 %1241 }
 0x5e4   : > { %1244 = vst.msk [vmem:[#allocation2 + $0x10] sm:$0xff] %vm768_vm0, %v1242_v38  ;;  %7830 = vmatmul.mubr.msk.f32.vlgmr.msra.gmra.mxu1 %vm952_vm2, %v1242_v38 }
 0x5e5   : > { %1245 = vst.msk [vmem:[#allocation2 + $0x38] sm:$0xff] %vm1050_vm1, %v1242_v38  ;;  %1459 = vmatpush1.msra.mxu1 %v9620_v1  ;;  %1506 = vmatprep.mubr.f32.mxu1 %v11774_v4 }
 0x5e6   : > { %1460 = vmatprep.subr.mxu1 %v9625_v2 }
 0x5e7   : > { %1461 = vmatpush1.msra.mxu1 %v9631_v3 }
 0x5e8   : > { %1462 = vmatprep.subr.mxu1 %v9638_v5 }
 0x5e9   : > { %1463 = vmatpush1.msra.mxu1 %v9653_v8 }
 0x5ea   : > { %1464 = vmatprep.subr.mxu1 %v9662_v10 }
 0x5eb   : > { %1465 = vmatpush1.msra.mxu1 %v9675_v13 }
 0x5ec   : > { %1466 = vmatprep.subr.mxu1 %v9684_v15 }
 0x5ed   : > { %1467 = vmatpush1.msra.mxu1 %v9698_v17 }
 0x5ee   : > { %1468 = vmatprep.subr.mxu1 %v9707_v19 }
 0x5ef   : > { %1469 = vmatpush1.msra.mxu1 %v9714_v21 }
 0x5f0   : > { %1470 = vmatprep.subr.mxu1 %v9720_v22 }
 0x5f1   : > { %1471 = vmatpush1.msra.mxu1 %v9726_v23 }
 0x5f2   : > { %1472 = vmatprep.subr.mxu1 %v9733_v24 }
 0x5f3   : > { %1473 = vmatpush1.msra.mxu1 %v9740_v25 }
 0x5f4   : > { %1652 = vmatprep.subr.mxu1 %v9615_v0 }
 0x6a4   : > { %v1314_v39 = vpop.f32.mrf.mxu1 }
 0x6a5   : > { %v1315_v41 = vadd.f32 %v1314_v39, %v9790_v32  ;;  %v892_v39 = vadd.f32 %v9883_v52, %v9796_v44 }
 0x6a6   : > { %v1316_v48 = vpop.f32.mrf.mxu1 }
 0x6a7   : > { %v1319_v43 = vadd.f32 %v1315_v41, %v884_v40  ;;  %v1317_v63 = vadd.f32 %v1316_v48, %v9794_v42 }
 0x6a9   : > { %v7831_v45 = vmul.f32 -1.442695, %v1319_v43 }
 0x6ab   : > { %9056 = vpow2.f32 %v7831_v45 }
 0x6b8   : > { %v9057_v46 = vpop.eup %9056 }
 0x6b9   : > { %v1323_v47 = vadd.f32 1.0, %v9057_v46 }
 0x6bb   : > { %9058 = vrcp.f32 %v1323_v47 }
 0x6c8   : > { %v9059_v6 = vpop.eup %9058 }
 0x6c9   : > { %v1326_v9 = vmul.f32 %v9059_v6, %v1317_v63  ;;  %v1329_v49 = vsub.f32 1.0, %v9059_v6  ;;  %v1335_v16 = vmul.f32 %v9059_v6, %v1239_v37  ;;  %v896_v6 = vadd.f32 %v9885_v53, %v9788_v31 }
 0x6cb   : > { %v1327_v11 = vadd.f32 %v1326_v9, %v886_v7 }
 0x6cd   : > { %9060 = vtanh.f32 %v1327_v11 }
 0x6da   : > { %v9061_v12 = vpop.eup %9060 }
 0x6db   : > { %1331 = vrot.lane.b32.xlu0 %v9061_v12, %s9460_s30 }
 0x74d   : > { %v1332_v14 = vpop.permute.xlu0 %1331 }
 0x74e   : > { %v1334_v18 = vmul.f32 %v1332_v14, %v1329_v49 }
 0x750   : > { %v1336_v20 = vadd.f32 %v1335_v16, %v1334_v18 }
 0x752   : > { %1338 = vrot.lane.b32.xlu1 %v1336_v20, %s9460_s30 }
 0x7c4   : > { %v1339_v27 = vpop.permute.xlu1 %1338 }
 0x7c5   : > { %1341 = vst.msk [vmem:[#allocation2 + $0x18] sm:$0xff] %vm768_vm0, %v1339_v27  ;;  %7832 = vmatmul.mubr.msk.f32.vlgmr.msra.gmra.mxu0 %vm952_vm2, %v1339_v27 }
 0x7c6   : > { %1342 = vst.msk [vmem:[#allocation2 + $0x30] sm:$0xff] %vm1050_vm1, %v1339_v27  ;;  %1556 = vmatpush1.msra.mxu0 %v9620_v1  ;;  %1603 = vmatprep.mubr.f32.mxu0 %v11774_v4 }
 0x7c7   : > { %1557 = vmatprep.subr.mxu0 %v9625_v2 }
 0x7c8   : > { %1558 = vmatpush1.msra.mxu0 %v9631_v3 }
 0x7c9   : > { %1559 = vmatprep.subr.mxu0 %v9638_v5 }
 0x7ca   : > { %1560 = vmatpush1.msra.mxu0 %v9653_v8 }
 0x7cb   : > { %1561 = vmatprep.subr.mxu0 %v9662_v10 }
 0x7cc   : > { %1562 = vmatpush1.msra.mxu0 %v9675_v13 }
 0x7cd   : > { %1563 = vmatprep.subr.mxu0 %v9684_v15 }
 0x7ce   : > { %1564 = vmatpush1.msra.mxu0 %v9698_v17 }
 0x7cf   : > { %1565 = vmatprep.subr.mxu0 %v9707_v19 }
 0x7d0   : > { %1566 = vmatpush1.msra.mxu0 %v9714_v21 }
 0x7d1   : > { %1567 = vmatprep.subr.mxu0 %v9720_v22 }
 0x7d2   : > { %1568 = vmatpush1.msra.mxu0 %v9726_v23 }
 0x7d3   : > { %1569 = vmatprep.subr.mxu0 %v9733_v24 }
 0x7d4   : > { %1570 = vmatpush1.msra.mxu0 %v9740_v25 }
 0x7d5   : > { %1749 = vmatprep.subr.mxu0 %v9615_v0 }
 0x885   : > { %v1411_v50 = vpop.f32.mrf.mxu0 }
 0x886   : > { %v1412_v29 = vadd.f32 %v1411_v50, %v9790_v32 }
 0x887   : > { %v1413_v36 = vpop.f32.mrf.mxu0 }
 0x888   : > { %v1416_v30 = vadd.f32 %v1412_v29, %v890_v28  ;;  %v1414_v37 = vadd.f32 %v1413_v36, %v9794_v42 }
 0x88a   : > { %v7833_v33 = vmul.f32 -1.442695, %v1416_v30 }
 0x88c   : > { %9062 = vpow2.f32 %v7833_v33 }
 0x899   : > { %v9063_v34 = vpop.eup %9062 }
 0x89a   : > { %v1420_v35 = vadd.f32 1.0, %v9063_v34 }
 0x89c   : > { %9064 = vrcp.f32 %v1420_v35  ;;  %v902_v35 = vadd.f32 %v9889_v55, %v9788_v31 }
 0x8a9   : > { %v9065_v38 = vpop.eup %9064 }
 0x8aa   : > { %v1423_v40 = vmul.f32 %v9065_v38, %v1414_v37  ;;  %v1426_v51 = vsub.f32 1.0, %v9065_v38  ;;  %v1432_v46 = vmul.f32 %v9065_v38, %v1336_v20  ;;  %v898_v20 = vadd.f32 %v9887_v54, %v9796_v44 }
 0x8ac   : > { %v1424_v41 = vadd.f32 %v1423_v40, %v892_v39 }
 0x8ae   : > { %9066 = vtanh.f32 %v1424_v41 }
 0x8bb   : > { %v9067_v43 = vpop.eup %9066 }
 0x8bc   : > { %1428 = vrot.lane.b32.xlu0 %v9067_v43, %s9460_s30 }
 0x92e   : > { %v1429_v45 = vpop.permute.xlu0 %1428 }
 0x92f   : > { %v1431_v47 = vmul.f32 %v1429_v45, %v1426_v51  ;;  %v904_v45 = vadd.f32 %v9891_v56, %v9796_v44 }
 0x931   : > { %v1433_v48 = vadd.f32 %v1432_v46, %v1431_v47 }
 0x933   : > { %1435 = vrot.lane.b32.xlu1 %v1433_v48, %s9460_s30 }
 0x9a5   : > { %v1436_v63 = vpop.permute.xlu1 %1435 }
 0x9a6   : > { %1438 = vst.msk [vmem:[#allocation2 + $0x20] sm:$0xff] %vm768_vm0, %v1436_v63  ;;  %7834 = vmatmul.mubr.msk.f32.vlgmr.msra.gmra.mxu1 %vm952_vm2, %v1436_v63 }
 0x9a7   : > { %1439 = vst.msk [vmem:[#allocation2 + $0x28] sm:$0xff] %vm1050_vm1, %v1436_v63  ;;  %1653 = vmatpush1.msra.mxu1 %v9620_v1  ;;  %1700 = vmatprep.mubr.f32.mxu1 %v11774_v4 }
 0x9a8   : > { %1654 = vmatprep.subr.mxu1 %v9625_v2 }
 0x9a9   : > { %1655 = vmatpush1.msra.mxu1 %v9631_v3 }
 0x9aa   : > { %1656 = vmatprep.subr.mxu1 %v9638_v5 }
 0x9ab   : > { %1657 = vmatpush1.msra.mxu1 %v9653_v8 }
 0x9ac   : > { %1658 = vmatprep.subr.mxu1 %v9662_v10 }
 0x9ad   : > { %1659 = vmatpush1.msra.mxu1 %v9675_v13 }
 0x9ae   : > { %1660 = vmatprep.subr.mxu1 %v9684_v15 }
 0x9af   : > { %1661 = vmatpush1.msra.mxu1 %v9698_v17 }
 0x9b0   : > { %1662 = vmatprep.subr.mxu1 %v9707_v19 }
 0x9b1   : > { %1663 = vmatpush1.msra.mxu1 %v9714_v21 }
 0x9b2   : > { %1664 = vmatprep.subr.mxu1 %v9720_v22 }
 0x9b3   : > { %1665 = vmatpush1.msra.mxu1 %v9726_v23 }
 0x9b4   : > { %1666 = vmatprep.subr.mxu1 %v9733_v24 }
 0x9b5   : > { %1667 = vmatpush1.msra.mxu1 %v9740_v25 }
 0x9b6   : > { %1846 = vmatprep.subr.mxu1 %v9615_v0 }
 0xa66   : > { %v1508_v52 = vpop.f32.mrf.mxu1 }
 0xa67   : > { %v1509_v7 = vadd.f32 %v1508_v52, %v9790_v32 }
 0xa68   : > { %v1510_v14 = vpop.f32.mrf.mxu1 }
 0xa69   : > { %v1513_v9 = vadd.f32 %v1509_v7, %v896_v6  ;;  %v1511_v16 = vadd.f32 %v1510_v14, %v9794_v42  ;;  %v914_v14 = vadd.f32 %v9897_v59, %v9788_v31 }
 0xa6b   : > { %v7835_v11 = vmul.f32 -1.442695, %v1513_v9 }
 0xa6d   : > { %9068 = vpow2.f32 %v7835_v11 }
 0xa7a   : > { %v9069_v12 = vpop.eup %9068 }
 0xa7b   : > { %v1517_v49 = vadd.f32 1.0, %v9069_v12 }
 0xa7d   : > { %9070 = vrcp.f32 %v1517_v49 }
 0xa8a   : > { %v9071_v18 = vpop.eup %9070 }
 0xa8b   : > { %v1520_v0 = vmul.f32 %v9071_v18, %v1511_v16  ;;  %v1523_v53 = vsub.f32 1.0, %v9071_v18  ;;  %v1529_v29 = vmul.f32 %v9071_v18, %v1433_v48 }
 0xa8d   : > { %v1521_v27 = vadd.f32 %v1520_v0, %v898_v20 }
 0xa8f   : > { %9072 = vtanh.f32 %v1521_v27 }
 0xa9c   : > { %v9073_v50 = vpop.eup %9072 }
 0xa9d   : > { %1525 = vrot.lane.b32.xlu0 %v9073_v50, %s9460_s30 }
 0xb0f   : > { %v1526_v28 = vpop.permute.xlu0 %1525 }
 0xb10   : > { %v1528_v30 = vmul.f32 %v1526_v28, %v1523_v53 }
 0xb12   : > { %v1530_v33 = vadd.f32 %v1529_v29, %v1528_v30  ;;  %v916_v29 = vadd.f32 %v9899_v60, %v9796_v44 }
 0xb14   : > { %1532 = vrot.lane.b32.xlu1 %v1530_v33, %s9460_s30 }
 0xb86   : > { %v1533_v34 = vpop.permute.xlu1 %1532 }
 0xb87   : > { %1535 = vst.msk [vmem:[#allocation2 + $0x28] sm:$0xff] %vm768_vm0, %v1533_v34  ;;  %7836 = vmatmul.mubr.msk.f32.vlgmr.msra.gmra.mxu0 %vm952_vm2, %v1533_v34 }
 0xb88   : > { %1536 = vst.msk [vmem:[#allocation2 + $0x20] sm:$0xff] %vm1050_vm1, %v1533_v34  ;;  %1750 = vmatpush1.msra.mxu0 %v9620_v1  ;;  %1797 = vmatprep.mubr.f32.mxu0 %v11774_v4 }
 0xb89   : > { %1751 = vmatprep.subr.mxu0 %v9625_v2 }
 0xb8a   : > { %1752 = vmatpush1.msra.mxu0 %v9631_v3 }
 0xb8b   : > { %1753 = vmatprep.subr.mxu0 %v9638_v5 }
 0xb8c   : > { %1754 = vmatpush1.msra.mxu0 %v9653_v8 }
 0xb8d   : > { %1755 = vmatprep.subr.mxu0 %v9662_v10 }
 0xb8e   : > { %1756 = vmatpush1.msra.mxu0 %v9675_v13 }
 0xb8f   : > { %1757 = vmatprep.subr.mxu0 %v9684_v15 }
 0xb90   : > { %1758 = vmatpush1.msra.mxu0 %v9698_v17 }
 0xb91   : > { %1759 = vmatprep.subr.mxu0 %v9707_v19 }
 0xb92   : > { %1760 = vmatpush1.msra.mxu0 %v9714_v21 }
 0xb93   : > { %1761 = vmatprep.subr.mxu0 %v9720_v22 }
 0xb94   : > { %1762 = vmatpush1.msra.mxu0 %v9726_v23 }
 0xb95   : > { %1763 = vmatprep.subr.mxu0 %v9733_v24 }
 0xb96   : > { %1764 = vmatpush1.msra.mxu0 %v9740_v25 }
 0xb97   : > { %8300 = vmatprep.subr.mxu0 %v11774_v4 }
 0xc47   : > { %v1605_v54 = vpop.f32.mrf.mxu0 }
 0xc48   : > { %v1606_v36 = vadd.f32 %v1605_v54, %v9790_v32 }
 0xc49   : > { %v1607_v41 = vpop.f32.mrf.mxu0 }
 0xc4a   : > { %v1610_v37 = vadd.f32 %v1606_v36, %v902_v35  ;;  %v1608_v43 = vadd.f32 %v1607_v41, %v9794_v42 }
 0xc4c   : > { %v7837_v38 = vmul.f32 -1.442695, %v1610_v37 }
 0xc4e   : > { %9074 = vpow2.f32 %v7837_v38 }
 0xc5b   : > { %v9075_v39 = vpop.eup %9074 }
 0xc5c   : > { %v1614_v40 = vadd.f32 1.0, %v9075_v39  ;;  %v920_v39 = vadd.f32 %v9901_v61, %v9788_v31  ;;  %v2029_v61 = vld [vmem:[%s11752_s12 + $0x30] sm:$0xff] }
 0xc5e   : > { %9076 = vrcp.f32 %v1614_v40 }
 0xc6b   : > { %v9077_v51 = vpop.eup %9076 }
 0xc6c   : > { %v1617_v46 = vmul.f32 %v9077_v51, %v1608_v43  ;;  %v1620_v55 = vsub.f32 1.0, %v9077_v51  ;;  %v1626_v52 = vmul.f32 %v9077_v51, %v1530_v33 }
 0xc6e   : > { %v1618_v47 = vadd.f32 %v1617_v46, %v904_v45 }
 0xc70   : > { %9078 = vtanh.f32 %v1618_v47 }
 0xc7d   : > { %v9079_v48 = vpop.eup %9078 }
 0xc7e   : > { %1622 = vrot.lane.b32.xlu0 %v9079_v48, %s9460_s30 }
 0xcf0   : > { %v1623_v63 = vpop.permute.xlu0 %1622 }
 0xcf1   : > { %v1625_v6 = vmul.f32 %v1623_v63, %v1620_v55  ;;  %v922_v55 = vadd.f32 %v9903_v62, %v9796_v44  ;;  %v2028_v62 = vld [vmem:[%s11752_s12 + $0x28] sm:$0xff] }
 0xcf3   : > { %v1627_v7 = vadd.f32 %v1626_v52, %v1625_v6  ;;  %v1929_v6 = vld [vmem:[%s11749_s9 + $0x20] sm:$0xff] }
 0xcf5   : > { %1629 = vrot.lane.b32.xlu1 %v1627_v7, %s9460_s30 }
 0xd67   : > { %v1630_v9 = vpop.permute.xlu1 %1629 }
 0xd68   : > { %1632 = vst.msk [vmem:[#allocation2 + $0x30] sm:$0xff] %vm768_vm0, %v1630_v9  ;;  %7838 = vmatmul.mubr.msk.f32.vlgmr.msra.gmra.mxu1 %vm952_vm2, %v1630_v9 }
 0xd69   : > { %1633 = vst.msk [vmem:[#allocation2 + $0x18] sm:$0xff] %vm1050_vm1, %v1630_v9  ;;  %1847 = vmatpush1.msra.mxu1 %v9620_v1  ;;  %1894 = vmatprep.mubr.f32.mxu1 %v11774_v4  ;;  %v1928_v9 = vld [vmem:[%s11749_s9 + $0x18] sm:$0xff] }
 0xd6a   : > { %1848 = vmatprep.subr.mxu1 %v9625_v2  ;;  %v908_v2 = vadd.f32 %v9893_v57, %v9788_v31  ;;  %v1932_v31 = vld [vmem:[%s11749_s9 + $0x38] sm:$0xff] }
 0xd6b   : > { %1849 = vmatpush1.msra.mxu1 %v9631_v3 }
 0xd6c   : > { %1850 = vmatprep.subr.mxu1 %v9638_v5 }
 0xd6d   : > { %1851 = vmatpush1.msra.mxu1 %v9653_v8 }
 0xd6e   : > { %1852 = vmatprep.subr.mxu1 %v9662_v10 }
 0xd6f   : > { %1853 = vmatpush1.msra.mxu1 %v9675_v13 }
 0xd70   : > { %1854 = vmatprep.subr.mxu1 %v9684_v15 }
 0xd71   : > { %1855 = vmatpush1.msra.mxu1 %v9698_v17 }
 0xd72   : > { %1856 = vmatprep.subr.mxu1 %v9707_v19 }
 0xd73   : > { %1857 = vmatpush1.msra.mxu1 %v9714_v21  ;;  %v910_v21 = vadd.f32 %v9895_v58, %v9796_v44  ;;  %v1930_v44 = vld [vmem:[%s11749_s9 + $0x28] sm:$0xff] }
 0xd74   : > { %1858 = vmatprep.subr.mxu1 %v9720_v22 }
 0xd75   : > { %1859 = vmatpush1.msra.mxu1 %v9726_v23 }
 0xd76   : > { %1860 = vmatprep.subr.mxu1 %v9733_v24 }
 0xd77   : > { %1861 = vmatpush1.msra.mxu1 %v9740_v25 }
 0xe28   : > { %v1702_v1 = vpop.f32.mrf.mxu1 }
 0xe29   : > { %v1703_v3 = vadd.f32 %v1702_v1, %v9790_v32 }
 0xe2a   : > { %v1704_v15 = vpop.f32.mrf.mxu1 }
 0xe2b   : > { %v1707_v5 = vadd.f32 %v1703_v3, %v908_v2  ;;  %v1705_v17 = vadd.f32 %v1704_v15, %v9794_v42  ;;  %v1927_v2 = vld [vmem:[%s11749_s9 + $0x10] sm:$0xff]  ;;  %v1926_v3 = vld [vmem:[%s11749_s9 + $0x8] sm:$0xff]  ;;  %v2023_v15 = vld [vmem:[%s11752_s12] sm:$0xff] }
 0xe2d   : > { %v7839_v8 = vmul.f32 -1.442695, %v1707_v5  ;;  %v1925_v5 = vld [vmem:[%s11749_s9] sm:$0xff] }
 0xe2f   : > { %9080 = vpow2.f32 %v7839_v8  ;;  %v2026_v8 = vld [vmem:[%s11752_s12 + $0x18] sm:$0xff] }
 0xe3c   : > { %v9081_v10 = vpop.eup %9080 }
 0xe3d   : > { %v1711_v13 = vadd.f32 1.0, %v9081_v10  ;;  %v2025_v10 = vld [vmem:[%s11752_s12 + $0x10] sm:$0xff] }
 0xe3f   : > { %9082 = vrcp.f32 %v1711_v13  ;;  %v2024_v13 = vld [vmem:[%s11752_s12 + $0x8] sm:$0xff] }
 0xe4c   : > { %v9083_v19 = vpop.eup %9082 }
 0xe4d   : > { %v1714_v22 = vmul.f32 %v9083_v19, %v1705_v17  ;;  %v1717_v25 = vsub.f32 1.0, %v9083_v19  ;;  %v1723_v57 = vmul.f32 %v9083_v19, %v1627_v7  ;;  %v2027_v7 = vld [vmem:[%s11752_s12 + $0x20] sm:$0xff] }
 0xe4f   : > { %v1715_v23 = vadd.f32 %v1714_v22, %v910_v21 }
 0xe51   : > { %9084 = vtanh.f32 %v1715_v23 }
 0xe5e   : > { %v9085_v24 = vpop.eup %9084 }
 0xe5f   : > { %1719 = vrot.lane.b32.xlu0 %v9085_v24, %s9460_s30 }
 0xed1   : > { %v1720_v56 = vpop.permute.xlu0 %1719 }
 0xed2   : > { %v1722_v11 = vmul.f32 %v1720_v56, %v1717_v25 }
 0xed4   : > { %v1724_v12 = vadd.f32 %v1723_v57, %v1722_v11  ;;  %v10151_v11 = vld [vmem:[#allocation2 + $0x18] sm:$0xff] }
 0xed6   : > { %1726 = vrot.lane.b32.xlu1 %v1724_v12, %s9460_s30 }
 0xf48   : > { %v1727_v49 = vpop.permute.xlu1 %1726 }
 0xf49   : > { %1729 = vst.msk [vmem:[#allocation2 + $0x38] sm:$0xff] %vm768_vm0, %v1727_v49  ;;  %7840 = vmatmul.mubr.msk.f32.vlgmr.msra.gmra.mxu0 %vm952_vm2, %v1727_v49 }
 0xf4a   : > { %1730 = vst.msk [vmem:[#allocation2 + $0x10] sm:$0xff] %vm1050_vm1, %v1727_v49  ;;  %8301 = vmatpush3.msra.mxu0 %v1932_v31  ;;  %8316 = vmatprep.mubr.msk.f32.mxu0 %vm9461_vm3, %v11774_v4  ;;  %v10159_v49 = vld [vmem:[#allocation2 + $0x28] sm:$0xff] }
 0xf4b   : > { %8302 = vmatprep.subr.mxu0 %v11774_v4 }
 0xf51   : > { %v10147_v57 = vld [vmem:[#allocation2 + $0x10] sm:$0xff] }
0x1009   : > { %v1799_v58 = vpop.f32.mrf.mxu0 }
0x100a   : > { %v1800_v16 = vadd.f32 %v1799_v58, %v9790_v32  ;;  %v10163_v58 = vld [vmem:[#allocation2 + $0x30] sm:$0xff] }
0x100b   : > { %v1801_v50 = vpop.f32.mrf.mxu0 }
0x100c   : > { %v1804_v18 = vadd.f32 %v1800_v16, %v914_v14  ;;  %v1802_v53 = vadd.f32 %v1801_v50, %v9794_v42  ;;  %v10167_v14 = vld [vmem:[#allocation2 + $0x38] sm:$0xff]  ;;  %v10207_v50 = vld [vmem:[%s11751_s11 + $0x8] sm:$0xff] }
0x100e   : > { %v7841_v20 = vmul.f32 -1.442695, %v1804_v18 }
0x1010   : > { %9086 = vpow2.f32 %v7841_v20  ;;  %v10184_v20 = vld [vmem:[%s11751_s11 + $0x18] sm:$0xff] }
0x101d   : > { %v9087_v0 = vpop.eup %9086 }
0x101e   : > { %v1808_v27 = vadd.f32 1.0, %v9087_v0  ;;  %v10192_v0 = vld [vmem:[%s11751_s11 + $0x10] sm:$0xff] }
0x1020   : > { %9088 = vrcp.f32 %v1808_v27  ;;  %v2205_v27 = vld [vmem:[%s10199_s5] sm:$0xff] }
0x1021   : > { %2207 = vst.msk [vmem:[#allocation3] sm:$0xff] %vm2206_vm4, %v2205_v27 }
0x102d   : > { %v9089_v28 = vpop.eup %9088 }
0x102e   : > { %v1811_v30 = vmul.f32 %v9089_v28, %v1802_v53  ;;  %v1814_v59 = vsub.f32 1.0, %v9089_v28  ;;  %v1820_v35 = vmul.f32 %v9089_v28, %v1724_v12  ;;  %v10155_v12 = vld [vmem:[#allocation2 + $0x20] sm:$0xff] }
0x102f   : > { %v10215_v53 = vld [vmem:[%s11751_s11] sm:$0xff] }
0x1030   : > { %v1812_v33 = vadd.f32 %v1811_v30, %v916_v29  ;;  %v7844_v28 = vld [vmem:[%s11750_s10] ss:$0 sm:$0xff] }
0x1032   : > { %9090 = vtanh.f32 %v1812_v33 }
0x103f   : > { %v9091_v34 = vpop.eup %9090 }
0x1040   : > { %1816 = vrot.lane.b32.xlu0 %v9091_v34, %s9460_s30  ;;  %v2208_v34 = vld [vmem:[#allocation3] sm:$0xff] }
0x10b2   : > { %v1817_v54 = vpop.permute.xlu0 %1816 }
0x10b3   : > { %v1819_v36 = vmul.f32 %v1817_v54, %v1814_v59  ;;  %v7857_v59 = vld [vmem:[%s11814_s0 + $0x1] ss:$0 sm:$0xff]  ;;  %v10228_v54 = vld [vmem:[%s11755_s15 + $0x8] sm:$0xff]  ;;  %s9463_s0 = smov 32  }
0x10b5   : > { %v10059_v37 = vadd.f32 %v1820_v35, %v1819_v36  ;;  %v10237_v36 = vld [vmem:[%s11755_s15] sm:$0xff] }
0x10b7   : > { %1823 = vrot.lane.b32.xlu1 %v10059_v37, %s9460_s30 }
0x1129   : > { %v1824_v38 = vpop.permute.xlu1 %1823 }
0x112a   : > { %1826 = vst.msk [vmem:[#allocation2 + $0x40] sm:$0xff] %vm768_vm0, %v1824_v38  ;;  %7842 = vmatmul.mubr.msk.f32.vlgmr.msra.gmra.mxu1 %vm952_vm2, %v1824_v38 }
0x112b   : > { %1827 = vst.msk [vmem:[#allocation2 + $0x8] sm:$0xff] %vm1050_vm1, %v1824_v38  ;;  %v10248_v38 = vld [vmem:[%s11757_s17 + $0x18] sm:$0xff] }
0x1131   : > { %v10171_v16 = vld [vmem:[#allocation2 + $0x40] sm:$0xff] }
0x1132   : > { %v10143_v56 = vld [vmem:[#allocation2 + $0x8] sm:$0xff] }
0x11ea   : > { %v1896_v60 = vpop.f32.mrf.mxu1 }
0x11eb   : > { %v1897_v40 = vadd.f32 %v1896_v60, %v9790_v32  ;;  %v1931_v32 = vld [vmem:[%s11749_s9 + $0x30] sm:$0xff] }
0x11ec   : > { %v1898_v46 = vpop.f32.mrf.mxu1  ;;  %8303 = vmatpush3.msra.mxu0 %v1931_v32  ;;  %v10257_v60 = vld [vmem:[%s11757_s17 + $0x10] sm:$0xff] }
0x11ed   : > { %v1901_v41 = vadd.f32 %v1897_v40, %v920_v39  ;;  %v1899_v47 = vadd.f32 %v1898_v46, %v9794_v42  ;;  %v2030_v42 = vld [vmem:[%s11752_s12 + $0x38] sm:$0xff]  ;;  %8304 = vmatprep.subr.mxu0 %v11774_v4  ;;  %v10266_v39 = vld [vmem:[%s11757_s17 + $0x8] sm:$0xff]  ;;  %v10273_v40 = vld [vmem:[%s11757_s17] sm:$0xff] }
0x11ee   : > { %8319 = vmatprep.subr.mxu1 %v2030_v42  ;;  %8305 = vmatpush3.msra.mxu0 %v1930_v44 }
0x11ef   : > { %v7843_v43 = vmul.f32 -1.442695, %v1901_v41  ;;  %8320 = vmatpush3.msra.mxu1 %v2030_v42  ;;  %8306 = vmatprep.subr.mxu0 %v11774_v4 }
0x11f0   : > { %8321 = vmatprep.subr.mxu1 %v2029_v61  ;;  %8307 = vmatpush3.msra.mxu0 %v1929_v6 }
0x11f1   : > { %9092 = vpow2.f32 %v7843_v43  ;;  %8322 = vmatpush3.msra.mxu1 %v2029_v61  ;;  %8308 = vmatprep.subr.mxu0 %v11774_v4 }
0x11f2   : > { %8323 = vmatprep.subr.mxu1 %v2028_v62  ;;  %8309 = vmatpush3.msra.mxu0 %v1928_v9 }
0x11f3   : > { %8324 = vmatpush3.msra.mxu1 %v2028_v62  ;;  %8310 = vmatprep.subr.mxu0 %v11774_v4 }
0x11f4   : > { %8325 = vmatprep.subr.mxu1 %v2027_v7  ;;  %8311 = vmatpush3.msra.mxu0 %v1927_v2 }
0x11f5   : > { %8326 = vmatpush3.msra.mxu1 %v2027_v7  ;;  %8312 = vmatprep.subr.mxu0 %v11774_v4 }
0x11f6   : > { %8313 = vmatpush3.msra.mxu0 %v1926_v3  ;;  %8327 = vmatprep.subr.mxu1 %v2026_v8 }
0x11f7   : > { %8314 = vmatprep.subr.mxu0 %v11774_v4  ;;  %8328 = vmatpush3.msra.mxu1 %v2026_v8 }
0x11f8   : > { %8315 = vmatpush3.msra.mxu0 %v1925_v5  ;;  %8329 = vmatprep.subr.mxu1 %v2025_v10 }
0x11f9   : > { %8350 = vmatprep.subr.mxu0 %v11774_v4  ;;  %8330 = vmatpush3.msra.mxu1 %v2025_v10 }
0x11fa   : > { %8331 = vmatprep.subr.mxu1 %v2024_v13 }
0x11fb   : > { %8332 = vmatpush3.msra.mxu1 %v2024_v13 }
0x11fc   : > { %8333 = vmatprep.subr.mxu1 %v2023_v15 }
0x11fd   : > { %8334 = vmatpush3.msra.mxu1 %v2023_v15 }
0x11fe   : > { %v9093_v51 = vpop.eup %9092  ;;  %8361 = vmatprep.subr.mxu1 %v11774_v4 }
0x11ff   : > { %v1905_v45 = vadd.f32 1.0, %v9093_v51 }
0x1201   : > { %9094 = vrcp.f32 %v1905_v45 }
0x120e   : > { %v9095_v48 = vpop.eup %9094 }
0x120f   : > { %v1908_v63 = vmul.f32 %v9095_v48, %v1899_v47  ;;  %v1911_v17 = vsub.f32 1.0, %v9095_v48  ;;  %v1917_v21 = vmul.f32 %v9095_v48, %v10059_v37  ;;  %v10239_v37 = vadd.f32 %v7857_v59, %v2208_v34 }
0x1211   : > { %v1909_v52 = vadd.f32 %v1908_v63, %v922_v55  ;;  %v7846_v63 = vld [vmem:[%s11753_s13] ss:$0 sm:$0xff] }
0x1213   : > { %9096 = vtanh.f32 %v1909_v52 }
0x1220   : > { %v9097_v1 = vpop.eup %9096 }
0x1221   : > { %1913 = vrot.lane.b32.xlu0 %v9097_v1, %s9460_s30 }
0x1293   : > { %v1914_v19 = vpop.permute.xlu0 %1913 }
0x1294   : > { %v1916_v22 = vmul.f32 %v1914_v19, %v1911_v17 }
0x1296   : > { %v1918_v23 = vadd.f32 %v1917_v21, %v1916_v22 }
0x1298   : > { %1920 = vrot.lane.b32.xlu1 %v1918_v23, %s9460_s30 }
0x130a   : > { %v1921_v24 = vpop.permute.xlu1 %1920 }
0x130b   : > { %1923 = vst.msk [vmem:[#allocation2 + $0x48] sm:$0xff] %vm768_vm0, %v1921_v24  ;;  %8317 = vmatmul.mubr.msk.f32.vlgmr.msra.gmra.mxu0 %vm952_vm2, %v1921_v24 }
0x130c   : > { %1924 = vst.msk [vmem:[#allocation2] sm:$0xff] %vm1050_vm1, %v1921_v24  ;;  %8358 = vmatprep.mubr.msk.f32.mxu0 %vm9461_vm3, %v11774_v4  ;;  %8351 = vmatpush3.msra.mxu0 %v10184_v20 }
0x130d   : > { %8352 = vmatprep.subr.mxu0 %v11774_v4 }
0x130e   : > { %8353 = vmatpush3.msra.mxu0 %v10192_v0 }
0x130f   : > { %8354 = vmatprep.subr.mxu0 %v11774_v4 }
0x1310   : > { %8355 = vmatpush3.msra.mxu0 %v10207_v50 }
0x1311   : > { %8356 = vmatprep.subr.mxu0 %v11774_v4 }
0x1312   : > { %v10175_v18 = vld [vmem:[#allocation2 + $0x48] sm:$0xff]  ;;  %8357 = vmatpush3.msra.mxu0 %v10215_v53 }
0x1313   : > { %v10139_v25 = vld [vmem:[#allocation2] sm:$0xff]  ;;  %8380 = vmatprep.subr.mxu0 %v11774_v4 }
0x1314   : > { %8335 = vmatprep.mubr.msk.f32.mxu1 %vm952_vm2, %v10139_v25 }
0x1315   : > { %8336 = vmatmul.mubr.msk.f32.vlgmr.msra.gmra.mxu1 %vm952_vm2, %v10143_v56 }
0x1316   : > { %8338 = vmatprep.mubr.msk.f32.mxu1 %vm952_vm2, %v10147_v57 }
0x1319   : > { %8339 = vmatmul.mubr.msk.f32.gmra.mxu1 %vm952_vm2, %v10151_v11 }
0x131a   : > { %8341 = vmatprep.mubr.msk.f32.mxu1 %vm952_vm2, %v10155_v12 }
0x131d   : > { %8342 = vmatmul.mubr.msk.f32.gmra.mxu1 %vm952_vm2, %v10159_v49 }
0x131e   : > { %8344 = vmatprep.mubr.msk.f32.mxu1 %vm952_vm2, %v10163_v58 }
0x1321   : > { %8345 = vmatmul.mubr.msk.f32.gmra.mxu1 %vm952_vm2, %v10167_v14 }
0x1322   : > { %8347 = vmatprep.mubr.msk.f32.mxu1 %vm952_vm2, %v10171_v16 }
0x1325   : > { %8348 = vmatmul.mubr.msk.f32.gmra.mxu1 %vm952_vm2, %v10175_v18 }
0x1326   : > { %8377 = vmatprep.mubr.msk.f32.mxu1 %vm9461_vm3, %v11774_v4 }
0x13cb   : > { %v2008_v29 = vpop.f32.mrf.mxu0 }
0x13cc   : > { %v2009_v30 = vadd.f32 %v7844_v28, %v2008_v29 }
0x13cd   : > { %v8318_v33 = vpop.f32.mrf.mxu0 }
0x13ce   : > { %9098 = vtanh.f32 %v2009_v30  ;;  %v10320_v30 = vld [vmem:[%s11754_s14] ss:$0 sm:$0xff] }
0x13cf   : > { %11822 = vst [vmem:[#allocation14_spill] sm:$0xff] %v10320_v30 }
0x13d5   : > { %v8337_v41 = vpop.f32.mrf.mxu1 }
0x13d6   : > { %v10286_v31 = vadd.f32 %v8337_v41, %v7846_v63 }
0x13d7   : > { %v2134_v43 = vpop.f32.mrf.mxu1 }
0x13d8   : > { %11815 = vst [vmem:[#allocation7_spill] sm:$0xff] %v10286_v31  ;;  %v10288_v32 = vadd.f32 %v7846_v63, %v2134_v43 }
0x13d9   : > { %v8340_v51 = vpop.f32.mrf.mxu1 }
0x13da   : > { %v10299_v1 = vadd.f32 %v8340_v51, %v7846_v63 }
0x13db   : > { %v10230_v35 = vpop.eup %9098  ;;  %v2144_v45 = vpop.f32.mrf.mxu1 }
0x13dc   : > { %8359 = vmatmul.mubr.msk.f32.vlgmr.msra.gmra.mxu0 %vm768_vm0, %v10230_v35  ;;  %v10292_v44 = vadd.f32 %v7846_v63, %v2144_v45 }
0x13dd   : > { %8381 = vmatpush3.msra.mxu0 %v10228_v54  ;;  %8384 = vmatprep.mubr.msk.f32.mxu0 %vm9461_vm3, %v11774_v4  ;;  %v8343_v46 = vpop.f32.mrf.mxu1 }
0x13de   : > { %8382 = vmatprep.subr.mxu0 %v11774_v4  ;;  %v10308_v17 = vadd.f32 %v8343_v46, %v7846_v63 }
0x13df   : > { %8383 = vmatpush3.msra.mxu0 %v10237_v36  ;;  %v2154_v47 = vpop.f32.mrf.mxu1 }
0x13e0   : > { %8387 = vmatprep.subr.mxu0 %v11774_v4  ;;  %8385 = vmatmul.mubr.msk.f32.vlgmr.msra.gmra.mxu0 %vm2206_vm4, %v10239_v37  ;;  %v10290_v42 = vadd.f32 %v7846_v63, %v2154_v47  ;;  %11819 = vst [vmem:[#allocation11_spill] sm:$0xff] %v10308_v17 }
0x13e1   : > { %8388 = vmatpush3.msra.mxu0 %v10248_v38  ;;  %8395 = vmatprep.mubr.msk.f32.mxu0 %vm9461_vm3, %v11774_v4  ;;  %v8346_v48 = vpop.f32.mrf.mxu1 }
0x13e2   : > { %8389 = vmatprep.subr.mxu0 %v11774_v4  ;;  %11816 = vst [vmem:[#allocation8_spill] sm:$0xff] %v10290_v42  ;;  %v10312_v23 = vadd.f32 %v8346_v48, %v7846_v63 }
0x13e3   : > { %8390 = vmatpush3.msra.mxu0 %v10257_v60  ;;  %v2164_v55 = vpop.f32.mrf.mxu1 }
0x13e4   : > { %8391 = vmatprep.subr.mxu0 %v11774_v4  ;;  %v10294_v62 = vadd.f32 %v7846_v63, %v2164_v55  ;;  %11820 = vst [vmem:[#allocation12_spill] sm:$0xff] %v10312_v23 }
0x13e5   : > { %8392 = vmatpush3.msra.mxu0 %v10266_v39  ;;  %v8349_v52 = vpop.f32.mrf.mxu1 }
0x13e6   : > { %8393 = vmatprep.subr.mxu0 %v11774_v4  ;;  %11817 = vst [vmem:[#allocation9_spill] sm:$0xff] %v10294_v62  ;;  %v10315_v28 = vadd.f32 %v8349_v52, %v7846_v63 }
0x13e7   : > { %8394 = vmatpush3.msra.mxu0 %v10273_v40  ;;  %v2174_v2 = vpop.f32.mrf.mxu1 }
0x13e8   : > { %8396 = vmatmul.mubr.msk.f32.vlgmr.msra.gmra.mxu0 %vm768_vm0, %v10230_v35  ;;  %8398 = vmatprep.subr.mxu0 %v11774_v4  ;;  %v10306_v15 = vadd.f32 %v7846_v63, %v2174_v2  ;;  %11821 = vst [vmem:[#allocation13_spill] sm:$0xff] %v10315_v28 }
0x13e9   : > { %8414 = vmatprep.mubr.msk.f32.mxu0 %vm9461_vm3, %v11774_v4 }
0x13ea   : > { %11818 = vst [vmem:[#allocation10_spill] sm:$0xff] %v10306_v15 }
0x149c   : > { %v2284_v61 = vpop.f32.mrf.mxu0 }
0x149d   : > { %v2300_v6 = vadd.f32 %v2284_v61, %v10286_v31  ;;  %v2288_v7 = vadd.f32 %v2284_v61, %v10288_v32  ;;  %v2318_v9 = vadd.f32 %v2284_v61, %v10290_v42  ;;  %v2306_v5 = vadd.f32 %v2284_v61, %v10292_v44 }
0x149e   : > { %v8360_v3 = vpop.f32.mrf.mxu0  ;;  %v2330_v8 = vadd.f32 %v2284_v61, %v10294_v62  ;;  %v2312_v13 = vadd.f32 %v2284_v61, %v10299_v1  ;;  %v2342_v21 = vadd.f32 %v2284_v61, %v10306_v15  ;;  %v2324_v22 = vadd.f32 %v2284_v61, %v10308_v17 }
0x149f   : > { %9100 = vtanh.f32 %v2300_v6  ;;  %v2336_v27 = vadd.f32 %v2284_v61, %v10312_v23  ;;  %v2348_v34 = vadd.f32 %v2284_v61, %v10315_v28 }
0x14a0   : > { %v10303_v10 = vpop.f32.mrf.mxu0  ;;  %9102 = vtanh.f32 %v2288_v7 }
0x14a1   : > { %9104 = vtanh.f32 %v2318_v9 }
0x14a2   : > { %v8386_v19 = vpop.f32.mrf.mxu0  ;;  %9106 = vtanh.f32 %v2306_v5 }
0x14a3   : > { %9108 = vtanh.f32 %v2330_v8 }
0x14a4   : > { %9110 = vtanh.f32 %v2312_v13 }
0x14a5   : > { %9112 = vtanh.f32 %v2342_v21 }
0x14a6   : > { %9114 = vtanh.f32 %v2324_v22 }
0x14a7   : > { %9116 = vtanh.f32 %v2336_v27 }
0x14a8   : > { %v2648_v24 = vpop.f32.mrf.mxu0  ;;  %9118 = vtanh.f32 %v2348_v34 }
0x14aa   : > { %v8397_v29 = vpop.f32.mrf.mxu0 }
0x14ac   : > { %v9101_v33 = vpop.eup %9100 }
0x14ad   : > { %v9103_v59 = vpop.eup %9102  ;;  %v2302_v41 = vmul.f32 %v9101_v33, %v10320_v30 }
0x14ae   : > { %v9105_v43 = vpop.eup %9104  ;;  %v2296_v51 = vmul.f32 %v9103_v59, %v10320_v30 }
0x14af   : > { %v9107_v45 = vpop.eup %9106  ;;  %v2303_v46 = vsel %vm768_vm0, %v2302_v41, 0.0  ;;  %v2320_v47 = vmul.f32 %v9105_v43, %v10320_v30  ;;  %v10346_v43 = vld [vmem:[%s11759_s19] ss:$0 sm:$0xff] }
0x14b0   : > { %v9109_v48 = vpop.eup %9108  ;;  %2304 = vadd.xlane.f32.xlu1 %v2303_v46  ;;  %v2297_v55 = vsel %vm768_vm0, %v2296_v51, 0.0  ;;  %v2308_v63 = vmul.f32 %v9107_v45, %v10320_v30  ;;  %11823 = vst [vmem:[#allocation15_spill] sm:$0xff] %v10346_v43  ;;  %v10349_v51 = vadd.f32 %v10346_v43, %v2648_v24  ;;  %v10356_v45 = vld [vmem:[%s11756_s16 + $0x38] sm:$0xff]  ;;  %v10361_v46 = vld [vmem:[%s11756_s16 + $0x30] sm:$0xff] }
0x14b1   : > { %v9111_v52 = vpop.eup %9110  ;;  %2298 = vadd.xlane.f32.xlu0 %v2297_v55  ;;  %v2321_v61 = vsel %vm768_vm0, %v2320_v47, 0.0  ;;  %v2332_v6 = vmul.f32 %v9109_v48, %v10320_v30  ;;  %8362 = vmatpush3.msra.mxu1 %v10356_v45  ;;  %v2692_v24 = vld [vmem:[%s11761_s21 + $0x38] sm:$0xff]  ;;  %v2691_v47 = vld [vmem:[%s11761_s21 + $0x30] sm:$0xff]  ;;  %v10374_v48 = vld [vmem:[%s11756_s16 + $0x28] sm:$0xff] }
0x14b2   : > { %v9113_v7 = vpop.eup %9112  ;;  %v2309_v9 = vsel %vm768_vm0, %v2308_v63, 0.0  ;;  %v2314_v2 = vmul.f32 %v9111_v52, %v10320_v30  ;;  %8363 = vmatprep.subr.mxu1 %v11774_v4  ;;  %8399 = vmatpush3.msra.mxu0 %v2692_v24  ;;  %v2690_v55 = vld [vmem:[%s11761_s21 + $0x28] sm:$0xff]  ;;  %v10385_v63 = vld [vmem:[%s11756_s16 + $0x20] sm:$0xff] }
0x14b3   : > { %v9115_v3 = vpop.eup %9114  ;;  %v2333_v5 = vsel %vm768_vm0, %v2332_v6, 0.0  ;;  %v2344_v8 = vmul.f32 %v9113_v7, %v10320_v30  ;;  %8364 = vmatpush3.msra.mxu1 %v10361_v46  ;;  %8400 = vmatprep.subr.mxu0 %v11774_v4  ;;  %v2689_v52 = vld [vmem:[%s11761_s21 + $0x20] sm:$0xff]  ;;  %v2688_v6 = vld [vmem:[%s11761_s21 + $0x18] sm:$0xff]  ;;  %v10407_v7 = vld [vmem:[%s11756_s16 + $0x10] sm:$0xff] }
0x14b4   : > { %2322 = vadd.xlane.f32.xlu1 %v2321_v61  ;;  %v2315_v13 = vsel %vm768_vm0, %v2314_v2, 0.0  ;;  %v2326_v19 = vmul.f32 %v9115_v3, %v10320_v30  ;;  %v9117_v21 = vpop.eup %9116  ;;  %8365 = vmatprep.subr.mxu1 %v11774_v4  ;;  %v10396_v61 = vld [vmem:[%s11756_s16 + $0x18] sm:$0xff]  ;;  %v10418_v2 = vld [vmem:[%s11756_s16 + $0x8] sm:$0xff] }
0x14b5   : > { %2310 = vadd.xlane.f32.xlu0 %v2309_v9  ;;  %v2345_v22 = vsel %vm768_vm0, %v2344_v8, 0.0  ;;  %v2338_v29 = vmul.f32 %v9117_v21, %v10320_v30  ;;  %v9119_v33 = vpop.eup %9118  ;;  %8401 = vmatpush3.msra.mxu0 %v2691_v47  ;;  %v2687_v9 = vld [vmem:[%s11761_s21 + $0x10] sm:$0xff]  ;;  %v2686_v3 = vld [vmem:[%s11761_s21 + $0x8] sm:$0xff]  ;;  %v2685_v8 = vld [vmem:[%s11761_s21] sm:$0xff] }
0x14b6   : > { %v2327_v27 = vsel %vm768_vm0, %v2326_v19, 0.0  ;;  %v2350_v59 = vmul.f32 %v9119_v33, %v10320_v30  ;;  %8366 = vmatpush3.msra.mxu1 %v10374_v48  ;;  %8402 = vmatprep.subr.mxu0 %v11774_v4 }
0x14b7   : > { %v2339_v34 = vsel %vm768_vm0, %v2338_v29, 0.0  ;;  %8367 = vmatprep.subr.mxu1 %v11774_v4  ;;  %8403 = vmatpush3.msra.mxu0 %v2690_v55 }
0x14b8   : > { %2334 = vadd.xlane.f32.xlu1 %v2333_v5  ;;  %v2351_v41 = vsel %vm768_vm0, %v2350_v59, 0.0  ;;  %8368 = vmatpush3.msra.mxu1 %v10385_v63  ;;  %v10429_v5 = vld [vmem:[%s11756_s16] sm:$0xff] }
0x14b9   : > { %2316 = vadd.xlane.f32.xlu0 %v2315_v13  ;;  %8404 = vmatprep.subr.mxu0 %v11774_v4 }
0x14ba   : > { %8369 = vmatprep.subr.mxu1 %v11774_v4  ;;  %8405 = vmatpush3.msra.mxu0 %v2689_v52 }
0x14bb   : > { %8370 = vmatpush3.msra.mxu1 %v10396_v61  ;;  %8406 = vmatprep.subr.mxu0 %v11774_v4 }
0x14bc   : > { %2346 = vadd.xlane.f32.xlu1 %v2345_v22  ;;  %8371 = vmatprep.subr.mxu1 %v11774_v4 }
0x14bd   : > { %2328 = vadd.xlane.f32.xlu0 %v2327_v27  ;;  %8407 = vmatpush3.msra.mxu0 %v2688_v6 }
0x14be   : > { %8372 = vmatpush3.msra.mxu1 %v10407_v7  ;;  %8408 = vmatprep.subr.mxu0 %v11774_v4 }
0x14bf   : > { %8373 = vmatprep.subr.mxu1 %v11774_v4  ;;  %8409 = vmatpush3.msra.mxu0 %v2687_v9 }
0x14c0   : > { %8374 = vmatpush3.msra.mxu1 %v10418_v2  ;;  %8410 = vmatprep.subr.mxu0 %v11774_v4 }
0x14c1   : > { %2340 = vadd.xlane.f32.xlu0 %v2339_v34  ;;  %8375 = vmatprep.subr.mxu1 %v11774_v4 }
0x14c2   : > { %8411 = vmatpush3.msra.mxu0 %v2686_v3  ;;  %8376 = vmatpush3.msra.mxu1 %v10429_v5 }
0x14c3   : > { %8412 = vmatprep.subr.mxu0 %v11774_v4  ;;  %8417 = vmatprep.subr.mxu1 %v11774_v4 }
0x14c4   : > { %8413 = vmatpush3.msra.mxu0 %v2685_v8 }
0x14c5   : > { %2352 = vadd.xlane.f32.xlu0 %v2351_v41 }
0x14cd   : > { %2660 = vrot.lane.b32.xlu1 %v10349_v51, %s9460_s30 }
0x1539   : > { %v2305_v13 = vpop.xlane.xlu1 %2304 }
0x153a   : > { %v2299_v19 = vpop.xlane.xlu0 %2298 }
0x153b   : > { %v2354_v22 = vmax.f32 %v2299_v19, %v2305_v13 }
0x153d   : > { %v2323_v27 = vpop.xlane.xlu1 %2322 }
0x153e   : > { %v2311_v21 = vpop.xlane.xlu0 %2310 }
0x153f   : > { %v2355_v29 = vmax.f32 %v2354_v22, %v2311_v21 }
0x1541   : > { %v2335_v41 = vpop.xlane.xlu1 %2334 }
0x1542   : > { %v2317_v33 = vpop.xlane.xlu0 %2316 }
0x1543   : > { %v2356_v34 = vmax.f32 %v2355_v29, %v2317_v33 }
0x1545   : > { %v2357_v59 = vmax.f32 %v2356_v34, %v2323_v27  ;;  %v2347_v9 = vpop.xlane.xlu1 %2346 }
0x1546   : > { %v2329_v24 = vpop.xlane.xlu0 %2328 }
0x1547   : > { %v2358_v47 = vmax.f32 %v2357_v59, %v2329_v24 }
0x1549   : > { %v2359_v55 = vmax.f32 %v2358_v47, %v2335_v41 }
0x154a   : > { %v2341_v52 = vpop.xlane.xlu0 %2340 }
0x154b   : > { %v2360_v6 = vmax.f32 %v2359_v55, %v2341_v52 }
0x154d   : > { %v2361_v3 = vmax.f32 %v2360_v6, %v2347_v9 }
0x154e   : > { %v2353_v8 = vpop.xlane.xlu0 %2352 }
0x154f   : > { %v2362_v26 = vmax.f32 %v2361_v3, %v2353_v8 }
0x1551   : > { %v2363_v4 = vsub.f32 %v2299_v19, %v2362_v26  ;;  %v2366_v43 = vsub.f32 %v2305_v13, %v2362_v26  ;;  %v2369_v30 = vsub.f32 %v2311_v21, %v2362_v26  ;;  %v2372_v15 = vsub.f32 %v2317_v33, %v2362_v26 }
0x1552   : > { %v2375_v29 = vsub.f32 %v2323_v27, %v2362_v26  ;;  %v2378_v34 = vsub.f32 %v2329_v24, %v2362_v26  ;;  %v2381_v47 = vsub.f32 %v2335_v41, %v2362_v26  ;;  %v2384_v6 = vsub.f32 %v2341_v52, %v2362_v26 }
0x1553   : > { %v2364_v28 = vmul.f32 1.442695, %v2363_v4  ;;  %v2367_v62 = vmul.f32 1.442695, %v2366_v43  ;;  %v2370_v22 = vmul.f32 1.442695, %v2369_v30  ;;  %v2387_v19 = vsub.f32 %v2347_v9, %v2362_v26 }
0x1554   : > { %v2373_v23 = vmul.f32 1.442695, %v2372_v15  ;;  %v2376_v59 = vmul.f32 1.442695, %v2375_v29  ;;  %v2379_v55 = vmul.f32 1.442695, %v2378_v34  ;;  %v2390_v21 = vsub.f32 %v2353_v8, %v2362_v26 }
0x1555   : > { %9120 = vpow2.f32 %v2364_v28  ;;  %v2382_v3 = vmul.f32 1.442695, %v2381_v47  ;;  %v2385_v13 = vmul.f32 1.442695, %v2384_v6  ;;  %v2388_v4 = vmul.f32 1.442695, %v2387_v19 }
0x1556   : > { %9122 = vpow2.f32 %v2367_v62  ;;  %v2391_v15 = vmul.f32 1.442695, %v2390_v21 }
0x1557   : > { %9124 = vpow2.f32 %v2370_v22 }
0x1558   : > { %9126 = vpow2.f32 %v2373_v23 }
0x1559   : > { %9128 = vpow2.f32 %v2376_v59 }
0x155a   : > { %9130 = vpow2.f32 %v2379_v55 }
0x155b   : > { %9132 = vpow2.f32 %v2382_v3 }
0x155c   : > { %9134 = vpow2.f32 %v2385_v13 }
0x155d   : > { %9136 = vpow2.f32 %v2388_v4 }
0x155e   : > { %9138 = vpow2.f32 %v2391_v15 }
0x1562   : > { %v9121_v30 = vpop.eup %9120 }
0x1563   : > { %v9123_v28 = vpop.eup %9122  ;;  %v2402_v62 = vmul.f32 %v9121_v30, %v10139_v25 }
0x1564   : > { %v9125_v43 = vpop.eup %9124  ;;  %v2393_v23 = vadd.f32 %v9123_v28, %v9121_v30  ;;  %v2403_v27 = vmul.f32 %v9123_v28, %v10143_v56 }
0x1565   : > { %v9127_v33 = vpop.eup %9126  ;;  %v2405_v52 = vmul.f32 %v9125_v43, %v10147_v57 }
0x1566   : > { %v2394_v41 = vadd.f32 %v9125_v43, %v2393_v23  ;;  %v2404_v24 = vadd.f32 %v2403_v27, %v2402_v62  ;;  %v2407_v8 = vmul.f32 %v9127_v33, %v10151_v11  ;;  %v9129_v22 = vpop.eup %9128 }
0x1567   : > { %v9131_v59 = vpop.eup %9130  ;;  %v2409_v55 = vmul.f32 %v9129_v22, %v10155_v12 }
0x1568   : > { %v2395_v26 = vadd.f32 %v9127_v33, %v2394_v41  ;;  %v2406_v9 = vadd.f32 %v2405_v52, %v2404_v24  ;;  %v9133_v6 = vpop.eup %9132  ;;  %v2411_v4 = vmul.f32 %v9131_v59, %v10159_v49 }
0x1569   : > { %v9135_v13 = vpop.eup %9134  ;;  %v2413_v23 = vmul.f32 %v9133_v6, %v10163_v58 }
0x156a   : > { %v2396_v29 = vadd.f32 %v9129_v22, %v2395_v26  ;;  %v2408_v34 = vadd.f32 %v2407_v8, %v2406_v9  ;;  %v9137_v30 = vpop.eup %9136  ;;  %v2415_v33 = vmul.f32 %v9135_v13, %v10167_v14 }
0x156b   : > { %v9139_v62 = vpop.eup %9138  ;;  %v2417_v24 = vmul.f32 %v9137_v30, %v10171_v16 }
0x156c   : > { %v2397_v47 = vadd.f32 %v9131_v59, %v2396_v29  ;;  %v2410_v19 = vadd.f32 %v2409_v55, %v2408_v34  ;;  %v2419_v26 = vmul.f32 %v9139_v62, %v10175_v18  ;;  %v11824_v29 = vmov 0.0   ;;  %v10457_v34 = vld [vmem:[%s11825_s1] ss:$0 sm:$0xff]  ;;  %s9462_s1 = smov 96  }
0x156d   : > { %2204 = vst [vmem:[%s10505_s4] sm:$0xff] %v11824_v29 }
0x156e   : > { %v2398_v3 = vadd.f32 %v9133_v6, %v2397_v47  ;;  %v2412_v28 = vadd.f32 %v2411_v4, %v2410_v19 }
0x1570   : > { %v2399_v21 = vadd.f32 %v9135_v13, %v2398_v3  ;;  %v2414_v27 = vadd.f32 %v2413_v23, %v2412_v28  ;;  %v2661_v28 = vpop.permute.xlu1 %2660 }
0x1572   : > { %v2400_v15 = vadd.f32 %v9137_v30, %v2399_v21  ;;  %v2416_v41 = vadd.f32 %v2415_v33, %v2414_v27  ;;  %v2682_v27 = vld [vmem:[%s11760_s20 + $0x8] sm:$0xff] }
0x1574   : > { %v2401_v43 = vadd.f32 %v9139_v62, %v2400_v15  ;;  %v2418_v52 = vadd.f32 %v2417_v24, %v2416_v41  ;;  %v2681_v41 = vld [vmem:[%s11760_s20] sm:$0xff] }
0x1576   : > { %9140 = vrcp.f32 %v2401_v43  ;;  %v2420_v9 = vadd.f32 %v2419_v26, %v2418_v52 }
0x1583   : > { %v9141_v8 = vpop.eup %9140 }
0x1584   : > { %v2422_v22 = vmul.f32 %v9141_v8, %v2420_v9 }
0x1586   : > { %8378 = vmatmul.mubr.msk.f32.vlgmr.msra.gmra.mxu1 %vm952_vm2, %v2422_v22  ;;  %8415 = vmatmul.mubr.msk.f32.vlgmr.msra.gmra.mxu0 %vm952_vm2, %v2422_v22 }
0x1587   : > { %8425 = vmatprep.mubr.msk.f32.mxu1 %vm9461_vm3, %v11824_v29 }
0x1646   : > { %v2492_v59 = vpop.f32.mrf.mxu1  ;;  %v2759_v47 = vpop.f32.mrf.mxu0 }
0x1647   : > { %v2566_v55 = vadd.f32 %v10303_v10, %v2492_v59  ;;  %v2684_v10 = vld [vmem:[%s11760_s20 + $0x18] sm:$0xff]  ;;  %v2839_v59 = vld [vmem:[%s11762_s22 + $0x8] sm:$0xff] }
0x1648   : > { %v8379_v6 = vpop.f32.mrf.mxu1  ;;  %v8416_v3 = vpop.f32.mrf.mxu0  ;;  %8418 = vmatpush3.msra.mxu1 %v2684_v10 }
0x1649   : > { %v2575_v19 = vadd.f32 %v10457_v34, %v2566_v55  ;;  %8419 = vmatprep.subr.mxu1 %v11824_v29 }
0x164b   : > { %v2652_v13 = vadd.f32 %v10349_v51, %v2575_v19  ;;  %v2683_v51 = vld [vmem:[%s11760_s20 + $0x10] sm:$0xff] }
0x164c   : > { %8420 = vmatpush3.msra.mxu1 %v2683_v51 }
0x164d   : > { %v7865_v21 = vmul.f32 -1.442695, %v2652_v13  ;;  %8421 = vmatprep.subr.mxu1 %v11824_v29 }
0x164e   : > { %8422 = vmatpush3.msra.mxu1 %v2682_v27 }
0x164f   : > { %9142 = vpow2.f32 %v7865_v21  ;;  %8423 = vmatprep.subr.mxu1 %v11824_v29  ;;  %v7869_v21 = vld [vmem:[%s11763_s23] ss:$0 sm:$0xff] }
0x1650   : > { %8424 = vmatpush3.msra.mxu1 %v2681_v41 }
0x1651   : > { %8428 = vmatprep.subr.mxu1 %v11824_v29 }
0x165c   : > { %v9143_v4 = vpop.eup %9142 }
0x165d   : > { %v2656_v30 = vadd.f32 1.0, %v9143_v4 }
0x165f   : > { %9144 = vrcp.f32 %v2656_v30 }
0x166c   : > { %v9145_v15 = vpop.eup %9144 }
0x166d   : > { %v2663_v62 = vmul.f32 %v9145_v15, %v2661_v28  ;;  %v2670_v52 = vsub.f32 1.0, %v9145_v15 }
0x166f   : > { %2665 = vrot.lane.b32.xlu0 %v2663_v62, %s9460_s30 }
0x16e1   : > { %v2666_v43 = vpop.permute.xlu0 %2665 }
0x16e2   : > { %v2668_v23 = vadd.f32 %v2666_v43, %v2575_v19 }
0x16e4   : > { %9146 = vtanh.f32 %v2668_v23 }
0x16f1   : > { %v9147_v33 = vpop.eup %9146 }
0x16f2   : > { %2672 = vrot.lane.b32.xlu1 %v9147_v33, %s9462_s1 }
0x16f6   : > { %2676 = vrot.lane.b32.xlu1 %v10230_v35, %s9463_s0  ;;  %v2838_v35 = vld [vmem:[%s11762_s22] sm:$0xff]  ;;  %s7870_s0 = sld [smem:[#allocation5 + $0x1]] }
0x16fc   : > { %p7871_p9 = scmp.ne.s32.totalorder %s7870_s0, 1 }
0x1764   : > { %v2673_v24 = vpop.permute.xlu1 %2672 }
0x1765   : > { %v2675_v9 = vmul.f32 %v2673_v24, %v2670_v52 }
0x1768   : > { %v2677_v26 = vpop.permute.xlu1 %2676 }
0x1769   : > { %v2679_v8 = vmul.f32 %v9145_v15, %v2677_v26 }
0x176b   : > { %v10481_v22 = vadd.f32 %v2679_v8, %v2675_v9 }
0x176d   : > { %2764 = vrot.lane.b32.xlu0 %v10481_v22, %s9462_s1 }
0x17df   : > { %v10488_v55 = vpop.permute.xlu0 %2764 }
0x17e0   : > { %8426 = vmatmul.mubr.msk.f32.vlgmr.msra.gmra.mxu1 %vm768_vm0, %v10488_v55 }
0x17e1   : > { %8429 = vmatpush3.msra.mxu1 %v2839_v59  ;;  %8432 = vmatprep.mubr.msk.f32.mxu1 %vm9461_vm3, %v11824_v29 }
0x17e2   : > { %8430 = vmatprep.subr.mxu1 %v11824_v29 }
0x17e3   : > { %8431 = vmatpush3.msra.mxu1 %v2838_v35 }
0x17e4   : > { %8433 = vmatmul.mubr.msk.f32.vlgmr.msra.gmra.mxu1 %vm2206_vm4, %v10239_v37 }
0x18a0   : > { %v2834_v6 = vpop.f32.mrf.mxu1 }
0x18a1   : > { %v2835_v19 = vadd.f32 %v2834_v6, %v2759_v47 }
0x18a2   : > { %v8427_v3 = vpop.f32.mrf.mxu1 }
0x18a4   : > { %v2906_v13 = vpop.f32.mrf.mxu1 }
0x18a5   : > { %v2910_v37 = vadd.f32 %v2906_v13, %v2835_v19  ;;  %2924 = sbr.rel (%p7871_p9) target bundleno = 6316 (0x18ac), region = 116 }
0x18a6   : > { %v8434_v4 = vpop.f32.mrf.mxu1 }
0x18a7   : > { %v2918_v30 = vadd.f32 %v7869_v21, %v2910_v37 }
0x18a9   : > { %2919 = vst [vmem:[%s10505_s4 + $0x8] sm:$0xff] %v2918_v30 }
0x18aa   : > { %v7872_v15 = vld [vmem:[%s10199_s5 + $0x8] sm:$0xff] }
0x18ab   : > { %2927 = vst.msk [vmem:[#allocation3] sm:$0xff] %vm2206_vm4, %v7872_v15 }
0x18ac PF: > { %p7873_p10 = scmp.ne.s32.totalorder %s7870_s0, 0 }
0x18ad   : > { %s11827_s28 = sld [smem:[#allocation20_spill]] (!%p7873_p10) }
0x18ae   : > { %2931 = sbr.rel (%p7873_p10) target bundleno = 6948 (0x1b24), region = 120 }
0x18b3   : > { %v2934_v29 = vsel %vm768_vm0, %v2918_v30, -inf  ;;  %v11826_v47 = vlaneseq  ;;  %v2960_v27 = vld [vmem:[%s11827_s28 + $0x18] sm:$0xff]  ;;  %v9464_v33 = vmov 0.0   ;;  %v2959_v9 = vld [vmem:[%s11827_s28 + $0x10] sm:$0xff]  ;;  %v2958_v8 = vld [vmem:[%s11827_s28 + $0x8] sm:$0xff]  ;;  %vm9465_vm7 = vmmov 0  }
0x18b4   : > { %2935 = vmax.xlane.f32.xlu0 %v2934_v29  ;;  %8435 = vmatprep.subr.mxu0 %v9464_v33  ;;  %v2957_v59 = vld [vmem:[%s11827_s28] sm:$0xff] }
0x18b5   : > { %v2933_v28 = vand.u32 127, %v11826_v47  ;;  %8436 = vmatpush3.msra.mxu0 %v2960_v27  ;;  %8443 = vmatprep.mubr.msk.f32.mxu0 %vm9465_vm7, %v9464_v33 }
0x18b6   : > { %8437 = vmatprep.subr.mxu0 %v9464_v33 }
0x18b7   : > { %8438 = vmatpush3.msra.mxu0 %v2959_v9 }
0x18b8   : > { %8439 = vmatprep.subr.mxu0 %v9464_v33 }
0x18b9   : > { %8440 = vmatpush3.msra.mxu0 %v2958_v8 }
0x18ba   : > { %8441 = vmatprep.subr.mxu0 %v9464_v33 }
0x18bb   : > { %8442 = vmatpush3.msra.mxu0 %v2957_v59 }
0x193d   : > { %v2936_v62 = vpop.xlane.xlu0 %2935 }
0x193e   : > { %vm2937_vm5 = vcmp.ge.f32.partialorder %v2918_v30, %v2936_v62 }
0x193f   : > { %v2938_v43 = vsel %vm2937_vm5, %v2933_v28, 32 }
0x1940   : > { %v2939_v23 = vsel %vm768_vm0, %v2938_v43, 2147483647 }
0x1941   : > { %v2941_v10 = vshra.s32 %v2939_v23, 16  ;;  %v2940_v41 = vand.u32 65535, %v2939_v23 }
0x1943   : > { %v2943_v51 = vcvt.s32.f32 %v2941_v10  ;;  %v2942_v52 = vcvt.s32.f32 %v2940_v41 }
0x1945   : > { %2944 = vmin.xlane.f32.xlu0 %v2943_v51 }
0x19ce   : > { %v2945_v24 = vpop.xlane.xlu0 %2944 }
0x19cf   : > { %vm2946_vm6 = vcmp.eq.f32.partialorder %v2943_v51, %v2945_v24  ;;  %v2951_v35 = vcvt.f32.s32 %v2945_v24 }
0x19d0   : > { %v2947_v26 = vsel %vm2946_vm6, %v2942_v52, inf }
0x19d1   : > { %2948 = vmin.xlane.f32.xlu1 %v2947_v26  ;;  %v2952_v3 = vshll.u32 %v2951_v35, 16 }
0x1a5a   : > { %v2949_v6 = vpop.xlane.xlu1 %2948 }
0x1a5b   : > { %v2950_v19 = vcvt.f32.s32 %v2949_v6 }
0x1a5d   : > { %v2953_v13 = vadd.s32 %v2952_v3, %v2950_v19 }
0x1a5f   : > { %vm2954_vm8 = vcmp.eq.s32.totalorder %v2933_v28, %v2953_v13 }
0x1a60   : > { %v7874_v21 = vsel %vm2954_vm8, 1.0, %v9464_v33 }
0x1a61   : > { %8444 = vmatmul.mubr.msk.f32.vlgmr.msra.gmra.mxu0 %vm768_vm0, %v7874_v21 }
0x1b21   : > { %v3030_v37 = vpop.f32.mrf.mxu0 }
0x1b22   : > { %3034 = vst.msk [vmem:[#allocation3] sm:$0xff] %vm2206_vm4, %v3030_v37 }
0x1b23   : > { %v8445_v4 = vpop.f32.mrf.mxu0 }
0x1b24 PF: > { %v11828_v30 = vmov 0.0   ;;  %s11829_s28 = sld [smem:[#allocation19_spill]]  ;;  %v11830_v33 = vld [vmem:[#allocation12_spill] sm:$0xff]  ;;  %v11831_v24 = vld [vmem:[#allocation9_spill] sm:$0xff]  ;;  %v11833_v8 = vld [vmem:[#allocation10_spill] sm:$0xff] }
0x1b25   : > { %8446 = vmatprep.subr.mxu0 %v11828_v30  ;;  %8454 = vmatprep.mubr.msk.f32.mxu0 %vm9461_vm3, %v11828_v30  ;;  %v11832_v26 = vld [vmem:[#allocation13_spill] sm:$0xff]  ;;  %v11834_v3 = vld [vmem:[#allocation14_spill] sm:$0xff]  ;;  %s7886_s25 = sld [smem:[#allocation5 + $0x2]] }
0x1b26   : > { %8447 = vmatpush3.msra.mxu0 %v10184_v20  ;;  %8457 = vmatprep.subr.mxu1 %v11828_v30 }
0x1b27   : > { %8448 = vmatprep.subr.mxu0 %v11828_v30  ;;  %8458 = vmatpush3.msra.mxu1 %v10356_v45 }
0x1b28   : > { %8449 = vmatpush3.msra.mxu0 %v10192_v0  ;;  %8459 = vmatprep.subr.mxu1 %v11828_v30 }
0x1b29   : > { %8450 = vmatprep.subr.mxu0 %v11828_v30  ;;  %8460 = vmatpush3.msra.mxu1 %v10361_v46  ;;  %v3035_v15 = vld [vmem:[#allocation3] sm:$0xff] }
0x1b2a   : > { %8451 = vmatpush3.msra.mxu0 %v10207_v50  ;;  %8461 = vmatprep.subr.mxu1 %v11828_v30  ;;  %v7876_v29 = vld [vmem:[%s11829_s28 + $0x2] ss:$0 sm:$0xff] }
0x1b2b   : > { %8452 = vmatprep.subr.mxu0 %v11828_v30  ;;  %8462 = vmatpush3.msra.mxu1 %v10374_v48  ;;  %v10573_v47 = vadd.f32 %v7876_v29, %v3035_v15  ;;  %p7887_p11 = scmp.ne.s32.totalorder %s7886_s25, 1 }
0x1b2c   : > { %8453 = vmatpush3.msra.mxu0 %v10215_v53  ;;  %8463 = vmatprep.subr.mxu1 %v11828_v30 }
0x1b2d   : > { %8455 = vmatmul.mubr.msk.f32.vlgmr.msra.gmra.mxu0 %vm768_vm0, %v10488_v55  ;;  %8476 = vmatprep.subr.mxu0 %v11828_v30 }
0x1b2e   : > { %8477 = vmatpush3.msra.mxu0 %v10228_v54  ;;  %8480 = vmatprep.mubr.msk.f32.mxu0 %vm9461_vm3, %v11828_v30 }
0x1b2f   : > { %8478 = vmatprep.subr.mxu0 %v11828_v30  ;;  %8464 = vmatpush3.msra.mxu1 %v10385_v63 }
0x1b30   : > { %8479 = vmatpush3.msra.mxu0 %v10237_v36  ;;  %8465 = vmatprep.subr.mxu1 %v11828_v30 }
0x1b31   : > { %8483 = vmatprep.subr.mxu0 %v11828_v30  ;;  %8466 = vmatpush3.msra.mxu1 %v10396_v61 }
0x1b32   : > { %8467 = vmatprep.subr.mxu1 %v11828_v30  ;;  %8473 = vmatprep.mubr.msk.f32.mxu1 %vm9461_vm3, %v11828_v30 }
0x1b33   : > { %8468 = vmatpush3.msra.mxu1 %v10407_v7  ;;  %8481 = vmatmul.mubr.msk.f32.vlgmr.msra.gmra.mxu0 %vm2206_vm4, %v10573_v47 }
0x1b34   : > { %8469 = vmatprep.subr.mxu1 %v11828_v30  ;;  %8484 = vmatpush3.msra.mxu0 %v10248_v38 }
0x1b35   : > { %8470 = vmatpush3.msra.mxu1 %v10418_v2  ;;  %8491 = vmatprep.mubr.msk.f32.mxu0 %vm9461_vm3, %v11828_v30 }
0x1b36   : > { %8471 = vmatprep.subr.mxu1 %v11828_v30  ;;  %8485 = vmatprep.subr.mxu0 %v11828_v30 }
0x1b37   : > { %8472 = vmatpush3.msra.mxu1 %v10429_v5  ;;  %8486 = vmatpush3.msra.mxu0 %v10257_v60 }
0x1b38   : > { %8494 = vmatprep.subr.mxu1 %v11828_v30  ;;  %8487 = vmatprep.subr.mxu0 %v11828_v30 }
0x1b39   : > { %8488 = vmatpush3.msra.mxu0 %v10266_v39 }
0x1b3a   : > { %8489 = vmatprep.subr.mxu0 %v11828_v30 }
0x1b3b   : > { %8490 = vmatpush3.msra.mxu0 %v10273_v40 }
0x1b3c   : > { %8492 = vmatmul.mubr.msk.f32.vlgmr.msra.gmra.mxu0 %vm768_vm0, %v10488_v55  ;;  %8513 = vmatprep.subr.mxu0 %v11828_v30 }
0x1b3d   : > { %8521 = vmatprep.mubr.msk.f32.mxu0 %vm9461_vm3, %v11828_v30 }
0x1bed   : > { %v3108_v28 = vpop.f32.mrf.mxu0 }
0x1bee   : > { %v3124_v62 = vadd.f32 %v3108_v28, %v10292_v44  ;;  %v3112_v43 = vadd.f32 %v3108_v28, %v10288_v32  ;;  %v3130_v23 = vadd.f32 %v3108_v28, %v10299_v1  ;;  %v3118_v51 = vadd.f32 %v3108_v28, %v10286_v31 }
0x1bef   : > { %v8456_v10 = vpop.f32.mrf.mxu0  ;;  %v3142_v27 = vadd.f32 %v3108_v28, %v10308_v17  ;;  %v3136_v55 = vadd.f32 %v3108_v28, %v10290_v42  ;;  %v3154_v41 = vadd.f32 %v3108_v28, %v11830_v33  ;;  %v3148_v52 = vadd.f32 %v3108_v28, %v11831_v24 }
0x1bf0   : > { %9148 = vtanh.f32 %v3124_v62  ;;  %v3166_v9 = vadd.f32 %v3108_v28, %v11832_v26  ;;  %v3160_v59 = vadd.f32 %v3108_v28, %v11833_v8 }
0x1bf1   : > { %9150 = vtanh.f32 %v3112_v43 }
0x1bf2   : > { %9152 = vtanh.f32 %v3130_v23 }
0x1bf3   : > { %9154 = vtanh.f32 %v3118_v51 }
0x1bf4   : > { %9156 = vtanh.f32 %v3142_v27 }
0x1bf5   : > { %9158 = vtanh.f32 %v3136_v55 }
0x1bf6   : > { %9160 = vtanh.f32 %v3154_v41 }
0x1bf7   : > { %9162 = vtanh.f32 %v3148_v52 }
0x1bf8   : > { %9164 = vtanh.f32 %v3166_v9 }
0x1bf9   : > { %9166 = vtanh.f32 %v3160_v59 }
0x1bfd   : > { %v9149_v35 = vpop.eup %9148 }
0x1bfe   : > { %v9151_v6 = vpop.eup %9150  ;;  %v3126_v19 = vmul.f32 %v9149_v35, %v11834_v3 }
0x1bff   : > { %v9153_v13 = vpop.eup %9152  ;;  %v3114_v21 = vmul.f32 %v9151_v6, %v11834_v3 }
0x1c00   : > { %v9155_v37 = vpop.eup %9154  ;;  %v3127_v4 = vsel %vm768_vm0, %v3126_v19, 0.0  ;;  %v3132_v15 = vmul.f32 %v9153_v13, %v11834_v3 }
0x1c01   : > { %v9157_v29 = vpop.eup %9156  ;;  %3128 = vadd.xlane.f32.xlu1 %v3127_v4  ;;  %v3115_v62 = vsel %vm768_vm0, %v3114_v21, 0.0  ;;  %v3120_v28 = vmul.f32 %v9155_v37, %v11834_v3  ;;  %v10621_v37 = vpop.f32.mrf.mxu0 }
0x1c02   : > { %v9159_v43 = vpop.eup %9158  ;;  %3116 = vadd.xlane.f32.xlu0 %v3115_v62  ;;  %v3133_v23 = vsel %vm768_vm0, %v3132_v15, 0.0  ;;  %v3144_v10 = vmul.f32 %v9157_v29, %v11834_v3  ;;  %v11835_v29 = vld [vmem:[#allocation15_spill] sm:$0xff] }
0x1c03   : > { %v9161_v51 = vpop.eup %9160  ;;  %v3121_v27 = vsel %vm768_vm0, %v3120_v28, 0.0  ;;  %v3138_v55 = vmul.f32 %v9159_v43, %v11834_v3  ;;  %v8482_v4 = vpop.f32.mrf.mxu0 }
0x1c04   : > { %v9163_v33 = vpop.eup %9162  ;;  %v3145_v41 = vsel %vm768_vm0, %v3144_v10, 0.0  ;;  %v3156_v24 = vmul.f32 %v9161_v51, %v11834_v3 }
0x1c05   : > { %3134 = vadd.xlane.f32.xlu1 %v3133_v23  ;;  %v9165_v52 = vpop.eup %9164  ;;  %v3139_v26 = vsel %vm768_vm0, %v3138_v55, 0.0  ;;  %v3150_v9 = vmul.f32 %v9163_v33, %v11834_v3  ;;  %v3454_v15 = vpop.f32.mrf.mxu0 }
0x1c06   : > { %3122 = vadd.xlane.f32.xlu0 %v3121_v27  ;;  %v9167_v8 = vpop.eup %9166  ;;  %v3157_v59 = vsel %vm768_vm0, %v3156_v24, 0.0  ;;  %v3168_v35 = vmul.f32 %v9165_v52, %v11834_v3  ;;  %v10624_v62 = vadd.f32 %v11835_v29, %v3454_v15 }
0x1c07   : > { %v3151_v6 = vsel %vm768_vm0, %v3150_v9, 0.0  ;;  %v3162_v19 = vmul.f32 %v9167_v8, %v11834_v3  ;;  %v8493_v28 = vpop.f32.mrf.mxu0 }
0x1c08   : > { %v3169_v13 = vsel %vm768_vm0, %v3168_v35, 0.0 }
0x1c09   : > { %3146 = vadd.xlane.f32.xlu1 %v3145_v41  ;;  %v3163_v21 = vsel %vm768_vm0, %v3162_v19, 0.0 }
0x1c0a   : > { %3140 = vadd.xlane.f32.xlu0 %v3139_v26 }
0x1c0d   : > { %3158 = vadd.xlane.f32.xlu1 %v3157_v59 }
0x1c0e   : > { %3152 = vadd.xlane.f32.xlu0 %v3151_v6 }
0x1c11   : > { %3170 = vadd.xlane.f32.xlu1 %v3169_v13 }
0x1c12   : > { %3164 = vadd.xlane.f32.xlu0 %v3163_v21 }
0x1c28   : > { %3466 = vrot.lane.b32.xlu0 %v10624_v62, %s9460_s30 }
0x1c8a   : > { %v3129_v43 = vpop.xlane.xlu1 %3128 }
0x1c8b   : > { %v3117_v3 = vpop.xlane.xlu0 %3116 }
0x1c8e   : > { %v3135_v23 = vpop.xlane.xlu1 %3134 }
0x1c8f   : > { %v3123_v10 = vpop.xlane.xlu0 %3122 }
0x1c90   : > { %v3172_v51 = vmax.f32 %v3117_v3, %v3123_v10 }
0x1c92   : > { %v3173_v27 = vmax.f32 %v3172_v51, %v3129_v43  ;;  %v3147_v55 = vpop.xlane.xlu1 %3146 }
0x1c93   : > { %v3141_v33 = vpop.xlane.xlu0 %3140 }
0x1c94   : > { %v3174_v41 = vmax.f32 %v3173_v27, %v3135_v23 }
0x1c96   : > { %v3175_v24 = vmax.f32 %v3174_v41, %v3141_v33  ;;  %v3159_v9 = vpop.xlane.xlu1 %3158 }
0x1c97   : > { %v3153_v52 = vpop.xlane.xlu0 %3152 }
0x1c98   : > { %v3176_v26 = vmax.f32 %v3175_v24, %v3147_v55 }
0x1c9a   : > { %v3177_v8 = vmax.f32 %v3176_v26, %v3153_v52  ;;  %v3171_v19 = vpop.xlane.xlu1 %3170 }
0x1c9b   : > { %v3165_v35 = vpop.xlane.xlu0 %3164 }
0x1c9c   : > { %v3178_v59 = vmax.f32 %v3177_v8, %v3159_v9 }
0x1c9e   : > { %v3179_v6 = vmax.f32 %v3178_v59, %v3165_v35 }
0x1ca0   : > { %v3180_v13 = vmax.f32 %v3179_v6, %v3171_v19 }
0x1ca2   : > { %v3181_v21 = vsub.f32 %v3117_v3, %v3180_v13  ;;  %v3184_v4 = vsub.f32 %v3123_v10, %v3180_v13  ;;  %v3187_v15 = vsub.f32 %v3129_v43, %v3180_v13  ;;  %v3190_v29 = vsub.f32 %v3135_v23, %v3180_v13 }
0x1ca3   : > { %v3193_v31 = vsub.f32 %v3141_v33, %v3180_v13  ;;  %v3196_v27 = vsub.f32 %v3147_v55, %v3180_v13  ;;  %v3199_v24 = vsub.f32 %v3153_v52, %v3180_v13  ;;  %v3202_v8 = vsub.f32 %v3159_v9, %v3180_v13 }
0x1ca4   : > { %v3182_v28 = vmul.f32 1.442695, %v3181_v21  ;;  %v3185_v42 = vmul.f32 1.442695, %v3184_v4  ;;  %v3188_v51 = vmul.f32 1.442695, %v3187_v15  ;;  %v3205_v3 = vsub.f32 %v3165_v35, %v3180_v13 }
0x1ca5   : > { %v3191_v17 = vmul.f32 1.442695, %v3190_v29  ;;  %v3194_v41 = vmul.f32 1.442695, %v3193_v31  ;;  %v3197_v26 = vmul.f32 1.442695, %v3196_v27  ;;  %v3208_v23 = vsub.f32 %v3171_v19, %v3180_v13 }
0x1ca6   : > { %9168 = vpow2.f32 %v3182_v28  ;;  %v3200_v59 = vmul.f32 1.442695, %v3199_v24  ;;  %v3203_v43 = vmul.f32 1.442695, %v3202_v8  ;;  %v3206_v10 = vmul.f32 1.442695, %v3205_v3 }
0x1ca7   : > { %9170 = vpow2.f32 %v3185_v42  ;;  %v3209_v33 = vmul.f32 1.442695, %v3208_v23 }
0x1ca8   : > { %9172 = vpow2.f32 %v3188_v51 }
0x1ca9   : > { %9174 = vpow2.f32 %v3191_v17 }
0x1caa   : > { %9176 = vpow2.f32 %v3194_v41 }
0x1cab   : > { %9178 = vpow2.f32 %v3197_v26 }
0x1cac   : > { %9180 = vpow2.f32 %v3200_v59 }
0x1cad   : > { %9182 = vpow2.f32 %v3203_v43 }
0x1cae   : > { %9184 = vpow2.f32 %v3206_v10 }
0x1caf   : > { %9186 = vpow2.f32 %v3209_v33 }
0x1cb3   : > { %v9169_v6 = vpop.eup %9168 }
0x1cb4   : > { %v9171_v21 = vpop.eup %9170  ;;  %v3220_v42 = vmul.f32 %v9169_v6, %v10139_v25 }
0x1cb5   : > { %v9173_v55 = vpop.eup %9172  ;;  %v3211_v31 = vadd.f32 %v9171_v21, %v9169_v6  ;;  %v3221_v17 = vmul.f32 %v9171_v21, %v10143_v56 }
0x1cb6   : > { %v9175_v52 = vpop.eup %9174  ;;  %v3223_v4 = vmul.f32 %v9173_v55, %v10147_v57 }
0x1cb7   : > { %v3212_v9 = vadd.f32 %v9173_v55, %v3211_v31  ;;  %v3222_v35 = vadd.f32 %v3221_v17, %v3220_v42  ;;  %v3225_v15 = vmul.f32 %v9175_v52, %v10151_v11  ;;  %v9177_v29 = vpop.eup %9176 }
0x1cb8   : > { %v9179_v27 = vpop.eup %9178  ;;  %v3227_v24 = vmul.f32 %v9177_v29, %v10155_v12 }
0x1cb9   : > { %v3213_v19 = vadd.f32 %v9175_v52, %v3212_v9  ;;  %v3224_v13 = vadd.f32 %v3223_v4, %v3222_v35  ;;  %v9181_v26 = vpop.eup %9180  ;;  %v3229_v23 = vmul.f32 %v9179_v27, %v10159_v49 }
0x1cba   : > { %v9183_v3 = vpop.eup %9182  ;;  %v3231_v55 = vmul.f32 %v9181_v26, %v10163_v58 }
0x1cbb   : > { %v3214_v28 = vadd.f32 %v9177_v29, %v3213_v19  ;;  %v3226_v51 = vadd.f32 %v3225_v15, %v3224_v13  ;;  %v9185_v10 = vpop.eup %9184  ;;  %v3233_v17 = vmul.f32 %v9183_v3, %v10167_v14  ;;  %v3495_v29 = vld [vmem:[%s11761_s21 + $0x38] sm:$0xff] }
0x1cbc   : > { %v9187_v21 = vpop.eup %9186  ;;  %v3235_v9 = vmul.f32 %v9185_v10, %v10171_v16 }
0x1cbd   : > { %v3215_v41 = vadd.f32 %v9179_v27, %v3214_v28  ;;  %v3228_v59 = vadd.f32 %v3227_v24, %v3226_v51  ;;  %v3237_v4 = vmul.f32 %v9187_v21, %v10175_v18  ;;  %v3494_v28 = vld [vmem:[%s11761_s21 + $0x30] sm:$0xff]  ;;  %v3493_v51 = vld [vmem:[%s11761_s21 + $0x28] sm:$0xff]  ;;  %v3492_v27 = vld [vmem:[%s11761_s21 + $0x20] sm:$0xff] }
0x1cbe   : > { %v3490_v24 = vld [vmem:[%s11761_s21 + $0x10] sm:$0xff] }
0x1cbf   : > { %v3216_v8 = vadd.f32 %v9181_v26, %v3215_v41  ;;  %v3230_v33 = vadd.f32 %v3229_v23, %v3228_v59  ;;  %v3491_v41 = vld [vmem:[%s11761_s21 + $0x18] sm:$0xff]  ;;  %v3489_v26 = vld [vmem:[%s11761_s21 + $0x8] sm:$0xff] }
0x1cc1   : > { %v3217_v43 = vadd.f32 %v9183_v3, %v3216_v8  ;;  %v3232_v31 = vadd.f32 %v3231_v55, %v3230_v33  ;;  %v3488_v8 = vld [vmem:[%s11761_s21] sm:$0xff] }
0x1cc3   : > { %v3218_v6 = vadd.f32 %v9185_v10, %v3217_v43  ;;  %v3234_v52 = vadd.f32 %v3233_v17, %v3232_v31  ;;  %v3467_v31 = vpop.permute.xlu0 %3466 }
0x1cc5   : > { %v3219_v42 = vadd.f32 %v9187_v21, %v3218_v6  ;;  %v3236_v35 = vadd.f32 %v3235_v9, %v3234_v52 }
0x1cc7   : > { %9188 = vrcp.f32 %v3219_v42  ;;  %v3238_v19 = vadd.f32 %v3237_v4, %v3236_v35  ;;  %v3485_v4 = vld [vmem:[%s11760_s20 + $0x8] sm:$0xff] }
0x1cd4   : > { %v9189_v13 = vpop.eup %9188 }
0x1cd5   : > { %v3240_v15 = vmul.f32 %v9189_v13, %v3238_v19  ;;  %v3484_v19 = vld [vmem:[%s11760_s20] sm:$0xff] }
0x1cd7   : > { %8474 = vmatmul.mubr.msk.f32.vlgmr.msra.gmra.mxu1 %vm952_vm2, %v3240_v15 }
0x1cd8   : > { %8495 = vmatpush3.msra.mxu1 %v3495_v29  ;;  %8510 = vmatprep.mubr.msk.f32.mxu1 %vm9461_vm3, %v11828_v30 }
0x1cd9   : > { %8496 = vmatprep.subr.mxu1 %v11828_v30 }
0x1cda   : > { %8497 = vmatpush3.msra.mxu1 %v3494_v28 }
0x1cdb   : > { %8498 = vmatprep.subr.mxu1 %v11828_v30 }
0x1cdc   : > { %8499 = vmatpush3.msra.mxu1 %v3493_v51 }
0x1cdd   : > { %8500 = vmatprep.subr.mxu1 %v11828_v30 }
0x1cde   : > { %8501 = vmatpush3.msra.mxu1 %v3492_v27 }
0x1cdf   : > { %8502 = vmatprep.subr.mxu1 %v11828_v30 }
0x1ce0   : > { %8503 = vmatpush3.msra.mxu1 %v3491_v41  ;;  %v3642_v41 = vld [vmem:[%s11762_s22 + $0x8] sm:$0xff] }
0x1ce1   : > { %8504 = vmatprep.subr.mxu1 %v11828_v30 }
0x1ce2   : > { %8505 = vmatpush3.msra.mxu1 %v3490_v24 }
0x1ce3   : > { %8506 = vmatprep.subr.mxu1 %v11828_v30 }
0x1ce4   : > { %8507 = vmatpush3.msra.mxu1 %v3489_v26  ;;  %v3641_v26 = vld [vmem:[%s11762_s22] sm:$0xff] }
0x1ce5   : > { %8508 = vmatprep.subr.mxu1 %v11828_v30 }
0x1ce6   : > { %8509 = vmatpush3.msra.mxu1 %v3488_v8 }
0x1ce7   : > { %8511 = vmatmul.mubr.msk.f32.vlgmr.msra.gmra.mxu1 %vm952_vm2, %v3240_v15 }
0x1d97   : > { %v3310_v59 = vpop.f32.mrf.mxu1 }
0x1d98   : > { %v3384_v3 = vadd.f32 %v10621_v37, %v3310_v59  ;;  %v3487_v37 = vld [vmem:[%s11760_s20 + $0x18] sm:$0xff] }
0x1d99   : > { %v8475_v43 = vpop.f32.mrf.mxu1  ;;  %8514 = vmatpush3.msra.mxu0 %v3487_v37 }
0x1d9a   : > { %v3387_v23 = vadd.f32 %v10457_v34, %v3384_v3  ;;  %8515 = vmatprep.subr.mxu0 %v11828_v30  ;;  %v7885_v43 = vld [vmem:[%s11763_s23] ss:$0 sm:$0xff] }
0x1d9c   : > { %v3458_v10 = vadd.f32 %v10624_v62, %v3387_v23  ;;  %v3486_v62 = vld [vmem:[%s11760_s20 + $0x10] sm:$0xff] }
0x1d9d   : > { %8516 = vmatpush3.msra.mxu0 %v3486_v62 }
0x1d9e   : > { %v7881_v6 = vmul.f32 -1.442695, %v3458_v10  ;;  %8517 = vmatprep.subr.mxu0 %v11828_v30 }
0x1d9f   : > { %8518 = vmatpush3.msra.mxu0 %v3485_v4 }
0x1da0   : > { %9190 = vpow2.f32 %v7881_v6  ;;  %8519 = vmatprep.subr.mxu0 %v11828_v30 }
0x1da1   : > { %8520 = vmatpush3.msra.mxu0 %v3484_v19 }
0x1da2   : > { %8524 = vmatprep.subr.mxu0 %v11828_v30 }
0x1da7   : > { %v3562_v33 = vpop.f32.mrf.mxu1 }
0x1da9   : > { %v8512_v21 = vpop.f32.mrf.mxu1 }
0x1dad   : > { %v9191_v42 = vpop.eup %9190 }
0x1dae   : > { %v3462_v55 = vadd.f32 1.0, %v9191_v42 }
0x1db0   : > { %9192 = vrcp.f32 %v3462_v55 }
0x1dbd   : > { %v9193_v17 = vpop.eup %9192 }
0x1dbe   : > { %v3469_v52 = vmul.f32 %v9193_v17, %v3467_v31  ;;  %v3476_v15 = vsub.f32 1.0, %v9193_v17  ;;  %v3482_v51 = vmul.f32 %v9193_v17, %v10481_v22 }
0x1dc0   : > { %3471 = vrot.lane.b32.xlu1 %v3469_v52, %s9460_s30 }
0x1e32   : > { %v3472_v9 = vpop.permute.xlu1 %3471 }
0x1e33   : > { %v3474_v35 = vadd.f32 %v3472_v9, %v3387_v23 }
0x1e35   : > { %9194 = vtanh.f32 %v3474_v35 }
0x1e42   : > { %v9195_v13 = vpop.eup %9194 }
0x1e43   : > { %3478 = vrot.lane.b32.xlu1 %v9195_v13, %s9462_s1 }
0x1eb5   : > { %v3479_v29 = vpop.permute.xlu1 %3478 }
0x1eb6   : > { %v3481_v28 = vmul.f32 %v3479_v29, %v3476_v15 }
0x1eb8   : > { %v10695_v27 = vadd.f32 %v3482_v51, %v3481_v28 }
0x1eba   : > { %3567 = vrot.lane.b32.xlu1 %v10695_v27, %s9462_s1 }
0x1f2c   : > { %v10702_v24 = vpop.permute.xlu1 %3567 }
0x1f2d   : > { %8522 = vmatmul.mubr.msk.f32.vlgmr.msra.gmra.mxu0 %vm768_vm0, %v10702_v24 }
0x1f2e   : > { %8525 = vmatpush3.msra.mxu0 %v3642_v41  ;;  %8528 = vmatprep.mubr.msk.f32.mxu0 %vm9461_vm3, %v11828_v30 }
0x1f2f   : > { %8526 = vmatprep.subr.mxu0 %v11828_v30 }
0x1f30   : > { %8527 = vmatpush3.msra.mxu0 %v3641_v26 }
0x1f31   : > { %8529 = vmatmul.mubr.msk.f32.vlgmr.msra.gmra.mxu0 %vm2206_vm4, %v10573_v47 }
0x1fed   : > { %v3637_v22 = vpop.f32.mrf.mxu0 }
0x1fee   : > { %v3638_v59 = vadd.f32 %v3637_v22, %v3562_v33 }
0x1fef   : > { %v8523_v8 = vpop.f32.mrf.mxu0 }
0x1ff1   : > { %v3709_v3 = vpop.f32.mrf.mxu0 }
0x1ff2   : > { %v3713_v23 = vadd.f32 %v3709_v3, %v3638_v59  ;;  %3727 = sbr.rel (%p7887_p11) target bundleno = 8185 (0x1ff9), region = 124 }
0x1ff3   : > { %v8530_v10 = vpop.f32.mrf.mxu0 }
0x1ff4   : > { %v3721_v6 = vadd.f32 %v7885_v43, %v3713_v23 }
0x1ff6   : > { %3722 = vst [vmem:[%s10505_s4 + $0x10] sm:$0xff] %v3721_v6 }
0x1ff7   : > { %v7888_v30 = vld [vmem:[%s10199_s5 + $0x10] sm:$0xff] }
0x1ff8   : > { %3730 = vst.msk [vmem:[#allocation3] sm:$0xff] %vm2206_vm4, %v7888_v30 }
0x1ff9 PF: > { %p7889_p12 = scmp.ne.s32.totalorder %s7886_s25, 0 }
0x1ffa   : > { %s11837_s29 = sld [smem:[#allocation20_spill]] (!%p7889_p12) }
0x1ffb   : > { %3734 = sbr.rel (%p7889_p12) target bundleno = 8817 (0x2271), region = 128 }
0x2000   : > { %v3737_v47 = vsel %vm768_vm0, %v3721_v6, -inf  ;;  %v11836_v33 = vlaneseq  ;;  %v3763_v9 = vld [vmem:[%s11837_s29 + $0x18] sm:$0xff]  ;;  %v9466_v35 = vmov 0.0   ;;  %v3762_v13 = vld [vmem:[%s11837_s29 + $0x10] sm:$0xff]  ;;  %v3761_v15 = vld [vmem:[%s11837_s29 + $0x8] sm:$0xff]  ;;  %vm9467_vm11 = vmmov 0  }
0x2001   : > { %3738 = vmax.xlane.f32.xlu0 %v3737_v47  ;;  %8531 = vmatprep.subr.mxu0 %v9466_v35  ;;  %v3760_v29 = vld [vmem:[%s11837_s29] sm:$0xff] }
0x2002   : > { %v3736_v21 = vand.u32 127, %v11836_v33  ;;  %8532 = vmatpush3.msra.mxu0 %v3763_v9  ;;  %8539 = vmatprep.mubr.msk.f32.mxu0 %vm9467_vm11, %v9466_v35 }
0x2003   : > { %8533 = vmatprep.subr.mxu0 %v9466_v35 }
0x2004   : > { %8534 = vmatpush3.msra.mxu0 %v3762_v13 }
0x2005   : > { %8535 = vmatprep.subr.mxu0 %v9466_v35 }
0x2006   : > { %8536 = vmatpush3.msra.mxu0 %v3761_v15 }
0x2007   : > { %8537 = vmatprep.subr.mxu0 %v9466_v35 }
0x2008   : > { %8538 = vmatpush3.msra.mxu0 %v3760_v29 }
0x208a   : > { %v3739_v42 = vpop.xlane.xlu0 %3738 }
0x208b   : > { %vm3740_vm9 = vcmp.ge.f32.partialorder %v3721_v6, %v3739_v42 }
0x208c   : > { %v3741_v55 = vsel %vm3740_vm9, %v3736_v21, 32 }
0x208d   : > { %v3742_v31 = vsel %vm768_vm0, %v3741_v55, 2147483647 }
0x208e   : > { %v3744_v17 = vshra.s32 %v3742_v31, 16  ;;  %v3743_v37 = vand.u32 65535, %v3742_v31 }
0x2090   : > { %v3746_v52 = vcvt.s32.f32 %v3744_v17  ;;  %v3745_v4 = vcvt.s32.f32 %v3743_v37 }
0x2092   : > { %3747 = vmin.xlane.f32.xlu0 %v3746_v52 }
0x211b   : > { %v3748_v62 = vpop.xlane.xlu0 %3747 }
0x211c   : > { %vm3749_vm10 = vcmp.eq.f32.partialorder %v3746_v52, %v3748_v62  ;;  %v3754_v28 = vcvt.f32.s32 %v3748_v62 }
0x211d   : > { %v3750_v19 = vsel %vm3749_vm10, %v3745_v4, inf }
0x211e   : > { %3751 = vmin.xlane.f32.xlu1 %v3750_v19  ;;  %v3755_v41 = vshll.u32 %v3754_v28, 16 }
0x21a7   : > { %v3752_v51 = vpop.xlane.xlu1 %3751 }
0x21a8   : > { %v3753_v26 = vcvt.f32.s32 %v3752_v51 }
0x21aa   : > { %v3756_v22 = vadd.s32 %v3755_v41, %v3753_v26 }
0x21ac   : > { %vm3757_vm12 = vcmp.eq.s32.totalorder %v3736_v21, %v3756_v22 }
0x21ad   : > { %v7890_v8 = vsel %vm3757_vm12, 1.0, %v9466_v35 }
0x21ae   : > { %8540 = vmatmul.mubr.msk.f32.vlgmr.msra.gmra.mxu0 %vm768_vm0, %v7890_v8 }
0x226e   : > { %v3833_v59 = vpop.f32.mrf.mxu0 }
0x226f   : > { %3837 = vst.msk [vmem:[#allocation3] sm:$0xff] %vm2206_vm4, %v3833_v59 }
0x2270   : > { %v8541_v3 = vpop.f32.mrf.mxu0 }
0x2271 PF: > { %v11838_v43 = vmov 0.0   ;;  %s11839_s29 = sld [smem:[#allocation19_spill]]  ;;  %v11840_v55 = vld [vmem:[#allocation7_spill] sm:$0xff]  ;;  %v11843_v35 = vld [vmem:[#allocation12_spill] sm:$0xff]  ;;  %v11844_v62 = vld [vmem:[#allocation9_spill] sm:$0xff] }
0x2272   : > { %8542 = vmatprep.subr.mxu0 %v11838_v43  ;;  %8550 = vmatprep.mubr.msk.f32.mxu0 %vm9461_vm3, %v11838_v43  ;;  %v11841_v17 = vld [vmem:[#allocation11_spill] sm:$0xff]  ;;  %v11845_v19 = vld [vmem:[#allocation13_spill] sm:$0xff]  ;;  %v11846_v15 = vld [vmem:[#allocation10_spill] sm:$0xff]  ;;  %s7902_s28 = sld [smem:[#allocation5 + $0x3]] }
0x2273   : > { %8543 = vmatpush3.msra.mxu0 %v10184_v20  ;;  %8553 = vmatprep.subr.mxu1 %v11838_v43  ;;  %v11847_v41 = vld [vmem:[#allocation14_spill] sm:$0xff] }
0x2274   : > { %8544 = vmatprep.subr.mxu0 %v11838_v43  ;;  %8554 = vmatpush3.msra.mxu1 %v10356_v45 }
0x2275   : > { %8545 = vmatpush3.msra.mxu0 %v10192_v0  ;;  %8555 = vmatprep.subr.mxu1 %v11838_v43 }
0x2276   : > { %8546 = vmatprep.subr.mxu0 %v11838_v43  ;;  %8556 = vmatpush3.msra.mxu1 %v10361_v46  ;;  %v3838_v23 = vld [vmem:[#allocation3] sm:$0xff] }
0x2277   : > { %8547 = vmatpush3.msra.mxu0 %v10207_v50  ;;  %8557 = vmatprep.subr.mxu1 %v11838_v43  ;;  %v7892_v10 = vld [vmem:[%s11839_s29 + $0x3] ss:$0 sm:$0xff] }
0x2278   : > { %8548 = vmatprep.subr.mxu0 %v11838_v43  ;;  %8558 = vmatpush3.msra.mxu1 %v10374_v48  ;;  %v10778_v6 = vadd.f32 %v7892_v10, %v3838_v23  ;;  %p7903_p13 = scmp.ne.s32.totalorder %s7902_s28, 1 }
0x2279   : > { %8549 = vmatpush3.msra.mxu0 %v10215_v53  ;;  %8559 = vmatprep.subr.mxu1 %v11838_v43 }
0x227a   : > { %8551 = vmatmul.mubr.msk.f32.vlgmr.msra.gmra.mxu0 %vm768_vm0, %v10702_v24  ;;  %8572 = vmatprep.subr.mxu0 %v11838_v43 }
0x227b   : > { %8573 = vmatpush3.msra.mxu0 %v10228_v54  ;;  %8576 = vmatprep.mubr.msk.f32.mxu0 %vm9461_vm3, %v11838_v43 }
0x227c   : > { %8574 = vmatprep.subr.mxu0 %v11838_v43  ;;  %8560 = vmatpush3.msra.mxu1 %v10385_v63 }
0x227d   : > { %8575 = vmatpush3.msra.mxu0 %v10237_v36  ;;  %8561 = vmatprep.subr.mxu1 %v11838_v43 }
0x227e   : > { %8579 = vmatprep.subr.mxu0 %v11838_v43  ;;  %8562 = vmatpush3.msra.mxu1 %v10396_v61 }
0x227f   : > { %8563 = vmatprep.subr.mxu1 %v11838_v43  ;;  %8569 = vmatprep.mubr.msk.f32.mxu1 %vm9461_vm3, %v11838_v43 }
0x2280   : > { %8564 = vmatpush3.msra.mxu1 %v10407_v7  ;;  %8577 = vmatmul.mubr.msk.f32.vlgmr.msra.gmra.mxu0 %vm2206_vm4, %v10778_v6 }
0x2281   : > { %8565 = vmatprep.subr.mxu1 %v11838_v43  ;;  %8580 = vmatpush3.msra.mxu0 %v10248_v38 }
0x2282   : > { %8566 = vmatpush3.msra.mxu1 %v10418_v2  ;;  %8587 = vmatprep.mubr.msk.f32.mxu0 %vm9461_vm3, %v11838_v43 }
0x2283   : > { %8567 = vmatprep.subr.mxu1 %v11838_v43  ;;  %8581 = vmatprep.subr.mxu0 %v11838_v43 }
0x2284   : > { %8568 = vmatpush3.msra.mxu1 %v10429_v5  ;;  %8582 = vmatpush3.msra.mxu0 %v10257_v60 }
0x2285   : > { %8590 = vmatprep.subr.mxu1 %v11838_v43  ;;  %8583 = vmatprep.subr.mxu0 %v11838_v43 }
0x2286   : > { %8584 = vmatpush3.msra.mxu0 %v10266_v39 }
0x2287   : > { %8585 = vmatprep.subr.mxu0 %v11838_v43 }
0x2288   : > { %8586 = vmatpush3.msra.mxu0 %v10273_v40 }
0x2289   : > { %8588 = vmatmul.mubr.msk.f32.vlgmr.msra.gmra.mxu0 %vm768_vm0, %v10702_v24  ;;  %8609 = vmatprep.subr.mxu0 %v11838_v43  ;;  %v11842_v24 = vld [vmem:[#allocation8_spill] sm:$0xff] }
0x228a   : > { %8617 = vmatprep.mubr.msk.f32.mxu0 %vm9461_vm3, %v11838_v43 }
0x233a   : > { %v3911_v30 = vpop.f32.mrf.mxu0 }
0x233b   : > { %v3927_v47 = vadd.f32 %v3911_v30, %v10292_v44  ;;  %v3915_v33 = vadd.f32 %v3911_v30, %v10288_v32  ;;  %v3933_v21 = vadd.f32 %v3911_v30, %v10299_v1  ;;  %v3921_v31 = vadd.f32 %v3911_v30, %v11840_v55 }
0x233c   : > { %v8552_v42 = vpop.f32.mrf.mxu0  ;;  %v3945_v52 = vadd.f32 %v3911_v30, %v11841_v17  ;;  %v3939_v9 = vadd.f32 %v3911_v30, %v11842_v24  ;;  %v3957_v37 = vadd.f32 %v3911_v30, %v11843_v35  ;;  %v3951_v4 = vadd.f32 %v3911_v30, %v11844_v62 }
0x233d   : > { %9196 = vtanh.f32 %v3927_v47  ;;  %v3969_v13 = vadd.f32 %v3911_v30, %v11845_v19  ;;  %v3963_v29 = vadd.f32 %v3911_v30, %v11846_v15 }
0x233e   : > { %9198 = vtanh.f32 %v3915_v33 }
0x233f   : > { %9200 = vtanh.f32 %v3933_v21 }
0x2340   : > { %9202 = vtanh.f32 %v3921_v31 }
0x2341   : > { %9204 = vtanh.f32 %v3945_v52 }
0x2342   : > { %9206 = vtanh.f32 %v3939_v9 }
0x2343   : > { %9208 = vtanh.f32 %v3957_v37 }
0x2344   : > { %9210 = vtanh.f32 %v3951_v4 }
0x2345   : > { %9212 = vtanh.f32 %v3969_v13 }
0x2346   : > { %9214 = vtanh.f32 %v3963_v29 }
0x234a   : > { %v9197_v28 = vpop.eup %9196 }
0x234b   : > { %v9199_v51 = vpop.eup %9198  ;;  %v3929_v26 = vmul.f32 %v9197_v28, %v11847_v41 }
0x234c   : > { %v9201_v22 = vpop.eup %9200  ;;  %v3917_v8 = vmul.f32 %v9199_v51, %v11847_v41 }
0x234d   : > { %v9203_v59 = vpop.eup %9202  ;;  %v3930_v3 = vsel %vm768_vm0, %v3929_v26, 0.0  ;;  %v3935_v23 = vmul.f32 %v9201_v22, %v11847_v41  ;;  %v10826_v26 = vpop.f32.mrf.mxu0 }
0x234e   : > { %v9205_v10 = vpop.eup %9204  ;;  %3931 = vadd.xlane.f32.xlu1 %v3930_v3  ;;  %v3918_v47 = vsel %vm768_vm0, %v3917_v8, 0.0  ;;  %v3923_v30 = vmul.f32 %v9203_v59, %v11847_v41  ;;  %v11848_v59 = vld [vmem:[#allocation15_spill] sm:$0xff] }
0x234f   : > { %v9207_v33 = vpop.eup %9206  ;;  %3919 = vadd.xlane.f32.xlu0 %v3918_v47  ;;  %v3936_v21 = vsel %vm768_vm0, %v3935_v23, 0.0  ;;  %v3947_v42 = vmul.f32 %v9205_v10, %v11847_v41  ;;  %v8578_v22 = vpop.f32.mrf.mxu0 }
0x2350   : > { %v9209_v55 = vpop.eup %9208  ;;  %v3924_v31 = vsel %vm768_vm0, %v3923_v30, 0.0  ;;  %v3941_v17 = vmul.f32 %v9207_v33, %v11847_v41 }
0x2351   : > { %v9211_v52 = vpop.eup %9210  ;;  %v3948_v24 = vsel %vm768_vm0, %v3947_v42, 0.0  ;;  %v3959_v9 = vmul.f32 %v9209_v55, %v11847_v41  ;;  %v4257_v8 = vpop.f32.mrf.mxu0 }
0x2352   : > { %3937 = vadd.xlane.f32.xlu1 %v3936_v21  ;;  %v9213_v35 = vpop.eup %9212  ;;  %v3942_v37 = vsel %vm768_vm0, %v3941_v17, 0.0  ;;  %v3953_v62 = vmul.f32 %v9211_v52, %v11847_v41  ;;  %v10829_v3 = vadd.f32 %v11848_v59, %v4257_v8 }
0x2353   : > { %3925 = vadd.xlane.f32.xlu0 %v3924_v31  ;;  %v9215_v4 = vpop.eup %9214  ;;  %v3960_v19 = vsel %vm768_vm0, %v3959_v9, 0.0  ;;  %v3971_v13 = vmul.f32 %v9213_v35, %v11847_v41  ;;  %v8589_v23 = vpop.f32.mrf.mxu0 }
0x2354   : > { %v3954_v15 = vsel %vm768_vm0, %v3953_v62, 0.0  ;;  %v3965_v29 = vmul.f32 %v9215_v4, %v11847_v41 }
0x2355   : > { %v3972_v28 = vsel %vm768_vm0, %v3971_v13, 0.0 }
0x2356   : > { %3949 = vadd.xlane.f32.xlu1 %v3948_v24  ;;  %v3966_v51 = vsel %vm768_vm0, %v3965_v29, 0.0 }
0x2357   : > { %3943 = vadd.xlane.f32.xlu0 %v3942_v37 }
0x235a   : > { %3961 = vadd.xlane.f32.xlu1 %v3960_v19 }
0x235b   : > { %3955 = vadd.xlane.f32.xlu0 %v3954_v15 }
0x235e   : > { %3973 = vadd.xlane.f32.xlu1 %v3972_v28 }
0x235f   : > { %3967 = vadd.xlane.f32.xlu0 %v3966_v51 }
0x2375   : > { %4269 = vrot.lane.b32.xlu0 %v10829_v3, %s9460_s30 }
0x23d7   : > { %v3932_v10 = vpop.xlane.xlu1 %3931 }
0x23d8   : > { %v3920_v41 = vpop.xlane.xlu0 %3919 }
0x23db   : > { %v3938_v47 = vpop.xlane.xlu1 %3937 }
0x23dc   : > { %v3926_v30 = vpop.xlane.xlu0 %3925 }
0x23dd   : > { %v3975_v33 = vmax.f32 %v3920_v41, %v3926_v30 }
0x23df   : > { %v3976_v21 = vmax.f32 %v3975_v33, %v3932_v10  ;;  %v3950_v42 = vpop.xlane.xlu1 %3949 }
0x23e0   : > { %v3944_v55 = vpop.xlane.xlu0 %3943 }
0x23e1   : > { %v3977_v31 = vmax.f32 %v3976_v21, %v3938_v47 }
0x23e3   : > { %v3978_v17 = vmax.f32 %v3977_v31, %v3944_v55  ;;  %v3962_v9 = vpop.xlane.xlu1 %3961 }
0x23e4   : > { %v3956_v52 = vpop.xlane.xlu0 %3955 }
0x23e5   : > { %v3979_v24 = vmax.f32 %v3978_v17, %v3950_v42 }
0x23e7   : > { %v3980_v35 = vmax.f32 %v3979_v24, %v3956_v52  ;;  %v3974_v19 = vpop.xlane.xlu1 %3973 }
0x23e8   : > { %v3968_v62 = vpop.xlane.xlu0 %3967 }
0x23e9   : > { %v3981_v37 = vmax.f32 %v3980_v35, %v3962_v9 }
0x23eb   : > { %v3982_v4 = vmax.f32 %v3981_v37, %v3968_v62 }
0x23ed   : > { %v3983_v13 = vmax.f32 %v3982_v4, %v3974_v19 }
0x23ef   : > { %v3984_v15 = vsub.f32 %v3920_v41, %v3983_v13  ;;  %v3987_v29 = vsub.f32 %v3926_v30, %v3983_v13  ;;  %v3990_v28 = vsub.f32 %v3932_v10, %v3983_v13  ;;  %v3993_v51 = vsub.f32 %v3938_v47, %v3983_v13 }
0x23f0   : > { %v3996_v33 = vsub.f32 %v3944_v55, %v3983_v13  ;;  %v3999_v21 = vsub.f32 %v3950_v42, %v3983_v13  ;;  %v4002_v17 = vsub.f32 %v3956_v52, %v3983_v13  ;;  %v4005_v35 = vsub.f32 %v3962_v9, %v3983_v13 }
0x23f1   : > { %v3985_v22 = vmul.f32 1.442695, %v3984_v15  ;;  %v3988_v8 = vmul.f32 1.442695, %v3987_v29  ;;  %v3991_v59 = vmul.f32 1.442695, %v3990_v28  ;;  %v4008_v41 = vsub.f32 %v3968_v62, %v3983_v13 }
0x23f2   : > { %v3994_v23 = vmul.f32 1.442695, %v3993_v51  ;;  %v3997_v31 = vmul.f32 1.442695, %v3996_v33  ;;  %v4000_v24 = vmul.f32 1.442695, %v3999_v21  ;;  %v4011_v47 = vsub.f32 %v3974_v19, %v3983_v13 }
0x23f3   : > { %9216 = vpow2.f32 %v3985_v22  ;;  %v4003_v37 = vmul.f32 1.442695, %v4002_v17  ;;  %v4006_v10 = vmul.f32 1.442695, %v4005_v35  ;;  %v4009_v30 = vmul.f32 1.442695, %v4008_v41 }
0x23f4   : > { %9218 = vpow2.f32 %v3988_v8  ;;  %v4012_v55 = vmul.f32 1.442695, %v4011_v47 }
0x23f5   : > { %9220 = vpow2.f32 %v3991_v59 }
0x23f6   : > { %9222 = vpow2.f32 %v3994_v23 }
0x23f7   : > { %9224 = vpow2.f32 %v3997_v31 }
0x23f8   : > { %9226 = vpow2.f32 %v4000_v24 }
0x23f9   : > { %9228 = vpow2.f32 %v4003_v37 }
0x23fa   : > { %9230 = vpow2.f32 %v4006_v10 }
0x23fb   : > { %9232 = vpow2.f32 %v4009_v30 }
0x23fc   : > { %9234 = vpow2.f32 %v4012_v55 }
0x2400   : > { %v9217_v4 = vpop.eup %9216 }
0x2401   : > { %v9219_v15 = vpop.eup %9218  ;;  %v4023_v42 = vmul.f32 %v9217_v4, %v10139_v25 }
0x2402   : > { %v9221_v29 = vpop.eup %9220  ;;  %v4014_v28 = vadd.f32 %v9219_v15, %v9217_v4  ;;  %v4024_v52 = vmul.f32 %v9219_v15, %v10143_v56 }
0x2403   : > { %v9223_v9 = vpop.eup %9222  ;;  %v4026_v22 = vmul.f32 %v9221_v29, %v10147_v57 }
0x2404   : > { %v4015_v51 = vadd.f32 %v9221_v29, %v4014_v28  ;;  %v4025_v62 = vadd.f32 %v4024_v52, %v4023_v42  ;;  %v4028_v8 = vmul.f32 %v9223_v9, %v10151_v11  ;;  %v9225_v59 = vpop.eup %9224 }
0x2405   : > { %v9227_v21 = vpop.eup %9226  ;;  %v4030_v17 = vmul.f32 %v9225_v59, %v10155_v12 }
0x2406   : > { %v4016_v19 = vadd.f32 %v9223_v9, %v4015_v51  ;;  %v4027_v13 = vadd.f32 %v4026_v22, %v4025_v62  ;;  %v9229_v24 = vpop.eup %9228  ;;  %v4032_v47 = vmul.f32 %v9227_v21, %v10159_v49 }
0x2407   : > { %v9231_v41 = vpop.eup %9230  ;;  %v4034_v29 = vmul.f32 %v9229_v24, %v10163_v58 }
0x2408   : > { %v4017_v23 = vadd.f32 %v9225_v59, %v4016_v19  ;;  %v4029_v33 = vadd.f32 %v4028_v8, %v4027_v13  ;;  %v9233_v30 = vpop.eup %9232  ;;  %v4036_v52 = vmul.f32 %v9231_v41, %v10167_v14  ;;  %v4298_v59 = vld [vmem:[%s11761_s21 + $0x38] sm:$0xff] }
0x2409   : > { %v9235_v15 = vpop.eup %9234  ;;  %v4038_v51 = vmul.f32 %v9233_v30, %v10171_v16 }
0x240a   : > { %v4018_v31 = vadd.f32 %v9227_v21, %v4017_v23  ;;  %v4031_v37 = vadd.f32 %v4030_v17, %v4029_v33  ;;  %v4040_v22 = vmul.f32 %v9235_v15, %v10175_v18  ;;  %v4297_v23 = vld [vmem:[%s11761_s21 + $0x30] sm:$0xff]  ;;  %v4296_v33 = vld [vmem:[%s11761_s21 + $0x28] sm:$0xff]  ;;  %v4295_v21 = vld [vmem:[%s11761_s21 + $0x20] sm:$0xff] }
0x240b   : > { %v4293_v17 = vld [vmem:[%s11761_s21 + $0x10] sm:$0xff] }
0x240c   : > { %v4019_v35 = vadd.f32 %v9229_v24, %v4018_v31  ;;  %v4033_v55 = vadd.f32 %v4032_v47, %v4031_v37  ;;  %v4294_v31 = vld [vmem:[%s11761_s21 + $0x18] sm:$0xff]  ;;  %v4292_v24 = vld [vmem:[%s11761_s21 + $0x8] sm:$0xff] }
0x240e   : > { %v4020_v10 = vadd.f32 %v9231_v41, %v4019_v35  ;;  %v4035_v28 = vadd.f32 %v4034_v29, %v4033_v55  ;;  %v4291_v35 = vld [vmem:[%s11761_s21] sm:$0xff] }
0x2410   : > { %v4021_v4 = vadd.f32 %v9233_v30, %v4020_v10  ;;  %v4037_v9 = vadd.f32 %v4036_v52, %v4035_v28  ;;  %v4270_v28 = vpop.permute.xlu0 %4269 }
0x2412   : > { %v4022_v42 = vadd.f32 %v9235_v15, %v4021_v4  ;;  %v4039_v62 = vadd.f32 %v4038_v51, %v4037_v9 }
0x2414   : > { %9236 = vrcp.f32 %v4022_v42  ;;  %v4041_v19 = vadd.f32 %v4040_v22, %v4039_v62  ;;  %v4288_v22 = vld [vmem:[%s11760_s20 + $0x8] sm:$0xff] }
0x2421   : > { %v9237_v13 = vpop.eup %9236 }
0x2422   : > { %v4043_v8 = vmul.f32 %v9237_v13, %v4041_v19  ;;  %v4287_v19 = vld [vmem:[%s11760_s20] sm:$0xff] }
0x2424   : > { %8570 = vmatmul.mubr.msk.f32.vlgmr.msra.gmra.mxu1 %vm952_vm2, %v4043_v8 }
0x2425   : > { %8591 = vmatpush3.msra.mxu1 %v4298_v59  ;;  %8606 = vmatprep.mubr.msk.f32.mxu1 %vm9461_vm3, %v11838_v43 }
0x2426   : > { %8592 = vmatprep.subr.mxu1 %v11838_v43 }
0x2427   : > { %8593 = vmatpush3.msra.mxu1 %v4297_v23 }
0x2428   : > { %8594 = vmatprep.subr.mxu1 %v11838_v43 }
0x2429   : > { %8595 = vmatpush3.msra.mxu1 %v4296_v33 }
0x242a   : > { %8596 = vmatprep.subr.mxu1 %v11838_v43 }
0x242b   : > { %8597 = vmatpush3.msra.mxu1 %v4295_v21 }
0x242c   : > { %8598 = vmatprep.subr.mxu1 %v11838_v43 }
0x242d   : > { %8599 = vmatpush3.msra.mxu1 %v4294_v31  ;;  %v4445_v31 = vld [vmem:[%s11762_s22 + $0x8] sm:$0xff] }
0x242e   : > { %8600 = vmatprep.subr.mxu1 %v11838_v43 }
0x242f   : > { %8601 = vmatpush3.msra.mxu1 %v4293_v17 }
0x2430   : > { %8602 = vmatprep.subr.mxu1 %v11838_v43 }
0x2431   : > { %8603 = vmatpush3.msra.mxu1 %v4292_v24  ;;  %v4444_v24 = vld [vmem:[%s11762_s22] sm:$0xff] }
0x2432   : > { %8604 = vmatprep.subr.mxu1 %v11838_v43 }
0x2433   : > { %8605 = vmatpush3.msra.mxu1 %v4291_v35 }
0x2434   : > { %8607 = vmatmul.mubr.msk.f32.vlgmr.msra.gmra.mxu1 %vm952_vm2, %v4043_v8 }
0x24e4   : > { %v4113_v37 = vpop.f32.mrf.mxu1 }
0x24e5   : > { %v4187_v41 = vadd.f32 %v10826_v26, %v4113_v37  ;;  %v4290_v26 = vld [vmem:[%s11760_s20 + $0x18] sm:$0xff] }
0x24e6   : > { %v8571_v10 = vpop.f32.mrf.mxu1  ;;  %8610 = vmatpush3.msra.mxu0 %v4290_v26 }
0x24e7   : > { %v4190_v47 = vadd.f32 %v10457_v34, %v4187_v41  ;;  %8611 = vmatprep.subr.mxu0 %v11838_v43  ;;  %v7901_v10 = vld [vmem:[%s11763_s23] ss:$0 sm:$0xff] }
0x24e9   : > { %v4261_v30 = vadd.f32 %v10829_v3, %v4190_v47  ;;  %v4289_v3 = vld [vmem:[%s11760_s20 + $0x10] sm:$0xff] }
0x24ea   : > { %8612 = vmatpush3.msra.mxu0 %v4289_v3 }
0x24eb   : > { %v7897_v4 = vmul.f32 -1.442695, %v4261_v30  ;;  %8613 = vmatprep.subr.mxu0 %v11838_v43 }
0x24ec   : > { %8614 = vmatpush3.msra.mxu0 %v4288_v22 }
0x24ed   : > { %9238 = vpow2.f32 %v7897_v4  ;;  %8615 = vmatprep.subr.mxu0 %v11838_v43 }
0x24ee   : > { %8616 = vmatpush3.msra.mxu0 %v4287_v19 }
0x24ef   : > { %8620 = vmatprep.subr.mxu0 %v11838_v43 }
0x24f4   : > { %v4365_v55 = vpop.f32.mrf.mxu1 }
0x24f6   : > { %v8608_v15 = vpop.f32.mrf.mxu1 }
0x24fa   : > { %v9239_v42 = vpop.eup %9238 }
0x24fb   : > { %v4265_v29 = vadd.f32 1.0, %v9239_v42 }
0x24fd   : > { %9240 = vrcp.f32 %v4265_v29 }
0x250a   : > { %v9241_v52 = vpop.eup %9240 }
0x250b   : > { %v4272_v9 = vmul.f32 %v9241_v52, %v4270_v28  ;;  %v4279_v8 = vsub.f32 1.0, %v9241_v52  ;;  %v4285_v33 = vmul.f32 %v9241_v52, %v10695_v27 }
0x250d   : > { %4274 = vrot.lane.b32.xlu1 %v4272_v9, %s9460_s30 }
0x257f   : > { %v4275_v51 = vpop.permute.xlu1 %4274 }
0x2580   : > { %v4277_v62 = vadd.f32 %v4275_v51, %v4190_v47 }
0x2582   : > { %9242 = vtanh.f32 %v4277_v62 }
0x258f   : > { %v9243_v13 = vpop.eup %9242 }
0x2590   : > { %4281 = vrot.lane.b32.xlu1 %v9243_v13, %s9462_s1 }
0x2602   : > { %v4282_v59 = vpop.permute.xlu1 %4281 }
0x2603   : > { %v4284_v23 = vmul.f32 %v4282_v59, %v4279_v8 }
0x2605   : > { %v10900_v21 = vadd.f32 %v4285_v33, %v4284_v23 }
0x2607   : > { %4370 = vrot.lane.b32.xlu1 %v10900_v21, %s9462_s1 }
0x2679   : > { %v10907_v17 = vpop.permute.xlu1 %4370 }
0x267a   : > { %8618 = vmatmul.mubr.msk.f32.vlgmr.msra.gmra.mxu0 %vm768_vm0, %v10907_v17 }
0x267b   : > { %8621 = vmatpush3.msra.mxu0 %v4445_v31  ;;  %8624 = vmatprep.mubr.msk.f32.mxu0 %vm9461_vm3, %v11838_v43 }
0x267c   : > { %8622 = vmatprep.subr.mxu0 %v11838_v43 }
0x267d   : > { %8623 = vmatpush3.msra.mxu0 %v4444_v24 }
0x267e   : > { %8625 = vmatmul.mubr.msk.f32.vlgmr.msra.gmra.mxu0 %vm2206_vm4, %v10778_v6 }
0x273a   : > { %v4440_v27 = vpop.f32.mrf.mxu0 }
0x273b   : > { %v4441_v37 = vadd.f32 %v4440_v27, %v4365_v55 }
0x273c   : > { %v8619_v35 = vpop.f32.mrf.mxu0 }
0x273e   : > { %v4512_v41 = vpop.f32.mrf.mxu0 }
0x273f   : > { %v4516_v47 = vadd.f32 %v4512_v41, %v4441_v37  ;;  %4530 = sbr.rel (%p7903_p13) target bundleno = 10054 (0x2746), region = 132 }
0x2740   : > { %v8626_v30 = vpop.f32.mrf.mxu0 }
0x2741   : > { %v4524_v4 = vadd.f32 %v7901_v10, %v4516_v47 }
0x2743   : > { %4525 = vst [vmem:[%s10505_s4 + $0x18] sm:$0xff] %v4524_v4 }
0x2744   : > { %v7904_v43 = vld [vmem:[%s10199_s5 + $0x18] sm:$0xff] }
0x2745   : > { %4533 = vst.msk [vmem:[#allocation3] sm:$0xff] %vm2206_vm4, %v7904_v43 }
0x2746 PF: > { %p7905_p0 = scmp.ne.s32.totalorder %s7902_s28, 0 }
0x2747   : > { %s11850_s26 = sld [smem:[#allocation20_spill]] (!%p7905_p0) }
0x2748   : > { %4537 = sbr.rel (%p7905_p0) target bundleno = 10686 (0x29be), region = 136 }
0x274d   : > { %v4540_v6 = vsel %vm768_vm0, %v4524_v4, -inf  ;;  %v11849_v55 = vlaneseq  ;;  %v4566_v51 = vld [vmem:[%s11850_s26 + $0x18] sm:$0xff]  ;;  %v9468_v62 = vmov 0.0   ;;  %v4565_v13 = vld [vmem:[%s11850_s26 + $0x10] sm:$0xff]  ;;  %v4564_v8 = vld [vmem:[%s11850_s26 + $0x8] sm:$0xff]  ;;  %vm9469_vm15 = vmmov 0  }
0x274e   : > { %4541 = vmax.xlane.f32.xlu0 %v4540_v6  ;;  %8627 = vmatprep.subr.mxu0 %v9468_v62  ;;  %v4563_v59 = vld [vmem:[%s11850_s26] sm:$0xff] }
0x274f   : > { %v4539_v15 = vand.u32 127, %v11849_v55  ;;  %8628 = vmatpush3.msra.mxu0 %v4566_v51  ;;  %8635 = vmatprep.mubr.msk.f32.mxu0 %vm9469_vm15, %v9468_v62 }
0x2750   : > { %8629 = vmatprep.subr.mxu0 %v9468_v62 }
0x2751   : > { %8630 = vmatpush3.msra.mxu0 %v4565_v13 }
0x2752   : > { %8631 = vmatprep.subr.mxu0 %v9468_v62 }
0x2753   : > { %8632 = vmatpush3.msra.mxu0 %v4564_v8 }
0x2754   : > { %8633 = vmatprep.subr.mxu0 %v9468_v62 }
0x2755   : > { %8634 = vmatpush3.msra.mxu0 %v4563_v59 }
0x27d7   : > { %v4542_v42 = vpop.xlane.xlu0 %4541 }
0x27d8   : > { %vm4543_vm13 = vcmp.ge.f32.partialorder %v4524_v4, %v4542_v42 }
0x27d9   : > { %v4544_v29 = vsel %vm4543_vm13, %v4539_v15, 32 }
0x27da   : > { %v4545_v28 = vsel %vm768_vm0, %v4544_v29, 2147483647 }
0x27db   : > { %v4547_v52 = vshra.s32 %v4545_v28, 16  ;;  %v4546_v26 = vand.u32 65535, %v4545_v28 }
0x27dd   : > { %v4549_v9 = vcvt.s32.f32 %v4547_v52  ;;  %v4548_v22 = vcvt.s32.f32 %v4546_v26 }
0x27df   : > { %4550 = vmin.xlane.f32.xlu0 %v4549_v9 }
0x2868   : > { %v4551_v3 = vpop.xlane.xlu0 %4550 }
0x2869   : > { %vm4552_vm14 = vcmp.eq.f32.partialorder %v4549_v9, %v4551_v3  ;;  %v4557_v23 = vcvt.f32.s32 %v4551_v3 }
0x286a   : > { %v4553_v19 = vsel %vm4552_vm14, %v4548_v22, inf }
0x286b   : > { %4554 = vmin.xlane.f32.xlu1 %v4553_v19  ;;  %v4558_v31 = vshll.u32 %v4557_v23, 16 }
0x28f4   : > { %v4555_v33 = vpop.xlane.xlu1 %4554 }
0x28f5   : > { %v4556_v24 = vcvt.f32.s32 %v4555_v33 }
0x28f7   : > { %v4559_v27 = vadd.s32 %v4558_v31, %v4556_v24 }
0x28f9   : > { %vm4560_vm1 = vcmp.eq.s32.totalorder %v4539_v15, %v4559_v27 }
0x28fa   : > { %v7906_v35 = vsel %vm4560_vm1, 1.0, %v9468_v62 }
0x28fb   : > { %8636 = vmatmul.mubr.msk.f32.vlgmr.msra.gmra.mxu0 %vm768_vm0, %v7906_v35 }
0x29bb   : > { %v4636_v37 = vpop.f32.mrf.mxu0 }
0x29bc   : > { %4640 = vst.msk [vmem:[#allocation3] sm:$0xff] %vm2206_vm4, %v4636_v37 }
0x29bd   : > { %v8637_v41 = vpop.f32.mrf.mxu0 }
0x29be PF: > { %v11851_v10 = vmov 0.0   ;;  %s11852_s26 = sld [smem:[#allocation19_spill]]  ;;  %v11853_v29 = vld [vmem:[#allocation7_spill] sm:$0xff]  ;;  %v11856_v62 = vld [vmem:[#allocation12_spill] sm:$0xff]  ;;  %v11857_v3 = vld [vmem:[#allocation9_spill] sm:$0xff] }
0x29bf   : > { %8638 = vmatprep.subr.mxu0 %v11851_v10  ;;  %8646 = vmatprep.mubr.msk.f32.mxu0 %vm9461_vm3, %v11851_v10  ;;  %v11854_v52 = vld [vmem:[#allocation11_spill] sm:$0xff]  ;;  %v11858_v19 = vld [vmem:[#allocation13_spill] sm:$0xff]  ;;  %v11859_v8 = vld [vmem:[#allocation10_spill] sm:$0xff]  ;;  %s7918_s29 = sld [smem:[#allocation5 + $0x4]] }
0x29c0   : > { %8639 = vmatpush3.msra.mxu0 %v10184_v20  ;;  %8649 = vmatprep.subr.mxu1 %v11851_v10  ;;  %v11860_v31 = vld [vmem:[#allocation14_spill] sm:$0xff] }
0x29c1   : > { %8640 = vmatprep.subr.mxu0 %v11851_v10  ;;  %8650 = vmatpush3.msra.mxu1 %v10356_v45 }
0x29c2   : > { %8641 = vmatpush3.msra.mxu0 %v10192_v0  ;;  %8651 = vmatprep.subr.mxu1 %v11851_v10 }
0x29c3   : > { %8642 = vmatprep.subr.mxu0 %v11851_v10  ;;  %8652 = vmatpush3.msra.mxu1 %v10361_v46  ;;  %v4641_v47 = vld [vmem:[#allocation3] sm:$0xff] }
0x29c4   : > { %8643 = vmatpush3.msra.mxu0 %v10207_v50  ;;  %8653 = vmatprep.subr.mxu1 %v11851_v10  ;;  %v7908_v30 = vld [vmem:[%s11852_s26 + $0x4] ss:$0 sm:$0xff] }
0x29c5   : > { %8644 = vmatprep.subr.mxu0 %v11851_v10  ;;  %8654 = vmatpush3.msra.mxu1 %v10374_v48  ;;  %v10983_v4 = vadd.f32 %v7908_v30, %v4641_v47  ;;  %p7919_p1 = scmp.ne.s32.totalorder %s7918_s29, 1 }
0x29c6   : > { %8645 = vmatpush3.msra.mxu0 %v10215_v53  ;;  %8655 = vmatprep.subr.mxu1 %v11851_v10 }
0x29c7   : > { %8647 = vmatmul.mubr.msk.f32.vlgmr.msra.gmra.mxu0 %vm768_vm0, %v10907_v17  ;;  %8668 = vmatprep.subr.mxu0 %v11851_v10 }
0x29c8   : > { %8669 = vmatpush3.msra.mxu0 %v10228_v54  ;;  %8672 = vmatprep.mubr.msk.f32.mxu0 %vm9461_vm3, %v11851_v10 }
0x29c9   : > { %8670 = vmatprep.subr.mxu0 %v11851_v10  ;;  %8656 = vmatpush3.msra.mxu1 %v10385_v63 }
0x29ca   : > { %8671 = vmatpush3.msra.mxu0 %v10237_v36  ;;  %8657 = vmatprep.subr.mxu1 %v11851_v10 }
0x29cb   : > { %8675 = vmatprep.subr.mxu0 %v11851_v10  ;;  %8658 = vmatpush3.msra.mxu1 %v10396_v61 }
0x29cc   : > { %8659 = vmatprep.subr.mxu1 %v11851_v10  ;;  %8665 = vmatprep.mubr.msk.f32.mxu1 %vm9461_vm3, %v11851_v10 }
0x29cd   : > { %8660 = vmatpush3.msra.mxu1 %v10407_v7  ;;  %8673 = vmatmul.mubr.msk.f32.vlgmr.msra.gmra.mxu0 %vm2206_vm4, %v10983_v4 }
0x29ce   : > { %8661 = vmatprep.subr.mxu1 %v11851_v10  ;;  %8676 = vmatpush3.msra.mxu0 %v10248_v38 }
0x29cf   : > { %8662 = vmatpush3.msra.mxu1 %v10418_v2  ;;  %8683 = vmatprep.mubr.msk.f32.mxu0 %vm9461_vm3, %v11851_v10 }
0x29d0   : > { %8663 = vmatprep.subr.mxu1 %v11851_v10  ;;  %8677 = vmatprep.subr.mxu0 %v11851_v10 }
0x29d1   : > { %8664 = vmatpush3.msra.mxu1 %v10429_v5  ;;  %8678 = vmatpush3.msra.mxu0 %v10257_v60 }
0x29d2   : > { %8686 = vmatprep.subr.mxu1 %v11851_v10  ;;  %8679 = vmatprep.subr.mxu0 %v11851_v10 }
0x29d3   : > { %8680 = vmatpush3.msra.mxu0 %v10266_v39 }
0x29d4   : > { %8681 = vmatprep.subr.mxu0 %v11851_v10 }
0x29d5   : > { %8682 = vmatpush3.msra.mxu0 %v10273_v40 }
0x29d6   : > { %8684 = vmatmul.mubr.msk.f32.vlgmr.msra.gmra.mxu0 %vm768_vm0, %v10907_v17  ;;  %8705 = vmatprep.subr.mxu0 %v11851_v10  ;;  %v11855_v17 = vld [vmem:[#allocation8_spill] sm:$0xff] }
0x29d7   : > { %8713 = vmatprep.mubr.msk.f32.mxu0 %vm9461_vm3, %v11851_v10 }
0x2a87   : > { %v4714_v43 = vpop.f32.mrf.mxu0 }
0x2a88   : > { %v4730_v6 = vadd.f32 %v4714_v43, %v10292_v44  ;;  %v4718_v55 = vadd.f32 %v4714_v43, %v10288_v32  ;;  %v4736_v15 = vadd.f32 %v4714_v43, %v10299_v1  ;;  %v4724_v28 = vadd.f32 %v4714_v43, %v11853_v29 }
0x2a89   : > { %v8648_v42 = vpop.f32.mrf.mxu0  ;;  %v4748_v9 = vadd.f32 %v4714_v43, %v11854_v52  ;;  %v4742_v51 = vadd.f32 %v4714_v43, %v11855_v17  ;;  %v4760_v26 = vadd.f32 %v4714_v43, %v11856_v62  ;;  %v4754_v22 = vadd.f32 %v4714_v43, %v11857_v3 }
0x2a8a   : > { %9244 = vtanh.f32 %v4730_v6  ;;  %v4772_v13 = vadd.f32 %v4714_v43, %v11858_v19  ;;  %v4766_v59 = vadd.f32 %v4714_v43, %v11859_v8 }
0x2a8b   : > { %9246 = vtanh.f32 %v4718_v55 }
0x2a8c   : > { %9248 = vtanh.f32 %v4736_v15 }
0x2a8d   : > { %9250 = vtanh.f32 %v4724_v28 }
0x2a8e   : > { %9252 = vtanh.f32 %v4748_v9 }
0x2a8f   : > { %9254 = vtanh.f32 %v4742_v51 }
0x2a90   : > { %9256 = vtanh.f32 %v4760_v26 }
0x2a91   : > { %9258 = vtanh.f32 %v4754_v22 }
0x2a92   : > { %9260 = vtanh.f32 %v4772_v13 }
0x2a93   : > { %9262 = vtanh.f32 %v4766_v59 }
0x2a97   : > { %v9245_v23 = vpop.eup %9244 }
0x2a98   : > { %v9247_v33 = vpop.eup %9246  ;;  %v4732_v24 = vmul.f32 %v9245_v23, %v11860_v31 }
0x2a99   : > { %v9249_v27 = vpop.eup %9248  ;;  %v4720_v35 = vmul.f32 %v9247_v33, %v11860_v31 }
0x2a9a   : > { %v9251_v37 = vpop.eup %9250  ;;  %v4733_v41 = vsel %vm768_vm0, %v4732_v24, 0.0  ;;  %v4738_v47 = vmul.f32 %v9249_v27, %v11860_v31  ;;  %v11031_v24 = vpop.f32.mrf.mxu0 }
0x2a9b   : > { %v9253_v30 = vpop.eup %9252  ;;  %4734 = vadd.xlane.f32.xlu1 %v4733_v41  ;;  %v4721_v6 = vsel %vm768_vm0, %v4720_v35, 0.0  ;;  %v4726_v43 = vmul.f32 %v9251_v37, %v11860_v31  ;;  %v11861_v37 = vld [vmem:[#allocation15_spill] sm:$0xff] }
0x2a9c   : > { %v9255_v55 = vpop.eup %9254  ;;  %4722 = vadd.xlane.f32.xlu0 %v4721_v6  ;;  %v4739_v15 = vsel %vm768_vm0, %v4738_v47, 0.0  ;;  %v4750_v42 = vmul.f32 %v9253_v30, %v11860_v31  ;;  %v8674_v27 = vpop.f32.mrf.mxu0 }
0x2a9d   : > { %v9257_v29 = vpop.eup %9256  ;;  %v4727_v28 = vsel %vm768_vm0, %v4726_v43, 0.0  ;;  %v4744_v52 = vmul.f32 %v9255_v55, %v11860_v31 }
0x2a9e   : > { %v9259_v9 = vpop.eup %9258  ;;  %v4751_v17 = vsel %vm768_vm0, %v4750_v42, 0.0  ;;  %v4762_v51 = vmul.f32 %v9257_v29, %v11860_v31  ;;  %v5060_v35 = vpop.f32.mrf.mxu0 }
0x2a9f   : > { %4740 = vadd.xlane.f32.xlu1 %v4739_v15  ;;  %v9261_v62 = vpop.eup %9260  ;;  %v4745_v26 = vsel %vm768_vm0, %v4744_v52, 0.0  ;;  %v4756_v3 = vmul.f32 %v9259_v9, %v11860_v31  ;;  %v11034_v41 = vadd.f32 %v11861_v37, %v5060_v35 }
0x2aa0   : > { %4728 = vadd.xlane.f32.xlu0 %v4727_v28  ;;  %v9263_v22 = vpop.eup %9262  ;;  %v4763_v19 = vsel %vm768_vm0, %v4762_v51, 0.0  ;;  %v4774_v13 = vmul.f32 %v9261_v62, %v11860_v31  ;;  %v8685_v47 = vpop.f32.mrf.mxu0 }
0x2aa1   : > { %v4757_v8 = vsel %vm768_vm0, %v4756_v3, 0.0  ;;  %v4768_v59 = vmul.f32 %v9263_v22, %v11860_v31 }
0x2aa2   : > { %v4775_v23 = vsel %vm768_vm0, %v4774_v13, 0.0 }
0x2aa3   : > { %4752 = vadd.xlane.f32.xlu1 %v4751_v17  ;;  %v4769_v33 = vsel %vm768_vm0, %v4768_v59, 0.0 }
0x2aa4   : > { %4746 = vadd.xlane.f32.xlu0 %v4745_v26 }
0x2aa7   : > { %4764 = vadd.xlane.f32.xlu1 %v4763_v19 }
0x2aa8   : > { %4758 = vadd.xlane.f32.xlu0 %v4757_v8 }
0x2aab   : > { %4776 = vadd.xlane.f32.xlu1 %v4775_v23 }
0x2aac   : > { %4770 = vadd.xlane.f32.xlu0 %v4769_v33 }
0x2ac2   : > { %5072 = vrot.lane.b32.xlu0 %v11034_v41, %s9460_s30 }
0x2b24   : > { %v4735_v30 = vpop.xlane.xlu1 %4734 }
0x2b25   : > { %v4723_v31 = vpop.xlane.xlu0 %4722 }
0x2b28   : > { %v4741_v6 = vpop.xlane.xlu1 %4740 }
0x2b29   : > { %v4729_v43 = vpop.xlane.xlu0 %4728 }
0x2b2a   : > { %v4778_v55 = vmax.f32 %v4723_v31, %v4729_v43 }
0x2b2c   : > { %v4779_v15 = vmax.f32 %v4778_v55, %v4735_v30  ;;  %v4753_v42 = vpop.xlane.xlu1 %4752 }
0x2b2d   : > { %v4747_v29 = vpop.xlane.xlu0 %4746 }
0x2b2e   : > { %v4780_v28 = vmax.f32 %v4779_v15, %v4741_v6 }
0x2b30   : > { %v4781_v52 = vmax.f32 %v4780_v28, %v4747_v29  ;;  %v4765_v51 = vpop.xlane.xlu1 %4764 }
0x2b31   : > { %v4759_v9 = vpop.xlane.xlu0 %4758 }
0x2b32   : > { %v4782_v17 = vmax.f32 %v4781_v52, %v4753_v42 }
0x2b34   : > { %v4783_v62 = vmax.f32 %v4782_v17, %v4759_v9  ;;  %v4777_v19 = vpop.xlane.xlu1 %4776 }
0x2b35   : > { %v4771_v3 = vpop.xlane.xlu0 %4770 }
0x2b36   : > { %v4784_v26 = vmax.f32 %v4783_v62, %v4765_v51 }
0x2b38   : > { %v4785_v22 = vmax.f32 %v4784_v26, %v4771_v3 }
0x2b3a   : > { %v4786_v13 = vmax.f32 %v4785_v22, %v4777_v19 }
0x2b3c   : > { %v4787_v8 = vsub.f32 %v4723_v31, %v4786_v13  ;;  %v4790_v59 = vsub.f32 %v4729_v43, %v4786_v13  ;;  %v4793_v23 = vsub.f32 %v4735_v30, %v4786_v13  ;;  %v4796_v33 = vsub.f32 %v4741_v6, %v4786_v13 }
0x2b3d   : > { %v4799_v55 = vsub.f32 %v4747_v29, %v4786_v13  ;;  %v4802_v15 = vsub.f32 %v4753_v42, %v4786_v13  ;;  %v4805_v52 = vsub.f32 %v4759_v9, %v4786_v13  ;;  %v4808_v62 = vsub.f32 %v4765_v51, %v4786_v13 }
0x2b3e   : > { %v4788_v27 = vmul.f32 1.442695, %v4787_v8  ;;  %v4791_v35 = vmul.f32 1.442695, %v4790_v59  ;;  %v4794_v37 = vmul.f32 1.442695, %v4793_v23  ;;  %v4811_v31 = vsub.f32 %v4771_v3, %v4786_v13 }
0x2b3f   : > { %v4797_v47 = vmul.f32 1.442695, %v4796_v33  ;;  %v4800_v28 = vmul.f32 1.442695, %v4799_v55  ;;  %v4803_v17 = vmul.f32 1.442695, %v4802_v15  ;;  %v4814_v6 = vsub.f32 %v4777_v19, %v4786_v13 }
0x2b40   : > { %9264 = vpow2.f32 %v4788_v27  ;;  %v4806_v26 = vmul.f32 1.442695, %v4805_v52  ;;  %v4809_v30 = vmul.f32 1.442695, %v4808_v62  ;;  %v4812_v43 = vmul.f32 1.442695, %v4811_v31 }
0x2b41   : > { %9266 = vpow2.f32 %v4791_v35  ;;  %v4815_v29 = vmul.f32 1.442695, %v4814_v6 }
0x2b42   : > { %9268 = vpow2.f32 %v4794_v37 }
0x2b43   : > { %9270 = vpow2.f32 %v4797_v47 }
0x2b44   : > { %9272 = vpow2.f32 %v4800_v28 }
0x2b45   : > { %9274 = vpow2.f32 %v4803_v17 }
0x2b46   : > { %9276 = vpow2.f32 %v4806_v26 }
0x2b47   : > { %9278 = vpow2.f32 %v4809_v30 }
0x2b48   : > { %9280 = vpow2.f32 %v4812_v43 }
0x2b49   : > { %9282 = vpow2.f32 %v4815_v29 }
0x2b4d   : > { %v9265_v22 = vpop.eup %9264 }
0x2b4e   : > { %v9267_v8 = vpop.eup %9266  ;;  %v4826_v42 = vmul.f32 %v9265_v22, %v10139_v25 }
0x2b4f   : > { %v9269_v59 = vpop.eup %9268  ;;  %v4817_v23 = vadd.f32 %v9267_v8, %v9265_v22  ;;  %v4827_v9 = vmul.f32 %v9267_v8, %v10143_v56 }
0x2b50   : > { %v9271_v51 = vpop.eup %9270  ;;  %v4829_v27 = vmul.f32 %v9269_v59, %v10147_v57 }
0x2b51   : > { %v4818_v33 = vadd.f32 %v9269_v59, %v4817_v23  ;;  %v4828_v3 = vadd.f32 %v4827_v9, %v4826_v42  ;;  %v4831_v35 = vmul.f32 %v9271_v51, %v10151_v11  ;;  %v9273_v37 = vpop.eup %9272 }
0x2b52   : > { %v9275_v15 = vpop.eup %9274  ;;  %v4833_v52 = vmul.f32 %v9273_v37, %v10155_v12 }
0x2b53   : > { %v4819_v19 = vadd.f32 %v9271_v51, %v4818_v33  ;;  %v4830_v13 = vadd.f32 %v4829_v27, %v4828_v3  ;;  %v9277_v17 = vpop.eup %9276  ;;  %v4835_v6 = vmul.f32 %v9275_v15, %v10159_v49 }
0x2b54   : > { %v9279_v31 = vpop.eup %9278  ;;  %v4837_v59 = vmul.f32 %v9277_v17, %v10163_v58 }
0x2b55   : > { %v4820_v47 = vadd.f32 %v9273_v37, %v4819_v19  ;;  %v4832_v55 = vadd.f32 %v4831_v35, %v4830_v13  ;;  %v9281_v43 = vpop.eup %9280  ;;  %v4839_v9 = vmul.f32 %v9279_v31, %v10167_v14  ;;  %v5101_v37 = vld [vmem:[%s11761_s21 + $0x38] sm:$0xff] }
0x2b56   : > { %v9283_v8 = vpop.eup %9282  ;;  %v4841_v33 = vmul.f32 %v9281_v43, %v10171_v16 }
0x2b57   : > { %v4821_v28 = vadd.f32 %v9275_v15, %v4820_v47  ;;  %v4834_v26 = vadd.f32 %v4833_v52, %v4832_v55  ;;  %v4843_v27 = vmul.f32 %v9283_v8, %v10175_v18  ;;  %v5100_v47 = vld [vmem:[%s11761_s21 + $0x30] sm:$0xff]  ;;  %v5099_v55 = vld [vmem:[%s11761_s21 + $0x28] sm:$0xff]  ;;  %v5098_v15 = vld [vmem:[%s11761_s21 + $0x20] sm:$0xff] }
0x2b58   : > { %v5096_v52 = vld [vmem:[%s11761_s21 + $0x10] sm:$0xff] }
0x2b59   : > { %v4822_v62 = vadd.f32 %v9277_v17, %v4821_v28  ;;  %v4836_v29 = vadd.f32 %v4835_v6, %v4834_v26  ;;  %v5097_v28 = vld [vmem:[%s11761_s21 + $0x18] sm:$0xff]  ;;  %v5095_v17 = vld [vmem:[%s11761_s21 + $0x8] sm:$0xff] }
0x2b5b   : > { %v4823_v30 = vadd.f32 %v9279_v31, %v4822_v62  ;;  %v4838_v23 = vadd.f32 %v4837_v59, %v4836_v29  ;;  %v5094_v62 = vld [vmem:[%s11761_s21] sm:$0xff] }
0x2b5d   : > { %v4824_v22 = vadd.f32 %v9281_v43, %v4823_v30  ;;  %v4840_v51 = vadd.f32 %v4839_v9, %v4838_v23  ;;  %v5073_v23 = vpop.permute.xlu0 %5072 }
0x2b5f   : > { %v4825_v42 = vadd.f32 %v9283_v8, %v4824_v22  ;;  %v4842_v3 = vadd.f32 %v4841_v33, %v4840_v51 }
0x2b61   : > { %9284 = vrcp.f32 %v4825_v42  ;;  %v4844_v19 = vadd.f32 %v4843_v27, %v4842_v3  ;;  %v5091_v27 = vld [vmem:[%s11760_s20 + $0x8] sm:$0xff] }
0x2b6e   : > { %v9285_v13 = vpop.eup %9284 }
0x2b6f   : > { %v4846_v35 = vmul.f32 %v9285_v13, %v4844_v19  ;;  %v5090_v19 = vld [vmem:[%s11760_s20] sm:$0xff] }
0x2b71   : > { %8666 = vmatmul.mubr.msk.f32.vlgmr.msra.gmra.mxu1 %vm952_vm2, %v4846_v35 }
0x2b72   : > { %8687 = vmatpush3.msra.mxu1 %v5101_v37  ;;  %8702 = vmatprep.mubr.msk.f32.mxu1 %vm9461_vm3, %v11851_v10 }
0x2b73   : > { %8688 = vmatprep.subr.mxu1 %v11851_v10 }
0x2b74   : > { %8689 = vmatpush3.msra.mxu1 %v5100_v47 }
0x2b75   : > { %8690 = vmatprep.subr.mxu1 %v11851_v10 }
0x2b76   : > { %8691 = vmatpush3.msra.mxu1 %v5099_v55 }
0x2b77   : > { %8692 = vmatprep.subr.mxu1 %v11851_v10 }
0x2b78   : > { %8693 = vmatpush3.msra.mxu1 %v5098_v15 }
0x2b79   : > { %8694 = vmatprep.subr.mxu1 %v11851_v10 }
0x2b7a   : > { %8695 = vmatpush3.msra.mxu1 %v5097_v28  ;;  %v5248_v28 = vld [vmem:[%s11762_s22 + $0x8] sm:$0xff] }
0x2b7b   : > { %8696 = vmatprep.subr.mxu1 %v11851_v10 }
0x2b7c   : > { %8697 = vmatpush3.msra.mxu1 %v5096_v52 }
0x2b7d   : > { %8698 = vmatprep.subr.mxu1 %v11851_v10 }
0x2b7e   : > { %8699 = vmatpush3.msra.mxu1 %v5095_v17  ;;  %v5247_v17 = vld [vmem:[%s11762_s22] sm:$0xff] }
0x2b7f   : > { %8700 = vmatprep.subr.mxu1 %v11851_v10 }
0x2b80   : > { %8701 = vmatpush3.msra.mxu1 %v5094_v62 }
0x2b81   : > { %8703 = vmatmul.mubr.msk.f32.vlgmr.msra.gmra.mxu1 %vm952_vm2, %v4846_v35 }
0x2c31   : > { %v4916_v26 = vpop.f32.mrf.mxu1 }
0x2c32   : > { %v4990_v31 = vadd.f32 %v11031_v24, %v4916_v26  ;;  %v5093_v24 = vld [vmem:[%s11760_s20 + $0x18] sm:$0xff] }
0x2c33   : > { %v8667_v30 = vpop.f32.mrf.mxu1  ;;  %8706 = vmatpush3.msra.mxu0 %v5093_v24 }
0x2c34   : > { %v4993_v6 = vadd.f32 %v10457_v34, %v4990_v31  ;;  %8707 = vmatprep.subr.mxu0 %v11851_v10  ;;  %v7917_v30 = vld [vmem:[%s11763_s23] ss:$0 sm:$0xff] }
0x2c36   : > { %v5064_v43 = vadd.f32 %v11034_v41, %v4993_v6  ;;  %v5092_v41 = vld [vmem:[%s11760_s20 + $0x10] sm:$0xff] }
0x2c37   : > { %8708 = vmatpush3.msra.mxu0 %v5092_v41 }
0x2c38   : > { %v7913_v22 = vmul.f32 -1.442695, %v5064_v43  ;;  %8709 = vmatprep.subr.mxu0 %v11851_v10 }
0x2c39   : > { %8710 = vmatpush3.msra.mxu0 %v5091_v27 }
0x2c3a   : > { %9286 = vpow2.f32 %v7913_v22  ;;  %8711 = vmatprep.subr.mxu0 %v11851_v10 }
0x2c3b   : > { %8712 = vmatpush3.msra.mxu0 %v5090_v19 }
0x2c3c   : > { %8716 = vmatprep.subr.mxu0 %v11851_v10 }
0x2c41   : > { %v5168_v29 = vpop.f32.mrf.mxu1 }
0x2c43   : > { %v8704_v8 = vpop.f32.mrf.mxu1 }
0x2c47   : > { %v9287_v42 = vpop.eup %9286 }
0x2c48   : > { %v5068_v59 = vadd.f32 1.0, %v9287_v42 }
0x2c4a   : > { %9288 = vrcp.f32 %v5068_v59 }
0x2c57   : > { %v9289_v9 = vpop.eup %9288 }
0x2c58   : > { %v5075_v51 = vmul.f32 %v9289_v9, %v5073_v23  ;;  %v5082_v35 = vsub.f32 1.0, %v9289_v9  ;;  %v5088_v55 = vmul.f32 %v9289_v9, %v10900_v21 }
0x2c5a   : > { %5077 = vrot.lane.b32.xlu1 %v5075_v51, %s9460_s30 }
0x2ccc   : > { %v5078_v33 = vpop.permute.xlu1 %5077 }
0x2ccd   : > { %v5080_v3 = vadd.f32 %v5078_v33, %v4993_v6 }
0x2ccf   : > { %9290 = vtanh.f32 %v5080_v3 }
0x2cdc   : > { %v9291_v13 = vpop.eup %9290 }
0x2cdd   : > { %5084 = vrot.lane.b32.xlu1 %v9291_v13, %s9462_s1 }
0x2d4f   : > { %v5085_v37 = vpop.permute.xlu1 %5084 }
0x2d50   : > { %v5087_v47 = vmul.f32 %v5085_v37, %v5082_v35 }
0x2d52   : > { %v11105_v15 = vadd.f32 %v5088_v55, %v5087_v47 }
0x2d54   : > { %5173 = vrot.lane.b32.xlu1 %v11105_v15, %s9462_s1 }
0x2dc6   : > { %v11112_v52 = vpop.permute.xlu1 %5173 }
0x2dc7   : > { %8714 = vmatmul.mubr.msk.f32.vlgmr.msra.gmra.mxu0 %vm768_vm0, %v11112_v52 }
0x2dc8   : > { %8717 = vmatpush3.msra.mxu0 %v5248_v28  ;;  %8720 = vmatprep.mubr.msk.f32.mxu0 %vm9461_vm3, %v11851_v10 }
0x2dc9   : > { %8718 = vmatprep.subr.mxu0 %v11851_v10 }
0x2dca   : > { %8719 = vmatpush3.msra.mxu0 %v5247_v17 }
0x2dcb   : > { %8721 = vmatmul.mubr.msk.f32.vlgmr.msra.gmra.mxu0 %vm2206_vm4, %v10983_v4 }
0x2e87   : > { %v5243_v21 = vpop.f32.mrf.mxu0 }
0x2e88   : > { %v5244_v26 = vadd.f32 %v5243_v21, %v5168_v29 }
0x2e89   : > { %v8715_v62 = vpop.f32.mrf.mxu0 }
0x2e8b   : > { %v5315_v31 = vpop.f32.mrf.mxu0 }
0x2e8c   : > { %v5319_v6 = vadd.f32 %v5315_v31, %v5244_v26  ;;  %5333 = sbr.rel (%p7919_p1) target bundleno = 11923 (0x2e93), region = 140 }
0x2e8d   : > { %v8722_v43 = vpop.f32.mrf.mxu0 }
0x2e8e   : > { %v5327_v22 = vadd.f32 %v7917_v30, %v5319_v6 }
0x2e90   : > { %5328 = vst [vmem:[%s10505_s4 + $0x20] sm:$0xff] %v5327_v22 }
0x2e91   : > { %v7920_v10 = vld [vmem:[%s10199_s5 + $0x20] sm:$0xff] }
0x2e92   : > { %5336 = vst.msk [vmem:[#allocation3] sm:$0xff] %vm2206_vm4, %v7920_v10 }
0x2e93 PF: > { %p7921_p2 = scmp.ne.s32.totalorder %s7918_s29, 0 }
0x2e94   : > { %s11863_s8 = sld [smem:[#allocation20_spill]] (!%p7921_p2) }
0x2e95   : > { %5340 = sbr.rel (%p7921_p2) target bundleno = 12555 (0x310b), region = 144 }
0x2e9a   : > { %v5343_v4 = vsel %vm768_vm0, %v5327_v22, -inf  ;;  %v11862_v29 = vlaneseq  ;;  %v5369_v33 = vld [vmem:[%s11863_s8 + $0x18] sm:$0xff]  ;;  %v9470_v3 = vmov 0.0   ;;  %v5368_v13 = vld [vmem:[%s11863_s8 + $0x10] sm:$0xff]  ;;  %v5367_v35 = vld [vmem:[%s11863_s8 + $0x8] sm:$0xff]  ;;  %vm9471_vm7 = vmmov 0  }
0x2e9b   : > { %5344 = vmax.xlane.f32.xlu0 %v5343_v4  ;;  %8723 = vmatprep.subr.mxu0 %v9470_v3  ;;  %v5366_v37 = vld [vmem:[%s11863_s8] sm:$0xff] }
0x2e9c   : > { %v5342_v8 = vand.u32 127, %v11862_v29  ;;  %8724 = vmatpush3.msra.mxu0 %v5369_v33  ;;  %8731 = vmatprep.mubr.msk.f32.mxu0 %vm9471_vm7, %v9470_v3 }
0x2e9d   : > { %8725 = vmatprep.subr.mxu0 %v9470_v3 }
0x2e9e   : > { %8726 = vmatpush3.msra.mxu0 %v5368_v13 }
0x2e9f   : > { %8727 = vmatprep.subr.mxu0 %v9470_v3 }
0x2ea0   : > { %8728 = vmatpush3.msra.mxu0 %v5367_v35 }
0x2ea1   : > { %8729 = vmatprep.subr.mxu0 %v9470_v3 }
0x2ea2   : > { %8730 = vmatpush3.msra.mxu0 %v5366_v37 }
0x2f24   : > { %v5345_v42 = vpop.xlane.xlu0 %5344 }
0x2f25   : > { %vm5346_vm5 = vcmp.ge.f32.partialorder %v5327_v22, %v5345_v42 }
0x2f26   : > { %v5347_v59 = vsel %vm5346_vm5, %v5342_v8, 32 }
0x2f27   : > { %v5348_v23 = vsel %vm768_vm0, %v5347_v59, 2147483647 }
0x2f28   : > { %v5350_v9 = vshra.s32 %v5348_v23, 16  ;;  %v5349_v24 = vand.u32 65535, %v5348_v23 }
0x2f2a   : > { %v5352_v51 = vcvt.s32.f32 %v5350_v9  ;;  %v5351_v27 = vcvt.s32.f32 %v5349_v24 }
0x2f2c   : > { %5353 = vmin.xlane.f32.xlu0 %v5352_v51 }
0x2fb5   : > { %v5354_v41 = vpop.xlane.xlu0 %5353 }
0x2fb6   : > { %vm5355_vm6 = vcmp.eq.f32.partialorder %v5352_v51, %v5354_v41  ;;  %v5360_v47 = vcvt.f32.s32 %v5354_v41 }
0x2fb7   : > { %v5356_v19 = vsel %vm5355_vm6, %v5351_v27, inf }
0x2fb8   : > { %5357 = vmin.xlane.f32.xlu1 %v5356_v19  ;;  %v5361_v28 = vshll.u32 %v5360_v47, 16 }
0x3041   : > { %v5358_v55 = vpop.xlane.xlu1 %5357 }
0x3042   : > { %v5359_v17 = vcvt.f32.s32 %v5358_v55 }
0x3044   : > { %v5362_v21 = vadd.s32 %v5361_v28, %v5359_v17 }
0x3046   : > { %vm5363_vm8 = vcmp.eq.s32.totalorder %v5342_v8, %v5362_v21 }
0x3047   : > { %v7922_v62 = vsel %vm5363_vm8, 1.0, %v9470_v3 }
0x3048   : > { %8732 = vmatmul.mubr.msk.f32.vlgmr.msra.gmra.mxu0 %vm768_vm0, %v7922_v62 }
0x3108   : > { %v5439_v26 = vpop.f32.mrf.mxu0 }
0x3109   : > { %5443 = vst.msk [vmem:[#allocation3] sm:$0xff] %vm2206_vm4, %v5439_v26 }
0x310a   : > { %v8733_v31 = vpop.f32.mrf.mxu0 }
0x310b PF: > { %v11864_v30 = vmov 0.0   ;;  %s11865_s8 = sld [smem:[#allocation19_spill]]  ;;  %v11866_v59 = vld [vmem:[#allocation7_spill] sm:$0xff]  ;;  %v11869_v3 = vld [vmem:[#allocation12_spill] sm:$0xff]  ;;  %v11870_v41 = vld [vmem:[#allocation9_spill] sm:$0xff] }
0x310c   : > { %8734 = vmatprep.subr.mxu0 %v11864_v30  ;;  %8742 = vmatprep.mubr.msk.f32.mxu0 %vm9461_vm3, %v11864_v30  ;;  %v11867_v9 = vld [vmem:[#allocation11_spill] sm:$0xff]  ;;  %v11871_v19 = vld [vmem:[#allocation13_spill] sm:$0xff]  ;;  %v11872_v35 = vld [vmem:[#allocation10_spill] sm:$0xff]  ;;  %s7934_s26 = sld [smem:[#allocation5 + $0x5]] }
0x310d   : > { %8735 = vmatpush3.msra.mxu0 %v10184_v20  ;;  %8745 = vmatprep.subr.mxu1 %v11864_v30  ;;  %v11873_v28 = vld [vmem:[#allocation14_spill] sm:$0xff] }
0x310e   : > { %8736 = vmatprep.subr.mxu0 %v11864_v30  ;;  %8746 = vmatpush3.msra.mxu1 %v10356_v45 }
0x310f   : > { %8737 = vmatpush3.msra.mxu0 %v10192_v0  ;;  %8747 = vmatprep.subr.mxu1 %v11864_v30 }
0x3110   : > { %8738 = vmatprep.subr.mxu0 %v11864_v30  ;;  %8748 = vmatpush3.msra.mxu1 %v10361_v46  ;;  %v5444_v6 = vld [vmem:[#allocation3] sm:$0xff] }
0x3111   : > { %8739 = vmatpush3.msra.mxu0 %v10207_v50  ;;  %8749 = vmatprep.subr.mxu1 %v11864_v30  ;;  %v7924_v43 = vld [vmem:[%s11865_s8 + $0x5] ss:$0 sm:$0xff] }
0x3112   : > { %8740 = vmatprep.subr.mxu0 %v11864_v30  ;;  %8750 = vmatpush3.msra.mxu1 %v10374_v48  ;;  %v11188_v22 = vadd.f32 %v7924_v43, %v5444_v6  ;;  %p7935_p3 = scmp.ne.s32.totalorder %s7934_s26, 1 }
0x3113   : > { %8741 = vmatpush3.msra.mxu0 %v10215_v53  ;;  %8751 = vmatprep.subr.mxu1 %v11864_v30 }
0x3114   : > { %8743 = vmatmul.mubr.msk.f32.vlgmr.msra.gmra.mxu0 %vm768_vm0, %v11112_v52  ;;  %8764 = vmatprep.subr.mxu0 %v11864_v30 }
0x3115   : > { %8765 = vmatpush3.msra.mxu0 %v10228_v54  ;;  %8768 = vmatprep.mubr.msk.f32.mxu0 %vm9461_vm3, %v11864_v30 }
0x3116   : > { %8766 = vmatprep.subr.mxu0 %v11864_v30  ;;  %8752 = vmatpush3.msra.mxu1 %v10385_v63 }
0x3117   : > { %8767 = vmatpush3.msra.mxu0 %v10237_v36  ;;  %8753 = vmatprep.subr.mxu1 %v11864_v30 }
0x3118   : > { %8771 = vmatprep.subr.mxu0 %v11864_v30  ;;  %8754 = vmatpush3.msra.mxu1 %v10396_v61 }
0x3119   : > { %8755 = vmatprep.subr.mxu1 %v11864_v30  ;;  %8761 = vmatprep.mubr.msk.f32.mxu1 %vm9461_vm3, %v11864_v30 }
0x311a   : > { %8756 = vmatpush3.msra.mxu1 %v10407_v7  ;;  %8769 = vmatmul.mubr.msk.f32.vlgmr.msra.gmra.mxu0 %vm2206_vm4, %v11188_v22 }
0x311b   : > { %8757 = vmatprep.subr.mxu1 %v11864_v30  ;;  %8772 = vmatpush3.msra.mxu0 %v10248_v38 }
0x311c   : > { %8758 = vmatpush3.msra.mxu1 %v10418_v2  ;;  %8779 = vmatprep.mubr.msk.f32.mxu0 %vm9461_vm3, %v11864_v30 }
0x311d   : > { %8759 = vmatprep.subr.mxu1 %v11864_v30  ;;  %8773 = vmatprep.subr.mxu0 %v11864_v30 }
0x311e   : > { %8760 = vmatpush3.msra.mxu1 %v10429_v5  ;;  %8774 = vmatpush3.msra.mxu0 %v10257_v60 }
0x311f   : > { %8782 = vmatprep.subr.mxu1 %v11864_v30  ;;  %8775 = vmatprep.subr.mxu0 %v11864_v30 }
0x3120   : > { %8776 = vmatpush3.msra.mxu0 %v10266_v39 }
0x3121   : > { %8777 = vmatprep.subr.mxu0 %v11864_v30 }
0x3122   : > { %8778 = vmatpush3.msra.mxu0 %v10273_v40 }
0x3123   : > { %8780 = vmatmul.mubr.msk.f32.vlgmr.msra.gmra.mxu0 %vm768_vm0, %v11112_v52  ;;  %8801 = vmatprep.subr.mxu0 %v11864_v30  ;;  %v11868_v52 = vld [vmem:[#allocation8_spill] sm:$0xff] }
0x3124   : > { %8809 = vmatprep.mubr.msk.f32.mxu0 %vm9461_vm3, %v11864_v30 }
0x31d4   : > { %v5517_v10 = vpop.f32.mrf.mxu0 }
0x31d5   : > { %v5533_v4 = vadd.f32 %v5517_v10, %v10292_v44  ;;  %v5521_v29 = vadd.f32 %v5517_v10, %v10288_v32  ;;  %v5539_v8 = vadd.f32 %v5517_v10, %v10299_v1  ;;  %v5527_v23 = vadd.f32 %v5517_v10, %v11866_v59 }
0x31d6   : > { %v8744_v42 = vpop.f32.mrf.mxu0  ;;  %v5551_v51 = vadd.f32 %v5517_v10, %v11867_v9  ;;  %v5545_v33 = vadd.f32 %v5517_v10, %v11868_v52  ;;  %v5563_v24 = vadd.f32 %v5517_v10, %v11869_v3  ;;  %v5557_v27 = vadd.f32 %v5517_v10, %v11870_v41 }
0x31d7   : > { %9292 = vtanh.f32 %v5533_v4  ;;  %v5575_v13 = vadd.f32 %v5517_v10, %v11871_v19  ;;  %v5569_v37 = vadd.f32 %v5517_v10, %v11872_v35 }
0x31d8   : > { %9294 = vtanh.f32 %v5521_v29 }
0x31d9   : > { %9296 = vtanh.f32 %v5539_v8 }
0x31da   : > { %9298 = vtanh.f32 %v5527_v23 }
0x31db   : > { %9300 = vtanh.f32 %v5551_v51 }
0x31dc   : > { %9302 = vtanh.f32 %v5545_v33 }
0x31dd   : > { %9304 = vtanh.f32 %v5563_v24 }
0x31de   : > { %9306 = vtanh.f32 %v5557_v27 }
0x31df   : > { %9308 = vtanh.f32 %v5575_v13 }
0x31e0   : > { %9310 = vtanh.f32 %v5569_v37 }
0x31e4   : > { %v9293_v47 = vpop.eup %9292 }
0x31e5   : > { %v9295_v55 = vpop.eup %9294  ;;  %v5535_v17 = vmul.f32 %v9293_v47, %v11873_v28 }
0x31e6   : > { %v9297_v21 = vpop.eup %9296  ;;  %v5523_v62 = vmul.f32 %v9295_v55, %v11873_v28 }
0x31e7   : > { %v9299_v26 = vpop.eup %9298  ;;  %v5536_v31 = vsel %vm768_vm0, %v5535_v17, 0.0  ;;  %v5541_v6 = vmul.f32 %v9297_v21, %v11873_v28  ;;  %v11236_v17 = vpop.f32.mrf.mxu0 }
0x31e8   : > { %v9301_v43 = vpop.eup %9300  ;;  %5537 = vadd.xlane.f32.xlu1 %v5536_v31  ;;  %v5524_v4 = vsel %vm768_vm0, %v5523_v62, 0.0  ;;  %v5529_v10 = vmul.f32 %v9299_v26, %v11873_v28  ;;  %v11874_v26 = vld [vmem:[#allocation15_spill] sm:$0xff] }
0x31e9   : > { %v9303_v29 = vpop.eup %9302  ;;  %5525 = vadd.xlane.f32.xlu0 %v5524_v4  ;;  %v5542_v8 = vsel %vm768_vm0, %v5541_v6, 0.0  ;;  %v5553_v42 = vmul.f32 %v9301_v43, %v11873_v28  ;;  %v8770_v21 = vpop.f32.mrf.mxu0 }
0x31ea   : > { %v9305_v59 = vpop.eup %9304  ;;  %v5530_v23 = vsel %vm768_vm0, %v5529_v10, 0.0  ;;  %v5547_v9 = vmul.f32 %v9303_v29, %v11873_v28 }
0x31eb   : > { %v9307_v51 = vpop.eup %9306  ;;  %v5554_v52 = vsel %vm768_vm0, %v5553_v42, 0.0  ;;  %v5565_v33 = vmul.f32 %v9305_v59, %v11873_v28  ;;  %v5863_v62 = vpop.f32.mrf.mxu0 }
0x31ec   : > { %5543 = vadd.xlane.f32.xlu1 %v5542_v8  ;;  %v9309_v3 = vpop.eup %9308  ;;  %v5548_v24 = vsel %vm768_vm0, %v5547_v9, 0.0  ;;  %v5559_v41 = vmul.f32 %v9307_v51, %v11873_v28  ;;  %v11239_v31 = vadd.f32 %v11874_v26, %v5863_v62 }
0x31ed   : > { %5531 = vadd.xlane.f32.xlu0 %v5530_v23  ;;  %v9311_v27 = vpop.eup %9310  ;;  %v5566_v19 = vsel %vm768_vm0, %v5565_v33, 0.0  ;;  %v5577_v13 = vmul.f32 %v9309_v3, %v11873_v28  ;;  %v8781_v6 = vpop.f32.mrf.mxu0 }
0x31ee   : > { %v5560_v35 = vsel %vm768_vm0, %v5559_v41, 0.0  ;;  %v5571_v37 = vmul.f32 %v9311_v27, %v11873_v28 }
0x31ef   : > { %v5578_v47 = vsel %vm768_vm0, %v5577_v13, 0.0 }
0x31f0   : > { %5555 = vadd.xlane.f32.xlu1 %v5554_v52  ;;  %v5572_v55 = vsel %vm768_vm0, %v5571_v37, 0.0 }
0x31f1   : > { %5549 = vadd.xlane.f32.xlu0 %v5548_v24 }
0x31f4   : > { %5567 = vadd.xlane.f32.xlu1 %v5566_v19 }
0x31f5   : > { %5561 = vadd.xlane.f32.xlu0 %v5560_v35 }
0x31f8   : > { %5579 = vadd.xlane.f32.xlu1 %v5578_v47 }
0x31f9   : > { %5573 = vadd.xlane.f32.xlu0 %v5572_v55 }
0x320f   : > { %5875 = vrot.lane.b32.xlu0 %v11239_v31, %s9460_s30 }
0x3271   : > { %v5538_v43 = vpop.xlane.xlu1 %5537 }
0x3272   : > { %v5526_v28 = vpop.xlane.xlu0 %5525 }
0x3275   : > { %v5544_v4 = vpop.xlane.xlu1 %5543 }
0x3276   : > { %v5532_v10 = vpop.xlane.xlu0 %5531 }
0x3277   : > { %v5581_v29 = vmax.f32 %v5526_v28, %v5532_v10 }
0x3279   : > { %v5582_v8 = vmax.f32 %v5581_v29, %v5538_v43  ;;  %v5556_v42 = vpop.xlane.xlu1 %5555 }
0x327a   : > { %v5550_v59 = vpop.xlane.xlu0 %5549 }
0x327b   : > { %v5583_v23 = vmax.f32 %v5582_v8, %v5544_v4 }
0x327d   : > { %v5584_v9 = vmax.f32 %v5583_v23, %v5550_v59  ;;  %v5568_v33 = vpop.xlane.xlu1 %5567 }
0x327e   : > { %v5562_v51 = vpop.xlane.xlu0 %5561 }
0x327f   : > { %v5585_v52 = vmax.f32 %v5584_v9, %v5556_v42 }
0x3281   : > { %v5586_v3 = vmax.f32 %v5585_v52, %v5562_v51  ;;  %v5580_v19 = vpop.xlane.xlu1 %5579 }
0x3282   : > { %v5574_v41 = vpop.xlane.xlu0 %5573 }
0x3283   : > { %v5587_v24 = vmax.f32 %v5586_v3, %v5568_v33 }
0x3285   : > { %v5588_v27 = vmax.f32 %v5587_v24, %v5574_v41 }
0x3287   : > { %v5589_v13 = vmax.f32 %v5588_v27, %v5580_v19 }
0x3289   : > { %v5590_v35 = vsub.f32 %v5526_v28, %v5589_v13  ;;  %v5593_v37 = vsub.f32 %v5532_v10, %v5589_v13  ;;  %v5596_v47 = vsub.f32 %v5538_v43, %v5589_v13  ;;  %v5599_v55 = vsub.f32 %v5544_v4, %v5589_v13 }
0x328a   : > { %v5602_v29 = vsub.f32 %v5550_v59, %v5589_v13  ;;  %v5605_v8 = vsub.f32 %v5556_v42, %v5589_v13  ;;  %v5608_v9 = vsub.f32 %v5562_v51, %v5589_v13  ;;  %v5611_v3 = vsub.f32 %v5568_v33, %v5589_v13 }
0x328b   : > { %v5591_v21 = vmul.f32 1.442695, %v5590_v35  ;;  %v5594_v62 = vmul.f32 1.442695, %v5593_v37  ;;  %v5597_v26 = vmul.f32 1.442695, %v5596_v47  ;;  %v5614_v28 = vsub.f32 %v5574_v41, %v5589_v13 }
0x328c   : > { %v5600_v6 = vmul.f32 1.442695, %v5599_v55  ;;  %v5603_v23 = vmul.f32 1.442695, %v5602_v29  ;;  %v5606_v52 = vmul.f32 1.442695, %v5605_v8  ;;  %v5617_v4 = vsub.f32 %v5580_v19, %v5589_v13 }
0x328d   : > { %9312 = vpow2.f32 %v5591_v21  ;;  %v5609_v24 = vmul.f32 1.442695, %v5608_v9  ;;  %v5612_v43 = vmul.f32 1.442695, %v5611_v3  ;;  %v5615_v10 = vmul.f32 1.442695, %v5614_v28 }
0x328e   : > { %9314 = vpow2.f32 %v5594_v62  ;;  %v5618_v59 = vmul.f32 1.442695, %v5617_v4 }
0x328f   : > { %9316 = vpow2.f32 %v5597_v26 }
0x3290   : > { %9318 = vpow2.f32 %v5600_v6 }
0x3291   : > { %9320 = vpow2.f32 %v5603_v23 }
0x3292   : > { %9322 = vpow2.f32 %v5606_v52 }
0x3293   : > { %9324 = vpow2.f32 %v5609_v24 }
0x3294   : > { %9326 = vpow2.f32 %v5612_v43 }
0x3295   : > { %9328 = vpow2.f32 %v5615_v10 }
0x3296   : > { %9330 = vpow2.f32 %v5618_v59 }
0x329a   : > { %v9313_v27 = vpop.eup %9312 }
0x329b   : > { %v9315_v35 = vpop.eup %9314  ;;  %v5629_v42 = vmul.f32 %v9313_v27, %v10139_v25 }
0x329c   : > { %v9317_v37 = vpop.eup %9316  ;;  %v5620_v47 = vadd.f32 %v9315_v35, %v9313_v27  ;;  %v5630_v51 = vmul.f32 %v9315_v35, %v10143_v56 }
0x329d   : > { %v9319_v33 = vpop.eup %9318  ;;  %v5632_v21 = vmul.f32 %v9317_v37, %v10147_v57 }
0x329e   : > { %v5621_v55 = vadd.f32 %v9317_v37, %v5620_v47  ;;  %v5631_v41 = vadd.f32 %v5630_v51, %v5629_v42  ;;  %v5634_v62 = vmul.f32 %v9319_v33, %v10151_v11  ;;  %v9321_v26 = vpop.eup %9320 }
0x329f   : > { %v9323_v8 = vpop.eup %9322  ;;  %v5636_v9 = vmul.f32 %v9321_v26, %v10155_v12 }
0x32a0   : > { %v5622_v19 = vadd.f32 %v9319_v33, %v5621_v55  ;;  %v5633_v13 = vadd.f32 %v5632_v21, %v5631_v41  ;;  %v9325_v52 = vpop.eup %9324  ;;  %v5638_v4 = vmul.f32 %v9323_v8, %v10159_v49 }
0x32a1   : > { %v9327_v28 = vpop.eup %9326  ;;  %v5640_v37 = vmul.f32 %v9325_v52, %v10163_v58 }
0x32a2   : > { %v5623_v6 = vadd.f32 %v9321_v26, %v5622_v19  ;;  %v5635_v29 = vadd.f32 %v5634_v62, %v5633_v13  ;;  %v9329_v10 = vpop.eup %9328  ;;  %v5642_v51 = vmul.f32 %v9327_v28, %v10167_v14  ;;  %v5904_v26 = vld [vmem:[%s11761_s21 + $0x38] sm:$0xff] }
0x32a3   : > { %v9331_v35 = vpop.eup %9330  ;;  %v5644_v55 = vmul.f32 %v9329_v10, %v10171_v16 }
0x32a4   : > { %v5624_v23 = vadd.f32 %v9323_v8, %v5623_v6  ;;  %v5637_v24 = vadd.f32 %v5636_v9, %v5635_v29  ;;  %v5646_v21 = vmul.f32 %v9331_v35, %v10175_v18  ;;  %v5903_v6 = vld [vmem:[%s11761_s21 + $0x30] sm:$0xff]  ;;  %v5902_v29 = vld [vmem:[%s11761_s21 + $0x28] sm:$0xff]  ;;  %v5901_v8 = vld [vmem:[%s11761_s21 + $0x20] sm:$0xff] }
0x32a5   : > { %v5899_v9 = vld [vmem:[%s11761_s21 + $0x10] sm:$0xff] }
0x32a6   : > { %v5625_v3 = vadd.f32 %v9325_v52, %v5624_v23  ;;  %v5639_v59 = vadd.f32 %v5638_v4, %v5637_v24  ;;  %v5900_v23 = vld [vmem:[%s11761_s21 + $0x18] sm:$0xff]  ;;  %v5898_v52 = vld [vmem:[%s11761_s21 + $0x8] sm:$0xff] }
0x32a8   : > { %v5626_v43 = vadd.f32 %v9327_v28, %v5625_v3  ;;  %v5641_v47 = vadd.f32 %v5640_v37, %v5639_v59  ;;  %v5897_v3 = vld [vmem:[%s11761_s21] sm:$0xff] }
0x32aa   : > { %v5627_v27 = vadd.f32 %v9329_v10, %v5626_v43  ;;  %v5643_v33 = vadd.f32 %v5642_v51, %v5641_v47  ;;  %v5876_v47 = vpop.permute.xlu0 %5875 }
0x32ac   : > { %v5628_v42 = vadd.f32 %v9331_v35, %v5627_v27  ;;  %v5645_v41 = vadd.f32 %v5644_v55, %v5643_v33 }
0x32ae   : > { %9332 = vrcp.f32 %v5628_v42  ;;  %v5647_v19 = vadd.f32 %v5646_v21, %v5645_v41  ;;  %v5894_v21 = vld [vmem:[%s11760_s20 + $0x8] sm:$0xff] }
0x32bb   : > { %v9333_v13 = vpop.eup %9332 }
0x32bc   : > { %v5649_v62 = vmul.f32 %v9333_v13, %v5647_v19  ;;  %v5893_v19 = vld [vmem:[%s11760_s20] sm:$0xff] }
0x32be   : > { %8762 = vmatmul.mubr.msk.f32.vlgmr.msra.gmra.mxu1 %vm952_vm2, %v5649_v62 }
0x32bf   : > { %8783 = vmatpush3.msra.mxu1 %v5904_v26  ;;  %8798 = vmatprep.mubr.msk.f32.mxu1 %vm9461_vm3, %v11864_v30 }
0x32c0   : > { %8784 = vmatprep.subr.mxu1 %v11864_v30 }
0x32c1   : > { %8785 = vmatpush3.msra.mxu1 %v5903_v6 }
0x32c2   : > { %8786 = vmatprep.subr.mxu1 %v11864_v30 }
0x32c3   : > { %8787 = vmatpush3.msra.mxu1 %v5902_v29 }
0x32c4   : > { %8788 = vmatprep.subr.mxu1 %v11864_v30 }
0x32c5   : > { %8789 = vmatpush3.msra.mxu1 %v5901_v8 }
0x32c6   : > { %8790 = vmatprep.subr.mxu1 %v11864_v30 }
0x32c7   : > { %8791 = vmatpush3.msra.mxu1 %v5900_v23  ;;  %v6051_v23 = vld [vmem:[%s11762_s22 + $0x8] sm:$0xff] }
0x32c8   : > { %8792 = vmatprep.subr.mxu1 %v11864_v30 }
0x32c9   : > { %8793 = vmatpush3.msra.mxu1 %v5899_v9 }
0x32ca   : > { %8794 = vmatprep.subr.mxu1 %v11864_v30 }
0x32cb   : > { %8795 = vmatpush3.msra.mxu1 %v5898_v52  ;;  %v6050_v52 = vld [vmem:[%s11762_s22] sm:$0xff] }
0x32cc   : > { %8796 = vmatprep.subr.mxu1 %v11864_v30 }
0x32cd   : > { %8797 = vmatpush3.msra.mxu1 %v5897_v3 }
0x32ce   : > { %8799 = vmatmul.mubr.msk.f32.vlgmr.msra.gmra.mxu1 %vm952_vm2, %v5649_v62 }
0x337e   : > { %v5719_v24 = vpop.f32.mrf.mxu1 }
0x337f   : > { %v5793_v28 = vadd.f32 %v11236_v17, %v5719_v24  ;;  %v5896_v17 = vld [vmem:[%s11760_s20 + $0x18] sm:$0xff] }
0x3380   : > { %v8763_v43 = vpop.f32.mrf.mxu1  ;;  %8802 = vmatpush3.msra.mxu0 %v5896_v17 }
0x3381   : > { %v5796_v4 = vadd.f32 %v10457_v34, %v5793_v28  ;;  %8803 = vmatprep.subr.mxu0 %v11864_v30  ;;  %v7933_v43 = vld [vmem:[%s11763_s23] ss:$0 sm:$0xff] }
0x3383   : > { %v5867_v10 = vadd.f32 %v11239_v31, %v5796_v4  ;;  %v5895_v31 = vld [vmem:[%s11760_s20 + $0x10] sm:$0xff] }
0x3384   : > { %8804 = vmatpush3.msra.mxu0 %v5895_v31 }
0x3385   : > { %v7929_v27 = vmul.f32 -1.442695, %v5867_v10  ;;  %8805 = vmatprep.subr.mxu0 %v11864_v30 }
0x3386   : > { %8806 = vmatpush3.msra.mxu0 %v5894_v21 }
0x3387   : > { %9334 = vpow2.f32 %v7929_v27  ;;  %8807 = vmatprep.subr.mxu0 %v11864_v30 }
0x3388   : > { %8808 = vmatpush3.msra.mxu0 %v5893_v19 }
0x3389   : > { %8812 = vmatprep.subr.mxu0 %v11864_v30 }
0x338e   : > { %v5971_v59 = vpop.f32.mrf.mxu1 }
0x3390   : > { %v8800_v35 = vpop.f32.mrf.mxu1 }
0x3394   : > { %v9335_v42 = vpop.eup %9334 }
0x3395   : > { %v5871_v37 = vadd.f32 1.0, %v9335_v42 }
0x3397   : > { %9336 = vrcp.f32 %v5871_v37 }
0x33a4   : > { %v9337_v51 = vpop.eup %9336 }
0x33a5   : > { %v5878_v33 = vmul.f32 %v9337_v51, %v5876_v47  ;;  %v5885_v62 = vsub.f32 1.0, %v9337_v51  ;;  %v5891_v29 = vmul.f32 %v9337_v51, %v11105_v15 }
0x33a7   : > { %5880 = vrot.lane.b32.xlu1 %v5878_v33, %s9460_s30 }
0x3419   : > { %v5881_v55 = vpop.permute.xlu1 %5880 }
0x341a   : > { %v5883_v41 = vadd.f32 %v5881_v55, %v5796_v4 }
0x341c   : > { %9338 = vtanh.f32 %v5883_v41 }
0x3429   : > { %v9339_v13 = vpop.eup %9338 }
0x342a   : > { %5887 = vrot.lane.b32.xlu1 %v9339_v13, %s9462_s1 }
0x349c   : > { %v5888_v26 = vpop.permute.xlu1 %5887 }
0x349d   : > { %v5890_v6 = vmul.f32 %v5888_v26, %v5885_v62 }
0x349f   : > { %v11310_v8 = vadd.f32 %v5891_v29, %v5890_v6 }
0x34a1   : > { %5976 = vrot.lane.b32.xlu1 %v11310_v8, %s9462_s1 }
0x3513   : > { %v11317_v9 = vpop.permute.xlu1 %5976 }
0x3514   : > { %8810 = vmatmul.mubr.msk.f32.vlgmr.msra.gmra.mxu0 %vm768_vm0, %v11317_v9 }
0x3515   : > { %8813 = vmatpush3.msra.mxu0 %v6051_v23  ;;  %8816 = vmatprep.mubr.msk.f32.mxu0 %vm9461_vm3, %v11864_v30 }
0x3516   : > { %8814 = vmatprep.subr.mxu0 %v11864_v30 }
0x3517   : > { %8815 = vmatpush3.msra.mxu0 %v6050_v52 }
0x3518   : > { %8817 = vmatmul.mubr.msk.f32.vlgmr.msra.gmra.mxu0 %vm2206_vm4, %v11188_v22 }
0x35d4   : > { %v6046_v15 = vpop.f32.mrf.mxu0 }
0x35d5   : > { %v6047_v24 = vadd.f32 %v6046_v15, %v5971_v59 }
0x35d6   : > { %v8811_v3 = vpop.f32.mrf.mxu0 }
0x35d8   : > { %v6118_v28 = vpop.f32.mrf.mxu0 }
0x35d9   : > { %v6122_v4 = vadd.f32 %v6118_v28, %v6047_v24  ;;  %6136 = sbr.rel (%p7935_p3) target bundleno = 13792 (0x35e0), region = 148 }
0x35da   : > { %v8818_v10 = vpop.f32.mrf.mxu0 }
0x35db   : > { %v6130_v27 = vadd.f32 %v7933_v43, %v6122_v4 }
0x35dd   : > { %6131 = vst [vmem:[%s10505_s4 + $0x28] sm:$0xff] %v6130_v27 }
0x35de   : > { %v7936_v30 = vld [vmem:[%s10199_s5 + $0x28] sm:$0xff] }
0x35df   : > { %6139 = vst.msk [vmem:[#allocation3] sm:$0xff] %vm2206_vm4, %v7936_v30 }
0x35e0 PF: > { %p7937_p4 = scmp.ne.s32.totalorder %s7934_s26, 0 }
0x35e1   : > { %s11876_s18 = sld [smem:[#allocation20_spill]] (!%p7937_p4) }
0x35e2   : > { %6143 = sbr.rel (%p7937_p4) target bundleno = 14424 (0x3858), region = 152 }
0x35e7   : > { %v6146_v22 = vsel %vm768_vm0, %v6130_v27, -inf  ;;  %v11875_v59 = vlaneseq  ;;  %v6172_v55 = vld [vmem:[%s11876_s18 + $0x18] sm:$0xff]  ;;  %v9472_v41 = vmov 0.0   ;;  %v6171_v13 = vld [vmem:[%s11876_s18 + $0x10] sm:$0xff]  ;;  %v6170_v62 = vld [vmem:[%s11876_s18 + $0x8] sm:$0xff]  ;;  %vm9473_vm11 = vmmov 0  }
0x35e8   : > { %6147 = vmax.xlane.f32.xlu0 %v6146_v22  ;;  %8819 = vmatprep.subr.mxu0 %v9472_v41  ;;  %v6169_v26 = vld [vmem:[%s11876_s18] sm:$0xff] }
0x35e9   : > { %v6145_v35 = vand.u32 127, %v11875_v59  ;;  %8820 = vmatpush3.msra.mxu0 %v6172_v55  ;;  %8827 = vmatprep.mubr.msk.f32.mxu0 %vm9473_vm11, %v9472_v41 }
0x35ea   : > { %8821 = vmatprep.subr.mxu0 %v9472_v41 }
0x35eb   : > { %8822 = vmatpush3.msra.mxu0 %v6171_v13 }
0x35ec   : > { %8823 = vmatprep.subr.mxu0 %v9472_v41 }
0x35ed   : > { %8824 = vmatpush3.msra.mxu0 %v6170_v62 }
0x35ee   : > { %8825 = vmatprep.subr.mxu0 %v9472_v41 }
0x35ef   : > { %8826 = vmatpush3.msra.mxu0 %v6169_v26 }
0x3671   : > { %v6148_v42 = vpop.xlane.xlu0 %6147 }
0x3672   : > { %vm6149_vm9 = vcmp.ge.f32.partialorder %v6130_v27, %v6148_v42 }
0x3673   : > { %v6150_v37 = vsel %vm6149_vm9, %v6145_v35, 32 }
0x3674   : > { %v6151_v47 = vsel %vm768_vm0, %v6150_v37, 2147483647 }
0x3675   : > { %v6153_v51 = vshra.s32 %v6151_v47, 16  ;;  %v6152_v17 = vand.u32 65535, %v6151_v47 }
0x3677   : > { %v6155_v33 = vcvt.s32.f32 %v6153_v51  ;;  %v6154_v21 = vcvt.s32.f32 %v6152_v17 }
0x3679   : > { %6156 = vmin.xlane.f32.xlu0 %v6155_v33 }
0x3702   : > { %v6157_v31 = vpop.xlane.xlu0 %6156 }
0x3703   : > { %vm6158_vm10 = vcmp.eq.f32.partialorder %v6155_v33, %v6157_v31  ;;  %v6163_v6 = vcvt.f32.s32 %v6157_v31 }
0x3704   : > { %v6159_v19 = vsel %vm6158_vm10, %v6154_v21, inf }
0x3705   : > { %6160 = vmin.xlane.f32.xlu1 %v6159_v19  ;;  %v6164_v23 = vshll.u32 %v6163_v6, 16 }
0x378e   : > { %v6161_v29 = vpop.xlane.xlu1 %6160 }
0x378f   : > { %v6162_v52 = vcvt.f32.s32 %v6161_v29 }
0x3791   : > { %v6165_v15 = vadd.s32 %v6164_v23, %v6162_v52 }
0x3793   : > { %vm6166_vm12 = vcmp.eq.s32.totalorder %v6145_v35, %v6165_v15 }
0x3794   : > { %v7938_v3 = vsel %vm6166_vm12, 1.0, %v9472_v41 }
0x3795   : > { %8828 = vmatmul.mubr.msk.f32.vlgmr.msra.gmra.mxu0 %vm768_vm0, %v7938_v3 }
0x3855   : > { %v6242_v24 = vpop.f32.mrf.mxu0 }
0x3856   : > { %6246 = vst.msk [vmem:[#allocation3] sm:$0xff] %vm2206_vm4, %v6242_v24 }
0x3857   : > { %v8829_v28 = vpop.f32.mrf.mxu0 }
0x3858 PF: > { %v11877_v43 = vmov 0.0   ;;  %s11878_s18 = sld [smem:[#allocation19_spill]]  ;;  %v11879_v37 = vld [vmem:[#allocation7_spill] sm:$0xff]  ;;  %v11882_v41 = vld [vmem:[#allocation12_spill] sm:$0xff]  ;;  %v11883_v31 = vld [vmem:[#allocation9_spill] sm:$0xff] }
0x3859   : > { %8830 = vmatprep.subr.mxu0 %v11877_v43  ;;  %8838 = vmatprep.mubr.msk.f32.mxu0 %vm9461_vm3, %v11877_v43  ;;  %v11880_v51 = vld [vmem:[#allocation11_spill] sm:$0xff]  ;;  %v11884_v19 = vld [vmem:[#allocation13_spill] sm:$0xff]  ;;  %v11885_v62 = vld [vmem:[#allocation10_spill] sm:$0xff]  ;;  %s7950_s8 = sld [smem:[#allocation5 + $0x6]] }
0x385a   : > { %8831 = vmatpush3.msra.mxu0 %v10184_v20  ;;  %8841 = vmatprep.subr.mxu1 %v11877_v43  ;;  %v11886_v23 = vld [vmem:[#allocation14_spill] sm:$0xff] }
0x385b   : > { %8832 = vmatprep.subr.mxu0 %v11877_v43  ;;  %8842 = vmatpush3.msra.mxu1 %v10356_v45 }
0x385c   : > { %8833 = vmatpush3.msra.mxu0 %v10192_v0  ;;  %8843 = vmatprep.subr.mxu1 %v11877_v43 }
0x385d   : > { %8834 = vmatprep.subr.mxu0 %v11877_v43  ;;  %8844 = vmatpush3.msra.mxu1 %v10361_v46  ;;  %v6247_v4 = vld [vmem:[#allocation3] sm:$0xff] }
0x385e   : > { %8835 = vmatpush3.msra.mxu0 %v10207_v50  ;;  %8845 = vmatprep.subr.mxu1 %v11877_v43  ;;  %v7940_v10 = vld [vmem:[%s11878_s18 + $0x6] ss:$0 sm:$0xff] }
0x385f   : > { %8836 = vmatprep.subr.mxu0 %v11877_v43  ;;  %8846 = vmatpush3.msra.mxu1 %v10374_v48  ;;  %v11393_v27 = vadd.f32 %v7940_v10, %v6247_v4  ;;  %p7951_p5 = scmp.ne.s32.totalorder %s7950_s8, 1 }
0x3860   : > { %8837 = vmatpush3.msra.mxu0 %v10215_v53  ;;  %8847 = vmatprep.subr.mxu1 %v11877_v43 }
0x3861   : > { %8839 = vmatmul.mubr.msk.f32.vlgmr.msra.gmra.mxu0 %vm768_vm0, %v11317_v9  ;;  %8860 = vmatprep.subr.mxu0 %v11877_v43 }
0x3862   : > { %8861 = vmatpush3.msra.mxu0 %v10228_v54  ;;  %8864 = vmatprep.mubr.msk.f32.mxu0 %vm9461_vm3, %v11877_v43 }
0x3863   : > { %8862 = vmatprep.subr.mxu0 %v11877_v43  ;;  %8848 = vmatpush3.msra.mxu1 %v10385_v63 }
0x3864   : > { %8863 = vmatpush3.msra.mxu0 %v10237_v36  ;;  %8849 = vmatprep.subr.mxu1 %v11877_v43 }
0x3865   : > { %8867 = vmatprep.subr.mxu0 %v11877_v43  ;;  %8850 = vmatpush3.msra.mxu1 %v10396_v61 }
0x3866   : > { %8851 = vmatprep.subr.mxu1 %v11877_v43  ;;  %8857 = vmatprep.mubr.msk.f32.mxu1 %vm9461_vm3, %v11877_v43 }
0x3867   : > { %8852 = vmatpush3.msra.mxu1 %v10407_v7  ;;  %8865 = vmatmul.mubr.msk.f32.vlgmr.msra.gmra.mxu0 %vm2206_vm4, %v11393_v27 }
0x3868   : > { %8853 = vmatprep.subr.mxu1 %v11877_v43  ;;  %8868 = vmatpush3.msra.mxu0 %v10248_v38 }
0x3869   : > { %8854 = vmatpush3.msra.mxu1 %v10418_v2  ;;  %8875 = vmatprep.mubr.msk.f32.mxu0 %vm9461_vm3, %v11877_v43 }
0x386a   : > { %8855 = vmatprep.subr.mxu1 %v11877_v43  ;;  %8869 = vmatprep.subr.mxu0 %v11877_v43 }
0x386b   : > { %8856 = vmatpush3.msra.mxu1 %v10429_v5  ;;  %8870 = vmatpush3.msra.mxu0 %v10257_v60 }
0x386c   : > { %8878 = vmatprep.subr.mxu1 %v11877_v43  ;;  %8871 = vmatprep.subr.mxu0 %v11877_v43 }
0x386d   : > { %8872 = vmatpush3.msra.mxu0 %v10266_v39 }
0x386e   : > { %8873 = vmatprep.subr.mxu0 %v11877_v43 }
0x386f   : > { %8874 = vmatpush3.msra.mxu0 %v10273_v40 }
0x3870   : > { %8876 = vmatmul.mubr.msk.f32.vlgmr.msra.gmra.mxu0 %vm768_vm0, %v11317_v9  ;;  %8897 = vmatprep.subr.mxu0 %v11877_v43  ;;  %v11881_v9 = vld [vmem:[#allocation8_spill] sm:$0xff] }
0x3871   : > { %8905 = vmatprep.mubr.msk.f32.mxu0 %vm9461_vm3, %v11877_v43 }
0x3921   : > { %v6320_v30 = vpop.f32.mrf.mxu0 }
0x3922   : > { %v6336_v22 = vadd.f32 %v6320_v30, %v10292_v44  ;;  %v6324_v59 = vadd.f32 %v6320_v30, %v10288_v32  ;;  %v6342_v35 = vadd.f32 %v6320_v30, %v10299_v1  ;;  %v6330_v47 = vadd.f32 %v6320_v30, %v11879_v37 }
0x3923   : > { %v8840_v42 = vpop.f32.mrf.mxu0  ;;  %v6354_v33 = vadd.f32 %v6320_v30, %v11880_v51  ;;  %v6348_v55 = vadd.f32 %v6320_v30, %v11881_v9  ;;  %v6366_v17 = vadd.f32 %v6320_v30, %v11882_v41  ;;  %v6360_v21 = vadd.f32 %v6320_v30, %v11883_v31 }
0x3924   : > { %9340 = vtanh.f32 %v6336_v22  ;;  %v6378_v13 = vadd.f32 %v6320_v30, %v11884_v19  ;;  %v6372_v26 = vadd.f32 %v6320_v30, %v11885_v62 }
0x3925   : > { %9342 = vtanh.f32 %v6324_v59 }
0x3926   : > { %9344 = vtanh.f32 %v6342_v35 }
0x3927   : > { %9346 = vtanh.f32 %v6330_v47 }
0x3928   : > { %9348 = vtanh.f32 %v6354_v33 }
0x3929   : > { %9350 = vtanh.f32 %v6348_v55 }
0x392a   : > { %9352 = vtanh.f32 %v6366_v17 }
0x392b   : > { %9354 = vtanh.f32 %v6360_v21 }
0x392c   : > { %9356 = vtanh.f32 %v6378_v13 }
0x392d   : > { %9358 = vtanh.f32 %v6372_v26 }
0x3931   : > { %v9341_v6 = vpop.eup %9340 }
0x3932   : > { %v9343_v29 = vpop.eup %9342  ;;  %v6338_v52 = vmul.f32 %v9341_v6, %v11886_v23 }
0x3933   : > { %v9345_v15 = vpop.eup %9344  ;;  %v6326_v3 = vmul.f32 %v9343_v29, %v11886_v23 }
0x3934   : > { %v9347_v24 = vpop.eup %9346  ;;  %v6339_v28 = vsel %vm768_vm0, %v6338_v52, 0.0  ;;  %v6344_v4 = vmul.f32 %v9345_v15, %v11886_v23  ;;  %v11441_v52 = vpop.f32.mrf.mxu0 }
0x3935   : > { %v9349_v10 = vpop.eup %9348  ;;  %6340 = vadd.xlane.f32.xlu1 %v6339_v28  ;;  %v6327_v22 = vsel %vm768_vm0, %v6326_v3, 0.0  ;;  %v6332_v30 = vmul.f32 %v9347_v24, %v11886_v23  ;;  %v11887_v24 = vld [vmem:[#allocation15_spill] sm:$0xff] }
0x3936   : > { %v9351_v59 = vpop.eup %9350  ;;  %6328 = vadd.xlane.f32.xlu0 %v6327_v22  ;;  %v6345_v35 = vsel %vm768_vm0, %v6344_v4, 0.0  ;;  %v6356_v42 = vmul.f32 %v9349_v10, %v11886_v23  ;;  %v8866_v15 = vpop.f32.mrf.mxu0 }
0x3937   : > { %v9353_v37 = vpop.eup %9352  ;;  %v6333_v47 = vsel %vm768_vm0, %v6332_v30, 0.0  ;;  %v6350_v51 = vmul.f32 %v9351_v59, %v11886_v23 }
0x3938   : > { %v9355_v33 = vpop.eup %9354  ;;  %v6357_v9 = vsel %vm768_vm0, %v6356_v42, 0.0  ;;  %v6368_v55 = vmul.f32 %v9353_v37, %v11886_v23  ;;  %v6666_v3 = vpop.f32.mrf.mxu0 }
0x3939   : > { %6346 = vadd.xlane.f32.xlu1 %v6345_v35  ;;  %v9357_v41 = vpop.eup %9356  ;;  %v6351_v17 = vsel %vm768_vm0, %v6350_v51, 0.0  ;;  %v6362_v31 = vmul.f32 %v9355_v33, %v11886_v23  ;;  %v11444_v28 = vadd.f32 %v11887_v24, %v6666_v3 }
0x393a   : > { %6334 = vadd.xlane.f32.xlu0 %v6333_v47  ;;  %v9359_v21 = vpop.eup %9358  ;;  %v6369_v19 = vsel %vm768_vm0, %v6368_v55, 0.0  ;;  %v6380_v13 = vmul.f32 %v9357_v41, %v11886_v23  ;;  %v8877_v4 = vpop.f32.mrf.mxu0 }
0x393b   : > { %v6363_v62 = vsel %vm768_vm0, %v6362_v31, 0.0  ;;  %v6374_v26 = vmul.f32 %v9359_v21, %v11886_v23 }
0x393c   : > { %v6381_v6 = vsel %vm768_vm0, %v6380_v13, 0.0 }
0x393d   : > { %6358 = vadd.xlane.f32.xlu1 %v6357_v9  ;;  %v6375_v29 = vsel %vm768_vm0, %v6374_v26, 0.0 }
0x393e   : > { %6352 = vadd.xlane.f32.xlu0 %v6351_v17 }
0x3941   : > { %6370 = vadd.xlane.f32.xlu1 %v6369_v19 }
0x3942   : > { %6364 = vadd.xlane.f32.xlu0 %v6363_v62 }
0x3945   : > { %6382 = vadd.xlane.f32.xlu1 %v6381_v6 }
0x3946   : > { %6376 = vadd.xlane.f32.xlu0 %v6375_v29 }
0x395c   : > { %6678 = vrot.lane.b32.xlu0 %v11444_v28, %s9460_s30 }
0x39be   : > { %v6341_v10 = vpop.xlane.xlu1 %6340 }
0x39bf   : > { %v6329_v23 = vpop.xlane.xlu0 %6328 }
0x39c2   : > { %v6347_v22 = vpop.xlane.xlu1 %6346 }
0x39c3   : > { %v6335_v30 = vpop.xlane.xlu0 %6334 }
0x39c4   : > { %v6384_v59 = vmax.f32 %v6329_v23, %v6335_v30 }
0x39c6   : > { %v6385_v35 = vmax.f32 %v6384_v59, %v6341_v10  ;;  %v6359_v42 = vpop.xlane.xlu1 %6358 }
0x39c7   : > { %v6353_v37 = vpop.xlane.xlu0 %6352 }
0x39c8   : > { %v6386_v47 = vmax.f32 %v6385_v35, %v6347_v22 }
0x39ca   : > { %v6387_v51 = vmax.f32 %v6386_v47, %v6353_v37  ;;  %v6371_v55 = vpop.xlane.xlu1 %6370 }
0x39cb   : > { %v6365_v33 = vpop.xlane.xlu0 %6364 }
0x39cc   : > { %v6388_v9 = vmax.f32 %v6387_v51, %v6359_v42 }
0x39ce   : > { %v6389_v41 = vmax.f32 %v6388_v9, %v6365_v33  ;;  %v6383_v19 = vpop.xlane.xlu1 %6382 }
0x39cf   : > { %v6377_v31 = vpop.xlane.xlu0 %6376 }
0x39d0   : > { %v6390_v17 = vmax.f32 %v6389_v41, %v6371_v55 }
0x39d2   : > { %v6391_v21 = vmax.f32 %v6390_v17, %v6377_v31 }
0x39d4   : > { %v6392_v13 = vmax.f32 %v6391_v21, %v6383_v19 }
0x39d6   : > { %v6393_v62 = vsub.f32 %v6329_v23, %v6392_v13  ;;  %v6396_v26 = vsub.f32 %v6335_v30, %v6392_v13  ;;  %v6399_v6 = vsub.f32 %v6341_v10, %v6392_v13  ;;  %v6402_v29 = vsub.f32 %v6347_v22, %v6392_v13 }
0x39d7   : > { %v6405_v59 = vsub.f32 %v6353_v37, %v6392_v13  ;;  %v6408_v35 = vsub.f32 %v6359_v42, %v6392_v13  ;;  %v6411_v51 = vsub.f32 %v6365_v33, %v6392_v13  ;;  %v6414_v41 = vsub.f32 %v6371_v55, %v6392_v13 }
0x39d8   : > { %v6394_v15 = vmul.f32 1.442695, %v6393_v62  ;;  %v6397_v3 = vmul.f32 1.442695, %v6396_v26  ;;  %v6400_v24 = vmul.f32 1.442695, %v6399_v6  ;;  %v6417_v23 = vsub.f32 %v6377_v31, %v6392_v13 }
0x39d9   : > { %v6403_v4 = vmul.f32 1.442695, %v6402_v29  ;;  %v6406_v47 = vmul.f32 1.442695, %v6405_v59  ;;  %v6409_v9 = vmul.f32 1.442695, %v6408_v35  ;;  %v6420_v22 = vsub.f32 %v6383_v19, %v6392_v13 }
0x39da   : > { %9360 = vpow2.f32 %v6394_v15  ;;  %v6412_v17 = vmul.f32 1.442695, %v6411_v51  ;;  %v6415_v10 = vmul.f32 1.442695, %v6414_v41  ;;  %v6418_v30 = vmul.f32 1.442695, %v6417_v23 }
0x39db   : > { %9362 = vpow2.f32 %v6397_v3  ;;  %v6421_v37 = vmul.f32 1.442695, %v6420_v22 }
0x39dc   : > { %9364 = vpow2.f32 %v6400_v24 }
0x39dd   : > { %9366 = vpow2.f32 %v6403_v4 }
0x39de   : > { %9368 = vpow2.f32 %v6406_v47 }
0x39df   : > { %9370 = vpow2.f32 %v6409_v9 }
0x39e0   : > { %9372 = vpow2.f32 %v6412_v17 }
0x39e1   : > { %9374 = vpow2.f32 %v6415_v10 }
0x39e2   : > { %9376 = vpow2.f32 %v6418_v30 }
0x39e3   : > { %9378 = vpow2.f32 %v6421_v37 }
0x39e7   : > { %v9361_v21 = vpop.eup %9360 }
0x39e8   : > { %v9363_v62 = vpop.eup %9362  ;;  %v6432_v42 = vmul.f32 %v9361_v21, %v10139_v25 }
0x39e9   : > { %v9365_v26 = vpop.eup %9364  ;;  %v6423_v6 = vadd.f32 %v9363_v62, %v9361_v21  ;;  %v6433_v33 = vmul.f32 %v9363_v62, %v10143_v56 }
0x39ea   : > { %v9367_v55 = vpop.eup %9366  ;;  %v6435_v15 = vmul.f32 %v9365_v26, %v10147_v57 }
0x39eb   : > { %v6424_v29 = vadd.f32 %v9365_v26, %v6423_v6  ;;  %v6434_v31 = vadd.f32 %v6433_v33, %v6432_v42  ;;  %v6437_v3 = vmul.f32 %v9367_v55, %v10151_v11  ;;  %v9369_v24 = vpop.eup %9368 }
0x39ec   : > { %v9371_v35 = vpop.eup %9370  ;;  %v6439_v51 = vmul.f32 %v9369_v24, %v10155_v12 }
0x39ed   : > { %v6425_v19 = vadd.f32 %v9367_v55, %v6424_v29  ;;  %v6436_v13 = vadd.f32 %v6435_v15, %v6434_v31  ;;  %v9373_v9 = vpop.eup %9372  ;;  %v6441_v22 = vmul.f32 %v9371_v35, %v10159_v49 }
0x39ee   : > { %v9375_v23 = vpop.eup %9374  ;;  %v6443_v26 = vmul.f32 %v9373_v9, %v10163_v58 }
0x39ef   : > { %v6426_v4 = vadd.f32 %v9369_v24, %v6425_v19  ;;  %v6438_v59 = vadd.f32 %v6437_v3, %v6436_v13  ;;  %v9377_v30 = vpop.eup %9376  ;;  %v6445_v33 = vmul.f32 %v9375_v23, %v10167_v14  ;;  %v6707_v24 = vld [vmem:[%s11761_s21 + $0x38] sm:$0xff] }
0x39f0   : > { %v9379_v62 = vpop.eup %9378  ;;  %v6447_v29 = vmul.f32 %v9377_v30, %v10171_v16 }
0x39f1   : > { %v6427_v47 = vadd.f32 %v9371_v35, %v6426_v4  ;;  %v6440_v17 = vadd.f32 %v6439_v51, %v6438_v59  ;;  %v6449_v15 = vmul.f32 %v9379_v62, %v10175_v18  ;;  %v6706_v4 = vld [vmem:[%s11761_s21 + $0x30] sm:$0xff]  ;;  %v6705_v59 = vld [vmem:[%s11761_s21 + $0x28] sm:$0xff]  ;;  %v6704_v35 = vld [vmem:[%s11761_s21 + $0x20] sm:$0xff] }
0x39f2   : > { %v6702_v51 = vld [vmem:[%s11761_s21 + $0x10] sm:$0xff] }
0x39f3   : > { %v6428_v41 = vadd.f32 %v9373_v9, %v6427_v47  ;;  %v6442_v37 = vadd.f32 %v6441_v22, %v6440_v17  ;;  %v6703_v47 = vld [vmem:[%s11761_s21 + $0x18] sm:$0xff]  ;;  %v6701_v9 = vld [vmem:[%s11761_s21 + $0x8] sm:$0xff] }
0x39f5   : > { %v6429_v10 = vadd.f32 %v9375_v23, %v6428_v41  ;;  %v6444_v6 = vadd.f32 %v6443_v26, %v6442_v37  ;;  %v6700_v41 = vld [vmem:[%s11761_s21] sm:$0xff] }
0x39f7   : > { %v6430_v21 = vadd.f32 %v9377_v30, %v6429_v10  ;;  %v6446_v55 = vadd.f32 %v6445_v33, %v6444_v6  ;;  %v6679_v6 = vpop.permute.xlu0 %6678 }
0x39f9   : > { %v6431_v42 = vadd.f32 %v9379_v62, %v6430_v21  ;;  %v6448_v31 = vadd.f32 %v6447_v29, %v6446_v55 }
0x39fb   : > { %9380 = vrcp.f32 %v6431_v42  ;;  %v6450_v19 = vadd.f32 %v6449_v15, %v6448_v31  ;;  %v6697_v15 = vld [vmem:[%s11760_s20 + $0x8] sm:$0xff] }
0x3a08   : > { %v9381_v13 = vpop.eup %9380 }
0x3a09   : > { %v6452_v3 = vmul.f32 %v9381_v13, %v6450_v19  ;;  %v6696_v19 = vld [vmem:[%s11760_s20] sm:$0xff] }
0x3a0b   : > { %8858 = vmatmul.mubr.msk.f32.vlgmr.msra.gmra.mxu1 %vm952_vm2, %v6452_v3 }
0x3a0c   : > { %8879 = vmatpush3.msra.mxu1 %v6707_v24  ;;  %8894 = vmatprep.mubr.msk.f32.mxu1 %vm9461_vm3, %v11877_v43 }
0x3a0d   : > { %8880 = vmatprep.subr.mxu1 %v11877_v43 }
0x3a0e   : > { %8881 = vmatpush3.msra.mxu1 %v6706_v4 }
0x3a0f   : > { %8882 = vmatprep.subr.mxu1 %v11877_v43 }
0x3a10   : > { %8883 = vmatpush3.msra.mxu1 %v6705_v59 }
0x3a11   : > { %8884 = vmatprep.subr.mxu1 %v11877_v43 }
0x3a12   : > { %8885 = vmatpush3.msra.mxu1 %v6704_v35 }
0x3a13   : > { %8886 = vmatprep.subr.mxu1 %v11877_v43 }
0x3a14   : > { %8887 = vmatpush3.msra.mxu1 %v6703_v47  ;;  %v6854_v47 = vld [vmem:[%s11762_s22 + $0x8] sm:$0xff] }
0x3a15   : > { %8888 = vmatprep.subr.mxu1 %v11877_v43 }
0x3a16   : > { %8889 = vmatpush3.msra.mxu1 %v6702_v51 }
0x3a17   : > { %8890 = vmatprep.subr.mxu1 %v11877_v43 }
0x3a18   : > { %8891 = vmatpush3.msra.mxu1 %v6701_v9  ;;  %v6853_v9 = vld [vmem:[%s11762_s22] sm:$0xff] }
0x3a19   : > { %8892 = vmatprep.subr.mxu1 %v11877_v43 }
0x3a1a   : > { %8893 = vmatpush3.msra.mxu1 %v6700_v41 }
0x3a1b   : > { %8895 = vmatmul.mubr.msk.f32.vlgmr.msra.gmra.mxu1 %vm952_vm2, %v6452_v3 }
0x3acb   : > { %v6522_v17 = vpop.f32.mrf.mxu1 }
0x3acc   : > { %v6596_v23 = vadd.f32 %v11441_v52, %v6522_v17  ;;  %v6699_v52 = vld [vmem:[%s11760_s20 + $0x18] sm:$0xff] }
0x3acd   : > { %v8859_v10 = vpop.f32.mrf.mxu1  ;;  %8898 = vmatpush3.msra.mxu0 %v6699_v52 }
0x3ace   : > { %v6599_v22 = vadd.f32 %v10457_v34, %v6596_v23  ;;  %8899 = vmatprep.subr.mxu0 %v11877_v43  ;;  %v7949_v10 = vld [vmem:[%s11763_s23] ss:$0 sm:$0xff] }
0x3ad0   : > { %v6670_v30 = vadd.f32 %v11444_v28, %v6599_v22  ;;  %v6698_v28 = vld [vmem:[%s11760_s20 + $0x10] sm:$0xff] }
0x3ad1   : > { %8900 = vmatpush3.msra.mxu0 %v6698_v28 }
0x3ad2   : > { %v7945_v21 = vmul.f32 -1.442695, %v6670_v30  ;;  %8901 = vmatprep.subr.mxu0 %v11877_v43 }
0x3ad3   : > { %8902 = vmatpush3.msra.mxu0 %v6697_v15 }
0x3ad4   : > { %9382 = vpow2.f32 %v7945_v21  ;;  %8903 = vmatprep.subr.mxu0 %v11877_v43 }
0x3ad5   : > { %8904 = vmatpush3.msra.mxu0 %v6696_v19 }
0x3ad6   : > { %8908 = vmatprep.subr.mxu0 %v11877_v43 }
0x3adb   : > { %v6774_v37 = vpop.f32.mrf.mxu1 }
0x3add   : > { %v8896_v62 = vpop.f32.mrf.mxu1 }
0x3ae1   : > { %v9383_v42 = vpop.eup %9382 }
0x3ae2   : > { %v6674_v26 = vadd.f32 1.0, %v9383_v42 }
0x3ae4   : > { %9384 = vrcp.f32 %v6674_v26 }
0x3af1   : > { %v9385_v33 = vpop.eup %9384 }
0x3af2   : > { %v6681_v55 = vmul.f32 %v9385_v33, %v6679_v6  ;;  %v6688_v3 = vsub.f32 1.0, %v9385_v33  ;;  %v6694_v59 = vmul.f32 %v9385_v33, %v11310_v8 }
0x3af4   : > { %6683 = vrot.lane.b32.xlu1 %v6681_v55, %s9460_s30 }
0x3b66   : > { %v6684_v29 = vpop.permute.xlu1 %6683 }
0x3b67   : > { %v6686_v31 = vadd.f32 %v6684_v29, %v6599_v22 }
0x3b69   : > { %9386 = vtanh.f32 %v6686_v31 }
0x3b76   : > { %v9387_v13 = vpop.eup %9386 }
0x3b77   : > { %6690 = vrot.lane.b32.xlu1 %v9387_v13, %s9462_s1 }
0x3be9   : > { %v6691_v24 = vpop.permute.xlu1 %6690 }
0x3bea   : > { %v6693_v4 = vmul.f32 %v6691_v24, %v6688_v3 }
0x3bec   : > { %v11515_v35 = vadd.f32 %v6694_v59, %v6693_v4 }
0x3bee   : > { %6779 = vrot.lane.b32.xlu1 %v11515_v35, %s9462_s1 }
0x3c60   : > { %v11522_v51 = vpop.permute.xlu1 %6779 }
0x3c61   : > { %8906 = vmatmul.mubr.msk.f32.vlgmr.msra.gmra.mxu0 %vm768_vm0, %v11522_v51 }
0x3c62   : > { %8909 = vmatpush3.msra.mxu0 %v6854_v47  ;;  %8912 = vmatprep.mubr.msk.f32.mxu0 %vm9461_vm3, %v11877_v43 }
0x3c63   : > { %8910 = vmatprep.subr.mxu0 %v11877_v43 }
0x3c64   : > { %8911 = vmatpush3.msra.mxu0 %v6853_v9 }
0x3c65   : > { %8913 = vmatmul.mubr.msk.f32.vlgmr.msra.gmra.mxu0 %vm2206_vm4, %v11393_v27 }
0x3d21   : > { %v6849_v8 = vpop.f32.mrf.mxu0 }
0x3d22   : > { %v6850_v17 = vadd.f32 %v6849_v8, %v6774_v37 }
0x3d23   : > { %v8907_v41 = vpop.f32.mrf.mxu0 }
0x3d25   : > { %v6921_v23 = vpop.f32.mrf.mxu0 }
0x3d26   : > { %v6925_v22 = vadd.f32 %v6921_v23, %v6850_v17  ;;  %6939 = sbr.rel (%p7951_p5) target bundleno = 15661 (0x3d2d), region = 156 }
0x3d27   : > { %v8914_v30 = vpop.f32.mrf.mxu0 }
0x3d28   : > { %v6933_v21 = vadd.f32 %v7949_v10, %v6925_v22 }
0x3d2a   : > { %6934 = vst [vmem:[%s10505_s4 + $0x30] sm:$0xff] %v6933_v21 }
0x3d2b   : > { %v7952_v43 = vld [vmem:[%s10199_s5 + $0x30] sm:$0xff] }
0x3d2c   : > { %6942 = vst.msk [vmem:[#allocation3] sm:$0xff] %vm2206_vm4, %v7952_v43 }
0x3d2d PF: > { %p7953_p6 = scmp.ne.s32.totalorder %s7950_s8, 0 }
0x3d2e   : > { %s11889_s29 = sld [smem:[#allocation20_spill]] (!%p7953_p6) }
0x3d2f   : > { %6946 = sbr.rel (%p7953_p6) target bundleno = 16293 (0x3fa5), region = 160 }
0x3d34   : > { %v6949_v27 = vsel %vm768_vm0, %v6933_v21, -inf  ;;  %v11888_v37 = vlaneseq  ;;  %v6975_v29 = vld [vmem:[%s11889_s29 + $0x18] sm:$0xff]  ;;  %v9474_v31 = vmov 0.0   ;;  %v6974_v13 = vld [vmem:[%s11889_s29 + $0x10] sm:$0xff]  ;;  %v6973_v3 = vld [vmem:[%s11889_s29 + $0x8] sm:$0xff]  ;;  %vm9475_vm15 = vmmov 0  }
0x3d35   : > { %6950 = vmax.xlane.f32.xlu0 %v6949_v27  ;;  %8915 = vmatprep.subr.mxu0 %v9474_v31  ;;  %v6972_v24 = vld [vmem:[%s11889_s29] sm:$0xff] }
0x3d36   : > { %v6948_v62 = vand.u32 127, %v11888_v37  ;;  %8916 = vmatpush3.msra.mxu0 %v6975_v29  ;;  %8923 = vmatprep.mubr.msk.f32.mxu0 %vm9475_vm15, %v9474_v31 }
0x3d37   : > { %8917 = vmatprep.subr.mxu0 %v9474_v31 }
0x3d38   : > { %8918 = vmatpush3.msra.mxu0 %v6974_v13 }
0x3d39   : > { %8919 = vmatprep.subr.mxu0 %v9474_v31 }
0x3d3a   : > { %8920 = vmatpush3.msra.mxu0 %v6973_v3 }
0x3d3b   : > { %8921 = vmatprep.subr.mxu0 %v9474_v31 }
0x3d3c   : > { %8922 = vmatpush3.msra.mxu0 %v6972_v24 }
0x3dbe   : > { %v6951_v42 = vpop.xlane.xlu0 %6950 }
0x3dbf   : > { %vm6952_vm13 = vcmp.ge.f32.partialorder %v6933_v21, %v6951_v42 }
0x3dc0   : > { %v6953_v26 = vsel %vm6952_vm13, %v6948_v62, 32 }
0x3dc1   : > { %v6954_v6 = vsel %vm768_vm0, %v6953_v26, 2147483647 }
0x3dc2   : > { %v6956_v33 = vshra.s32 %v6954_v6, 16  ;;  %v6955_v52 = vand.u32 65535, %v6954_v6 }
0x3dc4   : > { %v6958_v55 = vcvt.s32.f32 %v6956_v33  ;;  %v6957_v15 = vcvt.s32.f32 %v6955_v52 }
0x3dc6   : > { %6959 = vmin.xlane.f32.xlu0 %v6958_v55 }
0x3e4f   : > { %v6960_v28 = vpop.xlane.xlu0 %6959 }
0x3e50   : > { %vm6961_vm14 = vcmp.eq.f32.partialorder %v6958_v55, %v6960_v28  ;;  %v6966_v4 = vcvt.f32.s32 %v6960_v28 }
0x3e51   : > { %v6962_v19 = vsel %vm6961_vm14, %v6957_v15, inf }
0x3e52   : > { %6963 = vmin.xlane.f32.xlu1 %v6962_v19  ;;  %v6967_v47 = vshll.u32 %v6966_v4, 16 }
0x3edb   : > { %v6964_v59 = vpop.xlane.xlu1 %6963 }
0x3edc   : > { %v6965_v9 = vcvt.f32.s32 %v6964_v59 }
0x3ede   : > { %v6968_v8 = vadd.s32 %v6967_v47, %v6965_v9 }
0x3ee0   : > { %vm6969_vm1 = vcmp.eq.s32.totalorder %v6948_v62, %v6968_v8 }
0x3ee1   : > { %v7954_v41 = vsel %vm6969_vm1, 1.0, %v9474_v31 }
0x3ee2   : > { %8924 = vmatmul.mubr.msk.f32.vlgmr.msra.gmra.mxu0 %vm768_vm0, %v7954_v41 }
0x3fa2   : > { %v7045_v17 = vpop.f32.mrf.mxu0 }
0x3fa3   : > { %7049 = vst.msk [vmem:[#allocation3] sm:$0xff] %vm2206_vm4, %v7045_v17 }
0x3fa4   : > { %v8925_v23 = vpop.f32.mrf.mxu0 }
0x3fa5 PF: > { %v11890_v10 = vmov 0.0   ;;  %s11891_s5 = sld [smem:[#allocation19_spill]]  ;;  %v11899_v21 = vld [vmem:[#allocation14_spill] sm:$0xff] }
0x3fa6   : > { %8926 = vmatprep.subr.mxu0 %v11890_v10  ;;  %8934 = vmatprep.mubr.msk.f32.mxu0 %vm9461_vm3, %v11890_v10 }
0x3fa7   : > { %8927 = vmatpush3.msra.mxu0 %v10184_v20  ;;  %8937 = vmatprep.subr.mxu1 %v11890_v10 }
0x3fa8   : > { %8928 = vmatprep.subr.mxu0 %v11890_v10  ;;  %8938 = vmatpush3.msra.mxu1 %v10356_v45 }
0x3fa9   : > { %8929 = vmatpush3.msra.mxu0 %v10192_v0  ;;  %8939 = vmatprep.subr.mxu1 %v11890_v10 }
0x3faa   : > { %8930 = vmatprep.subr.mxu0 %v11890_v10  ;;  %8940 = vmatpush3.msra.mxu1 %v10361_v46  ;;  %v7050_v20 = vld [vmem:[#allocation3] sm:$0xff] }
0x3fab   : > { %8931 = vmatpush3.msra.mxu0 %v10207_v50  ;;  %8941 = vmatprep.subr.mxu1 %v11890_v10  ;;  %v7956_v0 = vld [vmem:[%s11891_s5 + $0x7] ss:$0 sm:$0xff] }
0x3fac   : > { %8932 = vmatprep.subr.mxu0 %v11890_v10  ;;  %8942 = vmatpush3.msra.mxu1 %v10374_v48  ;;  %v11598_v50 = vadd.f32 %v7956_v0, %v7050_v20  ;;  %v11894_v48 = vld [vmem:[#allocation8_spill] sm:$0xff] }
0x3fad   : > { %8933 = vmatpush3.msra.mxu0 %v10215_v53  ;;  %8943 = vmatprep.subr.mxu1 %v11890_v10 }
0x3fae   : > { %8935 = vmatmul.mubr.msk.f32.vlgmr.msra.gmra.mxu0 %vm768_vm0, %v11522_v51  ;;  %8956 = vmatprep.subr.mxu0 %v11890_v10 }
0x3faf   : > { %8957 = vmatpush3.msra.mxu0 %v10228_v54  ;;  %8960 = vmatprep.mubr.msk.f32.mxu0 %vm9461_vm3, %v11890_v10 }
0x3fb0   : > { %8958 = vmatprep.subr.mxu0 %v11890_v10  ;;  %8944 = vmatpush3.msra.mxu1 %v10385_v63 }
0x3fb1   : > { %8959 = vmatpush3.msra.mxu0 %v10237_v36  ;;  %8945 = vmatprep.subr.mxu1 %v11890_v10 }
0x3fb2   : > { %8963 = vmatprep.subr.mxu0 %v11890_v10  ;;  %8946 = vmatpush3.msra.mxu1 %v10396_v61  ;;  %v11895_v61 = vld [vmem:[#allocation12_spill] sm:$0xff] }
0x3fb3   : > { %8947 = vmatprep.subr.mxu1 %v11890_v10  ;;  %8953 = vmatprep.mubr.msk.f32.mxu1 %vm9461_vm3, %v11890_v10 }
0x3fb4   : > { %8948 = vmatpush3.msra.mxu1 %v10407_v7  ;;  %8961 = vmatmul.mubr.msk.f32.vlgmr.msra.gmra.mxu0 %vm2206_vm4, %v11598_v50 }
0x3fb5   : > { %8949 = vmatprep.subr.mxu1 %v11890_v10  ;;  %8964 = vmatpush3.msra.mxu0 %v10248_v38 }
0x3fb6   : > { %8950 = vmatpush3.msra.mxu1 %v10418_v2  ;;  %8971 = vmatprep.mubr.msk.f32.mxu0 %vm9461_vm3, %v11890_v10 }
0x3fb7   : > { %8951 = vmatprep.subr.mxu1 %v11890_v10  ;;  %8965 = vmatprep.subr.mxu0 %v11890_v10 }
0x3fb8   : > { %8952 = vmatpush3.msra.mxu1 %v10429_v5  ;;  %8966 = vmatpush3.msra.mxu0 %v10257_v60  ;;  %v11898_v5 = vld [vmem:[#allocation10_spill] sm:$0xff] }
0x3fb9   : > { %8974 = vmatprep.subr.mxu1 %v11890_v10  ;;  %8967 = vmatprep.subr.mxu0 %v11890_v10 }
0x3fba   : > { %8968 = vmatpush3.msra.mxu0 %v10266_v39  ;;  %v11892_v39 = vld [vmem:[#allocation7_spill] sm:$0xff] }
0x3fbb   : > { %8969 = vmatprep.subr.mxu0 %v11890_v10 }
0x3fbc   : > { %8970 = vmatpush3.msra.mxu0 %v10273_v40  ;;  %v11893_v40 = vld [vmem:[#allocation11_spill] sm:$0xff] }
0x3fbd   : > { %8972 = vmatmul.mubr.msk.f32.vlgmr.msra.gmra.mxu0 %vm768_vm0, %v11522_v51  ;;  %8993 = vmatprep.subr.mxu0 %v11890_v10 }
0x3fbe   : > { %9001 = vmatprep.mubr.msk.f32.mxu0 %vm9461_vm3, %v11890_v10 }
0x406e   : > { %v7123_v53 = vpop.f32.mrf.mxu0 }
0x406f   : > { %v7139_v54 = vadd.f32 %v7123_v53, %v10292_v44  ;;  %v7127_v36 = vadd.f32 %v7123_v53, %v10288_v32  ;;  %v7145_v38 = vadd.f32 %v7123_v53, %v10299_v1  ;;  %v7133_v45 = vadd.f32 %v7123_v53, %v11892_v39  ;;  %v11896_v44 = vld [vmem:[#allocation9_spill] sm:$0xff] }
0x4070   : > { %v8936_v60 = vpop.f32.mrf.mxu0  ;;  %v7157_v46 = vadd.f32 %v7123_v53, %v11893_v40  ;;  %v7151_v63 = vadd.f32 %v7123_v53, %v11894_v48  ;;  %v7169_v7 = vadd.f32 %v7123_v53, %v11895_v61  ;;  %v7163_v2 = vadd.f32 %v7123_v53, %v11896_v44  ;;  %v11897_v32 = vld [vmem:[#allocation13_spill] sm:$0xff] }
0x4071   : > { %9388 = vtanh.f32 %v7139_v54  ;;  %v7181_v1 = vadd.f32 %v7123_v53, %v11897_v32  ;;  %v7175_v51 = vadd.f32 %v7123_v53, %v11898_v5 }
0x4072   : > { %9390 = vtanh.f32 %v7127_v36 }
0x4073   : > { %9392 = vtanh.f32 %v7145_v38  ;;  %v11900_v38 = vld [vmem:[#allocation15_spill] sm:$0xff] }
0x4074   : > { %9394 = vtanh.f32 %v7133_v45  ;;  %v11646_v53 = vpop.f32.mrf.mxu0 }
0x4075   : > { %9396 = vtanh.f32 %v7157_v46 }
0x4076   : > { %9398 = vtanh.f32 %v7151_v63  ;;  %v8962_v54 = vpop.f32.mrf.mxu0 }
0x4077   : > { %9400 = vtanh.f32 %v7169_v7 }
0x4078   : > { %9402 = vtanh.f32 %v7163_v2 }
0x4079   : > { %9404 = vtanh.f32 %v7181_v1 }
0x407a   : > { %9406 = vtanh.f32 %v7175_v51 }
0x407d   : > { %v7469_v36 = vpop.f32.mrf.mxu0 }
0x407e   : > { %v9389_v22 = vpop.eup %9388  ;;  %v11649_v60 = vadd.f32 %v11900_v38, %v7469_v36 }
0x407f   : > { %v9391_v30 = vpop.eup %9390  ;;  %v7141_v43 = vmul.f32 %v9389_v22, %v11899_v21  ;;  %v8973_v39 = vpop.f32.mrf.mxu0 }
0x4080   : > { %v9393_v27 = vpop.eup %9392  ;;  %v7129_v37 = vmul.f32 %v9391_v30, %v11899_v21 }
0x4081   : > { %v9395_v62 = vpop.eup %9394  ;;  %v7142_v42 = vsel %vm768_vm0, %v7141_v43, 0.0  ;;  %v7147_v26 = vmul.f32 %v9393_v27, %v11899_v21 }
0x4082   : > { %v9397_v6 = vpop.eup %9396  ;;  %7143 = vadd.xlane.f32.xlu1 %v7142_v42  ;;  %v7130_v33 = vsel %vm768_vm0, %v7129_v37, 0.0  ;;  %v7135_v55 = vmul.f32 %v9395_v62, %v11899_v21 }
0x4083   : > { %v9399_v29 = vpop.eup %9398  ;;  %7131 = vadd.xlane.f32.xlu0 %v7130_v33  ;;  %v7148_v31 = vsel %vm768_vm0, %v7147_v26, 0.0  ;;  %v7159_v52 = vmul.f32 %v9397_v6, %v11899_v21 }
0x4084   : > { %v9401_v28 = vpop.eup %9400  ;;  %v7136_v15 = vsel %vm768_vm0, %v7135_v55, 0.0  ;;  %v7153_v19 = vmul.f32 %v9399_v29, %v11899_v21 }
0x4085   : > { %v9403_v13 = vpop.eup %9402  ;;  %v7160_v3 = vsel %vm768_vm0, %v7159_v52, 0.0  ;;  %v7171_v24 = vmul.f32 %v9401_v28, %v11899_v21 }
0x4086   : > { %7149 = vadd.xlane.f32.xlu1 %v7148_v31  ;;  %v9405_v4 = vpop.eup %9404  ;;  %v7154_v59 = vsel %vm768_vm0, %v7153_v19, 0.0  ;;  %v7165_v47 = vmul.f32 %v9403_v13, %v11899_v21 }
0x4087   : > { %7137 = vadd.xlane.f32.xlu0 %v7136_v15  ;;  %v9407_v9 = vpop.eup %9406  ;;  %v7172_v8 = vsel %vm768_vm0, %v7171_v24, 0.0  ;;  %v7183_v41 = vmul.f32 %v9405_v4, %v11899_v21 }
0x4088   : > { %v7166_v17 = vsel %vm768_vm0, %v7165_v47, 0.0  ;;  %v7177_v23 = vmul.f32 %v9407_v9, %v11899_v21 }
0x4089   : > { %v7184_v20 = vsel %vm768_vm0, %v7183_v41, 0.0 }
0x408a   : > { %7161 = vadd.xlane.f32.xlu1 %v7160_v3  ;;  %v7178_v0 = vsel %vm768_vm0, %v7177_v23, 0.0 }
0x408b   : > { %7155 = vadd.xlane.f32.xlu0 %v7154_v59 }
0x408e   : > { %7173 = vadd.xlane.f32.xlu1 %v7172_v8 }
0x408f   : > { %7167 = vadd.xlane.f32.xlu0 %v7166_v17 }
0x4092   : > { %7185 = vadd.xlane.f32.xlu1 %v7184_v20 }
0x4093   : > { %7179 = vadd.xlane.f32.xlu0 %v7178_v0 }
0x40a9   : > { %7481 = vrot.lane.b32.xlu0 %v11649_v60, %s9460_s30 }
0x410b   : > { %v7144_v45 = vpop.xlane.xlu1 %7143 }
0x410c   : > { %v7132_v40 = vpop.xlane.xlu0 %7131 }
0x410f   : > { %v7150_v46 = vpop.xlane.xlu1 %7149 }
0x4110   : > { %v7138_v48 = vpop.xlane.xlu0 %7137 }
0x4111   : > { %v7187_v63 = vmax.f32 %v7132_v40, %v7138_v48 }
0x4113   : > { %v7188_v61 = vmax.f32 %v7187_v63, %v7144_v45  ;;  %v7162_v7 = vpop.xlane.xlu1 %7161 }
0x4114   : > { %v7156_v44 = vpop.xlane.xlu0 %7155 }
0x4115   : > { %v7189_v2 = vmax.f32 %v7188_v61, %v7150_v46 }
0x4117   : > { %v7190_v32 = vmax.f32 %v7189_v2, %v7156_v44  ;;  %v7174_v51 = vpop.xlane.xlu1 %7173 }
0x4118   : > { %v7168_v1 = vpop.xlane.xlu0 %7167 }
0x4119   : > { %v7191_v5 = vmax.f32 %v7190_v32, %v7162_v7 }
0x411b   : > { %v7192_v22 = vmax.f32 %v7191_v5, %v7168_v1  ;;  %v7186_v27 = vpop.xlane.xlu1 %7185 }
0x411c   : > { %v7180_v21 = vpop.xlane.xlu0 %7179 }
0x411d   : > { %v7193_v30 = vmax.f32 %v7192_v22, %v7174_v51 }
0x411f   : > { %v7194_v43 = vmax.f32 %v7193_v30, %v7180_v21 }
0x4121   : > { %v7195_v37 = vmax.f32 %v7194_v43, %v7186_v27 }
0x4123   : > { %v7196_v62 = vsub.f32 %v7132_v40, %v7195_v37  ;;  %v7199_v42 = vsub.f32 %v7138_v48, %v7195_v37  ;;  %v7202_v26 = vsub.f32 %v7144_v45, %v7195_v37  ;;  %v7205_v6 = vsub.f32 %v7150_v46, %v7195_v37 }
0x4124   : > { %v7208_v52 = vsub.f32 %v7156_v44, %v7195_v37  ;;  %v7211_v28 = vsub.f32 %v7162_v7, %v7195_v37  ;;  %v7214_v19 = vsub.f32 %v7168_v1, %v7195_v37  ;;  %v7217_v3 = vsub.f32 %v7174_v51, %v7195_v37 }
0x4125   : > { %v7197_v33 = vmul.f32 1.442695, %v7196_v62  ;;  %v7200_v55 = vmul.f32 1.442695, %v7199_v42  ;;  %v7203_v29 = vmul.f32 1.442695, %v7202_v26  ;;  %v7220_v4 = vsub.f32 %v7180_v21, %v7195_v37 }
0x4126   : > { %v7206_v31 = vmul.f32 1.442695, %v7205_v6  ;;  %v7209_v15 = vmul.f32 1.442695, %v7208_v52  ;;  %v7212_v13 = vmul.f32 1.442695, %v7211_v28  ;;  %v7223_v47 = vsub.f32 %v7186_v27, %v7195_v37 }
0x4127   : > { %9408 = vpow2.f32 %v7197_v33  ;;  %v7215_v24 = vmul.f32 1.442695, %v7214_v19  ;;  %v7218_v59 = vmul.f32 1.442695, %v7217_v3  ;;  %v7221_v9 = vmul.f32 1.442695, %v7220_v4 }
0x4128   : > { %9410 = vpow2.f32 %v7200_v55  ;;  %v7224_v41 = vmul.f32 1.442695, %v7223_v47  ;;  %v7504_v52 = vld [vmem:[%s11761_s21 + $0x8] sm:$0xff]  ;;  %v7503_v28 = vld [vmem:[%s11761_s21] sm:$0xff] }
0x4129   : > { %9412 = vpow2.f32 %v7203_v29  ;;  %v7510_v29 = vld [vmem:[%s11761_s21 + $0x38] sm:$0xff] }
0x412a   : > { %9414 = vpow2.f32 %v7206_v31  ;;  %v7505_v31 = vld [vmem:[%s11761_s21 + $0x10] sm:$0xff] }
0x412b   : > { %9416 = vpow2.f32 %v7209_v15 }
0x412c   : > { %9418 = vpow2.f32 %v7212_v13 }
0x412d   : > { %9420 = vpow2.f32 %v7215_v24 }
0x412e   : > { %9422 = vpow2.f32 %v7218_v59 }
0x412f   : > { %9424 = vpow2.f32 %v7221_v9 }
0x4130   : > { %9426 = vpow2.f32 %v7224_v41  ;;  %v7482_v41 = vpop.permute.xlu0 %7481 }
0x4134   : > { %v9409_v8 = vpop.eup %9408 }
0x4135   : > { %v9411_v17 = vpop.eup %9410  ;;  %v7235_v23 = vmul.f32 %v9409_v8, %v10139_v25 }
0x4136   : > { %v9413_v20 = vpop.eup %9412  ;;  %v7226_v0 = vadd.f32 %v9411_v17, %v9409_v8  ;;  %v7236_v54 = vmul.f32 %v9411_v17, %v10143_v56 }
0x4137   : > { %v9415_v36 = vpop.eup %9414  ;;  %v7238_v45 = vmul.f32 %v9413_v20, %v10147_v57 }
0x4138   : > { %v7227_v38 = vadd.f32 %v9413_v20, %v7226_v0  ;;  %v7237_v39 = vadd.f32 %v7236_v54, %v7235_v23  ;;  %v7240_v48 = vmul.f32 %v9415_v36, %v10151_v11  ;;  %v9417_v63 = vpop.eup %9416  ;;  %v7499_v54 = vld [vmem:[%s11760_s20] sm:$0xff] }
0x4139   : > { %v9419_v44 = vpop.eup %9418  ;;  %v7242_v2 = vmul.f32 %v9417_v63, %v10155_v12 }
0x413a   : > { %v7228_v40 = vadd.f32 %v9415_v36, %v7227_v38  ;;  %v7239_v46 = vadd.f32 %v7238_v45, %v7237_v39  ;;  %v9421_v32 = vpop.eup %9420  ;;  %v7244_v22 = vmul.f32 %v9419_v44, %v10159_v49 }
0x413b   : > { %v9423_v5 = vpop.eup %9422  ;;  %v7246_v11 = vmul.f32 %v9421_v32, %v10163_v58  ;;  %v7509_v58 = vld [vmem:[%s11761_s21 + $0x30] sm:$0xff] }
0x413c   : > { %v7229_v61 = vadd.f32 %v9417_v63, %v7228_v40  ;;  %v7241_v7 = vadd.f32 %v7240_v48, %v7239_v46  ;;  %v9425_v30 = vpop.eup %9424  ;;  %v7248_v62 = vmul.f32 %v9423_v5, %v10167_v14  ;;  %v7508_v14 = vld [vmem:[%s11761_s21 + $0x28] sm:$0xff] }
0x413d   : > { %v9427_v43 = vpop.eup %9426  ;;  %v7250_v12 = vmul.f32 %v9425_v30, %v10171_v16  ;;  %v7507_v16 = vld [vmem:[%s11761_s21 + $0x20] sm:$0xff]  ;;  %v7657_v48 = vld [vmem:[%s11762_s22 + $0x8] sm:$0xff] }
0x413e   : > { %v7230_v25 = vadd.f32 %v9419_v44, %v7229_v61  ;;  %v7243_v56 = vadd.f32 %v7242_v2, %v7241_v7  ;;  %v7252_v6 = vmul.f32 %v9427_v43, %v10175_v18  ;;  %v7506_v18 = vld [vmem:[%s11761_s21 + $0x18] sm:$0xff]  ;;  %v7656_v61 = vld [vmem:[%s11762_s22] sm:$0xff] }
0x413f   : > { %v7965_v2 = vld [vmem:[%s11763_s23] ss:$0 sm:$0xff] }
0x4140   : > { %v7231_v1 = vadd.f32 %v9421_v32, %v7230_v25  ;;  %v7245_v21 = vadd.f32 %v7244_v22, %v7243_v56 }
0x4142   : > { %v7232_v51 = vadd.f32 %v9423_v5, %v7231_v1  ;;  %v7247_v37 = vadd.f32 %v7246_v11, %v7245_v21 }
0x4144   : > { %v7233_v57 = vadd.f32 %v9425_v30, %v7232_v51  ;;  %v7249_v42 = vadd.f32 %v7248_v62, %v7247_v37 }
0x4146   : > { %v7234_v27 = vadd.f32 %v9427_v43, %v7233_v57  ;;  %v7251_v26 = vadd.f32 %v7250_v12, %v7249_v42 }
0x4148   : > { %9428 = vrcp.f32 %v7234_v27  ;;  %v7253_v33 = vadd.f32 %v7252_v6, %v7251_v26 }
0x4155   : > { %v9429_v55 = vpop.eup %9428 }
0x4156   : > { %v7255_v49 = vmul.f32 %v9429_v55, %v7253_v33 }
0x4158   : > { %8954 = vmatmul.mubr.msk.f32.vlgmr.msra.gmra.mxu1 %vm952_vm2, %v7255_v49 }
0x4159   : > { %8975 = vmatpush3.msra.mxu1 %v7510_v29  ;;  %8990 = vmatprep.mubr.msk.f32.mxu1 %vm9461_vm3, %v11890_v10 }
0x415a   : > { %8976 = vmatprep.subr.mxu1 %v11890_v10 }
0x415b   : > { %8977 = vmatpush3.msra.mxu1 %v7509_v58 }
0x415c   : > { %8978 = vmatprep.subr.mxu1 %v11890_v10 }
0x415d   : > { %8979 = vmatpush3.msra.mxu1 %v7508_v14 }
0x415e   : > { %8980 = vmatprep.subr.mxu1 %v11890_v10 }
0x415f   : > { %8981 = vmatpush3.msra.mxu1 %v7507_v16 }
0x4160   : > { %8982 = vmatprep.subr.mxu1 %v11890_v10 }
0x4161   : > { %8983 = vmatpush3.msra.mxu1 %v7506_v18 }
0x4162   : > { %8984 = vmatprep.subr.mxu1 %v11890_v10 }
0x4163   : > { %8985 = vmatpush3.msra.mxu1 %v7505_v31 }
0x4164   : > { %8986 = vmatprep.subr.mxu1 %v11890_v10 }
0x4165   : > { %8987 = vmatpush3.msra.mxu1 %v7504_v52 }
0x4166   : > { %8988 = vmatprep.subr.mxu1 %v11890_v10 }
0x4167   : > { %8989 = vmatpush3.msra.mxu1 %v7503_v28 }
0x4168   : > { %8991 = vmatmul.mubr.msk.f32.vlgmr.msra.gmra.mxu1 %vm952_vm2, %v7255_v49 }
0x4218   : > { %v7325_v15 = vpop.f32.mrf.mxu1 }
0x4219   : > { %v7399_v19 = vadd.f32 %v11646_v53, %v7325_v15  ;;  %v7501_v53 = vld [vmem:[%s11760_s20 + $0x10] sm:$0xff] }
0x421a   : > { %v8955_v13 = vpop.f32.mrf.mxu1 }
0x421b   : > { %v7402_v3 = vadd.f32 %v10457_v34, %v7399_v19  ;;  %v7502_v34 = vld [vmem:[%s11760_s20 + $0x18] sm:$0xff] }
0x421c   : > { %8994 = vmatpush3.msra.mxu0 %v7502_v34 }
0x421d   : > { %v7473_v24 = vadd.f32 %v11649_v60, %v7402_v3  ;;  %8995 = vmatprep.subr.mxu0 %v11890_v10  ;;  %v7500_v60 = vld [vmem:[%s11760_s20 + $0x8] sm:$0xff] }
0x421e   : > { %8996 = vmatpush3.msra.mxu0 %v7501_v53 }
0x421f   : > { %v7961_v4 = vmul.f32 -1.442695, %v7473_v24  ;;  %8997 = vmatprep.subr.mxu0 %v11890_v10 }
0x4220   : > { %8998 = vmatpush3.msra.mxu0 %v7500_v60 }
0x4221   : > { %9430 = vpow2.f32 %v7961_v4  ;;  %8999 = vmatprep.subr.mxu0 %v11890_v10 }
0x4222   : > { %9000 = vmatpush3.msra.mxu0 %v7499_v54 }
0x4223   : > { %9004 = vmatprep.subr.mxu0 %v11890_v10 }
0x4228   : > { %v7577_v59 = vpop.f32.mrf.mxu1 }
0x422a   : > { %v8992_v47 = vpop.f32.mrf.mxu1 }
0x422e   : > { %v9431_v9 = vpop.eup %9430 }
0x422f   : > { %v7477_v8 = vadd.f32 1.0, %v9431_v9 }
0x4231   : > { %9432 = vrcp.f32 %v7477_v8 }
0x423e   : > { %v9433_v17 = vpop.eup %9432 }
0x423f   : > { %v7484_v23 = vmul.f32 %v9433_v17, %v7482_v41  ;;  %v7491_v38 = vsub.f32 1.0, %v9433_v17  ;;  %v7497_v40 = vmul.f32 %v9433_v17, %v11515_v35 }
0x4241   : > { %7486 = vrot.lane.b32.xlu1 %v7484_v23, %s9460_s30 }
0x42b3   : > { %v7487_v20 = vpop.permute.xlu1 %7486 }
0x42b4   : > { %v7489_v0 = vadd.f32 %v7487_v20, %v7402_v3 }
0x42b6   : > { %9434 = vtanh.f32 %v7489_v0 }
0x42c3   : > { %v9435_v36 = vpop.eup %9434 }
0x42c4   : > { %7493 = vrot.lane.b32.xlu1 %v9435_v36, %s9462_s1 }
0x4336   : > { %v7494_v39 = vpop.permute.xlu1 %7493 }
0x4337   : > { %v7496_v45 = vmul.f32 %v7494_v39, %v7491_v38 }
0x4339   : > { %v7498_v46 = vadd.f32 %v7497_v40, %v7496_v45 }
0x433b   : > { %7582 = vrot.lane.b32.xlu1 %v7498_v46, %s9462_s1 }
0x43ad   : > { %v7583_v63 = vpop.permute.xlu1 %7582 }
0x43ae   : > { %9002 = vmatmul.mubr.msk.f32.vlgmr.msra.gmra.mxu0 %vm768_vm0, %v7583_v63 }
0x43af   : > { %9005 = vmatpush3.msra.mxu0 %v7657_v48  ;;  %9008 = vmatprep.mubr.msk.f32.mxu0 %vm9461_vm3, %v11890_v10 }
0x43b0   : > { %9006 = vmatprep.subr.mxu0 %v11890_v10 }
0x43b1   : > { %9007 = vmatpush3.msra.mxu0 %v7656_v61 }
0x43b2   : > { %9009 = vmatmul.mubr.msk.f32.vlgmr.msra.gmra.mxu0 %vm2206_vm4, %v11598_v50 }
0x446e   : > { %v7652_v35 = vpop.f32.mrf.mxu0 }
0x446f   : > { %v7653_v44 = vadd.f32 %v7652_v35, %v7577_v59 }
0x4470   : > { %v9003_v7 = vpop.f32.mrf.mxu0 }
0x4472   : > { %v7724_v25 = vpop.f32.mrf.mxu0 }
0x4473   : > { %v7728_v32 = vadd.f32 %v7724_v25, %v7653_v44 }
0x4474   : > { %v9010_v1 = vpop.f32.mrf.mxu0 }
0x4475   : > { %v7736_v56 = vadd.f32 %v7965_v2, %v7728_v32 }
0x4477   : > { %7737 = vst [vmem:[%s10505_s4 + $0x38] sm:$0xff] %v7736_v56 }
0x4478 PF: > { %s40_s2 = sadd.s32 1, %s9456_s2  }
0x4479   : > { %p37_p7 = scmp.ge.s32.totalorder %s40_s2, 4  }
0x447b   :  { %39 = sbr.rel (!%p37_p7) target bundleno = 32 (0x20), region = 199 }

</bundles_post_ra>
